<compile_context>
chip_gen: v6e
topology: v6e:2x2x1
jax: 0.10.0
libtpu: 0.0.40
codegen_flags: <defaults>
</compile_context>

<pallas_src>
import numpy as np

import jax
import jax.numpy as jnp
from jax import lax
from jax.experimental import pallas as pl
from jax.experimental.pallas import tpu as pltpu

EPS = 1e-5
C1, C2, C3 = 32, 64, 128
LANE = 128
MXU_TILE = 256


def _round_up(x, m):
    return ((x + m - 1) // m) * m


def _mxu_pad(n):
    # Pad large inner dims to multiples of 256 (full MXU passes); leave small
    # dims (< 256) untouched.
    return _round_up(n, MXU_TILE) if n >= MXU_TILE else n


def _prelu(v, a):
    return jnp.where(v > 0, v, a * v)


def _default_batch_tile():
    # 512 keeps v5e inside its scoped-VMEM default; v6e/v7x get 1024.
    try:
        kind = jax.devices()[0].device_kind.lower()
    except Exception:
        return 512
    return 1024 if ("v6" in kind or "v7" in kind) else 512


# ----------------------------------------------------------------------------
# Kernel: one batch tile of B samples, whole network as 5 matmuls.
# ----------------------------------------------------------------------------
def make_kernel(latent_dim, n_classes, compute_dtype):
    def kernel(x_ref, prelu_ref,
               t1_ref, b1_ref, t2_ref, b2_ref, t3_ref, b3_ref,
               wip1_ref, bip1_ref, wip2_ref, bip2_ref,
               out_ref):
        p1 = prelu_ref[0]
        p2 = prelu_ref[1]
        p3 = prelu_ref[2]
        pip1 = prelu_ref[3]

        def mm(act, w_ref, b_ref):
            # bf16 operands, f32 accumulation (MXU native); bias-add in f32.
            return jnp.dot(act.astype(compute_dtype), w_ref[...],
                           preferred_element_type=jnp.float32) + b_ref[...]

        x = x_ref[...]                                     # (B, H*W) f32

        # conv1_1 + BN + PReLU   (Toeplitz matmul, BN folded into T1/b1)
        h = _prelu(mm(x, t1_ref, b1_ref), p1)
        # conv1_2 + BN + Dropout2d(eval = identity) + PReLU
        h = _prelu(mm(h, t2_ref, b2_ref), p2)
        # conv2_1 + BN + PReLU
        h = _prelu(mm(h, t3_ref, b3_ref), p3)
        # ip1 = PReLU(Linear(flatten))
        ip1 = _prelu(mm(h, wip1_ref, bip1_ref), pip1)

        # ip2 = log_softmax(Linear(ip1))  (f32 throughout)
        logits = mm(ip1, wip2_ref, bip2_ref)
        m = jnp.max(logits, axis=-1, keepdims=True)
        z = logits - m
        lse = jnp.log(jnp.sum(jnp.exp(z), axis=-1, keepdims=True))
        logp = z - lse

        # Single lane-dense output slab: [ ip1 | log_probs | zero pad ].
        out_ref[...] = jnp.zeros_like(out_ref)
        out_ref[:, :latent_dim] = ip1
        out_ref[:, latent_dim:latent_dim + n_classes] = logp

    return kernel


# ----------------------------------------------------------------------------
# Wrapper: batch-tiled pallas_call.
# ----------------------------------------------------------------------------
def _build_specs(B, hxw, wparams, out_w, single_buffer_weights):
    def w_spec(arr):
        nd = arr.ndim
        kwargs = {}
        if single_buffer_weights:
            # Constant-index weights: DMA once, one VMEM buffer.
            kwargs["pipeline_mode"] = pl.Buffered(1)
        return pl.BlockSpec(arr.shape, lambda i, _nd=nd: (0,) * _nd, **kwargs)

    in_specs = [pl.BlockSpec((B, hxw), lambda i: (i, 0)),
                pl.BlockSpec(memory_space=pltpu.MemorySpace.SMEM)]
    in_specs += [w_spec(a) for a in wparams]
    out_specs = pl.BlockSpec((B, out_w), lambda i: (i, 0))
    return in_specs, out_specs


def center_loss_forward(x_nhw, kparams, latent_dim, n_classes,
                        batch_tile=None, compute_dtype=jnp.bfloat16):
    N, H, W = x_nhw.shape
    assert W - 3 == 1, "module's ip1 Linear implies input width == 4"

    if batch_tile is None:
        batch_tile = _default_batch_tile()

    # Sublane-aligned batch tile, capped at ceil(N/2) so the grid has >= 2
    # "parallel" steps whenever N allows (keeps the v7x second TC busy).
    B = _round_up(min(batch_tile, max(8, pl.cdiv(N, 2))), 8)
    Npad = _round_up(N, B)
    grid = Npad // B

    x2d = x_nhw.reshape(N, H * W).astype(jnp.float32)      # lane-dense input slab
    if Npad != N:
        x2d = jnp.pad(x2d, ((0, Npad - N), (0, 0)))

    prelu, *wparams = kparams
    out_w = _round_up(latent_dim + n_classes, LANE)

    # Cost hint for XLA's scheduler around the custom call.
    mats = [wparams[0], wparams[2], wparams[4], wparams[6], wparams[8]]
    flops = 2 * Npad * sum(m.shape[0] * m.shape[1] for m in mats)
    weight_bytes = sum(int(np.prod(a.shape)) * a.dtype.itemsize for a in wparams)
    bytes_accessed = int(x2d.size) * 4 + weight_bytes + Npad * out_w * 4
    cost = pl.CostEstimate(flops=int(flops),
                           transcendentals=int(Npad * (n_classes + 1)),
                           bytes_accessed=int(bytes_accessed))

    kernel = make_kernel(latent_dim, n_classes, compute_dtype)
    out_shape = jax.ShapeDtypeStruct((Npad, out_w), jnp.float32)

    def run(single_buffer_weights):
        in_specs, out_specs = _build_specs(B, H * W, wparams, out_w,
                                           single_buffer_weights)
        return pl.pallas_call(
            kernel,
            grid=(grid,),
            in_specs=in_specs,
            out_specs=out_specs,
            out_shape=out_shape,
            cost_estimate=cost,
            compiler_params=pltpu.CompilerParams(
                dimension_semantics=("parallel",),
                vmem_limit_bytes=32 * 1024 * 1024),
        )(x2d, prelu, *wparams)

    try:
        out = run(single_buffer_weights=True)
    except Exception:
        # TODO(synk): pl.Buffered(1) pipeline_mode rejected by this JAX build;
        # fall back to default double-buffered weight blocks.
        out = run(single_buffer_weights=False)

    ip1 = out[:N, :latent_dim]
    ip2 = out[:N, latent_dim:latent_dim + n_classes]
    return ip1, ip2


# ----------------------------------------------------------------------------
# Parameter prep: fold each 2x2 valid conv (+ BN eval scale) into a dense
# Toeplitz matrix acting on the flattened feature vector.
# Feature layout: flat index = (row*Wout + col)*Cout + channel.
# ----------------------------------------------------------------------------
def _conv2x2_as_toeplitz(w_oihw, b, Hin, Win, scale):
    w = np.asarray(w_oihw, np.float32)            # (Cout, Cin, 2, 2)
    Cout, Cin = w.shape[0], w.shape[1]
    Hout, Wout = Hin - 1, Win - 1
    T = np.zeros((Hin * Win * Cin, Hout * Wout * Cout), np.float32)
    for i in range(Hout):
        for j in range(Wout):
            col = (i * Wout + j) * Cout
            for di in range(2):
                for dj in range(2):
                    row = ((i + di) * Win + (j + dj)) * Cin
                    T[row:row + Cin, col:col + Cout] = w[:, :, di, dj].T
    bt = np.tile(np.asarray(b, np.float32), Hout * Wout)
    return scale * T, scale * bt


def _pad_to(M, rows, cols):
    return np.pad(M, ((0, rows - M.shape[0]), (0, cols - M.shape[1])))


def to_kernel_params(tp, H, W, latent_dim, weight_dtype=jnp.bfloat16):
    H1, W1 = H - 1, W - 1
    H2, W2 = H - 2, W - 2
    H3, W3 = H - 3, W - 3
    assert W3 == 1
    scale = float(1.0 / np.sqrt(1.0 + EPS))   # BN eval: rm=0, rv=1, gamma=1, beta=0

    T1, b1 = _conv2x2_as_toeplitz(tp["w1"], tp["b1"], H, W, scale)    # (H*W,  672)
    T2, b2 = _conv2x2_as_toeplitz(tp["w2"], tp["b2"], H1, W1, scale)  # (672,  768)
    T3, b3 = _conv2x2_as_toeplitz(tp["w3"], tp["b3"], H2, W2, scale)  # (768,  640)

    # ip1: torch flattens (N, C3, H3, 1) channel-major (c*H3 + h); the kernel's
    # last-conv layout is h*C3 + c, so reorder the Linear weight accordingly.
    wip1 = np.asarray(tp["wip1"], np.float32)                          # (L, C3*H3)
    wip1 = np.transpose(wip1.reshape(latent_dim, C3, H3),
                        (2, 1, 0)).reshape(H3 * C3, latent_dim)        # (640, L)
    wip2 = np.asarray(tp["wip2"], np.float32).T                        # (L, n_cls)

    # Zero-pad the big inner dims to multiples of 256 for full MXU passes.
    # Padded pre-activations are exactly 0 (zero weight cols + zero bias) and
    # PReLU(0) == 0, so results are bit-identical on the real features.
    D0 = H * W
    D1 = _mxu_pad(T1.shape[1])
    D2 = _mxu_pad(T2.shape[1])
    D3 = _mxu_pad(T3.shape[1])
    T1 = _pad_to(T1, D0, D1); b1 = np.pad(b1, (0, D1 - b1.shape[0]))
    T2 = _pad_to(T2, D1, D2); b2 = np.pad(b2, (0, D2 - b2.shape[0]))
    T3 = _pad_to(T3, D2, D3); b3 = np.pad(b3, (0, D3 - b3.shape[0]))
    wip1 = _pad_to(wip1, D3, latent_dim)

    # Scalar PReLU params [p1, p2, p3, pip1] — live in SMEM.
    prelu = jnp.full((4,), tp["prelu"], jnp.float32)
    wd = weight_dtype

    def f32row(v):
        return jnp.asarray(np.asarray(v, np.float32))[None, :]

    return (prelu,
            jnp.asarray(T1, wd), f32row(b1),
            jnp.asarray(T2, wd), f32row(b2),
            jnp.asarray(T3, wd), f32row(b3),
            jnp.asarray(wip1, wd), f32row(tp["bip1"]),
            jnp.asarray(wip2, wd), f32row(tp["bip2"]))


# ----------------------------------------------------------------------------
# Deterministic parameter init (PyTorch layouts).
# ----------------------------------------------------------------------------
def init_torch_params(key, x_shape, n_classes, latent_dim):
    _, _, H, _ = x_shape
    H3 = H - 3
    ks = jax.random.split(key, 10)

    def kaiming(k, shape):                     # OIHW, fan_in = I*kh*kw
        fan_in = shape[1] * shape[2] * shape[3]
        return jax.random.normal(k, shape, jnp.float32) * (2.0 / fan_in) ** 0.5

    def unif(k, shape, bound):
        return jax.random.uniform(k, shape, jnp.float32, -bound, bound)

    d_ip1 = 128 * H3
    return {
        "w1": kaiming(ks[0], (C1, 1, 2, 2)),
        "b1": unif(ks[1], (C1,), (1 * 2 * 2) ** -0.5),
        "w2": kaiming(ks[2], (C2, C1, 2, 2)),
        "b2": unif(ks[3], (C2,), (C1 * 2 * 2) ** -0.5),
        "w3": kaiming(ks[4], (C3, C2, 2, 2)),
        "b3": unif(ks[5], (C3,), (C2 * 2 * 2) ** -0.5),
        "wip1": unif(ks[6], (latent_dim, d_ip1), d_ip1 ** -0.5),
        "bip1": unif(ks[7], (latent_dim,), d_ip1 ** -0.5),
        "wip2": unif(ks[8], (n_classes, latent_dim), latent_dim ** -0.5),
        "bip2": unif(ks[9], (n_classes,), latent_dim ** -0.5),
        "prelu": jnp.float32(0.25),            # PReLU default single parameter
    }


# ----------------------------------------------------------------------------
# Pure-JAX reference (mirrors the PyTorch forward, eval mode, fp32).
# ----------------------------------------------------------------------------
def reference_forward(x_nchw, tp):
    def conv(x, w, b):
        y = lax.conv_general_dilated(x, w, (1, 1), "VALID",
                                     dimension_numbers=("NCHW", "OIHW", "NCHW"))
        return y + b[None, :, None, None]

    def bn(x):
        return x / jnp.sqrt(1.0 + EPS)

    def prelu(x):
        return jnp.where(x > 0, x, tp["prelu"] * x)

    y = prelu(bn(conv(x_nchw, tp["w1"], tp["b1"])))
    y = prelu(bn(conv(y, tp["w2"], tp["b2"])))     # Dropout2d(eval) == identity
    y = prelu(bn(conv(y, tp["w3"], tp["b3"])))
    y = y.reshape(y.shape[0], -1)
    ip1 = prelu(y @ tp["wip1"].T + tp["bip1"])
    ip2 = ip1 @ tp["wip2"].T + tp["bip2"]
    ip2 = jax.nn.log_softmax(ip2, axis=1)
    return ip1, ip2


if __name__ == "__main__":
    Cin, H, W = 1, 8, 4                 # ip1 in_features = 128*(8-3) = 640
    latent_dim, n_classes = 32, 8

    key = jax.random.PRNGKey(0)
    kx, kp, kx2 = jax.random.split(key, 3)

    torch_params = init_torch_params(kp, (2, Cin, H, W), n_classes, latent_dim)

    # --- exact-wiring check: f32 weights / f32 matmul operands ---
    kparams_f32 = to_kernel_params(torch_params, H, W, latent_dim,
                                   weight_dtype=jnp.float32)
    N = 2
    x_nchw = jax.random.normal(kx, (N, Cin, H, W), jnp.float32)
    ip1, ip2 = center_loss_forward(x_nchw[:, 0], kparams_f32, latent_dim,
                                   n_classes, compute_dtype=jnp.float32)
    jax.block_until_ready((ip1, ip2))
    ref1, ref2 = reference_forward(x_nchw, torch_params)
    assert ip1.shape == (N, latent_dim) and ip2.shape == (N, n_classes)
    assert jnp.allclose(ip1, ref1, atol=1e-4, rtol=1e-4)
    assert jnp.allclose(ip2, ref2, atol=1e-4, rtol=1e-4)

    # --- perf path: bf16 matmul operands (f32 accumulation), multi-tile grid ---
    kparams_bf16 = to_kernel_params(torch_params, H, W, latent_dim)
    N2 = 300
    x2_nchw = jax.random.normal(kx2, (N2, Cin, H, W), jnp.float32)
    ip1b, ip2b = center_loss_forward(x2_nchw[:, 0], kparams_bf16, latent_dim,
                                     n_classes)
    jax.block_until_ready((ip1b, ip2b))
    ref1b, ref2b = reference_forward(x2_nchw, torch_params)
    assert ip1b.shape == (N2, latent_dim) and ip2b.shape == (N2, n_classes)
    # bf16 matmul operands relax parity vs the f32 reference (accum stays f32).
    assert jnp.allclose(ip1b, ref1b, atol=5e-2, rtol=5e-2)
    assert jnp.allclose(ip2b, ref2b, atol=5e-2, rtol=5e-2)

    print("KERNEL_OK")
</pallas_src>

<mosaic_0001>
module attributes {stable_mosaic.version = 11 : i64} {
  func.func @kernel(%arg0: i32, %arg1: memref<8x32xf32, #tpu.memory_space<vmem>>, %arg2: memref<4xf32, #tpu.memory_space<smem>>, %arg3: memref<32x768xf32, #tpu.memory_space<vmem>>, %arg4: memref<1x768xf32, #tpu.memory_space<vmem>>, %arg5: memref<768x768xf32, #tpu.memory_space<vmem>>, %arg6: memref<1x768xf32, #tpu.memory_space<vmem>>, %arg7: memref<768x768xf32, #tpu.memory_space<vmem>>, %arg8: memref<1x768xf32, #tpu.memory_space<vmem>>, %arg9: memref<768x32xf32, #tpu.memory_space<vmem>>, %arg10: memref<1x32xf32, #tpu.memory_space<vmem>>, %arg11: memref<32x8xf32, #tpu.memory_space<vmem>>, %arg12: memref<1x8xf32, #tpu.memory_space<vmem>>, %arg13: memref<8x128xf32, #tpu.memory_space<vmem>>) attributes {dimension_semantics = [#tpu.dimension_semantics<parallel>], iteration_bounds = array<i64: 1>, scalar_prefetch = 0 : i64, scratch_operands = 0 : i64, tpu.core_type = #tpu.core_type<tc>, window_params = [{transform_indices = @transform_0, window_bounds = array<i64: 8, 32>}, {transform_indices = @transform_1, window_bounds = array<i64: 4>}, {pipeline_mode = #tpu.pipeline_mode<synchronous>, transform_indices = @transform_2, window_bounds = array<i64: 32, 768>}, {pipeline_mode = #tpu.pipeline_mode<synchronous>, transform_indices = @transform_3, window_bounds = array<i64: 1, 768>}, {pipeline_mode = #tpu.pipeline_mode<synchronous>, transform_indices = @transform_4, window_bounds = array<i64: 768, 768>}, {pipeline_mode = #tpu.pipeline_mode<synchronous>, transform_indices = @transform_5, window_bounds = array<i64: 1, 768>}, {pipeline_mode = #tpu.pipeline_mode<synchronous>, transform_indices = @transform_6, window_bounds = array<i64: 768, 768>}, {pipeline_mode = #tpu.pipeline_mode<synchronous>, transform_indices = @transform_7, window_bounds = array<i64: 1, 768>}, {pipeline_mode = #tpu.pipeline_mode<synchronous>, transform_indices = @transform_8, window_bounds = array<i64: 768, 32>}, {pipeline_mode = #tpu.pipeline_mode<synchronous>, transform_indices = @transform_9, window_bounds = array<i64: 1, 32>}, {pipeline_mode = #tpu.pipeline_mode<synchronous>, transform_indices = @transform_10, window_bounds = array<i64: 32, 8>}, {pipeline_mode = #tpu.pipeline_mode<synchronous>, transform_indices = @transform_11, window_bounds = array<i64: 1, 8>}, {transform_indices = @transform_12, window_bounds = array<i64: 8, 128>}]} {
    %c0 = arith.constant 0 : index
    %0 = memref.load %arg2[%c0] : memref<4xf32, #tpu.memory_space<smem>>
    %c1 = arith.constant 1 : index
    %1 = memref.load %arg2[%c1] : memref<4xf32, #tpu.memory_space<smem>>
    %c2 = arith.constant 2 : index
    %2 = memref.load %arg2[%c2] : memref<4xf32, #tpu.memory_space<smem>>
    %c3 = arith.constant 3 : index
    %3 = memref.load %arg2[%c3] : memref<4xf32, #tpu.memory_space<smem>>
    %c0_0 = arith.constant 0 : index
    %c0_1 = arith.constant 0 : index
    %4 = vector.load %arg1[%c0_0, %c0_1] : memref<8x32xf32, #tpu.memory_space<vmem>>, vector<8x32xf32>
    %c0_2 = arith.constant 0 : index
    %c0_3 = arith.constant 0 : index
    %5 = vector.load %arg3[%c0_2, %c0_3] : memref<32x768xf32, #tpu.memory_space<vmem>>, vector<32x768xf32>
    %cst = arith.constant dense<0.000000e+00> : vector<8x768xf32>
    %6 = tpu.matmul %4, %5, %cst {dimension_numbers = #tpu.dot_dimension_numbers<[1], [0], [0], [1], [0, 0, 1, 1], [], []>} : vector<8x32xf32>, vector<32x768xf32>, vector<8x768xf32> -> vector<8x768xf32>
    %c0_4 = arith.constant 0 : index
    %c0_5 = arith.constant 0 : index
    %7 = vector.load %arg4[%c0_4, %c0_5] : memref<1x768xf32, #tpu.memory_space<vmem>>, vector<1x768xf32>
    %8 = vector.broadcast %7 : vector<1x768xf32> to vector<8x768xf32>
    %9 = arith.addf %6, %8 : vector<8x768xf32>
    %cst_6 = arith.constant 0.000000e+00 : f32
    %10 = vector.broadcast %cst_6 : f32 to vector<8x768xf32>
    %11 = arith.cmpf ogt, %9, %10 : vector<8x768xf32>
    %12 = vector.broadcast %0 : f32 to vector<8x768xf32>
    %13 = arith.mulf %12, %9 : vector<8x768xf32>
    %14 = arith.select %11, %9, %13 : vector<8x768xi1>, vector<8x768xf32>
    %c0_7 = arith.constant 0 : index
    %c0_8 = arith.constant 0 : index
    %15 = vector.load %arg5[%c0_7, %c0_8] : memref<768x768xf32, #tpu.memory_space<vmem>>, vector<768x768xf32>
    %cst_9 = arith.constant dense<0.000000e+00> : vector<8x768xf32>
    %16 = tpu.matmul %14, %15, %cst_9 {dimension_numbers = #tpu.dot_dimension_numbers<[1], [0], [0], [1], [0, 0, 1, 1], [], []>} : vector<8x768xf32>, vector<768x768xf32>, vector<8x768xf32> -> vector<8x768xf32>
    %c0_10 = arith.constant 0 : index
    %c0_11 = arith.constant 0 : index
    %17 = vector.load %arg6[%c0_10, %c0_11] : memref<1x768xf32, #tpu.memory_space<vmem>>, vector<1x768xf32>
    %18 = vector.broadcast %17 : vector<1x768xf32> to vector<8x768xf32>
    %19 = arith.addf %16, %18 : vector<8x768xf32>
    %cst_12 = arith.constant 0.000000e+00 : f32
    %20 = vector.broadcast %cst_12 : f32 to vector<8x768xf32>
    %21 = arith.cmpf ogt, %19, %20 : vector<8x768xf32>
    %22 = vector.broadcast %1 : f32 to vector<8x768xf32>
    %23 = arith.mulf %22, %19 : vector<8x768xf32>
    %24 = arith.select %21, %19, %23 : vector<8x768xi1>, vector<8x768xf32>
    %c0_13 = arith.constant 0 : index
    %c0_14 = arith.constant 0 : index
    %25 = vector.load %arg7[%c0_13, %c0_14] : memref<768x768xf32, #tpu.memory_space<vmem>>, vector<768x768xf32>
    %cst_15 = arith.constant dense<0.000000e+00> : vector<8x768xf32>
    %26 = tpu.matmul %24, %25, %cst_15 {dimension_numbers = #tpu.dot_dimension_numbers<[1], [0], [0], [1], [0, 0, 1, 1], [], []>} : vector<8x768xf32>, vector<768x768xf32>, vector<8x768xf32> -> vector<8x768xf32>
    %c0_16 = arith.constant 0 : index
    %c0_17 = arith.constant 0 : index
    %27 = vector.load %arg8[%c0_16, %c0_17] : memref<1x768xf32, #tpu.memory_space<vmem>>, vector<1x768xf32>
    %28 = vector.broadcast %27 : vector<1x768xf32> to vector<8x768xf32>
    %29 = arith.addf %26, %28 : vector<8x768xf32>
    %cst_18 = arith.constant 0.000000e+00 : f32
    %30 = vector.broadcast %cst_18 : f32 to vector<8x768xf32>
    %31 = arith.cmpf ogt, %29, %30 : vector<8x768xf32>
    %32 = vector.broadcast %2 : f32 to vector<8x768xf32>
    %33 = arith.mulf %32, %29 : vector<8x768xf32>
    %34 = arith.select %31, %29, %33 : vector<8x768xi1>, vector<8x768xf32>
    %c0_19 = arith.constant 0 : index
    %c0_20 = arith.constant 0 : index
    %35 = vector.load %arg9[%c0_19, %c0_20] : memref<768x32xf32, #tpu.memory_space<vmem>>, vector<768x32xf32>
    %cst_21 = arith.constant dense<0.000000e+00> : vector<8x32xf32>
    %36 = tpu.matmul %34, %35, %cst_21 {dimension_numbers = #tpu.dot_dimension_numbers<[1], [0], [0], [1], [0, 0, 1, 1], [], []>} : vector<8x768xf32>, vector<768x32xf32>, vector<8x32xf32> -> vector<8x32xf32>
    %c0_22 = arith.constant 0 : index
    %c0_23 = arith.constant 0 : index
    %37 = vector.load %arg10[%c0_22, %c0_23] : memref<1x32xf32, #tpu.memory_space<vmem>>, vector<1x32xf32>
    %38 = vector.broadcast %37 : vector<1x32xf32> to vector<8x32xf32>
    %39 = arith.addf %36, %38 : vector<8x32xf32>
    %cst_24 = arith.constant 0.000000e+00 : f32
    %40 = vector.broadcast %cst_24 : f32 to vector<8x32xf32>
    %41 = arith.cmpf ogt, %39, %40 : vector<8x32xf32>
    %42 = vector.broadcast %3 : f32 to vector<8x32xf32>
    %43 = arith.mulf %42, %39 : vector<8x32xf32>
    %44 = arith.select %41, %39, %43 : vector<8x32xi1>, vector<8x32xf32>
    %c0_25 = arith.constant 0 : index
    %c0_26 = arith.constant 0 : index
    %45 = vector.load %arg11[%c0_25, %c0_26] : memref<32x8xf32, #tpu.memory_space<vmem>>, vector<32x8xf32>
    %cst_27 = arith.constant dense<0.000000e+00> : vector<8x8xf32>
    %46 = tpu.matmul %44, %45, %cst_27 {dimension_numbers = #tpu.dot_dimension_numbers<[1], [0], [0], [1], [0, 0, 1, 1], [], []>} : vector<8x32xf32>, vector<32x8xf32>, vector<8x8xf32> -> vector<8x8xf32>
    %c0_28 = arith.constant 0 : index
    %c0_29 = arith.constant 0 : index
    %47 = vector.load %arg12[%c0_28, %c0_29] : memref<1x8xf32, #tpu.memory_space<vmem>>, vector<1x8xf32>
    %48 = vector.broadcast %47 : vector<1x8xf32> to vector<8x8xf32>
    %49 = arith.addf %46, %48 : vector<8x8xf32>
    %cst_30 = arith.constant dense<0xFF800000> : vector<8xf32>
    %50 = vector.multi_reduction <maximumf>, %49, %cst_30 [1] : vector<8x8xf32> to vector<8xf32>
    %51 = vector.shape_cast %50 : vector<8xf32> to vector<8x1xf32>
    %52 = vector.broadcast %51 : vector<8x1xf32> to vector<8x8xf32>
    %53 = arith.subf %49, %52 : vector<8x8xf32>
    %54 = math.exp %53 : vector<8x8xf32>
    %cst_31 = arith.constant dense<0.000000e+00> : vector<8xf32>
    %55 = vector.multi_reduction <add>, %54, %cst_31 [1] : vector<8x8xf32> to vector<8xf32>
    %56 = vector.shape_cast %55 : vector<8xf32> to vector<8x1xf32>
    %57 = math.log %56 : vector<8x1xf32>
    %58 = vector.broadcast %57 : vector<8x1xf32> to vector<8x8xf32>
    %59 = arith.subf %53, %58 : vector<8x8xf32>
    %cst_32 = arith.constant 0.000000e+00 : f32
    %60 = vector.broadcast %cst_32 : f32 to vector<8x128xf32>
    %c0_33 = arith.constant 0 : index
    %c0_34 = arith.constant 0 : index
    %61 = vector.load %arg13[%c0_33, %c0_34] : memref<8x128xf32, #tpu.memory_space<vmem>>, vector<8x128xf32>
    tpu.vector_store %arg13[%c0_33, %c0_34], %60 {strides = array<i32>} : memref<8x128xf32, #tpu.memory_space<vmem>>, vector<8x128xf32>,
    %c0_35 = arith.constant 0 : index
    %c0_36 = arith.constant 0 : index
    %62 = vector.load %arg13[%c0_35, %c0_36] : memref<8x128xf32, #tpu.memory_space<vmem>>, vector<8x32xf32>
    tpu.vector_store %arg13[%c0_35, %c0_36], %44 {strides = array<i32>} : memref<8x128xf32, #tpu.memory_space<vmem>>, vector<8x32xf32>,
    %c0_37 = arith.constant 0 : index
    %c32 = arith.constant 32 : index
    %63 = vector.load %arg13[%c0_37, %c32] : memref<8x128xf32, #tpu.memory_space<vmem>>, vector<8x8xf32>
    tpu.vector_store %arg13[%c0_37, %c32], %59 {strides = array<i32>} : memref<8x128xf32, #tpu.memory_space<vmem>>, vector<8x8xf32>,
    return
  }
  func.func @transform_0(%arg0: i32) -> (i32, i32) {
    %c0_i32 = arith.constant 0 : i32
    %c0_i32_0 = arith.constant 0 : i32
    return %arg0, %c0_i32 : i32, i32
  }
  func.func @transform_1(%arg0: i32) -> i32 {
    %c0_i32 = arith.constant 0 : i32
    %c0_i32_0 = arith.constant 0 : i32
    return %c0_i32 : i32
  }
  func.func @transform_2(%arg0: i32) -> (i32, i32) {
    %c0_i32 = arith.constant 0 : i32
    %c0_i32_0 = arith.constant 0 : i32
    %c0_i32_1 = arith.constant 0 : i32
    return %c0_i32, %c0_i32_0 : i32, i32
  }
  func.func @transform_3(%arg0: i32) -> (i32, i32) {
    %c0_i32 = arith.constant 0 : i32
    %c0_i32_0 = arith.constant 0 : i32
    %c0_i32_1 = arith.constant 0 : i32
    return %c0_i32, %c0_i32_0 : i32, i32
  }
  func.func @transform_4(%arg0: i32) -> (i32, i32) {
    %c0_i32 = arith.constant 0 : i32
    %c0_i32_0 = arith.constant 0 : i32
    %c0_i32_1 = arith.constant 0 : i32
    return %c0_i32, %c0_i32_0 : i32, i32
  }
  func.func @transform_5(%arg0: i32) -> (i32, i32) {
    %c0_i32 = arith.constant 0 : i32
    %c0_i32_0 = arith.constant 0 : i32
    %c0_i32_1 = arith.constant 0 : i32
    return %c0_i32, %c0_i32_0 : i32, i32
  }
  func.func @transform_6(%arg0: i32) -> (i32, i32) {
    %c0_i32 = arith.constant 0 : i32
    %c0_i32_0 = arith.constant 0 : i32
    %c0_i32_1 = arith.constant 0 : i32
    return %c0_i32, %c0_i32_0 : i32, i32
  }
  func.func @transform_7(%arg0: i32) -> (i32, i32) {
    %c0_i32 = arith.constant 0 : i32
    %c0_i32_0 = arith.constant 0 : i32
    %c0_i32_1 = arith.constant 0 : i32
    return %c0_i32, %c0_i32_0 : i32, i32
  }
  func.func @transform_8(%arg0: i32) -> (i32, i32) {
    %c0_i32 = arith.constant 0 : i32
    %c0_i32_0 = arith.constant 0 : i32
    %c0_i32_1 = arith.constant 0 : i32
    return %c0_i32, %c0_i32_0 : i32, i32
  }
  func.func @transform_9(%arg0: i32) -> (i32, i32) {
    %c0_i32 = arith.constant 0 : i32
    %c0_i32_0 = arith.constant 0 : i32
    %c0_i32_1 = arith.constant 0 : i32
    return %c0_i32, %c0_i32_0 : i32, i32
  }
  func.func @transform_10(%arg0: i32) -> (i32, i32) {
    %c0_i32 = arith.constant 0 : i32
    %c0_i32_0 = arith.constant 0 : i32
    %c0_i32_1 = arith.constant 0 : i32
    return %c0_i32, %c0_i32_0 : i32, i32
  }
  func.func @transform_11(%arg0: i32) -> (i32, i32) {
    %c0_i32 = arith.constant 0 : i32
    %c0_i32_0 = arith.constant 0 : i32
    %c0_i32_1 = arith.constant 0 : i32
    return %c0_i32, %c0_i32_0 : i32, i32
  }
  func.func @transform_12(%arg0: i32) -> (i32, i32) {
    %c0_i32 = arith.constant 0 : i32
    %c0_i32_0 = arith.constant 0 : i32
    return %arg0, %c0_i32 : i32, i32
  }
}

module attributes {stable_mosaic.version = 11 : i64} {
  func.func @kernel(%arg0: i32, %arg1: memref<8x32xf32, #tpu.memory_space<vmem>>, %arg2: memref<4xf32, #tpu.memory_space<smem>>, %arg3: memref<32x768xf32, #tpu.memory_space<vmem>>, %arg4: memref<1x768xf32, #tpu.memory_space<vmem>>, %arg5: memref<768x768xf32, #tpu.memory_space<vmem>>, %arg6: memref<1x768xf32, #tpu.memory_space<vmem>>, %arg7: memref<768x768xf32, #tpu.memory_space<vmem>>, %arg8: memref<1x768xf32, #tpu.memory_space<vmem>>, %arg9: memref<768x32xf32, #tpu.memory_space<vmem>>, %arg10: memref<1x32xf32, #tpu.memory_space<vmem>>, %arg11: memref<32x8xf32, #tpu.memory_space<vmem>>, %arg12: memref<1x8xf32, #tpu.memory_space<vmem>>, %arg13: memref<8x128xf32, #tpu.memory_space<vmem>>) attributes {dimension_semantics = [#tpu.dimension_semantics<parallel>], iteration_bounds = array<i64: 1>, scalar_prefetch = 0 : i64, scratch_operands = 0 : i64, tpu.core_type = #tpu.core_type<tc>, window_params = [{transform_indices = @transform_0, window_bounds = array<i64: 8, 32>}, {transform_indices = @transform_1, window_bounds = array<i64: 4>}, {pipeline_mode = #tpu.pipeline_mode<synchronous>, transform_indices = @transform_2, window_bounds = array<i64: 32, 768>}, {pipeline_mode = #tpu.pipeline_mode<synchronous>, transform_indices = @transform_3, window_bounds = array<i64: 1, 768>}, {pipeline_mode = #tpu.pipeline_mode<synchronous>, transform_indices = @transform_4, window_bounds = array<i64: 768, 768>}, {pipeline_mode = #tpu.pipeline_mode<synchronous>, transform_indices = @transform_5, window_bounds = array<i64: 1, 768>}, {pipeline_mode = #tpu.pipeline_mode<synchronous>, transform_indices = @transform_6, window_bounds = array<i64: 768, 768>}, {pipeline_mode = #tpu.pipeline_mode<synchronous>, transform_indices = @transform_7, window_bounds = array<i64: 1, 768>}, {pipeline_mode = #tpu.pipeline_mode<synchronous>, transform_indices = @transform_8, window_bounds = array<i64: 768, 32>}, {pipeline_mode = #tpu.pipeline_mode<synchronous>, transform_indices = @transform_9, window_bounds = array<i64: 1, 32>}, {pipeline_mode = #tpu.pipeline_mode<synchronous>, transform_indices = @transform_10, window_bounds = array<i64: 32, 8>}, {pipeline_mode = #tpu.pipeline_mode<synchronous>, transform_indices = @transform_11, window_bounds = array<i64: 1, 8>}, {transform_indices = @transform_12, window_bounds = array<i64: 8, 128>}]} {
    %c0 = arith.constant 0 : index
    %0 = memref.load %arg2[%c0] : memref<4xf32, #tpu.memory_space<smem>>
    %c1 = arith.constant 1 : index
    %1 = memref.load %arg2[%c1] : memref<4xf32, #tpu.memory_space<smem>>
    %c2 = arith.constant 2 : index
    %2 = memref.load %arg2[%c2] : memref<4xf32, #tpu.memory_space<smem>>
    %c3 = arith.constant 3 : index
    %3 = memref.load %arg2[%c3] : memref<4xf32, #tpu.memory_space<smem>>
    %c0_0 = arith.constant 0 : index
    %c0_1 = arith.constant 0 : index
    %4 = vector.load %arg1[%c0_0, %c0_1] : memref<8x32xf32, #tpu.memory_space<vmem>>, vector<8x32xf32>
    %c0_2 = arith.constant 0 : index
    %c0_3 = arith.constant 0 : index
    %5 = vector.load %arg3[%c0_2, %c0_3] : memref<32x768xf32, #tpu.memory_space<vmem>>, vector<32x768xf32>
    %cst = arith.constant dense<0.000000e+00> : vector<8x768xf32>
    %6 = tpu.matmul %4, %5, %cst {dimension_numbers = #tpu.dot_dimension_numbers<[1], [0], [0], [1], [0, 0, 1, 1], [], []>} : vector<8x32xf32>, vector<32x768xf32>, vector<8x768xf32> -> vector<8x768xf32>
    %c0_4 = arith.constant 0 : index
    %c0_5 = arith.constant 0 : index
    %7 = vector.load %arg4[%c0_4, %c0_5] : memref<1x768xf32, #tpu.memory_space<vmem>>, vector<1x768xf32>
    %8 = vector.broadcast %7 : vector<1x768xf32> to vector<8x768xf32>
    %9 = arith.addf %6, %8 : vector<8x768xf32>
    %cst_6 = arith.constant 0.000000e+00 : f32
    %10 = vector.broadcast %cst_6 : f32 to vector<8x768xf32>
    %11 = arith.cmpf ogt, %9, %10 : vector<8x768xf32>
    %12 = vector.broadcast %0 : f32 to vector<8x768xf32>
    %13 = arith.mulf %12, %9 : vector<8x768xf32>
    %14 = arith.select %11, %9, %13 : vector<8x768xi1>, vector<8x768xf32>
    %c0_7 = arith.constant 0 : index
    %c0_8 = arith.constant 0 : index
    %15 = vector.load %arg5[%c0_7, %c0_8] : memref<768x768xf32, #tpu.memory_space<vmem>>, vector<768x768xf32>
    %cst_9 = arith.constant dense<0.000000e+00> : vector<8x768xf32>
    %16 = tpu.matmul %14, %15, %cst_9 {dimension_numbers = #tpu.dot_dimension_numbers<[1], [0], [0], [1], [0, 0, 1, 1], [], []>} : vector<8x768xf32>, vector<768x768xf32>, vector<8x768xf32> -> vector<8x768xf32>
    %c0_10 = arith.constant 0 : index
    %c0_11 = arith.constant 0 : index
    %17 = vector.load %arg6[%c0_10, %c0_11] : memref<1x768xf32, #tpu.memory_space<vmem>>, vector<1x768xf32>
    %18 = vector.broadcast %17 : vector<1x768xf32> to vector<8x768xf32>
    %19 = arith.addf %16, %18 : vector<8x768xf32>
    %cst_12 = arith.constant 0.000000e+00 : f32
    %20 = vector.broadcast %cst_12 : f32 to vector<8x768xf32>
    %21 = arith.cmpf ogt, %19, %20 : vector<8x768xf32>
    %22 = vector.broadcast %1 : f32 to vector<8x768xf32>
    %23 = arith.mulf %22, %19 : vector<8x768xf32>
    %24 = arith.select %21, %19, %23 : vector<8x768xi1>, vector<8x768xf32>
    %c0_13 = arith.constant 0 : index
    %c0_14 = arith.constant 0 : index
    %25 = vector.load %arg7[%c0_13, %c0_14] : memref<768x768xf32, #tpu.memory_space<vmem>>, vector<768x768xf32>
    %cst_15 = arith.constant dense<0.000000e+00> : vector<8x768xf32>
    %26 = tpu.matmul %24, %25, %cst_15 {dimension_numbers = #tpu.dot_dimension_numbers<[1], [0], [0], [1], [0, 0, 1, 1], [], []>} : vector<8x768xf32>, vector<768x768xf32>, vector<8x768xf32> -> vector<8x768xf32>
    %c0_16 = arith.constant 0 : index
    %c0_17 = arith.constant 0 : index
    %27 = vector.load %arg8[%c0_16, %c0_17] : memref<1x768xf32, #tpu.memory_space<vmem>>, vector<1x768xf32>
    %28 = vector.broadcast %27 : vector<1x768xf32> to vector<8x768xf32>
    %29 = arith.addf %26, %28 : vector<8x768xf32>
    %cst_18 = arith.constant 0.000000e+00 : f32
    %30 = vector.broadcast %cst_18 : f32 to vector<8x768xf32>
    %31 = arith.cmpf ogt, %29, %30 : vector<8x768xf32>
    %32 = vector.broadcast %2 : f32 to vector<8x768xf32>
    %33 = arith.mulf %32, %29 : vector<8x768xf32>
    %34 = arith.select %31, %29, %33 : vector<8x768xi1>, vector<8x768xf32>
    %c0_19 = arith.constant 0 : index
    %c0_20 = arith.constant 0 : index
    %35 = vector.load %arg9[%c0_19, %c0_20] : memref<768x32xf32, #tpu.memory_space<vmem>>, vector<768x32xf32>
    %cst_21 = arith.constant dense<0.000000e+00> : vector<8x32xf32>
    %36 = tpu.matmul %34, %35, %cst_21 {dimension_numbers = #tpu.dot_dimension_numbers<[1], [0], [0], [1], [0, 0, 1, 1], [], []>} : vector<8x768xf32>, vector<768x32xf32>, vector<8x32xf32> -> vector<8x32xf32>
    %c0_22 = arith.constant 0 : index
    %c0_23 = arith.constant 0 : index
    %37 = vector.load %arg10[%c0_22, %c0_23] : memref<1x32xf32, #tpu.memory_space<vmem>>, vector<1x32xf32>
    %38 = vector.broadcast %37 : vector<1x32xf32> to vector<8x32xf32>
    %39 = arith.addf %36, %38 : vector<8x32xf32>
    %cst_24 = arith.constant 0.000000e+00 : f32
    %40 = vector.broadcast %cst_24 : f32 to vector<8x32xf32>
    %41 = arith.cmpf ogt, %39, %40 : vector<8x32xf32>
    %42 = vector.broadcast %3 : f32 to vector<8x32xf32>
    %43 = arith.mulf %42, %39 : vector<8x32xf32>
    %44 = arith.select %41, %39, %43 : vector<8x32xi1>, vector<8x32xf32>
    %c0_25 = arith.constant 0 : index
    %c0_26 = arith.constant 0 : index
    %45 = vector.load %arg11[%c0_25, %c0_26] : memref<32x8xf32, #tpu.memory_space<vmem>>, vector<32x8xf32>
    %cst_27 = arith.constant dense<0.000000e+00> : vector<8x8xf32>
    %46 = tpu.matmul %44, %45, %cst_27 {dimension_numbers = #tpu.dot_dimension_numbers<[1], [0], [0], [1], [0, 0, 1, 1], [], []>} : vector<8x32xf32>, vector<32x8xf32>, vector<8x8xf32> -> vector<8x8xf32>
    %c0_28 = arith.constant 0 : index
    %c0_29 = arith.constant 0 : index
    %47 = vector.load %arg12[%c0_28, %c0_29] : memref<1x8xf32, #tpu.memory_space<vmem>>, vector<1x8xf32>
    %48 = vector.broadcast %47 : vector<1x8xf32> to vector<8x8xf32>
    %49 = arith.addf %46, %48 : vector<8x8xf32>
    %cst_30 = arith.constant dense<0xFF800000> : vector<8xf32>
    %50 = vector.multi_reduction <maximumf>, %49, %cst_30 [1] : vector<8x8xf32> to vector<8xf32>
    %51 = vector.shape_cast %50 : vector<8xf32> to vector<8x1xf32>
    %52 = vector.broadcast %51 : vector<8x1xf32> to vector<8x8xf32>
    %53 = arith.subf %49, %52 : vector<8x8xf32>
    %54 = math.exp %53 : vector<8x8xf32>
    %cst_31 = arith.constant dense<0.000000e+00> : vector<8xf32>
    %55 = vector.multi_reduction <add>, %54, %cst_31 [1] : vector<8x8xf32> to vector<8xf32>
    %56 = vector.shape_cast %55 : vector<8xf32> to vector<8x1xf32>
    %57 = math.log %56 : vector<8x1xf32>
    %58 = vector.broadcast %57 : vector<8x1xf32> to vector<8x8xf32>
    %59 = arith.subf %53, %58 : vector<8x8xf32>
    %cst_32 = arith.constant 0.000000e+00 : f32
    %60 = vector.broadcast %cst_32 : f32 to vector<8x128xf32>
    %c0_33 = arith.constant 0 : index
    %c0_34 = arith.constant 0 : index
    %61 = vector.load %arg13[%c0_33, %c0_34] : memref<8x128xf32, #tpu.memory_space<vmem>>, vector<8x128xf32>
    tpu.vector_store %arg13[%c0_33, %c0_34], %60 {strides = array<i32>} : memref<8x128xf32, #tpu.memory_space<vmem>>, vector<8x128xf32>,
    %c0_35 = arith.constant 0 : index
    %c0_36 = arith.constant 0 : index
    %62 = vector.load %arg13[%c0_35, %c0_36] : memref<8x128xf32, #tpu.memory_space<vmem>>, vector<8x32xf32>
    tpu.vector_store %arg13[%c0_35, %c0_36], %44 {strides = array<i32>} : memref<8x128xf32, #tpu.memory_space<vmem>>, vector<8x32xf32>,
    %c0_37 = arith.constant 0 : index
    %c32 = arith.constant 32 : index
    %63 = vector.load %arg13[%c0_37, %c32] : memref<8x128xf32, #tpu.memory_space<vmem>>, vector<8x8xf32>
    tpu.vector_store %arg13[%c0_37, %c32], %59 {strides = array<i32>} : memref<8x128xf32, #tpu.memory_space<vmem>>, vector<8x8xf32>,
    return
  }
  func.func @transform_0(%arg0: i32) -> (i32, i32) {
    %c0_i32 = arith.constant 0 : i32
    %c0_i32_0 = arith.constant 0 : i32
    return %arg0, %c0_i32 : i32, i32
  }
  func.func @transform_1(%arg0: i32) -> i32 {
    %c0_i32 = arith.constant 0 : i32
    %c0_i32_0 = arith.constant 0 : i32
    return %c0_i32 : i32
  }
  func.func @transform_2(%arg0: i32) -> (i32, i32) {
    %c0_i32 = arith.constant 0 : i32
    %c0_i32_0 = arith.constant 0 : i32
    %c0_i32_1 = arith.constant 0 : i32
    return %c0_i32, %c0_i32_0 : i32, i32
  }
  func.func @transform_3(%arg0: i32) -> (i32, i32) {
    %c0_i32 = arith.constant 0 : i32
    %c0_i32_0 = arith.constant 0 : i32
    %c0_i32_1 = arith.constant 0 : i32
    return %c0_i32, %c0_i32_0 : i32, i32
  }
  func.func @transform_4(%arg0: i32) -> (i32, i32) {
    %c0_i32 = arith.constant 0 : i32
    %c0_i32_0 = arith.constant 0 : i32
    %c0_i32_1 = arith.constant 0 : i32
    return %c0_i32, %c0_i32_0 : i32, i32
  }
  func.func @transform_5(%arg0: i32) -> (i32, i32) {
    %c0_i32 = arith.constant 0 : i32
    %c0_i32_0 = arith.constant 0 : i32
    %c0_i32_1 = arith.constant 0 : i32
    return %c0_i32, %c0_i32_0 : i32, i32
  }
  func.func @transform_6(%arg0: i32) -> (i32, i32) {
    %c0_i32 = arith.constant 0 : i32
    %c0_i32_0 = arith.constant 0 : i32
    %c0_i32_1 = arith.constant 0 : i32
    return %c0_i32, %c0_i32_0 : i32, i32
  }
  func.func @transform_7(%arg0: i32) -> (i32, i32) {
    %c0_i32 = arith.constant 0 : i32
    %c0_i32_0 = arith.constant 0 : i32
    %c0_i32_1 = arith.constant 0 : i32
    return %c0_i32, %c0_i32_0 : i32, i32
  }
  func.func @transform_8(%arg0: i32) -> (i32, i32) {
    %c0_i32 = arith.constant 0 : i32
    %c0_i32_0 = arith.constant 0 : i32
    %c0_i32_1 = arith.constant 0 : i32
    return %c0_i32, %c0_i32_0 : i32, i32
  }
  func.func @transform_9(%arg0: i32) -> (i32, i32) {
    %c0_i32 = arith.constant 0 : i32
    %c0_i32_0 = arith.constant 0 : i32
    %c0_i32_1 = arith.constant 0 : i32
    return %c0_i32, %c0_i32_0 : i32, i32
  }
  func.func @transform_10(%arg0: i32) -> (i32, i32) {
    %c0_i32 = arith.constant 0 : i32
    %c0_i32_0 = arith.constant 0 : i32
    %c0_i32_1 = arith.constant 0 : i32
    return %c0_i32, %c0_i32_0 : i32, i32
  }
  func.func @transform_11(%arg0: i32) -> (i32, i32) {
    %c0_i32 = arith.constant 0 : i32
    %c0_i32_0 = arith.constant 0 : i32
    %c0_i32_1 = arith.constant 0 : i32
    return %c0_i32, %c0_i32_0 : i32, i32
  }
  func.func @transform_12(%arg0: i32) -> (i32, i32) {
    %c0_i32 = arith.constant 0 : i32
    %c0_i32_0 = arith.constant 0 : i32
    return %arg0, %c0_i32 : i32, i32
  }
}

</mosaic_0001>

<bundles_post_ra>
// kernel: tpu_custom_call.1
= control target key start
LH: loop header
LB: loop body
LE: loop exit
PB: predicated region body
PF: predicated region fallthrough
CT: control target
= control target key end

     0   :  { %17 = vsyncpa [#allocation3], 0  ;;  %s4386_s0 = inlined_call_operand.hbm [shape: f32[8,32], index: 0, kind: input, shape index: {}]   ;;  %s4387_s1 = inlined_call_operand.hbm [shape: f32[4], index: 1, kind: input, shape index: {}]   ;;  %s4388_s2 = inlined_call_operand.hbm [shape: f32[32,768], index: 2, kind: input, shape index: {}]   ;;  %s4389_s3 = inlined_call_operand.hbm [shape: f32[1,768], index: 3, kind: input, shape index: {}]   ;;  %s4390_s4 = inlined_call_operand.hbm [shape: f32[768,768], index: 4, kind: input, shape index: {}]   ;;  %s4391_s5 = inlined_call_operand.hbm [shape: f32[1,768], index: 5, kind: input, shape index: {}]   ;;  %s4392_s6 = inlined_call_operand.hbm [shape: f32[768,768], index: 6, kind: input, shape index: {}]   ;;  %s4393_s7 = inlined_call_operand.hbm [shape: f32[1,768], index: 7, kind: input, shape index: {}]   ;;  %s4394_s8 = inlined_call_operand.vmem [shape: f32[768,32], index: 8, kind: input, shape index: {}]   ;;  %s4395_s9 = inlined_call_operand.hbm [shape: f32[1,32], index: 9, kind: input, shape index: {}]   ;;  %s4396_s10 = inlined_call_operand.vmem [shape: f32[32,8], index: 10, kind: input, shape index: {}]   ;;  %s4397_s11 = inlined_call_operand.hbm [shape: f32[1,8], index: 11, kind: input, shape index: {}]   ;;  %s4398_s12 = inlined_call_operand.hbm [shape: f32[8,128], index: 12, kind: output, shape index: {}]  }
   0x1   :  { %18 = vsyncpa [#allocation5], 0 }
   0x2   :  { %19 = vsyncpa [#allocation8], 0 }
   0x3   :  { %20 = vsyncpa [#allocation11], 0 }
   0x4   :  { %21 = vsyncpa [#allocation14], 0 }
   0x5   :  { %22 = vsyncpa [#allocation17], 0 }
   0x6   :  { %23 = vsyncpa [#allocation4], 0  ;;  %s3808_s21 = smov [#allocation7]  }
   0x7   :  { %s47_s22 = sshll.u32 %s3808_s21, 4  ;;  %s48_s22 = int_to_ptr.vmem [resolvable:$true] %s47_s22 }
   0x8   :  { %s3594_s23 = scalar_lea.vmem %s48_s22, 3072  ;;  %p3599_p1 = scmp.lt.s32.totalorder %s48_s22, %s48_s22 }
   0x9   :  { %p3595_p0 = scmp.ne.s32.totalorder %s48_s22, %s3594_s23  ;;  %p3600_p2 = scmp.lt.s32.totalorder %s3594_s23, %s3594_s23 }
   0xb   :  { %p3601_p3 = por %p3600_p2, %p3599_p1 }
   0xd   :  { %p3602_p4 = pnand %p3601_p3, %p3595_p0 }
   0xf   :  { %3605 = shalt.err (!%p3602_p4)
}
  0x10   :  { %s3809_s24 = smov 768   ;;  %s3810_s25 = smov 48  }
  0x11   :  { %53 = dma.hbm_to_vmem [thread:$0]  %s4388_s2, 3072, %s48_s22, [#allocation8], %s3809_s24, %s3809_s24, %s3810_s25  }
  0x12   :  { %s3811_s28 = smov [#allocation10]   ;;  %s3812_s30 = smov [#allocation13]  }
  0x13   :  { %s69_s29 = sshll.u32 %s3811_s28, 4  ;;  %s91_s13 = sshll.u32 %s3812_s30, 4  ;;  %s70_s29 = int_to_ptr.vmem [resolvable:$true] %s69_s29  ;;  %s92_s13 = int_to_ptr.vmem [resolvable:$true] %s91_s13 }
  0x14   :  { %s3614_s14 = scalar_lea.vmem %s70_s29, 73728  ;;  %p3619_p6 = scmp.lt.s32.totalorder %s70_s29, %s70_s29 }
  0x15   :  { %p3615_p5 = scmp.ne.s32.totalorder %s70_s29, %s3614_s14  ;;  %p3620_p7 = scmp.lt.s32.totalorder %s3614_s14, %s3614_s14 }
  0x17   :  { %p3621_p8 = por %p3620_p7, %p3619_p6 }
  0x19   :  { %p3622_p9 = pnand %p3621_p8, %p3615_p5 }
  0x1b   :  { %3625 = shalt.err (!%p3622_p9)
}
  0x1c   :  { %75 = dma.hbm_to_vmem [thread:$0]  %s4390_s4, 73728, %s70_s29, [#allocation11], %s3809_s24, %s3809_s24, %s3810_s25  }
  0x1d   :  { %s3634_s17 = scalar_lea.vmem %s92_s13, 73728  ;;  %p3639_p11 = scmp.lt.s32.totalorder %s92_s13, %s92_s13 }
  0x1e   :  { %p3635_p10 = scmp.ne.s32.totalorder %s92_s13, %s3634_s17  ;;  %p3640_p12 = scmp.lt.s32.totalorder %s3634_s17, %s3634_s17 }
  0x20   :  { %p3641_p13 = por %p3640_p12, %p3639_p11 }
  0x22   :  { %p3642_p0 = pnand %p3641_p13, %p3635_p10 }
  0x24   :  { %3645 = shalt.err (!%p3642_p0)
}
  0x25   :  { %97 = dma.hbm_to_vmem [thread:$0]  %s4392_s6, 73728, %s92_s13, [#allocation14], %s3809_s24, %s3809_s24, %s3810_s25  }
  0x26   :  { %s3813_s19 = smov [#allocation16]   ;;  %s3814_s21 = smov [#allocation2]  }
  0x27   :  { %s116_s20 = sshll.u32 %s3813_s19, 4  ;;  %s30_s22 = sshll.u32 %s3814_s21, 4  ;;  %s117_s20 = int_to_ptr.vmem [resolvable:$true] %s116_s20  ;;  %s31_s22 = int_to_ptr.vmem [resolvable:$true] %s30_s22 }
  0x28   :  { %s3654_s23 = scalar_lea.vmem %s117_s20, 16  ;;  %s3658_s4 = scalar_lea.vmem %s117_s20, 32 }
  0x29   :  { %p3655_p1 = scmp.ne.s32.totalorder %s117_s20, %s3654_s23  ;;  %p3659_p2 = scmp.lt.s32.totalorder %s117_s20, %s117_s20 }
  0x2a   :  { %p3660_p3 = scmp.lt.s32.totalorder %s3658_s4, %s3654_s23 }
  0x2c   :  { %p3661_p4 = por %p3660_p3, %p3659_p2 }
  0x2e   :  { %p3662_p5 = pnand %p3661_p4, %p3655_p1 }
  0x30   :  { %3665 = shalt.err (!%p3662_p5)
}
  0x31   :  { %119 = dma.hbm_to_vmem [thread:$0]  %s4395_s9, 16, %s117_s20, [#allocation17]  }
  0x32   :  { %s3674_s28 = scalar_lea.vmem %s31_s22, 128  ;;  %p3679_p7 = scmp.lt.s32.totalorder %s31_s22, %s31_s22 }
  0x33   :  { %p3675_p6 = scmp.ne.s32.totalorder %s31_s22, %s3674_s28  ;;  %p3680_p8 = scmp.lt.s32.totalorder %s3674_s28, %s3674_s28 }
  0x35   :  { %p3681_p9 = por %p3680_p8, %p3679_p7 }
  0x37   :  { %p3682_p10 = pnand %p3681_p9, %p3675_p6 }
  0x39   :  { %3685 = shalt.err (!%p3682_p10)
}
  0x3a   :  { %33 = dma.hbm_to_vmem [thread:$0]  %s4386_s0, 128, %s31_s22, [#allocation3]  }
  0x3b   :  { %s3815_s25 = smov [#allocation6]   ;;  %s3816_s13 = smov [#allocation9]  }
  0x3c   :  { %41 = dma.hbm_to_smem %s4387_s1, 16, %s3815_s25, [#allocation5]  }
  0x3d   :  { %s60_s14 = sshll.u32 %s3816_s13, 4  ;;  %s3817_s9 = smov [#allocation12]   ;;  %s61_s14 = int_to_ptr.vmem [resolvable:$true] %s60_s14 }
  0x3e   :  { %s82_s15 = sshll.u32 %s3817_s9, 4  ;;  %s3702_s16 = scalar_lea.vmem %s61_s14, 96  ;;  %s83_s15 = int_to_ptr.vmem [resolvable:$true] %s82_s15 }
  0x3f   :  { %p3703_p11 = scmp.ne.s32.totalorder %s61_s14, %s3702_s16  ;;  %p3707_p12 = scmp.lt.s32.totalorder %s61_s14, %s61_s14 }
  0x40   :  { %p3708_p13 = scmp.lt.s32.totalorder %s3702_s16, %s3702_s16 }
  0x42   :  { %p3709_p0 = por %p3708_p13, %p3707_p12 }
  0x44   :  { %p3710_p1 = pnand %p3709_p0, %p3703_p11 }
  0x46   :  { %3713 = shalt.err (!%p3710_p1)
}
  0x47   :  { %63 = dma.hbm_to_vmem [thread:$0]  %s4389_s3, 96, %s61_s14, [#allocation8]  }
  0x48   :  { %s3722_s2 = scalar_lea.vmem %s83_s15, 96  ;;  %p3727_p3 = scmp.lt.s32.totalorder %s83_s15, %s83_s15 }
  0x49   :  { %p3723_p2 = scmp.ne.s32.totalorder %s83_s15, %s3722_s2  ;;  %p3728_p4 = scmp.lt.s32.totalorder %s3722_s2, %s3722_s2 }
  0x4b   :  { %p3729_p5 = por %p3728_p4, %p3727_p3 }
  0x4d   :  { %p3730_p6 = pnand %p3729_p5, %p3723_p2 }
  0x4f   :  { %3733 = shalt.err (!%p3730_p6)
}
  0x50   :  { %85 = dma.hbm_to_vmem [thread:$0]  %s4391_s5, 96, %s83_s15, [#allocation11]  }
  0x51   :  { %s3818_s19 = smov [#allocation15]   ;;  %s3819_s21 = smov [#allocation18]  }
  0x52   :  { %s104_s20 = sshll.u32 %s3818_s19, 4  ;;  %s128_s22 = sshll.u32 %s3819_s21, 4  ;;  %s105_s20 = int_to_ptr.vmem [resolvable:$true] %s104_s20  ;;  %s129_s22 = int_to_ptr.vmem [resolvable:$true] %s128_s22 }
  0x53   :  { %s3742_s23 = scalar_lea.vmem %s105_s20, 96  ;;  %p3747_p8 = scmp.lt.s32.totalorder %s105_s20, %s105_s20 }
  0x54   :  { %p3743_p7 = scmp.ne.s32.totalorder %s105_s20, %s3742_s23  ;;  %p3748_p9 = scmp.lt.s32.totalorder %s3742_s23, %s3742_s23 }
  0x56   :  { %p3749_p10 = por %p3748_p9, %p3747_p8 }
  0x58   :  { %p3750_p11 = pnand %p3749_p10, %p3743_p7 }
  0x5a   :  { %3753 = shalt.err (!%p3750_p11)
}
  0x5b   :  { %107 = dma.hbm_to_vmem [thread:$0]  %s4393_s7, 96, %s105_s20, [#allocation14]  }
  0x5c   :  { %s3762_s26 = scalar_lea.vmem %s129_s22, 16  ;;  %s3766_s5 = scalar_lea.vmem %s129_s22, 32 }
  0x5d   :  { %p3763_p12 = scmp.ne.s32.totalorder %s129_s22, %s3762_s26  ;;  %p3767_p13 = scmp.lt.s32.totalorder %s129_s22, %s129_s22 }
  0x5e   :  { %p3768_p0 = scmp.lt.s32.totalorder %s3766_s5, %s3762_s26 }
  0x60   :  { %p3769_p1 = por %p3768_p0, %p3767_p13 }
  0x62   :  { %p3770_p2 = pnand %p3769_p1, %p3763_p12 }
  0x64   :  { %3773 = shalt.err (!%p3770_p2)
}
  0x65   :  { %131 = dma.hbm_to_vmem [thread:$0]  %s4397_s11, 16, %s129_s22, [#allocation17]  }
  0x66   :  { %3794 = dma.done.wait [#allocation3], 128  }
  0x67   :  { %3795 = vsyncadd [#allocation3], 4294967168 }
  0x68   :  { %3796 = dma.done.wait [#allocation5], 16  }
  0x69   :  { %3797 = vsyncadd [#allocation5], 4294967280 }
  0x6a   :  { %3798 = dma.done.wait [#allocation8], 3168  }
  0x6b   :  { %3799 = vsyncadd [#allocation8], 4294964128 }
  0x6c   :  { %3800 = dma.done.wait [#allocation11], 73824  }
  0x6d   :  { %3801 = vsyncadd [#allocation11], 4294893472 }
  0x6e   :  { %3802 = dma.done.wait [#allocation14], 73824  }
  0x6f   :  { %3803 = vsyncadd [#allocation14], 4294893472 }
  0x70   :  { %3804 = dma.done.wait [#allocation17], 32  }
  0x71   :  { %3805 = vsyncadd [#allocation17], 4294967264 }
  0x72   :  { %162 = sfence }
  0x73   :  { %v187_v0 = vld [vmem:[#allocation7 + $0x98] sm:$0xff]  ;;  %v186_v1 = vld [vmem:[#allocation7 + $0x90] sm:$0xff]  ;;  %v181_v2 = vld [vmem:[#allocation7 + $0x68] sm:$0xff]  ;;  %v3820_v4 = vmov 0.0   ;;  %vm224_vm0 = vcmask 261120   ;;  %s163_s7 = sld [smem:[#allocation6]] }
  0x74   :  { %252 = vmatprep.subr.mxu0 %v187_v0  ;;  %v180_v3 = vld [vmem:[#allocation7 + $0x60] sm:$0xff]  ;;  %292 = vmatprep.mubr.f32.mxu0 %v3820_v4  ;;  %3406 = vst [vmem:[#allocation19] sm:$0xff] %v3820_v4  ;;  %v175_v5 = vld [vmem:[#allocation7 + $0x38] sm:$0xff]  ;;  %v174_v6 = vld [vmem:[#allocation7 + $0x30] sm:$0xff]  ;;  %s4002_s11 = sld [smem:[#allocation6 + $0x1]]  ;;  %s3823_s13 = smov [#allocation19]  }
  0x75   :  { %253 = vmatpush1.msra.mxu0 %v186_v1  ;;  %v169_v7 = vld [vmem:[#allocation7 + $0x8] sm:$0xff]  ;;  %v168_v8 = vld [vmem:[#allocation7] sm:$0xff]  ;;  %v3919_v9 = vld [vmem:[#allocation2] sm:$0xff]  ;;  %s3435_s15 = sld [smem:[#allocation6 + $0x2]]  ;;  %s3420_s14 = sshll.u32 %s3823_s13, 4  ;;  %s3421_s14 = int_to_ptr.vmem [resolvable:$true] %s3420_s14 }
  0x76   :  { %254 = vmatprep.subr.mxu0 %v181_v2  ;;  %v189_v10 = vld [vmem:[#allocation7 + $0xa8] sm:$0xff]  ;;  %v188_v11 = vld [vmem:[#allocation7 + $0xa0] sm:$0xff]  ;;  %v183_v12 = vld [vmem:[#allocation7 + $0x78] sm:$0xff]  ;;  %s3436_s30 = sld [smem:[#allocation6 + $0x3]]  ;;  %s3774_s9 = scalar_lea.vmem %s3421_s14, 128 }
  0x77   :  { %255 = vmatpush1.msra.mxu0 %v180_v3  ;;  %v551_v13 = vld [vmem:[#allocation10 + $0x2d8] sm:$0xff]  ;;  %v182_v14 = vld [vmem:[#allocation7 + $0x70] sm:$0xff]  ;;  %v177_v16 = vld [vmem:[#allocation7 + $0x48] sm:$0xff]  ;;  %p3775_p3 = scmp.ne.s32.totalorder %s3421_s14, %s3774_s9  ;;  %p3779_p4 = scmp.lt.s32.totalorder %s3421_s14, %s3421_s14 }
  0x78   :  { %256 = vmatprep.subr.mxu0 %v175_v5  ;;  %v550_v15 = vld [vmem:[#allocation10 + $0x2d0] sm:$0xff]  ;;  %v545_v17 = vld [vmem:[#allocation10 + $0x2a8] sm:$0xff]  ;;  %v176_v18 = vld [vmem:[#allocation7 + $0x40] sm:$0xff]  ;;  %1068 = vmatprep.subr.mxu1 %v551_v13  ;;  %p3780_p5 = scmp.lt.s32.totalorder %s3774_s9, %s3774_s9 }
  0x79   :  { %257 = vmatpush1.msra.mxu0 %v174_v6  ;;  %v544_v19 = vld [vmem:[#allocation10 + $0x2a0] sm:$0xff]  ;;  %v171_v20 = vld [vmem:[#allocation7 + $0x18] sm:$0xff]  ;;  %1069 = vmatpush1.msra.mxu1 %v550_v15  ;;  %v170_v22 = vld [vmem:[#allocation7 + $0x10] sm:$0xff] }
  0x7a   :  { %258 = vmatprep.subr.mxu0 %v169_v7  ;;  %v539_v21 = vld [vmem:[#allocation10 + $0x278] sm:$0xff]  ;;  %1070 = vmatprep.subr.mxu1 %v545_v17  ;;  %v538_v23 = vld [vmem:[#allocation10 + $0x270] sm:$0xff]  ;;  %v185_v26 = vld [vmem:[#allocation7 + $0x88] sm:$0xff]  ;;  %p3781_p6 = por %p3780_p5, %p3779_p4 }
  0x7b   :  { %259 = vmatpush1.msra.mxu0 %v168_v8  ;;  %v191_v24 = vld [vmem:[#allocation7 + $0xb8] sm:$0xff]  ;;  %1071 = vmatpush1.msra.mxu1 %v544_v19  ;;  %v190_v25 = vld [vmem:[#allocation7 + $0xb0] sm:$0xff]  ;;  %v184_v28 = vld [vmem:[#allocation7 + $0x80] sm:$0xff] }
  0x7c   :  { %3437 = vmatmul.mubr.msk.f32.vlgmr.msra.gmra.mxu0 %vm224_vm0, %v3919_v9  ;;  %323 = vmatprep.subr.mxu0 %v189_v10  ;;  %v533_v27 = vld [vmem:[#allocation10 + $0x248] sm:$0xff]  ;;  %v532_v29 = vld [vmem:[#allocation10 + $0x240] sm:$0xff]  ;;  %v179_v30 = vld [vmem:[#allocation7 + $0x58] sm:$0xff]  ;;  %p3782_p7 = pnand %p3781_p6, %p3775_p3 }
  0x7d   :  { %324 = vmatpush1.msra.mxu0 %v188_v11  ;;  %363 = vmatprep.mubr.f32.mxu0 %v3820_v4  ;;  %v527_v31 = vld [vmem:[#allocation10 + $0x218] sm:$0xff]  ;;  %v178_v32 = vld [vmem:[#allocation7 + $0x50] sm:$0xff]  ;;  %v173_v34 = vld [vmem:[#allocation7 + $0x28] sm:$0xff] }
  0x7e   :  { %325 = vmatprep.subr.mxu0 %v183_v12  ;;  %1072 = vmatprep.subr.mxu1 %v539_v21  ;;  %v526_v33 = vld [vmem:[#allocation10 + $0x210] sm:$0xff]  ;;  %v521_v35 = vld [vmem:[#allocation10 + $0x1e8] sm:$0xff]  ;;  %v172_v36 = vld [vmem:[#allocation7 + $0x20] sm:$0xff] }
  0x7f   :  { %326 = vmatpush1.msra.mxu0 %v182_v14  ;;  %1073 = vmatpush1.msra.mxu1 %v538_v23  ;;  %v520_v37 = vld [vmem:[#allocation10 + $0x1e0] sm:$0xff]  ;;  %v743_v38 = vld [vmem:[#allocation10 + $0x8d8] sm:$0xff]  ;;  %v742_v39 = vld [vmem:[#allocation10 + $0x8d0] sm:$0xff] }
  0x80   :  { %327 = vmatprep.subr.mxu0 %v177_v16  ;;  %1074 = vmatprep.subr.mxu1 %v533_v27  ;;  %v515_v40 = vld [vmem:[#allocation10 + $0x1b8] sm:$0xff]  ;;  %v737_v41 = vld [vmem:[#allocation10 + $0x8a8] sm:$0xff]  ;;  %v514_v42 = vld [vmem:[#allocation10 + $0x1b0] sm:$0xff] }
  0x81   :  { %328 = vmatpush1.msra.mxu0 %v176_v18  ;;  %1075 = vmatpush1.msra.mxu1 %v532_v29  ;;  %v736_v43 = vld [vmem:[#allocation10 + $0x8a0] sm:$0xff]  ;;  %v509_v44 = vld [vmem:[#allocation10 + $0x188] sm:$0xff]  ;;  %v731_v45 = vld [vmem:[#allocation10 + $0x878] sm:$0xff] }
  0x82   :  { %329 = vmatprep.subr.mxu0 %v171_v20  ;;  %1076 = vmatprep.subr.mxu1 %v527_v31  ;;  %v508_v46 = vld [vmem:[#allocation10 + $0x180] sm:$0xff]  ;;  %v730_v47 = vld [vmem:[#allocation10 + $0x870] sm:$0xff]  ;;  %v503_v48 = vld [vmem:[#allocation10 + $0x158] sm:$0xff] }
  0x83   :  { %330 = vmatpush1.msra.mxu0 %v170_v22  ;;  %1077 = vmatpush1.msra.mxu1 %v526_v33  ;;  %v725_v49 = vld [vmem:[#allocation10 + $0x848] sm:$0xff]  ;;  %v502_v50 = vld [vmem:[#allocation10 + $0x150] sm:$0xff]  ;;  %v724_v51 = vld [vmem:[#allocation10 + $0x840] sm:$0xff] }
  0x84   :  { %3438 = vmatmul.mubr.msk.f32.vlgmr.msra.gmra.mxu0 %vm224_vm0, %v3919_v9  ;;  %394 = vmatprep.subr.mxu0 %v191_v24  ;;  %v497_v52 = vld [vmem:[#allocation10 + $0x128] sm:$0xff]  ;;  %v719_v53 = vld [vmem:[#allocation10 + $0x818] sm:$0xff]  ;;  %v496_v54 = vld [vmem:[#allocation10 + $0x120] sm:$0xff] }
  0x85   :  { %395 = vmatpush1.msra.mxu0 %v190_v25  ;;  %434 = vmatprep.mubr.f32.mxu0 %v3820_v4  ;;  %v718_v55 = vld [vmem:[#allocation10 + $0x810] sm:$0xff]  ;;  %v491_v56 = vld [vmem:[#allocation10 + $0xf8] sm:$0xff]  ;;  %v713_v57 = vld [vmem:[#allocation10 + $0x7e8] sm:$0xff] }
  0x86   :  { %396 = vmatprep.subr.mxu0 %v185_v26  ;;  %1078 = vmatprep.subr.mxu1 %v521_v35  ;;  %v490_v58 = vld [vmem:[#allocation10 + $0xf0] sm:$0xff]  ;;  %v712_v59 = vld [vmem:[#allocation10 + $0x7e0] sm:$0xff]  ;;  %v485_v60 = vld [vmem:[#allocation10 + $0xc8] sm:$0xff] }
  0x87   :  { %397 = vmatpush1.msra.mxu0 %v184_v28  ;;  %1079 = vmatpush1.msra.mxu1 %v520_v37  ;;  %v707_v61 = vld [vmem:[#allocation10 + $0x7b8] sm:$0xff]  ;;  %v484_v62 = vld [vmem:[#allocation10 + $0xc0] sm:$0xff]  ;;  %v706_v63 = vld [vmem:[#allocation10 + $0x7b0] sm:$0xff] }
  0x88   :  { %398 = vmatprep.subr.mxu0 %v179_v30  ;;  %1080 = vmatprep.subr.mxu1 %v515_v40  ;;  %v479_v0 = vld [vmem:[#allocation10 + $0x98] sm:$0xff]  ;;  %v701_v1 = vld [vmem:[#allocation10 + $0x788] sm:$0xff]  ;;  %v478_v2 = vld [vmem:[#allocation10 + $0x90] sm:$0xff] }
  0x89   :  { %399 = vmatpush1.msra.mxu0 %v178_v32  ;;  %1081 = vmatpush1.msra.mxu1 %v514_v42  ;;  %v700_v3 = vld [vmem:[#allocation10 + $0x780] sm:$0xff]  ;;  %v473_v4 = vld [vmem:[#allocation10 + $0x68] sm:$0xff]  ;;  %v695_v5 = vld [vmem:[#allocation10 + $0x758] sm:$0xff] }
  0x8a   :  { %400 = vmatprep.subr.mxu0 %v173_v34  ;;  %1082 = vmatprep.subr.mxu1 %v509_v44  ;;  %v472_v6 = vld [vmem:[#allocation10 + $0x60] sm:$0xff]  ;;  %v694_v7 = vld [vmem:[#allocation10 + $0x750] sm:$0xff]  ;;  %v467_v8 = vld [vmem:[#allocation10 + $0x38] sm:$0xff] }
  0x8b   :  { %401 = vmatpush1.msra.mxu0 %v172_v36  ;;  %1083 = vmatpush1.msra.mxu1 %v508_v46  ;;  %v466_v10 = vld [vmem:[#allocation10 + $0x30] sm:$0xff]  ;;  %v688_v11 = vld [vmem:[#allocation10 + $0x720] sm:$0xff]  ;;  %v461_v12 = vld [vmem:[#allocation10 + $0x8] sm:$0xff] }
  0x8c   :  { %3439 = vmatmul.mubr.msk.f32.vlgmr.msra.gmra.mxu0 %vm224_vm0, %v3919_v9  ;;  %1139 = vmatprep.subr.mxu0 %v743_v38  ;;  %v689_v9 = vld [vmem:[#allocation10 + $0x728] sm:$0xff]  ;;  %v683_v13 = vld [vmem:[#allocation10 + $0x6f8] sm:$0xff]  ;;  %v460_v14 = vld [vmem:[#allocation10] sm:$0xff] }
  0x8d   :  { %1140 = vmatpush1.msra.mxu0 %v742_v39  ;;  %1084 = vmatprep.subr.mxu1 %v503_v48  ;;  %v682_v15 = vld [vmem:[#allocation10 + $0x6f0] sm:$0xff]  ;;  %v647_v16 = vld [vmem:[#allocation10 + $0x5d8] sm:$0xff]  ;;  %v677_v17 = vld [vmem:[#allocation10 + $0x6c8] sm:$0xff] }
  0x8e   :  { %1141 = vmatprep.subr.mxu0 %v737_v41  ;;  %1085 = vmatpush1.msra.mxu1 %v502_v50  ;;  %v646_v18 = vld [vmem:[#allocation10 + $0x5d0] sm:$0xff]  ;;  %v676_v19 = vld [vmem:[#allocation10 + $0x6c0] sm:$0xff]  ;;  %v641_v20 = vld [vmem:[#allocation10 + $0x5a8] sm:$0xff] }
  0x8f   :  { %1142 = vmatpush1.msra.mxu0 %v736_v43  ;;  %1086 = vmatprep.subr.mxu1 %v497_v52  ;;  %v671_v21 = vld [vmem:[#allocation10 + $0x698] sm:$0xff]  ;;  %v640_v22 = vld [vmem:[#allocation10 + $0x5a0] sm:$0xff]  ;;  %v670_v23 = vld [vmem:[#allocation10 + $0x690] sm:$0xff] }
  0x90   :  { %1143 = vmatprep.subr.mxu0 %v731_v45  ;;  %1087 = vmatpush1.msra.mxu1 %v496_v54  ;;  %v635_v24 = vld [vmem:[#allocation10 + $0x578] sm:$0xff]  ;;  %v665_v25 = vld [vmem:[#allocation10 + $0x668] sm:$0xff]  ;;  %v634_v26 = vld [vmem:[#allocation10 + $0x570] sm:$0xff] }
  0x91   :  { %1144 = vmatpush1.msra.mxu0 %v730_v47  ;;  %1088 = vmatprep.subr.mxu1 %v491_v56  ;;  %v664_v27 = vld [vmem:[#allocation10 + $0x660] sm:$0xff]  ;;  %v629_v28 = vld [vmem:[#allocation10 + $0x548] sm:$0xff]  ;;  %v659_v29 = vld [vmem:[#allocation10 + $0x638] sm:$0xff] }
  0x92   :  { %1145 = vmatprep.subr.mxu0 %v725_v49  ;;  %1089 = vmatpush1.msra.mxu1 %v490_v58  ;;  %v628_v30 = vld [vmem:[#allocation10 + $0x540] sm:$0xff]  ;;  %v658_v31 = vld [vmem:[#allocation10 + $0x630] sm:$0xff]  ;;  %v623_v32 = vld [vmem:[#allocation10 + $0x518] sm:$0xff] }
  0x93   :  { %1146 = vmatpush1.msra.mxu0 %v724_v51  ;;  %1090 = vmatprep.subr.mxu1 %v485_v60  ;;  %v653_v33 = vld [vmem:[#allocation10 + $0x608] sm:$0xff]  ;;  %v622_v34 = vld [vmem:[#allocation10 + $0x510] sm:$0xff]  ;;  %v652_v35 = vld [vmem:[#allocation10 + $0x600] sm:$0xff] }
  0x94   :  { %1147 = vmatprep.subr.mxu0 %v719_v53  ;;  %1091 = vmatpush1.msra.mxu1 %v484_v62  ;;  %v617_v36 = vld [vmem:[#allocation10 + $0x4e8] sm:$0xff]  ;;  %v839_v37 = vld [vmem:[#allocation10 + $0xbd8] sm:$0xff]  ;;  %v616_v38 = vld [vmem:[#allocation10 + $0x4e0] sm:$0xff] }
  0x95   :  { %1148 = vmatpush1.msra.mxu0 %v718_v55  ;;  %1092 = vmatprep.subr.mxu1 %v479_v0  ;;  %v838_v39 = vld [vmem:[#allocation10 + $0xbd0] sm:$0xff]  ;;  %v611_v40 = vld [vmem:[#allocation10 + $0x4b8] sm:$0xff]  ;;  %v833_v41 = vld [vmem:[#allocation10 + $0xba8] sm:$0xff] }
  0x96   :  { %1149 = vmatprep.subr.mxu0 %v713_v57  ;;  %1093 = vmatpush1.msra.mxu1 %v478_v2  ;;  %v610_v42 = vld [vmem:[#allocation10 + $0x4b0] sm:$0xff]  ;;  %v832_v43 = vld [vmem:[#allocation10 + $0xba0] sm:$0xff]  ;;  %v605_v44 = vld [vmem:[#allocation10 + $0x488] sm:$0xff] }
  0x97   :  { %1150 = vmatpush1.msra.mxu0 %v712_v59  ;;  %1094 = vmatprep.subr.mxu1 %v473_v4  ;;  %v827_v45 = vld [vmem:[#allocation10 + $0xb78] sm:$0xff]  ;;  %v604_v46 = vld [vmem:[#allocation10 + $0x480] sm:$0xff]  ;;  %v826_v47 = vld [vmem:[#allocation10 + $0xb70] sm:$0xff] }
  0x98   :  { %1151 = vmatprep.subr.mxu0 %v707_v61  ;;  %1095 = vmatpush1.msra.mxu1 %v472_v6  ;;  %v599_v48 = vld [vmem:[#allocation10 + $0x458] sm:$0xff]  ;;  %v821_v49 = vld [vmem:[#allocation10 + $0xb48] sm:$0xff]  ;;  %v598_v50 = vld [vmem:[#allocation10 + $0x450] sm:$0xff] }
  0x99   :  { %1152 = vmatpush1.msra.mxu0 %v706_v63  ;;  %1096 = vmatprep.subr.mxu1 %v467_v8  ;;  %v820_v51 = vld [vmem:[#allocation10 + $0xb40] sm:$0xff]  ;;  %v593_v52 = vld [vmem:[#allocation10 + $0x428] sm:$0xff]  ;;  %v815_v53 = vld [vmem:[#allocation10 + $0xb18] sm:$0xff] }
  0x9a   :  { %1153 = vmatprep.subr.mxu0 %v701_v1  ;;  %1097 = vmatpush1.msra.mxu1 %v466_v10  ;;  %v592_v54 = vld [vmem:[#allocation10 + $0x420] sm:$0xff]  ;;  %v814_v55 = vld [vmem:[#allocation10 + $0xb10] sm:$0xff]  ;;  %v587_v56 = vld [vmem:[#allocation10 + $0x3f8] sm:$0xff] }
  0x9b   :  { %1154 = vmatpush1.msra.mxu0 %v700_v3  ;;  %1098 = vmatprep.subr.mxu1 %v461_v12  ;;  %v809_v57 = vld [vmem:[#allocation10 + $0xae8] sm:$0xff]  ;;  %v586_v58 = vld [vmem:[#allocation10 + $0x3f0] sm:$0xff]  ;;  %v808_v59 = vld [vmem:[#allocation10 + $0xae0] sm:$0xff] }
  0x9c   :  { %1155 = vmatprep.subr.mxu0 %v695_v5  ;;  %1099 = vmatpush1.msra.mxu1 %v460_v14  ;;  %v581_v60 = vld [vmem:[#allocation10 + $0x3c8] sm:$0xff]  ;;  %v803_v61 = vld [vmem:[#allocation10 + $0xab8] sm:$0xff]  ;;  %v580_v62 = vld [vmem:[#allocation10 + $0x3c0] sm:$0xff] }
  0x9d   :  { %1156 = vmatpush1.msra.mxu0 %v694_v7  ;;  %1100 = vmatprep.subr.mxu1 %v647_v16  ;;  %v802_v63 = vld [vmem:[#allocation10 + $0xab0] sm:$0xff]  ;;  %v797_v0 = vld [vmem:[#allocation10 + $0xa88] sm:$0xff]  ;;  %v796_v1 = vld [vmem:[#allocation10 + $0xa80] sm:$0xff] }
  0x9e   :  { %1157 = vmatprep.subr.mxu0 %v689_v9  ;;  %1101 = vmatpush2.msra.mxu1 %v646_v18  ;;  %v575_v2 = vld [vmem:[#allocation10 + $0x398] sm:$0xff]  ;;  %v574_v4 = vld [vmem:[#allocation10 + $0x390] sm:$0xff]  ;;  %v569_v6 = vld [vmem:[#allocation10 + $0x368] sm:$0xff] }
  0x9f   :  { %1158 = vmatpush1.msra.mxu0 %v688_v11  ;;  %1102 = vmatprep.subr.mxu1 %v641_v20  ;;  %v791_v3 = vld [vmem:[#allocation10 + $0xa58] sm:$0xff]  ;;  %v790_v5 = vld [vmem:[#allocation10 + $0xa50] sm:$0xff]  ;;  %v785_v7 = vld [vmem:[#allocation10 + $0xa28] sm:$0xff] }
  0xa0   :  { %1159 = vmatprep.subr.mxu0 %v683_v13  ;;  %1103 = vmatpush2.msra.mxu1 %v640_v22  ;;  %v568_v8 = vld [vmem:[#allocation10 + $0x360] sm:$0xff]  ;;  %v563_v10 = vld [vmem:[#allocation10 + $0x338] sm:$0xff]  ;;  %v562_v12 = vld [vmem:[#allocation10 + $0x330] sm:$0xff] }
  0xa1   :  { %1160 = vmatpush1.msra.mxu0 %v682_v15  ;;  %1104 = vmatprep.subr.mxu1 %v635_v24  ;;  %v784_v9 = vld [vmem:[#allocation10 + $0xa20] sm:$0xff]  ;;  %v779_v11 = vld [vmem:[#allocation10 + $0x9f8] sm:$0xff]  ;;  %v778_v13 = vld [vmem:[#allocation10 + $0x9f0] sm:$0xff] }
  0xa2   :  { %1161 = vmatprep.subr.mxu0 %v677_v17  ;;  %1105 = vmatpush2.msra.mxu1 %v634_v26  ;;  %v557_v14 = vld [vmem:[#allocation10 + $0x308] sm:$0xff]  ;;  %v556_v16 = vld [vmem:[#allocation10 + $0x300] sm:$0xff]  ;;  %v767_v18 = vld [vmem:[#allocation10 + $0x998] sm:$0xff] }
  0xa3   :  { %1162 = vmatpush1.msra.mxu0 %v676_v19  ;;  %1106 = vmatprep.subr.mxu1 %v629_v28  ;;  %v773_v15 = vld [vmem:[#allocation10 + $0x9c8] sm:$0xff]  ;;  %v772_v17 = vld [vmem:[#allocation10 + $0x9c0] sm:$0xff]  ;;  %v935_v19 = vld [vmem:[#allocation10 + $0xed8] sm:$0xff]  ;;  %v194_v28 = vlaneseq }
  0xa4   :  { %1163 = vmatprep.subr.mxu0 %v671_v21  ;;  %1107 = vmatpush2.msra.mxu1 %v628_v30  ;;  %v766_v20 = vld [vmem:[#allocation10 + $0x990] sm:$0xff]  ;;  %v761_v21 = vld [vmem:[#allocation10 + $0x968] sm:$0xff]  ;;  %v760_v22 = vld [vmem:[#allocation10 + $0x960] sm:$0xff] }
  0xa5   :  { %1164 = vmatpush1.msra.mxu0 %v670_v23  ;;  %1108 = vmatprep.subr.mxu1 %v623_v32  ;;  %v755_v23 = vld [vmem:[#allocation10 + $0x938] sm:$0xff]  ;;  %v754_v24 = vld [vmem:[#allocation10 + $0x930] sm:$0xff]  ;;  %v748_v26 = vld [vmem:[#allocation10 + $0x900] sm:$0xff] }
  0xa6   :  { %1165 = vmatprep.subr.mxu0 %v665_v25  ;;  %1109 = vmatpush2.msra.mxu1 %v622_v34  ;;  %v749_v25 = vld [vmem:[#allocation10 + $0x908] sm:$0xff] }
  0xa7   :  { %1166 = vmatpush1.msra.mxu0 %v664_v27  ;;  %1110 = vmatprep.subr.mxu1 %v617_v36  ;;  %v553_v27 = vld [vmem:[#allocation10 + $0x2e8] sm:$0xff] }
  0xa8   :  { %1167 = vmatprep.subr.mxu0 %v659_v29  ;;  %1111 = vmatpush2.msra.mxu1 %v616_v38  ;;  %v3927_v29 = vshrl.u32 %v194_v28, 7  ;;  %v868_v28 = vld [vmem:[#allocation10 + $0xcc0] sm:$0xff] }
  0xa9   :  { %1168 = vmatpush1.msra.mxu0 %v658_v31  ;;  %1112 = vmatprep.subr.mxu1 %v611_v40  ;;  %v3932_v31 = vld [vmem:[#allocation9] sm:$0x3f] }
  0xaa   :  { %1169 = vmatprep.subr.mxu0 %v653_v33  ;;  %1113 = vmatpush2.msra.mxu1 %v610_v42  ;;  %v3930_v30 = vsub.s32 0, %v3927_v29  ;;  %v3935_v32 = vsub.s32 1, %v3927_v29  ;;  %v3944_v38 = vsub.s32 2, %v3927_v29 }
  0xab   :  { %1170 = vmatpush1.msra.mxu0 %v652_v35  ;;  %1114 = vmatprep.subr.mxu1 %v605_v44 }
  0xac   :  { %1171 = vmatprep.subr.mxu0 %v839_v37  ;;  %1115 = vmatpush2.msra.mxu1 %v604_v46  ;;  %v197_v33 = vrot.slane %v3932_v31, %v3930_v30  ;;  %v201_v34 = vrot.slane %v3932_v31, %v3935_v32  ;;  %v3941_v37 = vstv %s163_s7  ;;  %v205_v44 = vrot.slane %v3932_v31, %v3944_v38  ;;  %v934_v46 = vld [vmem:[#allocation10 + $0xed0] sm:$0xff] }
  0xad   :  { %1172 = vmatpush2.msra.mxu0 %v838_v39  ;;  %1116 = vmatprep.subr.mxu1 %v599_v48 }
  0xae   :  { %1173 = vmatprep.subr.mxu0 %v833_v41  ;;  %1117 = vmatpush2.msra.mxu1 %v598_v50  ;;  %v3947_v41 = vsub.s32 3, %v3927_v29  ;;  %v929_v50 = vld [vmem:[#allocation10 + $0xea8] sm:$0xff] }
  0xaf   :  { %1174 = vmatpush2.msra.mxu0 %v832_v43  ;;  %1118 = vmatprep.subr.mxu1 %v593_v52  ;;  %v928_v52 = vld [vmem:[#allocation10 + $0xea0] sm:$0xff] }
  0xb0   :  { %1175 = vmatprep.subr.mxu0 %v827_v45  ;;  %1119 = vmatpush2.msra.mxu1 %v592_v54  ;;  %v923_v54 = vld [vmem:[#allocation10 + $0xe78] sm:$0xff] }
  0xb1   :  { %1176 = vmatpush2.msra.mxu0 %v826_v47  ;;  %1120 = vmatprep.subr.mxu1 %v587_v56  ;;  %v209_v47 = vrot.slane %v3932_v31, %v3947_v41 }
  0xb2   :  { %1177 = vmatprep.subr.mxu0 %v821_v49  ;;  %1121 = vmatpush2.msra.mxu1 %v586_v58  ;;  %v917_v58 = vld [vmem:[#allocation10 + $0xe48] sm:$0xff] }
  0xb3   :  { %1178 = vmatpush2.msra.mxu0 %v820_v51  ;;  %1122 = vmatprep.subr.mxu1 %v581_v60  ;;  %v916_v60 = vld [vmem:[#allocation10 + $0xe40] sm:$0xff] }
  0xb4   :  { %1179 = vmatprep.subr.mxu0 %v815_v53  ;;  %1123 = vmatpush2.msra.mxu1 %v580_v62 }
  0xb5   :  { %1180 = vmatpush2.msra.mxu0 %v814_v55  ;;  %1124 = vmatprep.subr.mxu1 %v575_v2  ;;  %v905_v2 = vld [vmem:[#allocation10 + $0xde8] sm:$0xff] }
  0xb6   :  { %1181 = vmatprep.subr.mxu0 %v809_v57  ;;  %1125 = vmatpush2.msra.mxu1 %v574_v4  ;;  %v922_v57 = vld [vmem:[#allocation10 + $0xe70] sm:$0xff]  ;;  %v904_v4 = vld [vmem:[#allocation10 + $0xde0] sm:$0xff] }
  0xb7   :  { %1182 = vmatpush2.msra.mxu0 %v808_v59  ;;  %1126 = vmatprep.subr.mxu1 %v569_v6  ;;  %v899_v6 = vld [vmem:[#allocation10 + $0xdb8] sm:$0xff] }
  0xb8   :  { %1183 = vmatprep.subr.mxu0 %v803_v61  ;;  %1127 = vmatpush2.msra.mxu1 %v568_v8  ;;  %v911_v61 = vld [vmem:[#allocation10 + $0xe18] sm:$0xff]  ;;  %v898_v8 = vld [vmem:[#allocation10 + $0xdb0] sm:$0xff] }
  0xb9   :  { %1184 = vmatpush2.msra.mxu0 %v802_v63  ;;  %1128 = vmatprep.subr.mxu1 %v563_v10  ;;  %v893_v10 = vld [vmem:[#allocation10 + $0xd88] sm:$0xff] }
  0xba   :  { %1185 = vmatprep.subr.mxu0 %v797_v0  ;;  %1129 = vmatpush2.msra.mxu1 %v562_v12  ;;  %v910_v0 = vld [vmem:[#allocation10 + $0xe10] sm:$0xff]  ;;  %v892_v12 = vld [vmem:[#allocation10 + $0xd80] sm:$0xff] }
  0xbb   :  { %1186 = vmatpush2.msra.mxu0 %v796_v1  ;;  %1130 = vmatprep.subr.mxu1 %v557_v14  ;;  %v552_v1 = vld [vmem:[#allocation10 + $0x2e0] sm:$0xff]  ;;  %v887_v14 = vld [vmem:[#allocation10 + $0xd58] sm:$0xff] }
  0xbc   :  { %1187 = vmatprep.subr.mxu0 %v791_v3  ;;  %1131 = vmatpush2.msra.mxu1 %v556_v16  ;;  %v547_v3 = vld [vmem:[#allocation10 + $0x2b8] sm:$0xff]  ;;  %v886_v16 = vld [vmem:[#allocation10 + $0xd50] sm:$0xff] }
  0xbd   :  { %1188 = vmatpush2.msra.mxu0 %v790_v5  ;;  %1210 = vmatprep.subr.mxu1 %v935_v19  ;;  %v546_v5 = vld [vmem:[#allocation10 + $0x2b0] sm:$0xff]  ;;  %v523_v19 = vld [vmem:[#allocation10 + $0x1f8] sm:$0xff] }
  0xbe   :  { %1189 = vmatprep.subr.mxu0 %v785_v7  ;;  %v541_v7 = vld [vmem:[#allocation10 + $0x288] sm:$0xff] }
  0xbf   :  { %1190 = vmatpush2.msra.mxu0 %v784_v9  ;;  %v540_v9 = vld [vmem:[#allocation10 + $0x280] sm:$0xff] }
  0xc0   :  { %1191 = vmatprep.subr.mxu0 %v779_v11  ;;  %v535_v11 = vld [vmem:[#allocation10 + $0x258] sm:$0xff] }
  0xc1   :  { %1192 = vmatpush2.msra.mxu0 %v778_v13  ;;  %v534_v13 = vld [vmem:[#allocation10 + $0x250] sm:$0xff] }
  0xc2   :  { %1193 = vmatprep.subr.mxu0 %v773_v15  ;;  %v529_v15 = vld [vmem:[#allocation10 + $0x228] sm:$0xff] }
  0xc3   :  { %1194 = vmatpush2.msra.mxu0 %v772_v17  ;;  %v528_v17 = vld [vmem:[#allocation10 + $0x220] sm:$0xff] }
  0xc4   :  { %1195 = vmatprep.subr.mxu0 %v767_v18  ;;  %v881_v18 = vld [vmem:[#allocation10 + $0xd28] sm:$0xff] }
  0xc5   :  { %1196 = vmatpush2.msra.mxu0 %v766_v20  ;;  %v880_v20 = vld [vmem:[#allocation10 + $0xd20] sm:$0xff] }
  0xc6   :  { %1197 = vmatprep.subr.mxu0 %v761_v21  ;;  %v522_v21 = vld [vmem:[#allocation10 + $0x1f0] sm:$0xff] }
  0xc7   :  { %1198 = vmatpush2.msra.mxu0 %v760_v22  ;;  %v875_v22 = vld [vmem:[#allocation10 + $0xcf8] sm:$0xff] }
  0xc8   :  { %1199 = vmatprep.subr.mxu0 %v755_v23  ;;  %v517_v23 = vld [vmem:[#allocation10 + $0x1c8] sm:$0xff] }
  0xc9   :  { %1200 = vmatpush2.msra.mxu0 %v754_v24  ;;  %v874_v24 = vld [vmem:[#allocation10 + $0xcf0] sm:$0xff] }
  0xca   :  { %1201 = vmatprep.subr.mxu0 %v749_v25  ;;  %v516_v25 = vld [vmem:[#allocation10 + $0x1c0] sm:$0xff] }
  0xcb   :  { %1202 = vmatpush2.msra.mxu0 %v748_v26  ;;  %v869_v26 = vld [vmem:[#allocation10 + $0xcc8] sm:$0xff] }
  0xcc   :  { %1281 = vmatprep.subr.mxu0 %v553_v27  ;;  %v511_v27 = vld [vmem:[#allocation10 + $0x198] sm:$0xff] }
 0x13c   :  { %v294_v35 = vpop.f32.mrf.mxu0 }
 0x13d   :  { %v295_v36 = vadd.f32 %v294_v35, %v197_v33  ;;  %v510_v33 = vld [vmem:[#allocation10 + $0x190] sm:$0xff]  ;;  %v505_v35 = vld [vmem:[#allocation10 + $0x168] sm:$0xff] }
 0x13e   :  { %v296_v39 = vpop.f32.mrf.mxu0 }
 0x13f   :  { %v297_v40 = vadd.f32 %v296_v39, %v201_v34  ;;  %v448_v42 = vmul.f32 %v3941_v37, %v295_v36  ;;  %vm441_vm2 = vcmp.gt.f32.partialorder %v295_v36, 0.0  ;;  %v863_v34 = vld [vmem:[#allocation10 + $0xc98] sm:$0xff]  ;;  %v504_v39 = vld [vmem:[#allocation10 + $0x160] sm:$0xff] }
 0x141   :  { %v449_v43 = vmul.f32 %v3941_v37, %v297_v40  ;;  %vm442_vm1 = vcmp.gt.f32.partialorder %v297_v40, 0.0  ;;  %v3958_v49 = vsel %vm441_vm2, %v295_v36, %v448_v42  ;;  %v862_v36 = vld [vmem:[#allocation10 + $0xc90] sm:$0xff]  ;;  %v499_v42 = vld [vmem:[#allocation10 + $0x138] sm:$0xff] }
 0x143   :  { %v3953_v45 = vsel %vm442_vm1, %v297_v40, %v449_v43  ;;  %v857_v40 = vld [vmem:[#allocation10 + $0xc68] sm:$0xff]  ;;  %v856_v43 = vld [vmem:[#allocation10 + $0xc60] sm:$0xff] }
 0x144   :  { %v365_v48 = vpop.f32.mrf.mxu0  ;;  %1132 = vmatprep.mubr.f32.mxu1 %v3953_v45 }
 0x145   :  { %v366_v51 = vadd.f32 %v365_v48, %v205_v44  ;;  %1133 = vmatmul.mubr.f32.vlgmr.msra.gmra.mxu1 %v3958_v49  ;;  %v498_v44 = vld [vmem:[#allocation10 + $0x130] sm:$0xff] }
 0x146   :  { %1211 = vmatpush1.msra.mxu1 %v934_v46  ;;  %v367_v53 = vpop.f32.mrf.mxu0  ;;  %v851_v46 = vld [vmem:[#allocation10 + $0xc38] sm:$0xff]  ;;  %v850_v48 = vld [vmem:[#allocation10 + $0xc30] sm:$0xff] }
 0x147   :  { %vm443_vm3 = vcmp.gt.f32.partialorder %v366_v51, 0.0  ;;  %v450_v55 = vmul.f32 %v3941_v37, %v366_v51  ;;  %v368_v56 = vadd.f32 %v367_v53, %v209_v47  ;;  %1212 = vmatprep.subr.mxu1 %v929_v50  ;;  %v493_v47 = vld [vmem:[#allocation10 + $0x108] sm:$0xff]  ;;  %v492_v50 = vld [vmem:[#allocation10 + $0x100] sm:$0xff] }
 0x148   :  { %1213 = vmatpush1.msra.mxu1 %v928_v52  ;;  %v487_v52 = vld [vmem:[#allocation10 + $0xd8] sm:$0xff]  ;;  %v844_v53 = vld [vmem:[#allocation10 + $0xc00] sm:$0xff] }
 0x149   :  { %v451_v59 = vmul.f32 %v3941_v37, %v368_v56  ;;  %1214 = vmatprep.subr.mxu1 %v923_v54  ;;  %vm444_vm4 = vcmp.gt.f32.partialorder %v368_v56, 0.0  ;;  %v3963_v62 = vsel %vm443_vm3, %v366_v51, %v450_v55  ;;  %v845_v51 = vld [vmem:[#allocation10 + $0xc08] sm:$0xff]  ;;  %v486_v54 = vld [vmem:[#allocation10 + $0xd0] sm:$0xff]  ;;  %v1031_v55 = vld [vmem:[#allocation10 + $0x11d8] sm:$0xff] }
 0x14a   :  { %1215 = vmatpush1.msra.mxu1 %v922_v57  ;;  %v1030_v57 = vld [vmem:[#allocation10 + $0x11d0] sm:$0xff] }
 0x14b   :  { %1216 = vmatprep.subr.mxu1 %v917_v58  ;;  %v3965_v63 = vsel %vm444_vm4, %v368_v56, %v451_v59  ;;  %v481_v56 = vld [vmem:[#allocation10 + $0xa8] sm:$0xff]  ;;  %v480_v58 = vld [vmem:[#allocation10 + $0xa0] sm:$0xff]  ;;  %vm3821_vm4 = vmmov 0  }
 0x14c   :  { %1217 = vmatpush1.msra.mxu1 %v916_v60  ;;  %1203 = vmatprep.mubr.f32.mxu0 %v3965_v63  ;;  %v1025_v59 = vld [vmem:[#allocation10 + $0x11a8] sm:$0xff]  ;;  %v475_v60 = vld [vmem:[#allocation10 + $0x78] sm:$0xff] }
 0x14d   :  { %1218 = vmatprep.subr.mxu1 %v911_v61  ;;  %1204 = vmatmul.mubr.f32.vlgmr.msra.gmra.mxu0 %v3963_v62  ;;  %v1024_v61 = vld [vmem:[#allocation10 + $0x11a0] sm:$0xff] }
 0x14e   :  { %1219 = vmatpush1.msra.mxu1 %v910_v0  ;;  %1282 = vmatpush1.msra.mxu0 %v552_v1  ;;  %v474_v0 = vld [vmem:[#allocation10 + $0x70] sm:$0xff]  ;;  %v1019_v1 = vld [vmem:[#allocation10 + $0x1178] sm:$0xff] }
 0x14f   :  { %1220 = vmatprep.subr.mxu1 %v905_v2  ;;  %1283 = vmatprep.subr.mxu0 %v547_v3  ;;  %v469_v2 = vld [vmem:[#allocation10 + $0x48] sm:$0xff]  ;;  %v1018_v3 = vld [vmem:[#allocation10 + $0x1170] sm:$0xff] }
 0x150   :  { %1345 = vmatprep.mubr.f32.mxu0 %v3953_v45  ;;  %1221 = vmatpush1.msra.mxu1 %v904_v4  ;;  %v468_v4 = vld [vmem:[#allocation10 + $0x40] sm:$0xff] }
 0x151   :  { %1284 = vmatpush1.msra.mxu0 %v546_v5  ;;  %1222 = vmatprep.subr.mxu1 %v899_v6  ;;  %v1013_v5 = vld [vmem:[#allocation10 + $0x1148] sm:$0xff]  ;;  %v463_v6 = vld [vmem:[#allocation10 + $0x18] sm:$0xff] }
 0x152   :  { %1285 = vmatprep.subr.mxu0 %v541_v7  ;;  %1223 = vmatpush1.msra.mxu1 %v898_v8  ;;  %v1012_v7 = vld [vmem:[#allocation10 + $0x1140] sm:$0xff]  ;;  %v462_v8 = vld [vmem:[#allocation10 + $0x10] sm:$0xff] }
 0x153   :  { %1286 = vmatpush1.msra.mxu0 %v540_v9  ;;  %1224 = vmatprep.subr.mxu1 %v893_v10  ;;  %v1007_v9 = vld [vmem:[#allocation10 + $0x1118] sm:$0xff]  ;;  %v649_v10 = vld [vmem:[#allocation10 + $0x5e8] sm:$0xff] }
 0x154   :  { %1287 = vmatprep.subr.mxu0 %v535_v11  ;;  %1225 = vmatpush1.msra.mxu1 %v892_v12  ;;  %v1006_v11 = vld [vmem:[#allocation10 + $0x1110] sm:$0xff]  ;;  %v648_v12 = vld [vmem:[#allocation10 + $0x5e0] sm:$0xff] }
 0x155   :  { %1288 = vmatpush1.msra.mxu0 %v534_v13  ;;  %1226 = vmatprep.subr.mxu1 %v887_v14  ;;  %v1001_v13 = vld [vmem:[#allocation10 + $0x10e8] sm:$0xff]  ;;  %v643_v14 = vld [vmem:[#allocation10 + $0x5b8] sm:$0xff] }
 0x156   :  { %1289 = vmatprep.subr.mxu0 %v529_v15  ;;  %1227 = vmatpush1.msra.mxu1 %v886_v16  ;;  %v1000_v15 = vld [vmem:[#allocation10 + $0x10e0] sm:$0xff]  ;;  %v642_v16 = vld [vmem:[#allocation10 + $0x5b0] sm:$0xff] }
 0x157   :  { %1290 = vmatpush1.msra.mxu0 %v528_v17  ;;  %1228 = vmatprep.subr.mxu1 %v881_v18  ;;  %v995_v17 = vld [vmem:[#allocation10 + $0x10b8] sm:$0xff]  ;;  %v637_v18 = vld [vmem:[#allocation10 + $0x588] sm:$0xff] }
 0x158   :  { %1291 = vmatprep.subr.mxu0 %v523_v19  ;;  %1229 = vmatpush1.msra.mxu1 %v880_v20  ;;  %v994_v19 = vld [vmem:[#allocation10 + $0x10b0] sm:$0xff]  ;;  %v3971_v20 = vsub.s32 5, %v3927_v29 }
 0x159   :  { %1292 = vmatpush1.msra.mxu0 %v522_v21  ;;  %1230 = vmatprep.subr.mxu1 %v875_v22  ;;  %v636_v21 = vld [vmem:[#allocation10 + $0x580] sm:$0xff]  ;;  %v989_v22 = vld [vmem:[#allocation10 + $0x1088] sm:$0xff] }
 0x15a   :  { %1293 = vmatprep.subr.mxu0 %v517_v23  ;;  %1231 = vmatpush1.msra.mxu1 %v874_v24  ;;  %v436_v23 = vpop.f32.mrf.mxu0  ;;  %v631_v24 = vld [vmem:[#allocation10 + $0x558] sm:$0xff] }
 0x15b   :  { %1294 = vmatpush1.msra.mxu0 %v516_v25  ;;  %1232 = vmatprep.subr.mxu1 %v869_v26  ;;  %v988_v25 = vld [vmem:[#allocation10 + $0x1080] sm:$0xff]  ;;  %v630_v26 = vld [vmem:[#allocation10 + $0x550] sm:$0xff] }
 0x15c   :  { %1295 = vmatprep.subr.mxu0 %v511_v27  ;;  %1233 = vmatpush1.msra.mxu1 %v868_v28  ;;  %v983_v27 = vld [vmem:[#allocation10 + $0x1058] sm:$0xff]  ;;  %v625_v28 = vld [vmem:[#allocation10 + $0x528] sm:$0xff] }
 0x15d   :  { %1296 = vmatpush1.msra.mxu0 %v510_v33  ;;  %1234 = vmatprep.subr.mxu1 %v863_v34  ;;  %v982_v33 = vld [vmem:[#allocation10 + $0x1050] sm:$0xff]  ;;  %v217_v34 = vrot.slane %v3932_v31, %v3971_v20 }
 0x15e   :  { %1297 = vmatprep.subr.mxu0 %v505_v35  ;;  %1235 = vmatpush1.msra.mxu1 %v862_v36  ;;  %v624_v35 = vld [vmem:[#allocation10 + $0x520] sm:$0xff]  ;;  %v977_v36 = vld [vmem:[#allocation10 + $0x1028] sm:$0xff] }
 0x15f   :  { %1298 = vmatpush1.msra.mxu0 %v504_v39  ;;  %1236 = vmatprep.subr.mxu1 %v857_v40  ;;  %v438_v39 = vpop.f32.mrf.mxu0  ;;  %v619_v40 = vld [vmem:[#allocation10 + $0x4f8] sm:$0xff] }
 0x160   :  { %1299 = vmatprep.subr.mxu0 %v499_v42  ;;  %1237 = vmatpush1.msra.mxu1 %v856_v43  ;;  %v976_v42 = vld [vmem:[#allocation10 + $0x1020] sm:$0xff]  ;;  %v3976_v43 = vsub.s32 4, %v3927_v29  ;;  %v607_v29 = vld [vmem:[#allocation10 + $0x498] sm:$0xff] }
 0x161   :  { %1300 = vmatpush1.msra.mxu0 %v498_v44  ;;  %1238 = vmatprep.subr.mxu1 %v851_v46  ;;  %v618_v44 = vld [vmem:[#allocation10 + $0x4f0] sm:$0xff]  ;;  %v971_v46 = vld [vmem:[#allocation10 + $0xff8] sm:$0xff] }
 0x162   :  { %1301 = vmatprep.subr.mxu0 %v493_v47  ;;  %1239 = vmatpush1.msra.mxu1 %v850_v48  ;;  %v613_v47 = vld [vmem:[#allocation10 + $0x4c8] sm:$0xff]  ;;  %v970_v48 = vld [vmem:[#allocation10 + $0xff0] sm:$0xff] }
 0x163   :  { %1302 = vmatpush1.msra.mxu0 %v492_v50  ;;  %1240 = vmatprep.subr.mxu1 %v845_v51  ;;  %v439_v50 = vadd.f32 %v438_v39, %v217_v34  ;;  %v612_v51 = vld [vmem:[#allocation10 + $0x4c0] sm:$0xff]  ;;  %v721_v34 = vld [vmem:[#allocation10 + $0x828] sm:$0xff] }
 0x164   :  { %1303 = vmatprep.subr.mxu0 %v487_v52  ;;  %1241 = vmatpush1.msra.mxu1 %v844_v53  ;;  %v965_v52 = vld [vmem:[#allocation10 + $0xfc8] sm:$0xff]  ;;  %v213_v53 = vrot.slane %v3932_v31, %v3976_v43  ;;  %v595_v31 = vld [vmem:[#allocation10 + $0x438] sm:$0xff]  ;;  %v936_v39 = vld [vmem:[#allocation10 + $0xee0] sm:$0xff] }
 0x165   :  { %1304 = vmatpush1.msra.mxu0 %v486_v54  ;;  %1242 = vmatprep.subr.mxu1 %v1031_v55  ;;  %v964_v54 = vld [vmem:[#allocation10 + $0xfc0] sm:$0xff]  ;;  %v606_v55 = vld [vmem:[#allocation10 + $0x490] sm:$0xff]  ;;  %vm446_vm5 = vcmp.gt.f32.partialorder %v439_v50, 0.0 }
 0x166   :  { %1305 = vmatprep.subr.mxu0 %v481_v56  ;;  %1243 = vmatpush2.msra.mxu1 %v1030_v57  ;;  %v959_v56 = vld [vmem:[#allocation10 + $0xf98] sm:$0xff]  ;;  %v453_v57 = vmul.f32 %v3941_v37, %v439_v50 }
 0x167   :  { %1306 = vmatpush1.msra.mxu0 %v480_v58  ;;  %1244 = vmatprep.subr.mxu1 %v1025_v59  ;;  %v601_v58 = vld [vmem:[#allocation10 + $0x468] sm:$0xff]  ;;  %v958_v59 = vld [vmem:[#allocation10 + $0xf90] sm:$0xff] }
 0x168   :  { %1307 = vmatprep.subr.mxu0 %v475_v60  ;;  %1245 = vmatpush2.msra.mxu1 %v1024_v61  ;;  %v600_v60 = vld [vmem:[#allocation10 + $0x460] sm:$0xff]  ;;  %v953_v61 = vld [vmem:[#allocation10 + $0xf68] sm:$0xff] }
 0x169   :  { %1308 = vmatpush1.msra.mxu0 %v474_v0  ;;  %1246 = vmatprep.subr.mxu1 %v1019_v1  ;;  %v437_v0 = vadd.f32 %v436_v23, %v213_v53  ;;  %v952_v1 = vld [vmem:[#allocation10 + $0xf60] sm:$0xff]  ;;  %v733_v23 = vld [vmem:[#allocation10 + $0x888] sm:$0xff]  ;;  %v919_v53 = vld [vmem:[#allocation10 + $0xe58] sm:$0xff] }
 0x16a   :  { %1309 = vmatprep.subr.mxu0 %v469_v2  ;;  %1247 = vmatpush2.msra.mxu1 %v1018_v3  ;;  %v594_v2 = vld [vmem:[#allocation10 + $0x430] sm:$0xff]  ;;  %v947_v3 = vld [vmem:[#allocation10 + $0xf38] sm:$0xff] }
 0x16b   :  { %1310 = vmatpush1.msra.mxu0 %v468_v4  ;;  %1248 = vmatprep.subr.mxu1 %v1013_v5  ;;  %v3981_v4 = vsel %vm446_vm5, %v439_v50, %v453_v57  ;;  %v589_v5 = vld [vmem:[#allocation10 + $0x408] sm:$0xff]  ;;  %vm445_vm6 = vcmp.gt.f32.partialorder %v437_v0, 0.0  ;;  %v708_v50 = vld [vmem:[#allocation10 + $0x7c0] sm:$0xff] }
 0x16c   :  { %1311 = vmatprep.subr.mxu0 %v463_v6  ;;  %1249 = vmatpush2.msra.mxu1 %v1012_v7  ;;  %v946_v6 = vld [vmem:[#allocation10 + $0xf30] sm:$0xff]  ;;  %v588_v7 = vld [vmem:[#allocation10 + $0x400] sm:$0xff] }
 0x16d   :  { %1312 = vmatpush1.msra.mxu0 %v462_v8  ;;  %1250 = vmatprep.subr.mxu1 %v1007_v9  ;;  %v452_v8 = vmul.f32 %v3941_v37, %v437_v0  ;;  %v941_v9 = vld [vmem:[#allocation10 + $0xf08] sm:$0xff]  ;;  %v696_v57 = vld [vmem:[#allocation10 + $0x760] sm:$0xff] }
 0x16e   :  { %1313 = vmatprep.subr.mxu0 %v649_v10  ;;  %1251 = vmatpush2.msra.mxu1 %v1006_v11  ;;  %v583_v10 = vld [vmem:[#allocation10 + $0x3d8] sm:$0xff]  ;;  %v940_v11 = vld [vmem:[#allocation10 + $0xf00] sm:$0xff] }
 0x16f   :  { %1314 = vmatpush2.msra.mxu0 %v648_v12  ;;  %1252 = vmatprep.subr.mxu1 %v1001_v13  ;;  %v582_v12 = vld [vmem:[#allocation10 + $0x3d0] sm:$0xff]  ;;  %v577_v13 = vld [vmem:[#allocation10 + $0x3a8] sm:$0xff]  ;;  %v3985_v37 = vsel %vm445_vm6, %v437_v0, %v452_v8  ;;  %vm3393_vm6 = vcmask 64512  }
 0x170   :  { %1315 = vmatprep.subr.mxu0 %v643_v14  ;;  %1253 = vmatpush2.msra.mxu1 %v1000_v15  ;;  %v745_v14 = vld [vmem:[#allocation10 + $0x8e8] sm:$0xff]  ;;  %v576_v15 = vld [vmem:[#allocation10 + $0x3a0] sm:$0xff]  ;;  %v906_v0 = vld [vmem:[#allocation10 + $0xdf0] sm:$0xff] }
 0x171   :  { %1316 = vmatpush2.msra.mxu0 %v642_v16  ;;  %1254 = vmatprep.subr.mxu1 %v995_v17  ;;  %v744_v16 = vld [vmem:[#allocation10 + $0x8e0] sm:$0xff]  ;;  %v571_v17 = vld [vmem:[#allocation10 + $0x378] sm:$0xff]  ;;  %v894_v8 = vld [vmem:[#allocation10 + $0xd90] sm:$0xff] }
 0x172   :  { %1317 = vmatprep.subr.mxu0 %v637_v18  ;;  %1255 = vmatpush2.msra.mxu1 %v994_v19  ;;  %v739_v18 = vld [vmem:[#allocation10 + $0x8b8] sm:$0xff]  ;;  %v570_v19 = vld [vmem:[#allocation10 + $0x370] sm:$0xff] }
 0x173   :  { %1318 = vmatpush2.msra.mxu0 %v636_v21  ;;  %1256 = vmatprep.subr.mxu1 %v989_v22  ;;  %v738_v21 = vld [vmem:[#allocation10 + $0x8b0] sm:$0xff]  ;;  %v565_v22 = vld [vmem:[#allocation10 + $0x348] sm:$0xff] }
 0x174   :  { %1319 = vmatprep.subr.mxu0 %v631_v24  ;;  %1257 = vmatpush2.msra.mxu1 %v988_v25  ;;  %v564_v24 = vld [vmem:[#allocation10 + $0x340] sm:$0xff] }
 0x175   :  { %1320 = vmatpush2.msra.mxu0 %v630_v26  ;;  %1258 = vmatprep.subr.mxu1 %v983_v27  ;;  %v732_v25 = vld [vmem:[#allocation10 + $0x880] sm:$0xff]  ;;  %v559_v26 = vld [vmem:[#allocation10 + $0x318] sm:$0xff] }
 0x176   :  { %1321 = vmatprep.subr.mxu0 %v625_v28  ;;  %1259 = vmatpush2.msra.mxu1 %v982_v33  ;;  %v727_v27 = vld [vmem:[#allocation10 + $0x858] sm:$0xff]  ;;  %v558_v28 = vld [vmem:[#allocation10 + $0x310] sm:$0xff] }
 0x177   :  { %1322 = vmatpush2.msra.mxu0 %v624_v35  ;;  %1260 = vmatprep.subr.mxu1 %v977_v36  ;;  %v726_v33 = vld [vmem:[#allocation10 + $0x850] sm:$0xff]  ;;  %v937_v35 = vld [vmem:[#allocation10 + $0xee8] sm:$0xff]  ;;  %v720_v36 = vld [vmem:[#allocation10 + $0x820] sm:$0xff] }
 0x178   :  { %1323 = vmatprep.subr.mxu0 %v619_v40  ;;  %1261 = vmatpush2.msra.mxu1 %v976_v42  ;;  %v715_v40 = vld [vmem:[#allocation10 + $0x7f8] sm:$0xff] }
 0x179   :  { %1324 = vmatpush2.msra.mxu0 %v618_v44  ;;  %1262 = vmatprep.subr.mxu1 %v971_v46  ;;  %v931_v42 = vld [vmem:[#allocation10 + $0xeb8] sm:$0xff]  ;;  %v714_v44 = vld [vmem:[#allocation10 + $0x7f0] sm:$0xff] }
 0x17a   :  { %1325 = vmatprep.subr.mxu0 %v613_v47  ;;  %1263 = vmatpush2.msra.mxu1 %v970_v48  ;;  %v930_v46 = vld [vmem:[#allocation10 + $0xeb0] sm:$0xff]  ;;  %v709_v47 = vld [vmem:[#allocation10 + $0x7c8] sm:$0xff] }
 0x17b   :  { %1326 = vmatpush2.msra.mxu0 %v612_v51  ;;  %1264 = vmatprep.subr.mxu1 %v965_v52  ;;  %v925_v48 = vld [vmem:[#allocation10 + $0xe88] sm:$0xff]  ;;  %v924_v51 = vld [vmem:[#allocation10 + $0xe80] sm:$0xff]  ;;  %v703_v52 = vld [vmem:[#allocation10 + $0x798] sm:$0xff] }
 0x17c   :  { %1327 = vmatprep.subr.mxu0 %v607_v29  ;;  %1265 = vmatpush2.msra.mxu1 %v964_v54  ;;  %v702_v29 = vld [vmem:[#allocation10 + $0x790] sm:$0xff] }
 0x17d   :  { %1328 = vmatpush2.msra.mxu0 %v606_v55  ;;  %1266 = vmatprep.subr.mxu1 %v959_v56  ;;  %v918_v54 = vld [vmem:[#allocation10 + $0xe50] sm:$0xff]  ;;  %v697_v55 = vld [vmem:[#allocation10 + $0x768] sm:$0xff] }
 0x17e   :  { %1329 = vmatprep.subr.mxu0 %v601_v58  ;;  %1267 = vmatpush2.msra.mxu1 %v958_v59  ;;  %v913_v56 = vld [vmem:[#allocation10 + $0xe28] sm:$0xff]  ;;  %v912_v58 = vld [vmem:[#allocation10 + $0xe20] sm:$0xff]  ;;  %v691_v59 = vld [vmem:[#allocation10 + $0x738] sm:$0xff] }
 0x17f   :  { %1330 = vmatpush2.msra.mxu0 %v600_v60  ;;  %1268 = vmatprep.subr.mxu1 %v953_v61  ;;  %v907_v60 = vld [vmem:[#allocation10 + $0xdf8] sm:$0xff]  ;;  %v690_v61 = vld [vmem:[#allocation10 + $0x730] sm:$0xff] }
 0x180   :  { %1331 = vmatprep.subr.mxu0 %v595_v31  ;;  %1269 = vmatpush2.msra.mxu1 %v952_v1  ;;  %v685_v31 = vld [vmem:[#allocation10 + $0x708] sm:$0xff] }
 0x181   :  { %1332 = vmatpush2.msra.mxu0 %v594_v2  ;;  %1270 = vmatprep.subr.mxu1 %v947_v3  ;;  %v901_v1 = vld [vmem:[#allocation10 + $0xdc8] sm:$0xff]  ;;  %v684_v2 = vld [vmem:[#allocation10 + $0x700] sm:$0xff] }
 0x182   :  { %1274 = vmatprep.mubr.f32.mxu1 %v3981_v4  ;;  %1333 = vmatprep.subr.mxu0 %v589_v5  ;;  %v900_v3 = vld [vmem:[#allocation10 + $0xdc0] sm:$0xff]  ;;  %v679_v5 = vld [vmem:[#allocation10 + $0x6d8] sm:$0xff] }
 0x183   :  { %1271 = vmatpush2.msra.mxu1 %v946_v6  ;;  %1334 = vmatpush2.msra.mxu0 %v588_v7  ;;  %v895_v6 = vld [vmem:[#allocation10 + $0xd98] sm:$0xff]  ;;  %v678_v7 = vld [vmem:[#allocation10 + $0x6d0] sm:$0xff] }
 0x184   :  { %1272 = vmatprep.subr.mxu1 %v941_v9  ;;  %1335 = vmatprep.subr.mxu0 %v583_v10  ;;  %v673_v9 = vld [vmem:[#allocation10 + $0x6a8] sm:$0xff] }
 0x185   :  { %1273 = vmatpush2.msra.mxu1 %v940_v11  ;;  %1336 = vmatpush2.msra.mxu0 %v582_v12  ;;  %v889_v10 = vld [vmem:[#allocation10 + $0xd68] sm:$0xff]  ;;  %v672_v11 = vld [vmem:[#allocation10 + $0x6a0] sm:$0xff] }
 0x186   :  { %1275 = vmatmul.mubr.f32.vlgmr.msra.gmra.mxu1 %v3985_v37  ;;  %1337 = vmatprep.subr.mxu0 %v577_v13  ;;  %v888_v12 = vld [vmem:[#allocation10 + $0xd60] sm:$0xff]  ;;  %v667_v13 = vld [vmem:[#allocation10 + $0x678] sm:$0xff] }
 0x187   :  { %1352 = vmatprep.subr.mxu1 %v745_v14  ;;  %1338 = vmatpush2.msra.mxu0 %v576_v15  ;;  %v883_v14 = vld [vmem:[#allocation10 + $0xd38] sm:$0xff]  ;;  %v666_v15 = vld [vmem:[#allocation10 + $0x670] sm:$0xff] }
 0x188   :  { %1353 = vmatpush1.msra.mxu1 %v744_v16  ;;  %1416 = vmatprep.mubr.f32.mxu1 %v3965_v63  ;;  %v882_v16 = vld [vmem:[#allocation10 + $0xd30] sm:$0xff] }
 0x189   :  { %1339 = vmatprep.subr.mxu0 %v571_v17  ;;  %1354 = vmatprep.subr.mxu1 %v739_v18  ;;  %v661_v17 = vld [vmem:[#allocation10 + $0x648] sm:$0xff] }
 0x18a   :  { %1340 = vmatpush2.msra.mxu0 %v570_v19  ;;  %1355 = vmatpush1.msra.mxu1 %v738_v21  ;;  %v877_v18 = vld [vmem:[#allocation10 + $0xd08] sm:$0xff]  ;;  %v660_v19 = vld [vmem:[#allocation10 + $0x640] sm:$0xff] }
 0x18b   :  { %1341 = vmatprep.subr.mxu0 %v565_v22  ;;  %1356 = vmatprep.subr.mxu1 %v733_v23  ;;  %v876_v21 = vld [vmem:[#allocation10 + $0xd00] sm:$0xff]  ;;  %v655_v22 = vld [vmem:[#allocation10 + $0x618] sm:$0xff] }
 0x18c   :  { %1342 = vmatpush2.msra.mxu0 %v564_v24  ;;  %1357 = vmatpush1.msra.mxu1 %v732_v25  ;;  %v871_v23 = vld [vmem:[#allocation10 + $0xcd8] sm:$0xff]  ;;  %v654_v24 = vld [vmem:[#allocation10 + $0x610] sm:$0xff] }
 0x18d   :  { %1343 = vmatprep.subr.mxu0 %v559_v26  ;;  %1358 = vmatprep.subr.mxu1 %v727_v27  ;;  %v870_v25 = vld [vmem:[#allocation10 + $0xcd0] sm:$0xff]  ;;  %v841_v26 = vld [vmem:[#allocation10 + $0xbe8] sm:$0xff] }
 0x18e   :  { %1344 = vmatpush2.msra.mxu0 %v558_v28  ;;  %1359 = vmatpush1.msra.mxu1 %v726_v33  ;;  %v865_v27 = vld [vmem:[#allocation10 + $0xca8] sm:$0xff]  ;;  %v840_v28 = vld [vmem:[#allocation10 + $0xbe0] sm:$0xff] }
 0x18f   :  { %1346 = vmatmul.mubr.f32.vlgmr.msra.gmra.mxu0 %v3958_v49  ;;  %1360 = vmatprep.subr.mxu1 %v721_v34  ;;  %v864_v33 = vld [vmem:[#allocation10 + $0xca0] sm:$0xff]  ;;  %v835_v34 = vld [vmem:[#allocation10 + $0xbb8] sm:$0xff] }
 0x190   :  { %1423 = vmatprep.subr.mxu0 %v937_v35  ;;  %1361 = vmatpush1.msra.mxu1 %v720_v36  ;;  %v859_v35 = vld [vmem:[#allocation10 + $0xc78] sm:$0xff]  ;;  %v834_v36 = vld [vmem:[#allocation10 + $0xbb0] sm:$0xff] }
 0x191   :  { %1424 = vmatpush1.msra.mxu0 %v936_v39  ;;  %1487 = vmatprep.mubr.f32.mxu0 %v3981_v4  ;;  %v858_v39 = vld [vmem:[#allocation10 + $0xc70] sm:$0xff] }
 0x192   :  { %1362 = vmatprep.subr.mxu1 %v715_v40  ;;  %1425 = vmatprep.subr.mxu0 %v931_v42  ;;  %v829_v40 = vld [vmem:[#allocation10 + $0xb88] sm:$0xff] }
 0x193   :  { %1363 = vmatpush1.msra.mxu1 %v714_v44  ;;  %1426 = vmatpush1.msra.mxu0 %v930_v46  ;;  %v853_v42 = vld [vmem:[#allocation10 + $0xc48] sm:$0xff]  ;;  %v828_v44 = vld [vmem:[#allocation10 + $0xb80] sm:$0xff] }
 0x194   :  { %1364 = vmatprep.subr.mxu1 %v709_v47  ;;  %1427 = vmatprep.subr.mxu0 %v925_v48  ;;  %v852_v46 = vld [vmem:[#allocation10 + $0xc40] sm:$0xff]  ;;  %v823_v47 = vld [vmem:[#allocation10 + $0xb58] sm:$0xff] }
 0x195   :  { %1365 = vmatpush1.msra.mxu1 %v708_v50  ;;  %1428 = vmatpush1.msra.mxu0 %v924_v51  ;;  %v847_v48 = vld [vmem:[#allocation10 + $0xc18] sm:$0xff]  ;;  %v822_v50 = vld [vmem:[#allocation10 + $0xb50] sm:$0xff] }
 0x196   :  { %1366 = vmatprep.subr.mxu1 %v703_v52  ;;  %1429 = vmatprep.subr.mxu0 %v919_v53  ;;  %v846_v51 = vld [vmem:[#allocation10 + $0xc10] sm:$0xff]  ;;  %v817_v52 = vld [vmem:[#allocation10 + $0xb28] sm:$0xff] }
 0x197   :  { %1367 = vmatpush1.msra.mxu1 %v702_v29  ;;  %1430 = vmatpush1.msra.mxu0 %v918_v54  ;;  %v1033_v53 = vld [vmem:[#allocation10 + $0x11e8] sm:$0xff]  ;;  %v816_v29 = vld [vmem:[#allocation10 + $0xb20] sm:$0xff] }
 0x198   :  { %1368 = vmatprep.subr.mxu1 %v697_v55  ;;  %1431 = vmatprep.subr.mxu0 %v913_v56  ;;  %v1032_v54 = vld [vmem:[#allocation10 + $0x11e0] sm:$0xff]  ;;  %v811_v55 = vld [vmem:[#allocation10 + $0xaf8] sm:$0xff] }
 0x199   :  { %1369 = vmatpush1.msra.mxu1 %v696_v57  ;;  %1432 = vmatpush1.msra.mxu0 %v912_v58  ;;  %v1027_v56 = vld [vmem:[#allocation10 + $0x11b8] sm:$0xff]  ;;  %v810_v57 = vld [vmem:[#allocation10 + $0xaf0] sm:$0xff] }
 0x19a   :  { %1370 = vmatprep.subr.mxu1 %v691_v59  ;;  %1433 = vmatprep.subr.mxu0 %v907_v60  ;;  %v1026_v58 = vld [vmem:[#allocation10 + $0x11b0] sm:$0xff]  ;;  %v805_v59 = vld [vmem:[#allocation10 + $0xac8] sm:$0xff] }
 0x19b   :  { %1371 = vmatpush1.msra.mxu1 %v690_v61  ;;  %1434 = vmatpush1.msra.mxu0 %v906_v0  ;;  %v1021_v60 = vld [vmem:[#allocation10 + $0x1188] sm:$0xff]  ;;  %v804_v61 = vld [vmem:[#allocation10 + $0xac0] sm:$0xff] }
 0x19c   :  { %1372 = vmatprep.subr.mxu1 %v685_v31  ;;  %1435 = vmatprep.subr.mxu0 %v901_v1  ;;  %v1020_v0 = vld [vmem:[#allocation10 + $0x1180] sm:$0xff]  ;;  %v799_v31 = vld [vmem:[#allocation10 + $0xa98] sm:$0xff] }
 0x19d   :  { %1373 = vmatpush1.msra.mxu1 %v684_v2  ;;  %1436 = vmatpush1.msra.mxu0 %v900_v3  ;;  %v1015_v1 = vld [vmem:[#allocation10 + $0x1158] sm:$0xff]  ;;  %v798_v2 = vld [vmem:[#allocation10 + $0xa90] sm:$0xff] }
 0x19e   :  { %1374 = vmatprep.subr.mxu1 %v679_v5  ;;  %1437 = vmatprep.subr.mxu0 %v895_v6  ;;  %v1014_v3 = vld [vmem:[#allocation10 + $0x1150] sm:$0xff]  ;;  %v793_v5 = vld [vmem:[#allocation10 + $0xa68] sm:$0xff] }
 0x19f   :  { %1375 = vmatpush1.msra.mxu1 %v678_v7  ;;  %1438 = vmatpush1.msra.mxu0 %v894_v8  ;;  %v1009_v6 = vld [vmem:[#allocation10 + $0x1128] sm:$0xff]  ;;  %v792_v7 = vld [vmem:[#allocation10 + $0xa60] sm:$0xff] }
 0x1a0   :  { %1376 = vmatprep.subr.mxu1 %v673_v9  ;;  %1439 = vmatprep.subr.mxu0 %v889_v10  ;;  %v1008_v8 = vld [vmem:[#allocation10 + $0x1120] sm:$0xff]  ;;  %v787_v9 = vld [vmem:[#allocation10 + $0xa38] sm:$0xff] }
 0x1a1   :  { %1377 = vmatpush1.msra.mxu1 %v672_v11  ;;  %1440 = vmatpush1.msra.mxu0 %v888_v12  ;;  %v1003_v10 = vld [vmem:[#allocation10 + $0x10f8] sm:$0xff]  ;;  %v786_v11 = vld [vmem:[#allocation10 + $0xa30] sm:$0xff] }
 0x1a2   :  { %1378 = vmatprep.subr.mxu1 %v667_v13  ;;  %1441 = vmatprep.subr.mxu0 %v883_v14  ;;  %v1002_v12 = vld [vmem:[#allocation10 + $0x10f0] sm:$0xff]  ;;  %v781_v13 = vld [vmem:[#allocation10 + $0xa08] sm:$0xff] }
 0x1a3   :  { %1379 = vmatpush1.msra.mxu1 %v666_v15  ;;  %1442 = vmatpush1.msra.mxu0 %v882_v16  ;;  %v997_v14 = vld [vmem:[#allocation10 + $0x10c8] sm:$0xff]  ;;  %v780_v15 = vld [vmem:[#allocation10 + $0xa00] sm:$0xff] }
 0x1a4   :  { %1380 = vmatprep.subr.mxu1 %v661_v17  ;;  %1443 = vmatprep.subr.mxu0 %v877_v18  ;;  %v996_v16 = vld [vmem:[#allocation10 + $0x10c0] sm:$0xff]  ;;  %v775_v17 = vld [vmem:[#allocation10 + $0x9d8] sm:$0xff] }
 0x1a5   :  { %1381 = vmatpush1.msra.mxu1 %v660_v19  ;;  %1444 = vmatpush1.msra.mxu0 %v876_v21  ;;  %v991_v18 = vld [vmem:[#allocation10 + $0x1098] sm:$0xff]  ;;  %v774_v19 = vld [vmem:[#allocation10 + $0x9d0] sm:$0xff] }
 0x1a6   :  { %1382 = vmatprep.subr.mxu1 %v655_v22  ;;  %1445 = vmatprep.subr.mxu0 %v871_v23  ;;  %v990_v21 = vld [vmem:[#allocation10 + $0x1090] sm:$0xff]  ;;  %v769_v22 = vld [vmem:[#allocation10 + $0x9a8] sm:$0xff] }
 0x1a7   :  { %1383 = vmatpush1.msra.mxu1 %v654_v24  ;;  %1446 = vmatpush1.msra.mxu0 %v870_v25  ;;  %v985_v23 = vld [vmem:[#allocation10 + $0x1068] sm:$0xff]  ;;  %v768_v24 = vld [vmem:[#allocation10 + $0x9a0] sm:$0xff] }
 0x1a8   :  { %1384 = vmatprep.subr.mxu1 %v841_v26  ;;  %1447 = vmatprep.subr.mxu0 %v865_v27  ;;  %v984_v25 = vld [vmem:[#allocation10 + $0x1060] sm:$0xff]  ;;  %v763_v26 = vld [vmem:[#allocation10 + $0x978] sm:$0xff] }
 0x1a9   :  { %1385 = vmatpush2.msra.mxu1 %v840_v28  ;;  %1448 = vmatpush1.msra.mxu0 %v864_v33  ;;  %v979_v27 = vld [vmem:[#allocation10 + $0x1038] sm:$0xff]  ;;  %v762_v28 = vld [vmem:[#allocation10 + $0x970] sm:$0xff] }
 0x1aa   :  { %1386 = vmatprep.subr.mxu1 %v835_v34  ;;  %1449 = vmatprep.subr.mxu0 %v859_v35  ;;  %v978_v33 = vld [vmem:[#allocation10 + $0x1030] sm:$0xff]  ;;  %v757_v34 = vld [vmem:[#allocation10 + $0x948] sm:$0xff] }
 0x1ab   :  { %1387 = vmatpush2.msra.mxu1 %v834_v36  ;;  %1450 = vmatpush1.msra.mxu0 %v858_v39  ;;  %v973_v35 = vld [vmem:[#allocation10 + $0x1008] sm:$0xff]  ;;  %v756_v36 = vld [vmem:[#allocation10 + $0x940] sm:$0xff] }
 0x1ac   :  { %1388 = vmatprep.subr.mxu1 %v829_v40  ;;  %1451 = vmatprep.subr.mxu0 %v853_v42  ;;  %v972_v39 = vld [vmem:[#allocation10 + $0x1000] sm:$0xff]  ;;  %v751_v40 = vld [vmem:[#allocation10 + $0x918] sm:$0xff] }
 0x1ad   :  { %1389 = vmatpush2.msra.mxu1 %v828_v44  ;;  %1452 = vmatpush1.msra.mxu0 %v852_v46  ;;  %v967_v42 = vld [vmem:[#allocation10 + $0xfd8] sm:$0xff]  ;;  %v750_v44 = vld [vmem:[#allocation10 + $0x910] sm:$0xff] }
 0x1ae   :  { %1390 = vmatprep.subr.mxu1 %v823_v47  ;;  %1453 = vmatprep.subr.mxu0 %v847_v48  ;;  %v966_v46 = vld [vmem:[#allocation10 + $0xfd0] sm:$0xff]  ;;  %v961_v47 = vld [vmem:[#allocation10 + $0xfa8] sm:$0xff]  ;;  %v555_v48 = vld [vmem:[#allocation10 + $0x2f8] sm:$0xff] }
 0x1af   :  { %1391 = vmatpush2.msra.mxu1 %v822_v50  ;;  %1454 = vmatpush1.msra.mxu0 %v846_v51  ;;  %v960_v50 = vld [vmem:[#allocation10 + $0xfa0] sm:$0xff]  ;;  %v554_v51 = vld [vmem:[#allocation10 + $0x2f0] sm:$0xff] }
 0x1b0   :  { %1392 = vmatprep.subr.mxu1 %v817_v52  ;;  %1455 = vmatprep.subr.mxu0 %v1033_v53  ;;  %v955_v52 = vld [vmem:[#allocation10 + $0xf78] sm:$0xff]  ;;  %v549_v53 = vld [vmem:[#allocation10 + $0x2c8] sm:$0xff] }
 0x1b1   :  { %1393 = vmatpush2.msra.mxu1 %v816_v29  ;;  %1456 = vmatpush2.msra.mxu0 %v1032_v54  ;;  %v954_v29 = vld [vmem:[#allocation10 + $0xf70] sm:$0xff]  ;;  %v548_v54 = vld [vmem:[#allocation10 + $0x2c0] sm:$0xff] }
 0x1b2   :  { %1394 = vmatprep.subr.mxu1 %v811_v55  ;;  %1457 = vmatprep.subr.mxu0 %v1027_v56  ;;  %v949_v55 = vld [vmem:[#allocation10 + $0xf48] sm:$0xff]  ;;  %v543_v56 = vld [vmem:[#allocation10 + $0x298] sm:$0xff] }
 0x1b3   :  { %1395 = vmatpush2.msra.mxu1 %v810_v57  ;;  %1458 = vmatpush2.msra.mxu0 %v1026_v58  ;;  %v948_v57 = vld [vmem:[#allocation10 + $0xf40] sm:$0xff]  ;;  %v542_v58 = vld [vmem:[#allocation10 + $0x290] sm:$0xff] }
 0x1b4   :  { %1396 = vmatprep.subr.mxu1 %v805_v59  ;;  %1459 = vmatprep.subr.mxu0 %v1021_v60  ;;  %v943_v59 = vld [vmem:[#allocation10 + $0xf18] sm:$0xff]  ;;  %v537_v60 = vld [vmem:[#allocation10 + $0x268] sm:$0xff] }
 0x1b5   :  { %1397 = vmatpush2.msra.mxu1 %v804_v61  ;;  %1460 = vmatpush2.msra.mxu0 %v1020_v0  ;;  %v942_v61 = vld [vmem:[#allocation10 + $0xf10] sm:$0xff]  ;;  %v536_v0 = vld [vmem:[#allocation10 + $0x260] sm:$0xff] }
 0x1b6   :  { %1398 = vmatprep.subr.mxu1 %v799_v31  ;;  %1461 = vmatprep.subr.mxu0 %v1015_v1  ;;  %v531_v31 = vld [vmem:[#allocation10 + $0x238] sm:$0xff]  ;;  %v530_v1 = vld [vmem:[#allocation10 + $0x230] sm:$0xff] }
 0x1b7   :  { %1399 = vmatpush2.msra.mxu1 %v798_v2  ;;  %1462 = vmatpush2.msra.mxu0 %v1014_v3  ;;  %v746_v2 = vld [vmem:[#allocation10 + $0x8f0] sm:$0xff]  ;;  %v525_v3 = vld [vmem:[#allocation10 + $0x208] sm:$0xff] }
 0x1b8   :  { %1400 = vmatprep.subr.mxu1 %v793_v5  ;;  %1463 = vmatprep.subr.mxu0 %v1009_v6  ;;  %v741_v5 = vld [vmem:[#allocation10 + $0x8c8] sm:$0xff]  ;;  %v524_v6 = vld [vmem:[#allocation10 + $0x200] sm:$0xff] }
 0x1b9   :  { %1401 = vmatpush2.msra.mxu1 %v792_v7  ;;  %1464 = vmatpush2.msra.mxu0 %v1008_v8  ;;  %v740_v7 = vld [vmem:[#allocation10 + $0x8c0] sm:$0xff]  ;;  %v519_v8 = vld [vmem:[#allocation10 + $0x1d8] sm:$0xff] }
 0x1ba   :  { %1402 = vmatprep.subr.mxu1 %v787_v9  ;;  %1465 = vmatprep.subr.mxu0 %v1003_v10  ;;  %v735_v9 = vld [vmem:[#allocation10 + $0x898] sm:$0xff]  ;;  %v518_v10 = vld [vmem:[#allocation10 + $0x1d0] sm:$0xff] }
 0x1bb   :  { %1403 = vmatpush2.msra.mxu1 %v786_v11  ;;  %1466 = vmatpush2.msra.mxu0 %v1002_v12  ;;  %v734_v11 = vld [vmem:[#allocation10 + $0x890] sm:$0xff]  ;;  %v513_v12 = vld [vmem:[#allocation10 + $0x1a8] sm:$0xff] }
 0x1bc   :  { %1404 = vmatprep.subr.mxu1 %v781_v13  ;;  %1467 = vmatprep.subr.mxu0 %v997_v14  ;;  %v729_v13 = vld [vmem:[#allocation10 + $0x868] sm:$0xff]  ;;  %v512_v14 = vld [vmem:[#allocation10 + $0x1a0] sm:$0xff] }
 0x1bd   :  { %1405 = vmatpush2.msra.mxu1 %v780_v15  ;;  %1468 = vmatpush2.msra.mxu0 %v996_v16  ;;  %v728_v15 = vld [vmem:[#allocation10 + $0x860] sm:$0xff]  ;;  %v507_v16 = vld [vmem:[#allocation10 + $0x178] sm:$0xff] }
 0x1be   :  { %1406 = vmatprep.subr.mxu1 %v775_v17  ;;  %1469 = vmatprep.subr.mxu0 %v991_v18  ;;  %v723_v17 = vld [vmem:[#allocation10 + $0x838] sm:$0xff]  ;;  %v722_v18 = vld [vmem:[#allocation10 + $0x830] sm:$0xff] }
 0x1bf   :  { %1407 = vmatpush2.msra.mxu1 %v774_v19  ;;  %1470 = vmatpush2.msra.mxu0 %v990_v21  ;;  %v501_v19 = vld [vmem:[#allocation10 + $0x148] sm:$0xff] }
 0x1c0   :  { %1408 = vmatprep.subr.mxu1 %v769_v22  ;;  %1471 = vmatprep.subr.mxu0 %v985_v23  ;;  %v717_v21 = vld [vmem:[#allocation10 + $0x808] sm:$0xff]  ;;  %v500_v22 = vld [vmem:[#allocation10 + $0x140] sm:$0xff] }
 0x1c1   :  { %1409 = vmatpush2.msra.mxu1 %v768_v24  ;;  %1472 = vmatpush2.msra.mxu0 %v984_v25  ;;  %v716_v23 = vld [vmem:[#allocation10 + $0x800] sm:$0xff]  ;;  %v495_v24 = vld [vmem:[#allocation10 + $0x118] sm:$0xff] }
 0x1c2   :  { %1410 = vmatprep.subr.mxu1 %v763_v26  ;;  %1473 = vmatprep.subr.mxu0 %v979_v27  ;;  %v711_v25 = vld [vmem:[#allocation10 + $0x7d8] sm:$0xff]  ;;  %v494_v26 = vld [vmem:[#allocation10 + $0x110] sm:$0xff] }
 0x1c3   :  { %1411 = vmatpush2.msra.mxu1 %v762_v28  ;;  %1474 = vmatpush2.msra.mxu0 %v978_v33  ;;  %v710_v27 = vld [vmem:[#allocation10 + $0x7d0] sm:$0xff]  ;;  %v489_v28 = vld [vmem:[#allocation10 + $0xe8] sm:$0xff] }
 0x1c4   :  { %1412 = vmatprep.subr.mxu1 %v757_v34  ;;  %1475 = vmatprep.subr.mxu0 %v973_v35  ;;  %v705_v33 = vld [vmem:[#allocation10 + $0x7a8] sm:$0xff]  ;;  %v488_v34 = vld [vmem:[#allocation10 + $0xe0] sm:$0xff] }
 0x1c5   :  { %1413 = vmatpush2.msra.mxu1 %v756_v36  ;;  %1476 = vmatpush2.msra.mxu0 %v972_v39  ;;  %v704_v35 = vld [vmem:[#allocation10 + $0x7a0] sm:$0xff]  ;;  %v483_v36 = vld [vmem:[#allocation10 + $0xb8] sm:$0xff] }
 0x1c6   :  { %1414 = vmatprep.subr.mxu1 %v751_v40  ;;  %1477 = vmatprep.subr.mxu0 %v967_v42  ;;  %v699_v39 = vld [vmem:[#allocation10 + $0x778] sm:$0xff]  ;;  %v482_v40 = vld [vmem:[#allocation10 + $0xb0] sm:$0xff] }
 0x1c7   :  { %1415 = vmatpush2.msra.mxu1 %v750_v44  ;;  %1478 = vmatpush2.msra.mxu0 %v966_v46  ;;  %v698_v42 = vld [vmem:[#allocation10 + $0x770] sm:$0xff]  ;;  %v477_v44 = vld [vmem:[#allocation10 + $0x88] sm:$0xff] }
 0x1c8   :  { %1417 = vmatmul.mubr.f32.vlgmr.msra.gmra.mxu1 %v3963_v62  ;;  %1479 = vmatprep.subr.mxu0 %v961_v47  ;;  %v693_v46 = vld [vmem:[#allocation10 + $0x748] sm:$0xff]  ;;  %v476_v47 = vld [vmem:[#allocation10 + $0x80] sm:$0xff] }
 0x1c9   :  { %1494 = vmatprep.subr.mxu1 %v555_v48  ;;  %1480 = vmatpush2.msra.mxu0 %v960_v50  ;;  %v692_v48 = vld [vmem:[#allocation10 + $0x740] sm:$0xff]  ;;  %v471_v50 = vld [vmem:[#allocation10 + $0x58] sm:$0xff] }
 0x1ca   :  { %1495 = vmatpush1.msra.mxu1 %v554_v51  ;;  %1558 = vmatprep.mubr.f32.mxu1 %v3953_v45  ;;  %v747_v45 = vld [vmem:[#allocation10 + $0x8f8] sm:$0xff] }
 0x1cb   :  { %1481 = vmatprep.subr.mxu0 %v955_v52  ;;  %1496 = vmatprep.subr.mxu1 %v549_v53  ;;  %v687_v51 = vld [vmem:[#allocation10 + $0x718] sm:$0xff]  ;;  %v470_v52 = vld [vmem:[#allocation10 + $0x50] sm:$0xff] }
 0x1cc   :  { %1482 = vmatpush2.msra.mxu0 %v954_v29  ;;  %1497 = vmatpush1.msra.mxu1 %v548_v54  ;;  %v686_v53 = vld [vmem:[#allocation10 + $0x710] sm:$0xff]  ;;  %v465_v29 = vld [vmem:[#allocation10 + $0x28] sm:$0xff] }
 0x1cd   :  { %1483 = vmatprep.subr.mxu0 %v949_v55  ;;  %1498 = vmatprep.subr.mxu1 %v543_v56  ;;  %v681_v54 = vld [vmem:[#allocation10 + $0x6e8] sm:$0xff]  ;;  %v464_v55 = vld [vmem:[#allocation10 + $0x20] sm:$0xff] }
 0x1ce   :  { %1484 = vmatpush2.msra.mxu0 %v948_v57  ;;  %1499 = vmatpush1.msra.mxu1 %v542_v58  ;;  %v680_v56 = vld [vmem:[#allocation10 + $0x6e0] sm:$0xff]  ;;  %v651_v57 = vld [vmem:[#allocation10 + $0x5f8] sm:$0xff] }
 0x1cf   :  { %1485 = vmatprep.subr.mxu0 %v943_v59  ;;  %1500 = vmatprep.subr.mxu1 %v537_v60  ;;  %v675_v58 = vld [vmem:[#allocation10 + $0x6b8] sm:$0xff]  ;;  %v650_v59 = vld [vmem:[#allocation10 + $0x5f0] sm:$0xff] }
 0x1d0   :  { %1486 = vmatpush2.msra.mxu0 %v942_v61  ;;  %1501 = vmatpush1.msra.mxu1 %v536_v0  ;;  %v674_v60 = vld [vmem:[#allocation10 + $0x6b0] sm:$0xff]  ;;  %v645_v61 = vld [vmem:[#allocation10 + $0x5c8] sm:$0xff] }
 0x1d1   :  { %1488 = vmatmul.mubr.f32.vlgmr.msra.gmra.mxu0 %v3985_v37  ;;  %1502 = vmatprep.subr.mxu1 %v531_v31  ;;  %v669_v0 = vld [vmem:[#allocation10 + $0x688] sm:$0xff]  ;;  %v644_v31 = vld [vmem:[#allocation10 + $0x5c0] sm:$0xff] }
 0x1d2   :  { %1565 = vmatprep.subr.mxu0 %v747_v45  ;;  %1503 = vmatpush1.msra.mxu1 %v530_v1  ;;  %v668_v45 = vld [vmem:[#allocation10 + $0x680] sm:$0xff]  ;;  %v639_v1 = vld [vmem:[#allocation10 + $0x598] sm:$0xff] }
 0x1d3   :  { %1566 = vmatpush1.msra.mxu0 %v746_v2  ;;  %1629 = vmatprep.mubr.f32.mxu0 %v3965_v63  ;;  %v506_v63 = vld [vmem:[#allocation10 + $0x170] sm:$0xff]  ;;  %v663_v2 = vld [vmem:[#allocation10 + $0x658] sm:$0xff] }
 0x1d4   :  { %1504 = vmatprep.subr.mxu1 %v525_v3  ;;  %1567 = vmatprep.subr.mxu0 %v741_v5  ;;  %v638_v3 = vld [vmem:[#allocation10 + $0x590] sm:$0xff] }
 0x1d5   :  { %1505 = vmatpush1.msra.mxu1 %v524_v6  ;;  %1568 = vmatpush1.msra.mxu0 %v740_v7  ;;  %v662_v5 = vld [vmem:[#allocation10 + $0x650] sm:$0xff]  ;;  %v633_v6 = vld [vmem:[#allocation10 + $0x568] sm:$0xff] }
 0x1d6   :  { %1506 = vmatprep.subr.mxu1 %v519_v8  ;;  %1569 = vmatprep.subr.mxu0 %v735_v9  ;;  %v657_v7 = vld [vmem:[#allocation10 + $0x628] sm:$0xff]  ;;  %v632_v8 = vld [vmem:[#allocation10 + $0x560] sm:$0xff] }
 0x1d7   :  { %1507 = vmatpush1.msra.mxu1 %v518_v10  ;;  %1570 = vmatpush1.msra.mxu0 %v734_v11  ;;  %v656_v9 = vld [vmem:[#allocation10 + $0x620] sm:$0xff]  ;;  %v627_v10 = vld [vmem:[#allocation10 + $0x538] sm:$0xff] }
 0x1d8   :  { %1508 = vmatprep.subr.mxu1 %v513_v12  ;;  %1571 = vmatprep.subr.mxu0 %v729_v13  ;;  %v843_v11 = vld [vmem:[#allocation10 + $0xbf8] sm:$0xff]  ;;  %v626_v12 = vld [vmem:[#allocation10 + $0x530] sm:$0xff] }
 0x1d9   :  { %1509 = vmatpush1.msra.mxu1 %v512_v14  ;;  %1572 = vmatpush1.msra.mxu0 %v728_v15  ;;  %v842_v13 = vld [vmem:[#allocation10 + $0xbf0] sm:$0xff]  ;;  %v621_v14 = vld [vmem:[#allocation10 + $0x508] sm:$0xff] }
 0x1da   :  { %1510 = vmatprep.subr.mxu1 %v507_v16  ;;  %1573 = vmatprep.subr.mxu0 %v723_v17  ;;  %v837_v15 = vld [vmem:[#allocation10 + $0xbc8] sm:$0xff]  ;;  %v620_v16 = vld [vmem:[#allocation10 + $0x500] sm:$0xff] }
 0x1db   :  { %1511 = vmatpush1.msra.mxu1 %v506_v63  ;;  %1574 = vmatpush1.msra.mxu0 %v722_v18  ;;  %v836_v17 = vld [vmem:[#allocation10 + $0xbc0] sm:$0xff]  ;;  %v615_v63 = vld [vmem:[#allocation10 + $0x4d8] sm:$0xff] }
 0x1dc   :  { %1512 = vmatprep.subr.mxu1 %v501_v19  ;;  %1575 = vmatprep.subr.mxu0 %v717_v21  ;;  %v831_v18 = vld [vmem:[#allocation10 + $0xb98] sm:$0xff]  ;;  %v614_v19 = vld [vmem:[#allocation10 + $0x4d0] sm:$0xff] }
 0x1dd   :  { %1513 = vmatpush1.msra.mxu1 %v500_v22  ;;  %1576 = vmatpush1.msra.mxu0 %v716_v23  ;;  %v830_v21 = vld [vmem:[#allocation10 + $0xb90] sm:$0xff]  ;;  %v609_v22 = vld [vmem:[#allocation10 + $0x4a8] sm:$0xff] }
 0x1de   :  { %1514 = vmatprep.subr.mxu1 %v495_v24  ;;  %1577 = vmatprep.subr.mxu0 %v711_v25  ;;  %v825_v23 = vld [vmem:[#allocation10 + $0xb68] sm:$0xff]  ;;  %v608_v24 = vld [vmem:[#allocation10 + $0x4a0] sm:$0xff] }
 0x1df   :  { %1515 = vmatpush1.msra.mxu1 %v494_v26  ;;  %1578 = vmatpush1.msra.mxu0 %v710_v27  ;;  %v824_v25 = vld [vmem:[#allocation10 + $0xb60] sm:$0xff]  ;;  %v603_v26 = vld [vmem:[#allocation10 + $0x478] sm:$0xff] }
 0x1e0   :  { %1516 = vmatprep.subr.mxu1 %v489_v28  ;;  %1579 = vmatprep.subr.mxu0 %v705_v33  ;;  %v819_v27 = vld [vmem:[#allocation10 + $0xb38] sm:$0xff]  ;;  %v602_v28 = vld [vmem:[#allocation10 + $0x470] sm:$0xff] }
 0x1e1   :  { %1517 = vmatpush1.msra.mxu1 %v488_v34  ;;  %1580 = vmatpush1.msra.mxu0 %v704_v35  ;;  %v818_v33 = vld [vmem:[#allocation10 + $0xb30] sm:$0xff]  ;;  %v597_v34 = vld [vmem:[#allocation10 + $0x448] sm:$0xff] }
 0x1e2   :  { %1518 = vmatprep.subr.mxu1 %v483_v36  ;;  %1581 = vmatprep.subr.mxu0 %v699_v39  ;;  %v813_v35 = vld [vmem:[#allocation10 + $0xb08] sm:$0xff]  ;;  %v596_v36 = vld [vmem:[#allocation10 + $0x440] sm:$0xff] }
 0x1e3   :  { %1519 = vmatpush1.msra.mxu1 %v482_v40  ;;  %1582 = vmatpush1.msra.mxu0 %v698_v42  ;;  %v812_v39 = vld [vmem:[#allocation10 + $0xb00] sm:$0xff]  ;;  %v591_v40 = vld [vmem:[#allocation10 + $0x418] sm:$0xff] }
 0x1e4   :  { %1520 = vmatprep.subr.mxu1 %v477_v44  ;;  %1583 = vmatprep.subr.mxu0 %v693_v46  ;;  %v807_v42 = vld [vmem:[#allocation10 + $0xad8] sm:$0xff]  ;;  %v590_v44 = vld [vmem:[#allocation10 + $0x410] sm:$0xff] }
 0x1e5   :  { %1521 = vmatpush1.msra.mxu1 %v476_v47  ;;  %1584 = vmatpush1.msra.mxu0 %v692_v48  ;;  %v806_v46 = vld [vmem:[#allocation10 + $0xad0] sm:$0xff]  ;;  %v585_v47 = vld [vmem:[#allocation10 + $0x3e8] sm:$0xff] }
 0x1e6   :  { %1522 = vmatprep.subr.mxu1 %v471_v50  ;;  %1585 = vmatprep.subr.mxu0 %v687_v51  ;;  %v801_v48 = vld [vmem:[#allocation10 + $0xaa8] sm:$0xff]  ;;  %v584_v50 = vld [vmem:[#allocation10 + $0x3e0] sm:$0xff] }
 0x1e7   :  { %1523 = vmatpush1.msra.mxu1 %v470_v52  ;;  %1586 = vmatpush1.msra.mxu0 %v686_v53  ;;  %v800_v51 = vld [vmem:[#allocation10 + $0xaa0] sm:$0xff]  ;;  %v579_v52 = vld [vmem:[#allocation10 + $0x3b8] sm:$0xff] }
 0x1e8   :  { %1524 = vmatprep.subr.mxu1 %v465_v29  ;;  %1587 = vmatprep.subr.mxu0 %v681_v54  ;;  %v795_v53 = vld [vmem:[#allocation10 + $0xa78] sm:$0xff]  ;;  %v578_v29 = vld [vmem:[#allocation10 + $0x3b0] sm:$0xff] }
 0x1e9   :  { %1525 = vmatpush1.msra.mxu1 %v464_v55  ;;  %1588 = vmatpush1.msra.mxu0 %v680_v56  ;;  %v794_v54 = vld [vmem:[#allocation10 + $0xa70] sm:$0xff]  ;;  %v573_v55 = vld [vmem:[#allocation10 + $0x388] sm:$0xff] }
 0x1ea   :  { %1526 = vmatprep.subr.mxu1 %v651_v57  ;;  %1589 = vmatprep.subr.mxu0 %v675_v58  ;;  %v789_v56 = vld [vmem:[#allocation10 + $0xa48] sm:$0xff]  ;;  %v572_v57 = vld [vmem:[#allocation10 + $0x380] sm:$0xff] }
 0x1eb   :  { %1527 = vmatpush2.msra.mxu1 %v650_v59  ;;  %1590 = vmatpush1.msra.mxu0 %v674_v60  ;;  %v788_v58 = vld [vmem:[#allocation10 + $0xa40] sm:$0xff]  ;;  %v567_v59 = vld [vmem:[#allocation10 + $0x358] sm:$0xff] }
 0x1ec   :  { %1528 = vmatprep.subr.mxu1 %v645_v61  ;;  %1591 = vmatprep.subr.mxu0 %v669_v0  ;;  %v783_v60 = vld [vmem:[#allocation10 + $0xa18] sm:$0xff]  ;;  %v566_v61 = vld [vmem:[#allocation10 + $0x350] sm:$0xff] }
 0x1ed   :  { %1529 = vmatpush2.msra.mxu1 %v644_v31  ;;  %1592 = vmatpush1.msra.mxu0 %v668_v45  ;;  %v782_v0 = vld [vmem:[#allocation10 + $0xa10] sm:$0xff]  ;;  %v561_v31 = vld [vmem:[#allocation10 + $0x328] sm:$0xff] }
 0x1ee   :  { %1530 = vmatprep.subr.mxu1 %v639_v1  ;;  %1593 = vmatprep.subr.mxu0 %v663_v2  ;;  %v777_v45 = vld [vmem:[#allocation10 + $0x9e8] sm:$0xff]  ;;  %v560_v1 = vld [vmem:[#allocation10 + $0x320] sm:$0xff] }
 0x1ef   :  { %1531 = vmatpush2.msra.mxu1 %v638_v3  ;;  %1594 = vmatpush1.msra.mxu0 %v662_v5  ;;  %v776_v2 = vld [vmem:[#allocation10 + $0x9e0] sm:$0xff]  ;;  %v771_v3 = vld [vmem:[#allocation10 + $0x9b8] sm:$0xff] }
 0x1f0   :  { %1532 = vmatprep.subr.mxu1 %v633_v6  ;;  %1595 = vmatprep.subr.mxu0 %v657_v7  ;;  %v939_v5 = vld [vmem:[#allocation10 + $0xef8] sm:$0xff]  ;;  %v770_v6 = vld [vmem:[#allocation10 + $0x9b0] sm:$0xff] }
 0x1f1   :  { %1533 = vmatpush2.msra.mxu1 %v632_v8  ;;  %1596 = vmatpush1.msra.mxu0 %v656_v9  ;;  %v938_v7 = vld [vmem:[#allocation10 + $0xef0] sm:$0xff]  ;;  %v765_v8 = vld [vmem:[#allocation10 + $0x988] sm:$0xff] }
 0x1f2   :  { %1534 = vmatprep.subr.mxu1 %v627_v10  ;;  %1597 = vmatprep.subr.mxu0 %v843_v11  ;;  %v933_v9 = vld [vmem:[#allocation10 + $0xec8] sm:$0xff]  ;;  %v764_v10 = vld [vmem:[#allocation10 + $0x980] sm:$0xff] }
 0x1f3   :  { %1535 = vmatpush2.msra.mxu1 %v626_v12  ;;  %1598 = vmatpush2.msra.mxu0 %v842_v13  ;;  %v932_v11 = vld [vmem:[#allocation10 + $0xec0] sm:$0xff]  ;;  %v759_v12 = vld [vmem:[#allocation10 + $0x958] sm:$0xff] }
 0x1f4   :  { %1536 = vmatprep.subr.mxu1 %v621_v14  ;;  %1599 = vmatprep.subr.mxu0 %v837_v15  ;;  %v927_v13 = vld [vmem:[#allocation10 + $0xe98] sm:$0xff]  ;;  %v758_v14 = vld [vmem:[#allocation10 + $0x950] sm:$0xff] }
 0x1f5   :  { %1537 = vmatpush2.msra.mxu1 %v620_v16  ;;  %1600 = vmatpush2.msra.mxu0 %v836_v17  ;;  %v926_v15 = vld [vmem:[#allocation10 + $0xe90] sm:$0xff]  ;;  %v753_v16 = vld [vmem:[#allocation10 + $0x928] sm:$0xff]  ;;  %v752_v17 = vld [vmem:[#allocation10 + $0x920] sm:$0xff] }
 0x1f6   :  { %1538 = vmatprep.subr.mxu1 %v615_v63  ;;  %1601 = vmatprep.subr.mxu0 %v831_v18  ;;  %v920_v63 = vld [vmem:[#allocation10 + $0xe60] sm:$0xff]  ;;  %v915_v18 = vld [vmem:[#allocation10 + $0xe38] sm:$0xff] }
 0x1f7   :  { %1539 = vmatpush2.msra.mxu1 %v614_v19  ;;  %1602 = vmatpush2.msra.mxu0 %v830_v21  ;;  %v1817_v19 = vld [vmem:[#allocation13 + $0x2d8] sm:$0xff]  ;;  %v909_v21 = vld [vmem:[#allocation10 + $0xe08] sm:$0xff] }
 0x1f8   :  { %1540 = vmatprep.subr.mxu1 %v609_v22  ;;  %1603 = vmatprep.subr.mxu0 %v825_v23  ;;  %v1816_v22 = vld [vmem:[#allocation13 + $0x2d0] sm:$0xff]  ;;  %v908_v23 = vld [vmem:[#allocation10 + $0xe00] sm:$0xff] }
 0x1f9   :  { %1541 = vmatpush2.msra.mxu1 %v608_v24  ;;  %1604 = vmatpush2.msra.mxu0 %v824_v25  ;;  %v1811_v24 = vld [vmem:[#allocation13 + $0x2a8] sm:$0xff]  ;;  %v903_v25 = vld [vmem:[#allocation10 + $0xdd8] sm:$0xff] }
 0x1fa   :  { %1542 = vmatprep.subr.mxu1 %v603_v26  ;;  %1605 = vmatprep.subr.mxu0 %v819_v27  ;;  %v1810_v26 = vld [vmem:[#allocation13 + $0x2a0] sm:$0xff]  ;;  %v902_v27 = vld [vmem:[#allocation10 + $0xdd0] sm:$0xff] }
 0x1fb   :  { %1543 = vmatpush2.msra.mxu1 %v602_v28  ;;  %1606 = vmatpush2.msra.mxu0 %v818_v33  ;;  %v1805_v28 = vld [vmem:[#allocation13 + $0x278] sm:$0xff]  ;;  %v897_v33 = vld [vmem:[#allocation10 + $0xda8] sm:$0xff] }
 0x1fc   :  { %1544 = vmatprep.subr.mxu1 %v597_v34  ;;  %1607 = vmatprep.subr.mxu0 %v813_v35  ;;  %v1804_v34 = vld [vmem:[#allocation13 + $0x270] sm:$0xff]  ;;  %v896_v35 = vld [vmem:[#allocation10 + $0xda0] sm:$0xff] }
 0x1fd   :  { %1545 = vmatpush2.msra.mxu1 %v596_v36  ;;  %1608 = vmatpush2.msra.mxu0 %v812_v39  ;;  %v1799_v36 = vld [vmem:[#allocation13 + $0x248] sm:$0xff]  ;;  %v1798_v39 = vld [vmem:[#allocation13 + $0x240] sm:$0xff] }
 0x1fe   :  { %1546 = vmatprep.subr.mxu1 %v591_v40  ;;  %1609 = vmatprep.subr.mxu0 %v807_v42  ;;  %v890_v40 = vld [vmem:[#allocation10 + $0xd70] sm:$0xff]  ;;  %v1793_v42 = vld [vmem:[#allocation13 + $0x218] sm:$0xff] }
 0x1ff   :  { %1547 = vmatpush2.msra.mxu1 %v590_v44  ;;  %1610 = vmatpush2.msra.mxu0 %v806_v46  ;;  %v885_v44 = vld [vmem:[#allocation10 + $0xd48] sm:$0xff]  ;;  %v1792_v46 = vld [vmem:[#allocation13 + $0x210] sm:$0xff] }
 0x200   :  { %1548 = vmatprep.subr.mxu1 %v585_v47  ;;  %1611 = vmatprep.subr.mxu0 %v801_v48  ;;  %v884_v47 = vld [vmem:[#allocation10 + $0xd40] sm:$0xff]  ;;  %v1787_v48 = vld [vmem:[#allocation13 + $0x1e8] sm:$0xff] }
 0x201   :  { %1549 = vmatpush2.msra.mxu1 %v584_v50  ;;  %1612 = vmatpush2.msra.mxu0 %v800_v51  ;;  %v879_v50 = vld [vmem:[#allocation10 + $0xd18] sm:$0xff]  ;;  %v1786_v51 = vld [vmem:[#allocation13 + $0x1e0] sm:$0xff] }
 0x202   :  { %1550 = vmatprep.subr.mxu1 %v579_v52  ;;  %1613 = vmatprep.subr.mxu0 %v795_v53  ;;  %v878_v52 = vld [vmem:[#allocation10 + $0xd10] sm:$0xff]  ;;  %v1781_v53 = vld [vmem:[#allocation13 + $0x1b8] sm:$0xff] }
 0x203   :  { %1551 = vmatpush2.msra.mxu1 %v578_v29  ;;  %1614 = vmatpush2.msra.mxu0 %v794_v54  ;;  %v873_v29 = vld [vmem:[#allocation10 + $0xce8] sm:$0xff]  ;;  %v1780_v54 = vld [vmem:[#allocation13 + $0x1b0] sm:$0xff] }
 0x204   :  { %1552 = vmatprep.subr.mxu1 %v573_v55  ;;  %1615 = vmatprep.subr.mxu0 %v789_v56  ;;  %v872_v55 = vld [vmem:[#allocation10 + $0xce0] sm:$0xff]  ;;  %v1775_v56 = vld [vmem:[#allocation13 + $0x188] sm:$0xff] }
 0x205   :  { %1553 = vmatpush2.msra.mxu1 %v572_v57  ;;  %1616 = vmatpush2.msra.mxu0 %v788_v58  ;;  %v867_v57 = vld [vmem:[#allocation10 + $0xcb8] sm:$0xff]  ;;  %v1774_v58 = vld [vmem:[#allocation13 + $0x180] sm:$0xff] }
 0x206   :  { %1554 = vmatprep.subr.mxu1 %v567_v59  ;;  %1617 = vmatprep.subr.mxu0 %v783_v60  ;;  %v866_v59 = vld [vmem:[#allocation10 + $0xcb0] sm:$0xff]  ;;  %v1769_v60 = vld [vmem:[#allocation13 + $0x158] sm:$0xff] }
 0x207   :  { %1555 = vmatpush2.msra.mxu1 %v566_v61  ;;  %1618 = vmatpush2.msra.mxu0 %v782_v0  ;;  %v861_v61 = vld [vmem:[#allocation10 + $0xc88] sm:$0xff]  ;;  %v1768_v0 = vld [vmem:[#allocation13 + $0x150] sm:$0xff] }
 0x208   :  { %1556 = vmatprep.subr.mxu1 %v561_v31  ;;  %1619 = vmatprep.subr.mxu0 %v777_v45  ;;  %v860_v31 = vld [vmem:[#allocation10 + $0xc80] sm:$0xff]  ;;  %v1763_v45 = vld [vmem:[#allocation13 + $0x128] sm:$0xff] }
 0x209   :  { %1557 = vmatpush2.msra.mxu1 %v560_v1  ;;  %1620 = vmatpush2.msra.mxu0 %v776_v2  ;;  %v855_v1 = vld [vmem:[#allocation10 + $0xc58] sm:$0xff]  ;;  %v1762_v2 = vld [vmem:[#allocation13 + $0x120] sm:$0xff] }
 0x20a   :  { %1559 = vmatmul.mubr.f32.vlgmr.msra.gmra.mxu1 %v3958_v49  ;;  %1621 = vmatprep.subr.mxu0 %v771_v3  ;;  %v921_v49 = vld [vmem:[#allocation10 + $0xe68] sm:$0xff]  ;;  %v854_v3 = vld [vmem:[#allocation10 + $0xc50] sm:$0xff] }
 0x20b   :  { %1636 = vmatprep.subr.mxu1 %v939_v5  ;;  %1622 = vmatpush2.msra.mxu0 %v770_v6  ;;  %v1757_v5 = vld [vmem:[#allocation13 + $0xf8] sm:$0xff]  ;;  %v849_v6 = vld [vmem:[#allocation10 + $0xc28] sm:$0xff] }
 0x20c   :  { %1637 = vmatpush1.msra.mxu1 %v938_v7  ;;  %1700 = vmatprep.mubr.f32.mxu1 %v3981_v4  ;;  %v914_v4 = vld [vmem:[#allocation10 + $0xe30] sm:$0xff] }
 0x20d   :  { %1623 = vmatprep.subr.mxu0 %v765_v8  ;;  %1638 = vmatprep.subr.mxu1 %v933_v9  ;;  %v1756_v7 = vld [vmem:[#allocation13 + $0xf0] sm:$0xff]  ;;  %v848_v8 = vld [vmem:[#allocation10 + $0xc20] sm:$0xff]  ;;  %v1751_v9 = vld [vmem:[#allocation13 + $0xc8] sm:$0xff] }
 0x20e   :  { %1624 = vmatpush2.msra.mxu0 %v764_v10  ;;  %1639 = vmatpush1.msra.mxu1 %v932_v11  ;;  %v1035_v10 = vld [vmem:[#allocation10 + $0x11f8] sm:$0xff]  ;;  %v1750_v11 = vld [vmem:[#allocation13 + $0xc0] sm:$0xff] }
 0x20f   :  { %1625 = vmatprep.subr.mxu0 %v759_v12  ;;  %1640 = vmatprep.subr.mxu1 %v927_v13  ;;  %v1034_v12 = vld [vmem:[#allocation10 + $0x11f0] sm:$0xff]  ;;  %v1745_v13 = vld [vmem:[#allocation13 + $0x98] sm:$0xff] }
 0x210   :  { %1626 = vmatpush2.msra.mxu0 %v758_v14  ;;  %1641 = vmatpush1.msra.mxu1 %v926_v15  ;;  %v1029_v14 = vld [vmem:[#allocation10 + $0x11c8] sm:$0xff]  ;;  %v1744_v15 = vld [vmem:[#allocation13 + $0x90] sm:$0xff] }
 0x211   :  { %1627 = vmatprep.subr.mxu0 %v753_v16  ;;  %1642 = vmatprep.subr.mxu1 %v921_v49  ;;  %v1028_v16 = vld [vmem:[#allocation10 + $0x11c0] sm:$0xff]  ;;  %v1739_v49 = vld [vmem:[#allocation13 + $0x68] sm:$0xff] }
 0x212   :  { %1628 = vmatpush2.msra.mxu0 %v752_v17  ;;  %1643 = vmatpush1.msra.mxu1 %v920_v63  ;;  %v1023_v17 = vld [vmem:[#allocation10 + $0x1198] sm:$0xff]  ;;  %v1738_v63 = vld [vmem:[#allocation13 + $0x60] sm:$0xff] }
 0x213   :  { %1630 = vmatmul.mubr.f32.vlgmr.msra.gmra.mxu0 %v3963_v62  ;;  %1644 = vmatprep.subr.mxu1 %v915_v18  ;;  %v891_v62 = vld [vmem:[#allocation10 + $0xd78] sm:$0xff]  ;;  %v1022_v18 = vld [vmem:[#allocation10 + $0x1190] sm:$0xff] }
 0x214   :  { %1645 = vmatpush1.msra.mxu1 %v914_v4  ;;  %2334 = vmatprep.subr.mxu0 %v1817_v19  ;;  %v1733_v4 = vld [vmem:[#allocation13 + $0x38] sm:$0xff]  ;;  %v1017_v19 = vld [vmem:[#allocation10 + $0x1168] sm:$0xff] }
 0x215   :  { %1646 = vmatprep.subr.mxu1 %v909_v21  ;;  %2335 = vmatpush1.msra.mxu0 %v1816_v22  ;;  %v1732_v21 = vld [vmem:[#allocation13 + $0x30] sm:$0xff]  ;;  %v1016_v22 = vld [vmem:[#allocation10 + $0x1160] sm:$0xff] }
 0x216   :  { %1647 = vmatpush1.msra.mxu1 %v908_v23  ;;  %2336 = vmatprep.subr.mxu0 %v1811_v24  ;;  %v1727_v23 = vld [vmem:[#allocation13 + $0x8] sm:$0xff]  ;;  %v1011_v24 = vld [vmem:[#allocation10 + $0x1138] sm:$0xff] }
 0x217   :  { %1648 = vmatprep.subr.mxu1 %v903_v25  ;;  %2337 = vmatpush1.msra.mxu0 %v1810_v26  ;;  %v1726_v25 = vld [vmem:[#allocation13] sm:$0xff]  ;;  %v1010_v26 = vld [vmem:[#allocation10 + $0x1130] sm:$0xff] }
 0x218   :  { %1649 = vmatpush1.msra.mxu1 %v902_v27  ;;  %2338 = vmatprep.subr.mxu0 %v1805_v28  ;;  %v1913_v27 = vld [vmem:[#allocation13 + $0x5d8] sm:$0xff]  ;;  %v1005_v28 = vld [vmem:[#allocation10 + $0x1108] sm:$0xff] }
 0x219   :  { %1650 = vmatprep.subr.mxu1 %v897_v33  ;;  %2339 = vmatpush1.msra.mxu0 %v1804_v34  ;;  %v1912_v33 = vld [vmem:[#allocation13 + $0x5d0] sm:$0xff]  ;;  %v1004_v34 = vld [vmem:[#allocation10 + $0x1100] sm:$0xff] }
 0x21a   :  { %1651 = vmatpush1.msra.mxu1 %v896_v35  ;;  %2340 = vmatprep.subr.mxu0 %v1799_v36  ;;  %v1907_v35 = vld [vmem:[#allocation13 + $0x5a8] sm:$0xff]  ;;  %v999_v36 = vld [vmem:[#allocation10 + $0x10d8] sm:$0xff] }
 0x21b   :  { %1652 = vmatprep.subr.mxu1 %v891_v62  ;;  %2341 = vmatpush1.msra.mxu0 %v1798_v39  ;;  %v1906_v62 = vld [vmem:[#allocation13 + $0x5a0] sm:$0xff]  ;;  %v998_v39 = vld [vmem:[#allocation10 + $0x10d0] sm:$0xff] }
 0x21c   :  { %1653 = vmatpush1.msra.mxu1 %v890_v40  ;;  %2342 = vmatprep.subr.mxu0 %v1793_v42  ;;  %v1901_v40 = vld [vmem:[#allocation13 + $0x578] sm:$0xff]  ;;  %v993_v42 = vld [vmem:[#allocation10 + $0x10a8] sm:$0xff] }
 0x21d   :  { %1654 = vmatprep.subr.mxu1 %v885_v44  ;;  %2343 = vmatpush1.msra.mxu0 %v1792_v46  ;;  %v1900_v44 = vld [vmem:[#allocation13 + $0x570] sm:$0xff]  ;;  %v992_v46 = vld [vmem:[#allocation10 + $0x10a0] sm:$0xff] }
 0x21e   :  { %1655 = vmatpush1.msra.mxu1 %v884_v47  ;;  %2344 = vmatprep.subr.mxu0 %v1787_v48  ;;  %v1895_v47 = vld [vmem:[#allocation13 + $0x548] sm:$0xff]  ;;  %v987_v48 = vld [vmem:[#allocation10 + $0x1078] sm:$0xff] }
 0x21f   :  { %1656 = vmatprep.subr.mxu1 %v879_v50  ;;  %2345 = vmatpush1.msra.mxu0 %v1786_v51  ;;  %v1894_v50 = vld [vmem:[#allocation13 + $0x540] sm:$0xff]  ;;  %v986_v51 = vld [vmem:[#allocation10 + $0x1070] sm:$0xff] }
 0x220   :  { %1657 = vmatpush1.msra.mxu1 %v878_v52  ;;  %2346 = vmatprep.subr.mxu0 %v1781_v53  ;;  %v1889_v52 = vld [vmem:[#allocation13 + $0x518] sm:$0xff]  ;;  %v981_v53 = vld [vmem:[#allocation10 + $0x1048] sm:$0xff] }
 0x221   :  { %1658 = vmatprep.subr.mxu1 %v873_v29  ;;  %2347 = vmatpush1.msra.mxu0 %v1780_v54  ;;  %v1888_v29 = vld [vmem:[#allocation13 + $0x510] sm:$0xff]  ;;  %v980_v54 = vld [vmem:[#allocation10 + $0x1040] sm:$0xff] }
 0x222   :  { %1659 = vmatpush1.msra.mxu1 %v872_v55  ;;  %2348 = vmatprep.subr.mxu0 %v1775_v56  ;;  %v1883_v55 = vld [vmem:[#allocation13 + $0x4e8] sm:$0xff]  ;;  %v975_v56 = vld [vmem:[#allocation10 + $0x1018] sm:$0xff] }
 0x223   :  { %1660 = vmatprep.subr.mxu1 %v867_v57  ;;  %2349 = vmatpush1.msra.mxu0 %v1774_v58  ;;  %v1882_v57 = vld [vmem:[#allocation13 + $0x4e0] sm:$0xff]  ;;  %v974_v58 = vld [vmem:[#allocation10 + $0x1010] sm:$0xff] }
 0x224   :  { %1661 = vmatpush1.msra.mxu1 %v866_v59  ;;  %2350 = vmatprep.subr.mxu0 %v1769_v60  ;;  %v1877_v59 = vld [vmem:[#allocation13 + $0x4b8] sm:$0xff]  ;;  %v1134_v60 = vpop.f32.mrf.mxu1 }
 0x225   :  { %1662 = vmatprep.subr.mxu1 %v861_v61  ;;  %2351 = vmatpush1.msra.mxu0 %v1768_v0  ;;  %v969_v61 = vld [vmem:[#allocation10 + $0xfe8] sm:$0xff]  ;;  %v1876_v0 = vld [vmem:[#allocation13 + $0x4b0] sm:$0xff] }
 0x226   :  { %1663 = vmatpush1.msra.mxu1 %v860_v31  ;;  %2352 = vmatprep.subr.mxu0 %v1763_v45  ;;  %v968_v31 = vld [vmem:[#allocation10 + $0xfe0] sm:$0xff]  ;;  %v1871_v45 = vld [vmem:[#allocation13 + $0x488] sm:$0xff] }
 0x227   :  { %1664 = vmatprep.subr.mxu1 %v855_v1  ;;  %2353 = vmatpush1.msra.mxu0 %v1762_v2  ;;  %v3998_v1 = vld [vmem:[#allocation12] sm:$0x3f]  ;;  %v1205_v2 = vpop.f32.mrf.mxu0 }
 0x228   :  { %1665 = vmatpush1.msra.mxu1 %v854_v3  ;;  %2354 = vmatprep.subr.mxu0 %v1757_v5  ;;  %v963_v3 = vld [vmem:[#allocation10 + $0xfb8] sm:$0xff]  ;;  %v1870_v5 = vld [vmem:[#allocation13 + $0x480] sm:$0xff] }
 0x229   :  { %1666 = vmatprep.subr.mxu1 %v849_v6  ;;  %2355 = vmatpush1.msra.mxu0 %v1756_v7  ;;  %v1045_v6 = vrot.slane %v3998_v1, %v3935_v32  ;;  %v962_v7 = vld [vmem:[#allocation10 + $0xfb0] sm:$0xff] }
 0x22a   :  { %1667 = vmatpush1.msra.mxu1 %v848_v8  ;;  %2356 = vmatprep.subr.mxu0 %v1751_v9  ;;  %v1865_v8 = vld [vmem:[#allocation13 + $0x458] sm:$0xff]  ;;  %v1136_v9 = vpop.f32.mrf.mxu1 }
 0x22b   :  { %1668 = vmatprep.subr.mxu1 %v1035_v10  ;;  %2357 = vmatpush1.msra.mxu0 %v1750_v11  ;;  %v957_v10 = vld [vmem:[#allocation10 + $0xf88] sm:$0xff]  ;;  %v1864_v11 = vld [vmem:[#allocation13 + $0x450] sm:$0xff] }
 0x22c   :  { %1669 = vmatpush2.msra.mxu1 %v1034_v12  ;;  %2358 = vmatprep.subr.mxu0 %v1745_v13  ;;  %v1041_v12 = vrot.slane %v3998_v1, %v3930_v30  ;;  %v956_v13 = vld [vmem:[#allocation10 + $0xf80] sm:$0xff] }
 0x22d   :  { %1670 = vmatprep.subr.mxu1 %v1029_v14  ;;  %2359 = vmatpush1.msra.mxu0 %v1744_v15  ;;  %v1859_v14 = vld [vmem:[#allocation13 + $0x428] sm:$0xff]  ;;  %v1207_v15 = vpop.f32.mrf.mxu0 }
 0x22e   :  { %1671 = vmatpush2.msra.mxu1 %v1028_v16  ;;  %2360 = vmatprep.subr.mxu0 %v1739_v49  ;;  %v951_v16 = vld [vmem:[#allocation10 + $0xf58] sm:$0xff]  ;;  %v1858_v49 = vld [vmem:[#allocation13 + $0x420] sm:$0xff] }
 0x22f   :  { %1672 = vmatprep.subr.mxu1 %v1023_v17  ;;  %2361 = vmatpush1.msra.mxu0 %v1738_v63  ;;  %v1137_v17 = vadd.f32 %v1136_v9, %v1045_v6  ;;  %v950_v63 = vld [vmem:[#allocation10 + $0xf50] sm:$0xff]  ;;  %v2189_v6 = vld [vmem:[#allocation13 + $0xe78] sm:$0xff] }
 0x230   :  { %1673 = vmatpush2.msra.mxu1 %v1022_v18  ;;  %2362 = vmatprep.subr.mxu0 %v1733_v4  ;;  %v1853_v18 = vld [vmem:[#allocation13 + $0x3f8] sm:$0xff]  ;;  %v945_v4 = vld [vmem:[#allocation10 + $0xf28] sm:$0xff] }
 0x231   :  { %1674 = vmatprep.subr.mxu1 %v1017_v19  ;;  %2363 = vmatpush1.msra.mxu0 %v1732_v21  ;;  %v1852_v19 = vld [vmem:[#allocation13 + $0x3f0] sm:$0xff]  ;;  %v1967_v9 = vld [vmem:[#allocation13 + $0x788] sm:$0xff] }
 0x232   :  { %1675 = vmatpush2.msra.mxu1 %v1016_v22  ;;  %2364 = vmatprep.subr.mxu0 %v1727_v23  ;;  %v1135_v22 = vadd.f32 %v1134_v60, %v1041_v12  ;;  %v1208_v23 = vadd.f32 %v1207_v15, %v1137_v17  ;;  %v2182_v12 = vld [vmem:[#allocation13 + $0xe40] sm:$0xff]  ;;  %v1960_v15 = vld [vmem:[#allocation13 + $0x750] sm:$0xff]  ;;  %v2171_v17 = vld [vmem:[#allocation13 + $0xde8] sm:$0xff] }
 0x233   :  { %1676 = vmatprep.subr.mxu1 %v1011_v24  ;;  %2365 = vmatpush1.msra.mxu0 %v1726_v25  ;;  %v944_v24 = vld [vmem:[#allocation10 + $0xf20] sm:$0xff]  ;;  %v1847_v25 = vld [vmem:[#allocation13 + $0x3c8] sm:$0xff] }
 0x234   :  { %1677 = vmatpush2.msra.mxu1 %v1010_v26  ;;  %2366 = vmatprep.subr.mxu0 %v1913_v27  ;;  %v1846_v26 = vld [vmem:[#allocation13 + $0x3c0] sm:$0xff] }
 0x235   :  { %1678 = vmatprep.subr.mxu1 %v1005_v28  ;;  %2367 = vmatpush2.msra.mxu0 %v1912_v33  ;;  %v1206_v28 = vadd.f32 %v1205_v2, %v1135_v22  ;;  %v1841_v33 = vld [vmem:[#allocation13 + $0x398] sm:$0xff]  ;;  %v1978_v2 = vld [vmem:[#allocation13 + $0x7e0] sm:$0xff]  ;;  %v2164_v22 = vld [vmem:[#allocation13 + $0xdb0] sm:$0xff] }
 0x236   :  { %1679 = vmatpush2.msra.mxu1 %v1004_v34  ;;  %2368 = vmatprep.subr.mxu0 %v1907_v35  ;;  %v2009_v35 = vld [vmem:[#allocation13 + $0x8d8] sm:$0xff] }
 0x237   :  { %1680 = vmatprep.subr.mxu1 %v999_v36  ;;  %2369 = vmatpush2.msra.mxu0 %v1906_v62  ;;  %v4007_v36 = vstv %s4002_s11  ;;  %v1840_v62 = vld [vmem:[#allocation13 + $0x390] sm:$0xff] }
 0x238   :  { %1681 = vmatpush2.msra.mxu1 %v998_v39  ;;  %2370 = vmatprep.subr.mxu0 %v1901_v40  ;;  %v2008_v39 = vld [vmem:[#allocation13 + $0x8d0] sm:$0xff] }
 0x239   :  { %1682 = vmatprep.subr.mxu1 %v993_v42  ;;  %2371 = vmatpush2.msra.mxu0 %v1900_v44  ;;  %v1835_v44 = vld [vmem:[#allocation13 + $0x368] sm:$0xff] }
 0x23a   :  { %1683 = vmatpush2.msra.mxu1 %v992_v46  ;;  %2372 = vmatprep.subr.mxu0 %v1895_v47  ;;  %v1834_v46 = vld [vmem:[#allocation13 + $0x360] sm:$0xff]  ;;  %v2003_v47 = vld [vmem:[#allocation13 + $0x8a8] sm:$0xff] }
 0x23b   :  { %1684 = vmatprep.subr.mxu1 %v987_v48  ;;  %2373 = vmatpush2.msra.mxu0 %v1894_v50  ;;  %v1829_v48 = vld [vmem:[#allocation13 + $0x338] sm:$0xff] }
 0x23c   :  { %1685 = vmatpush2.msra.mxu1 %v986_v51  ;;  %2374 = vmatprep.subr.mxu0 %v1889_v52  ;;  %v2002_v51 = vld [vmem:[#allocation13 + $0x8a0] sm:$0xff]  ;;  %v1828_v52 = vld [vmem:[#allocation13 + $0x330] sm:$0xff] }
 0x23d   :  { %1686 = vmatprep.subr.mxu1 %v981_v53  ;;  %2375 = vmatpush2.msra.mxu0 %v1888_v29  ;;  %v1823_v29 = vld [vmem:[#allocation13 + $0x308] sm:$0xff] }
 0x23e   :  { %1687 = vmatpush2.msra.mxu1 %v980_v54  ;;  %2376 = vmatprep.subr.mxu0 %v1883_v55  ;;  %v1996_v54 = vld [vmem:[#allocation13 + $0x870] sm:$0xff]  ;;  %v1822_v55 = vld [vmem:[#allocation13 + $0x300] sm:$0xff] }
 0x23f   :  { %1688 = vmatprep.subr.mxu1 %v975_v56  ;;  %2377 = vmatpush2.msra.mxu0 %v1882_v57  ;;  %v1991_v56 = vld [vmem:[#allocation13 + $0x848] sm:$0xff]  ;;  %v1990_v57 = vld [vmem:[#allocation13 + $0x840] sm:$0xff] }
 0x240   :  { %1689 = vmatpush2.msra.mxu1 %v974_v58  ;;  %2378 = vmatprep.subr.mxu0 %v1877_v59  ;;  %v1985_v58 = vld [vmem:[#allocation13 + $0x818] sm:$0xff] }
 0x241   :  { %1690 = vmatprep.subr.mxu1 %v969_v61  ;;  %2379 = vmatpush2.msra.mxu0 %v1876_v0  ;;  %v2201_v59 = vld [vmem:[#allocation13 + $0xed8] sm:$0xff]  ;;  %v1984_v61 = vld [vmem:[#allocation13 + $0x810] sm:$0xff] }
 0x242   :  { %1691 = vmatpush2.msra.mxu1 %v968_v31  ;;  %2380 = vmatprep.subr.mxu0 %v1871_v45  ;;  %v2200_v0 = vld [vmem:[#allocation13 + $0xed0] sm:$0xff]  ;;  %v1979_v31 = vld [vmem:[#allocation13 + $0x7e8] sm:$0xff] }
 0x243   :  { %1692 = vmatprep.subr.mxu1 %v963_v3  ;;  %2381 = vmatpush2.msra.mxu0 %v1870_v5  ;;  %v2195_v45 = vld [vmem:[#allocation13 + $0xea8] sm:$0xff]  ;;  %v2194_v3 = vld [vmem:[#allocation13 + $0xea0] sm:$0xff]  ;;  %v1973_v5 = vld [vmem:[#allocation13 + $0x7b8] sm:$0xff] }
 0x244   :  { %1693 = vmatpush2.msra.mxu1 %v962_v7  ;;  %2382 = vmatprep.subr.mxu0 %v1865_v8  ;;  %v1972_v7 = vld [vmem:[#allocation13 + $0x7b0] sm:$0xff] }
 0x245   :  { %1694 = vmatprep.subr.mxu1 %v957_v10  ;;  %2383 = vmatpush2.msra.mxu0 %v1864_v11  ;;  %v2188_v8 = vld [vmem:[#allocation13 + $0xe70] sm:$0xff]  ;;  %v2183_v10 = vld [vmem:[#allocation13 + $0xe48] sm:$0xff]  ;;  %v1966_v11 = vld [vmem:[#allocation13 + $0x780] sm:$0xff] }
 0x246   :  { %1695 = vmatpush2.msra.mxu1 %v956_v13  ;;  %2384 = vmatprep.subr.mxu0 %v1859_v14  ;;  %v1276_v21 = vpop.f32.mrf.mxu1  ;;  %v1961_v13 = vld [vmem:[#allocation13 + $0x758] sm:$0xff] }
 0x247   :  { %1696 = vmatprep.subr.mxu1 %v951_v16  ;;  %2385 = vmatpush2.msra.mxu0 %v1858_v49  ;;  %v1277_v40 = vadd.f32 %v1276_v21, %v1206_v28  ;;  %v2177_v14 = vld [vmem:[#allocation13 + $0xe18] sm:$0xff]  ;;  %v2176_v16 = vld [vmem:[#allocation13 + $0xe10] sm:$0xff]  ;;  %v1955_v49 = vld [vmem:[#allocation13 + $0x728] sm:$0xff] }
 0x248   :  { %1697 = vmatpush2.msra.mxu1 %v950_v63  ;;  %2386 = vmatprep.subr.mxu0 %v1853_v18  ;;  %v1278_v27 = vpop.f32.mrf.mxu1  ;;  %v1954_v63 = vld [vmem:[#allocation13 + $0x720] sm:$0xff]  ;;  %v1948_v21 = vld [vmem:[#allocation13 + $0x6f0] sm:$0xff]  ;;  %v2153_v28 = vld [vmem:[#allocation13 + $0xd58] sm:$0xff] }
 0x249   :  { %1698 = vmatprep.subr.mxu1 %v945_v4  ;;  %2387 = vmatpush2.msra.mxu0 %v1852_v19  ;;  %v1279_v34 = vadd.f32 %v1278_v27, %v1208_v23  ;;  %v1714_v53 = vmul.f32 %v4007_v36, %v1277_v40  ;;  %vm1707_vm8 = vcmp.gt.f32.partialorder %v1277_v40, 0.0  ;;  %v2170_v18 = vld [vmem:[#allocation13 + $0xde0] sm:$0xff]  ;;  %v1949_v4 = vld [vmem:[#allocation13 + $0x6f8] sm:$0xff]  ;;  %v1943_v23 = vld [vmem:[#allocation13 + $0x6c8] sm:$0xff] }
 0x24a   :  { %1699 = vmatpush2.msra.mxu1 %v944_v24  ;;  %2388 = vmatprep.subr.mxu0 %v1847_v25  ;;  %v2165_v19 = vld [vmem:[#allocation13 + $0xdb8] sm:$0xff]  ;;  %v2159_v24 = vld [vmem:[#allocation13 + $0xd88] sm:$0xff]  ;;  %v1942_v25 = vld [vmem:[#allocation13 + $0x6c0] sm:$0xff] }
 0x24b   :  { %1701 = vmatmul.mubr.f32.vlgmr.msra.gmra.mxu1 %v3985_v37  ;;  %2389 = vmatpush2.msra.mxu0 %v1846_v26  ;;  %v1715_v42 = vmul.f32 %v4007_v36, %v1279_v34  ;;  %vm1708_vm7 = vcmp.gt.f32.partialorder %v1279_v34, 0.0  ;;  %v1997_v37 = vld [vmem:[#allocation13 + $0x878] sm:$0xff]  ;;  %v4015_v60 = vsel %vm1707_vm8, %v1277_v40, %v1714_v53  ;;  %v2158_v26 = vld [vmem:[#allocation13 + $0xd80] sm:$0xff] }
 0x24c   :  { %2390 = vmatprep.subr.mxu0 %v1841_v33  ;;  %2405 = vmatprep.subr.mxu1 %v2009_v35  ;;  %v1937_v27 = vld [vmem:[#allocation13 + $0x698] sm:$0xff]  ;;  %v1936_v33 = vld [vmem:[#allocation13 + $0x690] sm:$0xff]  ;;  %v1931_v35 = vld [vmem:[#allocation13 + $0x668] sm:$0xff] }
 0x24d   :  { %2391 = vmatpush2.msra.mxu0 %v1840_v62  ;;  %v4011_v50 = vsel %vm1708_vm7, %v1279_v34, %v1715_v42  ;;  %2406 = vmatpush1.msra.mxu1 %v2008_v39  ;;  %v2152_v34 = vld [vmem:[#allocation13 + $0xd50] sm:$0xff]  ;;  %v2147_v62 = vld [vmem:[#allocation13 + $0xd28] sm:$0xff]  ;;  %v1930_v39 = vld [vmem:[#allocation13 + $0x660] sm:$0xff] }
 0x24e   :  { %2392 = vmatprep.subr.mxu0 %v1835_v44  ;;  %2398 = vmatprep.mubr.f32.mxu0 %v4011_v50  ;;  %v2146_v40 = vld [vmem:[#allocation13 + $0xd20] sm:$0xff]  ;;  %v1925_v42 = vld [vmem:[#allocation13 + $0x638] sm:$0xff] }
 0x24f   :  { %2393 = vmatpush2.msra.mxu0 %v1834_v46  ;;  %2407 = vmatprep.subr.mxu1 %v2003_v47  ;;  %v2141_v44 = vld [vmem:[#allocation13 + $0xcf8] sm:$0xff]  ;;  %v1924_v46 = vld [vmem:[#allocation13 + $0x630] sm:$0xff] }
 0x250   :  { %2394 = vmatprep.subr.mxu0 %v1829_v48  ;;  %2408 = vmatpush1.msra.mxu1 %v2002_v51  ;;  %v2140_v47 = vld [vmem:[#allocation13 + $0xcf0] sm:$0xff]  ;;  %v1919_v48 = vld [vmem:[#allocation13 + $0x608] sm:$0xff]  ;;  %v2105_v53 = vld [vmem:[#allocation13 + $0xbd8] sm:$0xff] }
 0x251   :  { %2395 = vmatpush2.msra.mxu0 %v1828_v52  ;;  %2409 = vmatprep.subr.mxu1 %v1997_v37  ;;  %v2135_v51 = vld [vmem:[#allocation13 + $0xcc8] sm:$0xff]  ;;  %v1918_v52 = vld [vmem:[#allocation13 + $0x600] sm:$0xff] }
 0x252   :  { %2396 = vmatprep.subr.mxu0 %v1823_v29  ;;  %2410 = vmatpush1.msra.mxu1 %v1996_v54  ;;  %v2134_v37 = vld [vmem:[#allocation13 + $0xcc0] sm:$0xff]  ;;  %v2129_v29 = vld [vmem:[#allocation13 + $0xc98] sm:$0xff]  ;;  %v2104_v54 = vld [vmem:[#allocation13 + $0xbd0] sm:$0xff] }
 0x253   :  { %2397 = vmatpush2.msra.mxu0 %v1822_v55  ;;  %2411 = vmatprep.subr.mxu1 %v1991_v56  ;;  %v2128_v55 = vld [vmem:[#allocation13 + $0xc90] sm:$0xff]  ;;  %v2099_v56 = vld [vmem:[#allocation13 + $0xba8] sm:$0xff] }
 0x254   :  { %2399 = vmatmul.mubr.f32.vlgmr.msra.gmra.mxu0 %v4015_v60  ;;  %2412 = vmatpush1.msra.mxu1 %v1990_v57  ;;  %v2123_v57 = vld [vmem:[#allocation13 + $0xc68] sm:$0xff] }
 0x255   :  { %2413 = vmatprep.subr.mxu1 %v1985_v58  ;;  %2476 = vmatprep.subr.mxu0 %v2201_v59  ;;  %v2098_v58 = vld [vmem:[#allocation13 + $0xba0] sm:$0xff] }
 0x256   :  { %2414 = vmatpush1.msra.mxu1 %v1984_v61  ;;  %2477 = vmatpush1.msra.mxu0 %v2200_v0  ;;  %v2122_v59 = vld [vmem:[#allocation13 + $0xc60] sm:$0xff]  ;;  %v2093_v61 = vld [vmem:[#allocation13 + $0xb78] sm:$0xff] }
 0x257   :  { %2415 = vmatprep.subr.mxu1 %v1979_v31  ;;  %2478 = vmatprep.subr.mxu0 %v2195_v45  ;;  %v2117_v0 = vld [vmem:[#allocation13 + $0xc38] sm:$0xff]  ;;  %v2092_v31 = vld [vmem:[#allocation13 + $0xb70] sm:$0xff] }
 0x258   :  { %2416 = vmatpush1.msra.mxu1 %v1978_v2  ;;  %2479 = vmatpush1.msra.mxu0 %v2194_v3  ;;  %v2116_v45 = vld [vmem:[#allocation13 + $0xc30] sm:$0xff]  ;;  %v2087_v2 = vld [vmem:[#allocation13 + $0xb48] sm:$0xff] }
 0x259   :  { %2417 = vmatprep.subr.mxu1 %v1973_v5  ;;  %2480 = vmatprep.subr.mxu0 %v2189_v6  ;;  %v2111_v3 = vld [vmem:[#allocation13 + $0xc08] sm:$0xff]  ;;  %v2086_v5 = vld [vmem:[#allocation13 + $0xb40] sm:$0xff] }
 0x25a   :  { %2418 = vmatpush1.msra.mxu1 %v1972_v7  ;;  %2481 = vmatpush1.msra.mxu0 %v2188_v8  ;;  %v2110_v6 = vld [vmem:[#allocation13 + $0xc00] sm:$0xff]  ;;  %v2081_v7 = vld [vmem:[#allocation13 + $0xb18] sm:$0xff] }
 0x25b   :  { %2419 = vmatprep.subr.mxu1 %v1967_v9  ;;  %2482 = vmatprep.subr.mxu0 %v2183_v10  ;;  %v2297_v8 = vld [vmem:[#allocation13 + $0x11d8] sm:$0xff]  ;;  %v2080_v9 = vld [vmem:[#allocation13 + $0xb10] sm:$0xff] }
 0x25c   :  { %2420 = vmatpush1.msra.mxu1 %v1966_v11  ;;  %2483 = vmatpush1.msra.mxu0 %v2182_v12  ;;  %v2296_v10 = vld [vmem:[#allocation13 + $0x11d0] sm:$0xff]  ;;  %v2075_v11 = vld [vmem:[#allocation13 + $0xae8] sm:$0xff] }
 0x25d   :  { %2421 = vmatprep.subr.mxu1 %v1961_v13  ;;  %2484 = vmatprep.subr.mxu0 %v2177_v14  ;;  %v2291_v12 = vld [vmem:[#allocation13 + $0x11a8] sm:$0xff]  ;;  %v2074_v13 = vld [vmem:[#allocation13 + $0xae0] sm:$0xff] }
 0x25e   :  { %2422 = vmatpush1.msra.mxu1 %v1960_v15  ;;  %2485 = vmatpush1.msra.mxu0 %v2176_v16  ;;  %v2290_v14 = vld [vmem:[#allocation13 + $0x11a0] sm:$0xff]  ;;  %v2069_v15 = vld [vmem:[#allocation13 + $0xab8] sm:$0xff] }
 0x25f   :  { %2423 = vmatprep.subr.mxu1 %v1955_v49  ;;  %2486 = vmatprep.subr.mxu0 %v2171_v17  ;;  %v2285_v16 = vld [vmem:[#allocation13 + $0x1178] sm:$0xff]  ;;  %v2068_v49 = vld [vmem:[#allocation13 + $0xab0] sm:$0xff] }
 0x260   :  { %2424 = vmatpush1.msra.mxu1 %v1954_v63  ;;  %2487 = vmatpush1.msra.mxu0 %v2170_v18  ;;  %v2284_v17 = vld [vmem:[#allocation13 + $0x1170] sm:$0xff]  ;;  %v2063_v63 = vld [vmem:[#allocation13 + $0xa88] sm:$0xff] }
 0x261   :  { %2425 = vmatprep.subr.mxu1 %v1949_v4  ;;  %2488 = vmatprep.subr.mxu0 %v2165_v19  ;;  %v2279_v18 = vld [vmem:[#allocation13 + $0x1148] sm:$0xff]  ;;  %v2062_v4 = vld [vmem:[#allocation13 + $0xa80] sm:$0xff] }
 0x262   :  { %2426 = vmatpush1.msra.mxu1 %v1948_v21  ;;  %2489 = vmatpush1.msra.mxu0 %v2164_v22  ;;  %v2278_v19 = vld [vmem:[#allocation13 + $0x1140] sm:$0xff]  ;;  %v2057_v21 = vld [vmem:[#allocation13 + $0xa58] sm:$0xff] }
 0x263   :  { %2427 = vmatprep.subr.mxu1 %v1943_v23  ;;  %2490 = vmatprep.subr.mxu0 %v2159_v24  ;;  %v2273_v22 = vld [vmem:[#allocation13 + $0x1118] sm:$0xff]  ;;  %v2056_v23 = vld [vmem:[#allocation13 + $0xa50] sm:$0xff] }
 0x264   :  { %2428 = vmatpush1.msra.mxu1 %v1942_v25  ;;  %2491 = vmatpush1.msra.mxu0 %v2158_v26  ;;  %v2272_v24 = vld [vmem:[#allocation13 + $0x1110] sm:$0xff]  ;;  %v2051_v25 = vld [vmem:[#allocation13 + $0xa28] sm:$0xff] }
 0x265   :  { %2429 = vmatprep.subr.mxu1 %v1937_v27  ;;  %2492 = vmatprep.subr.mxu0 %v2153_v28  ;;  %v2267_v26 = vld [vmem:[#allocation13 + $0x10e8] sm:$0xff]  ;;  %v2050_v27 = vld [vmem:[#allocation13 + $0xa20] sm:$0xff] }
 0x266   :  { %2430 = vmatpush1.msra.mxu1 %v1936_v33  ;;  %2493 = vmatpush1.msra.mxu0 %v2152_v34  ;;  %v2266_v28 = vld [vmem:[#allocation13 + $0x10e0] sm:$0xff]  ;;  %v2045_v33 = vld [vmem:[#allocation13 + $0x9f8] sm:$0xff] }
 0x267   :  { %2431 = vmatprep.subr.mxu1 %v1931_v35  ;;  %2494 = vmatprep.subr.mxu0 %v2147_v62  ;;  %v2261_v34 = vld [vmem:[#allocation13 + $0x10b8] sm:$0xff]  ;;  %v2044_v35 = vld [vmem:[#allocation13 + $0x9f0] sm:$0xff] }
 0x268   :  { %2432 = vmatpush1.msra.mxu1 %v1930_v39  ;;  %2495 = vmatpush1.msra.mxu0 %v2146_v40  ;;  %v2260_v62 = vld [vmem:[#allocation13 + $0x10b0] sm:$0xff]  ;;  %v2039_v39 = vld [vmem:[#allocation13 + $0x9c8] sm:$0xff] }
 0x269   :  { %2433 = vmatprep.subr.mxu1 %v1925_v42  ;;  %2496 = vmatprep.subr.mxu0 %v2141_v44  ;;  %v2255_v40 = vld [vmem:[#allocation13 + $0x1088] sm:$0xff]  ;;  %v2038_v42 = vld [vmem:[#allocation13 + $0x9c0] sm:$0xff] }
 0x26a   :  { %2434 = vmatpush1.msra.mxu1 %v1924_v46  ;;  %2497 = vmatpush1.msra.mxu0 %v2140_v47  ;;  %v2254_v44 = vld [vmem:[#allocation13 + $0x1080] sm:$0xff]  ;;  %v2033_v46 = vld [vmem:[#allocation13 + $0x998] sm:$0xff] }
 0x26b   :  { %2435 = vmatprep.subr.mxu1 %v1919_v48  ;;  %2498 = vmatprep.subr.mxu0 %v2135_v51  ;;  %v2249_v47 = vld [vmem:[#allocation13 + $0x1058] sm:$0xff]  ;;  %v2032_v48 = vld [vmem:[#allocation13 + $0x990] sm:$0xff] }
 0x26c   :  { %2436 = vmatpush1.msra.mxu1 %v1918_v52  ;;  %2499 = vmatpush1.msra.mxu0 %v2134_v37  ;;  %v2248_v51 = vld [vmem:[#allocation13 + $0x1050] sm:$0xff]  ;;  %v2027_v52 = vld [vmem:[#allocation13 + $0x968] sm:$0xff] }
 0x26d   :  { %2437 = vmatprep.subr.mxu1 %v2105_v53  ;;  %2500 = vmatprep.subr.mxu0 %v2129_v29  ;;  %v2243_v37 = vld [vmem:[#allocation13 + $0x1028] sm:$0xff]  ;;  %v2026_v53 = vld [vmem:[#allocation13 + $0x960] sm:$0xff] }
 0x26e   :  { %2438 = vmatpush2.msra.mxu1 %v2104_v54  ;;  %2501 = vmatpush1.msra.mxu0 %v2128_v55  ;;  %v2242_v29 = vld [vmem:[#allocation13 + $0x1020] sm:$0xff]  ;;  %v2021_v54 = vld [vmem:[#allocation13 + $0x938] sm:$0xff] }
 0x26f   :  { %2439 = vmatprep.subr.mxu1 %v2099_v56  ;;  %2502 = vmatprep.subr.mxu0 %v2123_v57  ;;  %v2237_v55 = vld [vmem:[#allocation13 + $0xff8] sm:$0xff]  ;;  %v2020_v56 = vld [vmem:[#allocation13 + $0x930] sm:$0xff] }
 0x270   :  { %2440 = vmatpush2.msra.mxu1 %v2098_v58  ;;  %2503 = vmatpush1.msra.mxu0 %v2122_v59  ;;  %v2236_v57 = vld [vmem:[#allocation13 + $0xff0] sm:$0xff]  ;;  %v2015_v58 = vld [vmem:[#allocation13 + $0x908] sm:$0xff] }
 0x271   :  { %2441 = vmatprep.subr.mxu1 %v2093_v61  ;;  %2504 = vmatprep.subr.mxu0 %v2117_v0  ;;  %v2231_v59 = vld [vmem:[#allocation13 + $0xfc8] sm:$0xff]  ;;  %v1347_v61 = vpop.f32.mrf.mxu0  ;;  %v2014_v0 = vld [vmem:[#allocation13 + $0x900] sm:$0xff] }
 0x272   :  { %2442 = vmatpush2.msra.mxu1 %v2092_v31  ;;  %2505 = vmatpush1.msra.mxu0 %v2116_v45  ;;  %v2230_v31 = vld [vmem:[#allocation13 + $0xfc0] sm:$0xff]  ;;  %v1049_v45 = vrot.slane %v3998_v1, %v3944_v38 }
 0x273   :  { %2443 = vmatprep.subr.mxu1 %v2087_v2  ;;  %2506 = vmatprep.subr.mxu0 %v2111_v3  ;;  %v1819_v2 = vld [vmem:[#allocation13 + $0x2e8] sm:$0xff]  ;;  %v2225_v3 = vld [vmem:[#allocation13 + $0xf98] sm:$0xff] }
 0x274   :  { %2444 = vmatpush2.msra.mxu1 %v2086_v5  ;;  %2507 = vmatpush1.msra.mxu0 %v2110_v6  ;;  %v2224_v6 = vld [vmem:[#allocation13 + $0xf90] sm:$0xff] }
 0x275   :  { %2445 = vmatprep.subr.mxu1 %v2081_v7  ;;  %2508 = vmatprep.subr.mxu0 %v2297_v8  ;;  %v1053_v7 = vrot.slane %v3998_v1, %v3947_v41  ;;  %v2219_v8 = vld [vmem:[#allocation13 + $0xf68] sm:$0xff]  ;;  %v2206_v1 = vld [vmem:[#allocation13 + $0xf00] sm:$0xff] }
 0x276   :  { %2446 = vmatpush2.msra.mxu1 %v2080_v9  ;;  %2509 = vmatpush2.msra.mxu0 %v2296_v10  ;;  %v1349_v9 = vpop.f32.mrf.mxu0  ;;  %v2218_v10 = vld [vmem:[#allocation13 + $0xf60] sm:$0xff] }
 0x277   :  { %2447 = vmatprep.subr.mxu1 %v2075_v11  ;;  %2510 = vmatprep.subr.mxu0 %v2291_v12  ;;  %v1348_v11 = vadd.f32 %v1347_v61, %v1049_v45  ;;  %v2213_v12 = vld [vmem:[#allocation13 + $0xf38] sm:$0xff]  ;;  %v1734_v45 = vld [vmem:[#allocation13 + $0x40] sm:$0xff] }
 0x278   :  { %2448 = vmatpush2.msra.mxu1 %v2074_v13  ;;  %2511 = vmatpush2.msra.mxu0 %v2290_v14  ;;  %v2212_v14 = vld [vmem:[#allocation13 + $0xf30] sm:$0xff]  ;;  %v1741_v61 = vld [vmem:[#allocation13 + $0x78] sm:$0xff] }
 0x279   :  { %2449 = vmatprep.subr.mxu1 %v2069_v15  ;;  %2512 = vmatprep.subr.mxu0 %v2285_v16  ;;  %v1350_v15 = vadd.f32 %v1349_v9, %v1053_v7  ;;  %v1909_v7 = vld [vmem:[#allocation13 + $0x5b8] sm:$0xff]  ;;  %v1903_v9 = vld [vmem:[#allocation13 + $0x588] sm:$0xff] }
 0x27a   :  { %2450 = vmatpush2.msra.mxu1 %v2068_v49  ;;  %2513 = vmatpush2.msra.mxu0 %v2284_v17  ;;  %v2207_v49 = vld [vmem:[#allocation13 + $0xf08] sm:$0xff] }
 0x27b   :  { %2451 = vmatprep.subr.mxu1 %v2063_v63  ;;  %2514 = vmatprep.subr.mxu0 %v2279_v18 }
 0x27c   :  { %2452 = vmatpush2.msra.mxu1 %v2062_v4  ;;  %2515 = vmatpush2.msra.mxu0 %v2278_v19  ;;  %v2011_v4 = vld [vmem:[#allocation13 + $0x8e8] sm:$0xff] }
 0x27d   :  { %2453 = vmatprep.subr.mxu1 %v2057_v21  ;;  %2516 = vmatprep.subr.mxu0 %v2273_v22 }
 0x27e   :  { %2454 = vmatpush2.msra.mxu1 %v2056_v23  ;;  %2517 = vmatpush2.msra.mxu0 %v2272_v24 }
 0x27f   :  { %2455 = vmatprep.subr.mxu1 %v2051_v25  ;;  %2518 = vmatprep.subr.mxu0 %v2267_v26  ;;  %v1818_v25 = vld [vmem:[#allocation13 + $0x2e0] sm:$0xff] }
 0x280   :  { %2456 = vmatpush2.msra.mxu1 %v2050_v27  ;;  %2519 = vmatpush2.msra.mxu0 %v2266_v28  ;;  %v1813_v27 = vld [vmem:[#allocation13 + $0x2b8] sm:$0xff]  ;;  %v1812_v28 = vld [vmem:[#allocation13 + $0x2b0] sm:$0xff] }
 0x281   :  { %2457 = vmatprep.subr.mxu1 %v2045_v33  ;;  %2520 = vmatprep.subr.mxu0 %v2261_v34  ;;  %v1807_v33 = vld [vmem:[#allocation13 + $0x288] sm:$0xff]  ;;  %v1806_v34 = vld [vmem:[#allocation13 + $0x280] sm:$0xff] }
 0x282   :  { %2458 = vmatpush2.msra.mxu1 %v2044_v35  ;;  %2521 = vmatpush2.msra.mxu0 %v2260_v62  ;;  %v1801_v35 = vld [vmem:[#allocation13 + $0x258] sm:$0xff]  ;;  %v1800_v62 = vld [vmem:[#allocation13 + $0x250] sm:$0xff] }
 0x283   :  { %2459 = vmatprep.subr.mxu1 %v2039_v39  ;;  %2522 = vmatprep.subr.mxu0 %v2255_v40  ;;  %v1795_v39 = vld [vmem:[#allocation13 + $0x228] sm:$0xff]  ;;  %v1794_v40 = vld [vmem:[#allocation13 + $0x220] sm:$0xff] }
 0x284   :  { %2460 = vmatpush2.msra.mxu1 %v2038_v42  ;;  %2523 = vmatpush2.msra.mxu0 %v2254_v44  ;;  %v1789_v42 = vld [vmem:[#allocation13 + $0x1f8] sm:$0xff]  ;;  %v1788_v44 = vld [vmem:[#allocation13 + $0x1f0] sm:$0xff] }
 0x285   :  { %2461 = vmatprep.subr.mxu1 %v2033_v46  ;;  %2524 = vmatprep.subr.mxu0 %v2249_v47  ;;  %v1783_v46 = vld [vmem:[#allocation13 + $0x1c8] sm:$0xff]  ;;  %v1782_v47 = vld [vmem:[#allocation13 + $0x1c0] sm:$0xff] }
 0x286   :  { %2462 = vmatpush2.msra.mxu1 %v2032_v48  ;;  %2525 = vmatpush2.msra.mxu0 %v2248_v51  ;;  %v1777_v48 = vld [vmem:[#allocation13 + $0x198] sm:$0xff]  ;;  %v1776_v51 = vld [vmem:[#allocation13 + $0x190] sm:$0xff] }
 0x287   :  { %2463 = vmatprep.subr.mxu1 %v2027_v52  ;;  %2526 = vmatprep.subr.mxu0 %v2243_v37  ;;  %v1771_v52 = vld [vmem:[#allocation13 + $0x168] sm:$0xff]  ;;  %v1770_v37 = vld [vmem:[#allocation13 + $0x160] sm:$0xff] }
 0x288   :  { %2464 = vmatpush2.msra.mxu1 %v2026_v53  ;;  %2527 = vmatpush2.msra.mxu0 %v2242_v29  ;;  %v1418_v5 = vpop.f32.mrf.mxu1  ;;  %v1765_v53 = vld [vmem:[#allocation13 + $0x138] sm:$0xff]  ;;  %v1764_v29 = vld [vmem:[#allocation13 + $0x130] sm:$0xff] }
 0x289   :  { %2465 = vmatprep.subr.mxu1 %v2021_v54  ;;  %2528 = vmatprep.subr.mxu0 %v2237_v55  ;;  %v1419_v16 = vadd.f32 %v1418_v5, %v1348_v11  ;;  %v1759_v54 = vld [vmem:[#allocation13 + $0x108] sm:$0xff]  ;;  %v1758_v55 = vld [vmem:[#allocation13 + $0x100] sm:$0xff]  ;;  %v1897_v11 = vld [vmem:[#allocation13 + $0x558] sm:$0xff] }
 0x28a   :  { %2466 = vmatpush2.msra.mxu1 %v2020_v56  ;;  %2529 = vmatpush2.msra.mxu0 %v2236_v57  ;;  %v1420_v13 = vpop.f32.mrf.mxu1  ;;  %v1753_v56 = vld [vmem:[#allocation13 + $0xd8] sm:$0xff]  ;;  %v1752_v57 = vld [vmem:[#allocation13 + $0xd0] sm:$0xff]  ;;  %v1915_v5 = vld [vmem:[#allocation13 + $0x5e8] sm:$0xff] }
 0x28b   :  { %2467 = vmatprep.subr.mxu1 %v2015_v58  ;;  %2530 = vmatprep.subr.mxu0 %v2231_v59  ;;  %v1421_v63 = vadd.f32 %v1420_v13, %v1350_v15  ;;  %v1747_v58 = vld [vmem:[#allocation13 + $0xa8] sm:$0xff]  ;;  %v1746_v59 = vld [vmem:[#allocation13 + $0xa0] sm:$0xff]  ;;  %v1885_v15 = vld [vmem:[#allocation13 + $0x4f8] sm:$0xff] }
 0x28c   :  { %2468 = vmatpush2.msra.mxu1 %v2014_v0  ;;  %2531 = vmatpush2.msra.mxu0 %v2230_v31  ;;  %v1740_v0 = vld [vmem:[#allocation13 + $0x70] sm:$0xff]  ;;  %v1735_v31 = vld [vmem:[#allocation13 + $0x48] sm:$0xff] }
 0x28d   :  { %2547 = vmatprep.subr.mxu1 %v1819_v2  ;;  %2532 = vmatprep.subr.mxu0 %v2225_v3  ;;  %v1729_v2 = vld [vmem:[#allocation13 + $0x18] sm:$0xff]  ;;  %v1728_v3 = vld [vmem:[#allocation13 + $0x10] sm:$0xff]  ;;  %v1891_v13 = vld [vmem:[#allocation13 + $0x528] sm:$0xff] }
 0x28e   :  { %2533 = vmatpush2.msra.mxu0 %v2224_v6  ;;  %v1914_v6 = vld [vmem:[#allocation13 + $0x5e0] sm:$0xff] }
 0x28f   :  { %2534 = vmatprep.subr.mxu0 %v2219_v8  ;;  %v1908_v8 = vld [vmem:[#allocation13 + $0x5b0] sm:$0xff] }
 0x290   :  { %2535 = vmatpush2.msra.mxu0 %v2218_v10  ;;  %v1902_v10 = vld [vmem:[#allocation13 + $0x580] sm:$0xff] }
 0x291   :  { %v1489_v17 = vpop.f32.mrf.mxu0  ;;  %2536 = vmatprep.subr.mxu0 %v2213_v12  ;;  %v1896_v12 = vld [vmem:[#allocation13 + $0x550] sm:$0xff] }
 0x292   :  { %v1490_v18 = vadd.f32 %v1489_v17, %v1419_v16  ;;  %2537 = vmatpush2.msra.mxu0 %v2212_v14  ;;  %v1890_v14 = vld [vmem:[#allocation13 + $0x520] sm:$0xff]  ;;  %v1884_v16 = vld [vmem:[#allocation13 + $0x4f0] sm:$0xff] }
 0x293   :  { %v1491_v19 = vpop.f32.mrf.mxu0  ;;  %2538 = vmatprep.subr.mxu0 %v2207_v49  ;;  %v1879_v49 = vld [vmem:[#allocation13 + $0x4c8] sm:$0xff]  ;;  %v1878_v17 = vld [vmem:[#allocation13 + $0x4c0] sm:$0xff] }
 0x294   :  { %v1492_v21 = vadd.f32 %v1491_v19, %v1421_v63  ;;  %2539 = vmatpush2.msra.mxu0 %v2206_v1  ;;  %v1716_v22 = vmul.f32 %v4007_v36, %v1490_v18  ;;  %vm1709_vm9 = vcmp.gt.f32.partialorder %v1490_v18, 0.0  ;;  %v1873_v1 = vld [vmem:[#allocation13 + $0x498] sm:$0xff]  ;;  %v1872_v63 = vld [vmem:[#allocation13 + $0x490] sm:$0xff] }
 0x295   :  { %2618 = vmatprep.subr.mxu0 %v2011_v4  ;;  %v1866_v4 = vld [vmem:[#allocation13 + $0x460] sm:$0xff]  ;;  %v1861_v19 = vld [vmem:[#allocation13 + $0x438] sm:$0xff] }
 0x296   :  { %v1717_v23 = vmul.f32 %v4007_v36, %v1492_v21  ;;  %vm1710_vm10 = vcmp.gt.f32.partialorder %v1492_v21, 0.0  ;;  %v4027_v26 = vsel %vm1709_vm9, %v1490_v18, %v1716_v22  ;;  %v1867_v18 = vld [vmem:[#allocation13 + $0x468] sm:$0xff] }
 0x297   :  { %v1855_v22 = vld [vmem:[#allocation13 + $0x408] sm:$0xff] }
 0x298   :  { %v4024_v24 = vsel %vm1710_vm10, %v1492_v21, %v1717_v23  ;;  %v1860_v21 = vld [vmem:[#allocation13 + $0x430] sm:$0xff]  ;;  %v1854_v23 = vld [vmem:[#allocation13 + $0x400] sm:$0xff] }
 0x299   :  { %2469 = vmatprep.mubr.f32.mxu1 %v4024_v24 }
 0x29a   :  { %2470 = vmatmul.mubr.f32.vlgmr.msra.gmra.mxu1 %v4027_v26 }
 0x29b   :  { %2548 = vmatpush1.msra.mxu1 %v1818_v25  ;;  %2611 = vmatprep.mubr.f32.mxu1 %v4011_v50  ;;  %v1849_v25 = vld [vmem:[#allocation13 + $0x3d8] sm:$0xff] }
 0x29c   :  { %2549 = vmatprep.subr.mxu1 %v1813_v27  ;;  %v1848_v27 = vld [vmem:[#allocation13 + $0x3d0] sm:$0xff] }
 0x29d   :  { %2550 = vmatpush1.msra.mxu1 %v1812_v28  ;;  %v1843_v28 = vld [vmem:[#allocation13 + $0x3a8] sm:$0xff] }
 0x29e   :  { %2551 = vmatprep.subr.mxu1 %v1807_v33  ;;  %v1842_v33 = vld [vmem:[#allocation13 + $0x3a0] sm:$0xff] }
 0x29f   :  { %2552 = vmatpush1.msra.mxu1 %v1806_v34  ;;  %v1837_v34 = vld [vmem:[#allocation13 + $0x378] sm:$0xff] }
 0x2a0   :  { %2553 = vmatprep.subr.mxu1 %v1801_v35  ;;  %v1836_v35 = vld [vmem:[#allocation13 + $0x370] sm:$0xff] }
 0x2a1   :  { %2554 = vmatpush1.msra.mxu1 %v1800_v62  ;;  %v1831_v62 = vld [vmem:[#allocation13 + $0x348] sm:$0xff] }
 0x2a2   :  { %2555 = vmatprep.subr.mxu1 %v1795_v39  ;;  %v1830_v39 = vld [vmem:[#allocation13 + $0x340] sm:$0xff] }
 0x2a3   :  { %2556 = vmatpush1.msra.mxu1 %v1794_v40  ;;  %v1825_v40 = vld [vmem:[#allocation13 + $0x318] sm:$0xff] }
 0x2a4   :  { %2557 = vmatprep.subr.mxu1 %v1789_v42  ;;  %v1824_v42 = vld [vmem:[#allocation13 + $0x310] sm:$0xff] }
 0x2a5   :  { %2558 = vmatpush1.msra.mxu1 %v1788_v44  ;;  %v2203_v44 = vld [vmem:[#allocation13 + $0xee8] sm:$0xff] }
 0x2a6   :  { %2559 = vmatprep.subr.mxu1 %v1783_v46  ;;  %v2202_v46 = vld [vmem:[#allocation13 + $0xee0] sm:$0xff] }
 0x2a7   :  { %2560 = vmatpush1.msra.mxu1 %v1782_v47  ;;  %v2197_v47 = vld [vmem:[#allocation13 + $0xeb8] sm:$0xff] }
 0x2a8   :  { %2561 = vmatprep.subr.mxu1 %v1777_v48  ;;  %v2196_v48 = vld [vmem:[#allocation13 + $0xeb0] sm:$0xff] }
 0x2a9   :  { %2562 = vmatpush1.msra.mxu1 %v1776_v51  ;;  %v2191_v51 = vld [vmem:[#allocation13 + $0xe88] sm:$0xff] }
 0x2aa   :  { %2563 = vmatprep.subr.mxu1 %v1771_v52  ;;  %v2190_v52 = vld [vmem:[#allocation13 + $0xe80] sm:$0xff] }
 0x2ab   :  { %2564 = vmatpush1.msra.mxu1 %v1770_v37  ;;  %v2185_v37 = vld [vmem:[#allocation13 + $0xe58] sm:$0xff] }
 0x2ac   :  { %2565 = vmatprep.subr.mxu1 %v1765_v53  ;;  %v2184_v53 = vld [vmem:[#allocation13 + $0xe50] sm:$0xff] }
 0x2ad   :  { %2566 = vmatpush1.msra.mxu1 %v1764_v29  ;;  %v2179_v29 = vld [vmem:[#allocation13 + $0xe28] sm:$0xff] }
 0x2ae   :  { %2567 = vmatprep.subr.mxu1 %v1759_v54  ;;  %v2178_v54 = vld [vmem:[#allocation13 + $0xe20] sm:$0xff] }
 0x2af   :  { %2568 = vmatpush1.msra.mxu1 %v1758_v55  ;;  %v2173_v55 = vld [vmem:[#allocation13 + $0xdf8] sm:$0xff] }
 0x2b0   :  { %2569 = vmatprep.subr.mxu1 %v1753_v56  ;;  %v2172_v56 = vld [vmem:[#allocation13 + $0xdf0] sm:$0xff] }
 0x2b1   :  { %2570 = vmatpush1.msra.mxu1 %v1752_v57  ;;  %v2167_v57 = vld [vmem:[#allocation13 + $0xdc8] sm:$0xff] }
 0x2b2   :  { %2571 = vmatprep.subr.mxu1 %v1747_v58  ;;  %v2166_v58 = vld [vmem:[#allocation13 + $0xdc0] sm:$0xff] }
 0x2b3   :  { %2572 = vmatpush1.msra.mxu1 %v1746_v59  ;;  %v2161_v59 = vld [vmem:[#allocation13 + $0xd98] sm:$0xff] }
 0x2b4   :  { %2573 = vmatprep.subr.mxu1 %v1741_v61  ;;  %v2160_v61 = vld [vmem:[#allocation13 + $0xd90] sm:$0xff] }
 0x2b5   :  { %2574 = vmatpush1.msra.mxu1 %v1740_v0  ;;  %v2155_v0 = vld [vmem:[#allocation13 + $0xd68] sm:$0xff] }
 0x2b6   :  { %2575 = vmatprep.subr.mxu1 %v1735_v31  ;;  %v2154_v31 = vld [vmem:[#allocation13 + $0xd60] sm:$0xff] }
 0x2b7   :  { %2576 = vmatpush1.msra.mxu1 %v1734_v45  ;;  %v2149_v45 = vld [vmem:[#allocation13 + $0xd38] sm:$0xff] }
 0x2b8   :  { %2577 = vmatprep.subr.mxu1 %v1729_v2  ;;  %v2148_v2 = vld [vmem:[#allocation13 + $0xd30] sm:$0xff] }
 0x2b9   :  { %2578 = vmatpush1.msra.mxu1 %v1728_v3  ;;  %v2143_v3 = vld [vmem:[#allocation13 + $0xd08] sm:$0xff] }
 0x2ba   :  { %2579 = vmatprep.subr.mxu1 %v1915_v5  ;;  %v2142_v5 = vld [vmem:[#allocation13 + $0xd00] sm:$0xff] }
 0x2bb   :  { %2580 = vmatpush2.msra.mxu1 %v1914_v6  ;;  %v2137_v6 = vld [vmem:[#allocation13 + $0xcd8] sm:$0xff] }
 0x2bc   :  { %2581 = vmatprep.subr.mxu1 %v1909_v7  ;;  %v2136_v7 = vld [vmem:[#allocation13 + $0xcd0] sm:$0xff] }
 0x2bd   :  { %2582 = vmatpush2.msra.mxu1 %v1908_v8  ;;  %v2131_v8 = vld [vmem:[#allocation13 + $0xca8] sm:$0xff] }
 0x2be   :  { %2583 = vmatprep.subr.mxu1 %v1903_v9  ;;  %v2130_v9 = vld [vmem:[#allocation13 + $0xca0] sm:$0xff] }
 0x2bf   :  { %2584 = vmatpush2.msra.mxu1 %v1902_v10  ;;  %v2125_v10 = vld [vmem:[#allocation13 + $0xc78] sm:$0xff] }
 0x2c0   :  { %2585 = vmatprep.subr.mxu1 %v1897_v11  ;;  %v2124_v11 = vld [vmem:[#allocation13 + $0xc70] sm:$0xff] }
 0x2c1   :  { %2586 = vmatpush2.msra.mxu1 %v1896_v12  ;;  %v2119_v12 = vld [vmem:[#allocation13 + $0xc48] sm:$0xff] }
 0x2c2   :  { %2587 = vmatprep.subr.mxu1 %v1891_v13  ;;  %v2118_v13 = vld [vmem:[#allocation13 + $0xc40] sm:$0xff] }
 0x2c3   :  { %2588 = vmatpush2.msra.mxu1 %v1890_v14  ;;  %v2113_v14 = vld [vmem:[#allocation13 + $0xc18] sm:$0xff] }
 0x2c4   :  { %2589 = vmatprep.subr.mxu1 %v1885_v15  ;;  %v2112_v15 = vld [vmem:[#allocation13 + $0xc10] sm:$0xff] }
 0x2c5   :  { %2590 = vmatpush2.msra.mxu1 %v1884_v16  ;;  %v2299_v16 = vld [vmem:[#allocation13 + $0x11e8] sm:$0xff] }
 0x2c6   :  { %2591 = vmatprep.subr.mxu1 %v1879_v49  ;;  %v2298_v49 = vld [vmem:[#allocation13 + $0x11e0] sm:$0xff] }
 0x2c7   :  { %2592 = vmatpush2.msra.mxu1 %v1878_v17  ;;  %v2293_v17 = vld [vmem:[#allocation13 + $0x11b8] sm:$0xff] }
 0x2c8   :  { %2593 = vmatprep.subr.mxu1 %v1873_v1  ;;  %v2292_v1 = vld [vmem:[#allocation13 + $0x11b0] sm:$0xff] }
 0x2c9   :  { %2594 = vmatpush2.msra.mxu1 %v1872_v63  ;;  %v2287_v63 = vld [vmem:[#allocation13 + $0x1188] sm:$0xff] }
 0x2ca   :  { %2595 = vmatprep.subr.mxu1 %v1867_v18  ;;  %v2286_v18 = vld [vmem:[#allocation13 + $0x1180] sm:$0xff] }
 0x2cb   :  { %2596 = vmatpush2.msra.mxu1 %v1866_v4  ;;  %v2281_v4 = vld [vmem:[#allocation13 + $0x1158] sm:$0xff] }
 0x2cc   :  { %2597 = vmatprep.subr.mxu1 %v1861_v19  ;;  %v2280_v19 = vld [vmem:[#allocation13 + $0x1150] sm:$0xff] }
 0x2cd   :  { %2598 = vmatpush2.msra.mxu1 %v1860_v21  ;;  %v2275_v21 = vld [vmem:[#allocation13 + $0x1128] sm:$0xff] }
 0x2ce   :  { %2599 = vmatprep.subr.mxu1 %v1855_v22  ;;  %v2274_v22 = vld [vmem:[#allocation13 + $0x1120] sm:$0xff] }
 0x2cf   :  { %2600 = vmatpush2.msra.mxu1 %v1854_v23  ;;  %v2269_v23 = vld [vmem:[#allocation13 + $0x10f8] sm:$0xff] }
 0x2d0   :  { %2601 = vmatprep.subr.mxu1 %v1849_v25  ;;  %v2268_v25 = vld [vmem:[#allocation13 + $0x10f0] sm:$0xff] }
 0x2d1   :  { %2602 = vmatpush2.msra.mxu1 %v1848_v27  ;;  %v1560_v27 = vpop.f32.mrf.mxu1 }
 0x2d2   :  { %2603 = vmatprep.subr.mxu1 %v1843_v28  ;;  %v2263_v28 = vld [vmem:[#allocation13 + $0x10c8] sm:$0xff] }
 0x2d3   :  { %2604 = vmatpush2.msra.mxu1 %v1842_v33  ;;  %v3584_v33 = vld [vmem:[#allocation12] sm:$0x3f] }
 0x2d4   :  { %2605 = vmatprep.subr.mxu1 %v1837_v34  ;;  %v1057_v34 = vrot.slane %v3584_v33, %v3976_v43 }
 0x2d5   :  { %2606 = vmatpush2.msra.mxu1 %v1836_v35  ;;  %v2262_v35 = vld [vmem:[#allocation13 + $0x10c0] sm:$0xff] }
 0x2d6   :  { %2607 = vmatprep.subr.mxu1 %v1831_v62  ;;  %v1631_v62 = vpop.f32.mrf.mxu0 }
 0x2d7   :  { %2608 = vmatpush2.msra.mxu1 %v1830_v39  ;;  %v2257_v39 = vld [vmem:[#allocation13 + $0x1098] sm:$0xff] }
 0x2d8   :  { %2609 = vmatprep.subr.mxu1 %v1825_v40  ;;  %v1061_v40 = vrot.slane %v3584_v33, %v3971_v20  ;;  %v1974_v33 = vld [vmem:[#allocation13 + $0x7c0] sm:$0xff] }
 0x2d9   :  { %2610 = vmatpush2.msra.mxu1 %v1824_v42  ;;  %v2256_v42 = vld [vmem:[#allocation13 + $0x1090] sm:$0xff] }
 0x2da   :  { %2612 = vmatmul.mubr.f32.vlgmr.msra.gmra.mxu1 %v4015_v60  ;;  %2689 = vmatprep.subr.mxu1 %v2203_v44  ;;  %v1562_v44 = vpop.f32.mrf.mxu1 }
 0x2db   :  { %2690 = vmatpush1.msra.mxu1 %v2202_v46  ;;  %v2251_v46 = vld [vmem:[#allocation13 + $0x1068] sm:$0xff] }
 0x2dc   :  { %2691 = vmatprep.subr.mxu1 %v2197_v47  ;;  %v1561_v47 = vadd.f32 %v1560_v27, %v1057_v34  ;;  %v1975_v27 = vld [vmem:[#allocation13 + $0x7c8] sm:$0xff]  ;;  %v2000_v34 = vld [vmem:[#allocation13 + $0x890] sm:$0xff] }
 0x2dd   :  { %2692 = vmatpush1.msra.mxu1 %v2196_v48  ;;  %v2250_v48 = vld [vmem:[#allocation13 + $0x1060] sm:$0xff] }
 0x2de   :  { %2693 = vmatprep.subr.mxu1 %v2191_v51  ;;  %v1633_v51 = vpop.f32.mrf.mxu0 }
 0x2df   :  { %2694 = vmatpush1.msra.mxu1 %v2190_v52  ;;  %v2245_v52 = vld [vmem:[#allocation13 + $0x1038] sm:$0xff] }
 0x2e0   :  { %2695 = vmatprep.subr.mxu1 %v2185_v37  ;;  %v1563_v37 = vadd.f32 %v1562_v44, %v1061_v40  ;;  %v1994_v40 = vld [vmem:[#allocation13 + $0x860] sm:$0xff]  ;;  %v1989_v44 = vld [vmem:[#allocation13 + $0x838] sm:$0xff] }
 0x2e1   :  { %2696 = vmatpush1.msra.mxu1 %v2184_v53  ;;  %v1632_v53 = vadd.f32 %v1631_v62, %v1561_v47  ;;  %v1995_v62 = vld [vmem:[#allocation13 + $0x868] sm:$0xff]  ;;  %v1957_v47 = vld [vmem:[#allocation13 + $0x738] sm:$0xff] }
 0x2e2   :  { %2697 = vmatprep.subr.mxu1 %v2179_v29  ;;  %v2244_v29 = vld [vmem:[#allocation13 + $0x1030] sm:$0xff] }
 0x2e3   :  { %2698 = vmatpush1.msra.mxu1 %v2178_v54 }
 0x2e4   :  { %2699 = vmatprep.subr.mxu1 %v2173_v55  ;;  %v2239_v55 = vld [vmem:[#allocation13 + $0x1008] sm:$0xff] }
 0x2e5   :  { %2700 = vmatpush1.msra.mxu1 %v2172_v56  ;;  %v1634_v56 = vadd.f32 %v1633_v51, %v1563_v37  ;;  %v1956_v51 = vld [vmem:[#allocation13 + $0x730] sm:$0xff]  ;;  %v1951_v37 = vld [vmem:[#allocation13 + $0x708] sm:$0xff] }
 0x2e6   :  { %2701 = vmatprep.subr.mxu1 %v2167_v57 }
 0x2e7   :  { %2702 = vmatpush1.msra.mxu1 %v2166_v58  ;;  %v2238_v58 = vld [vmem:[#allocation13 + $0x1000] sm:$0xff] }
 0x2e8   :  { %2703 = vmatprep.subr.mxu1 %v2161_v59 }
 0x2e9   :  { %2704 = vmatpush1.msra.mxu1 %v2160_v61  ;;  %v2233_v61 = vld [vmem:[#allocation13 + $0xfd8] sm:$0xff] }
 0x2ea   :  { %2705 = vmatprep.subr.mxu1 %v2155_v0 }
 0x2eb   :  { %2706 = vmatpush1.msra.mxu1 %v2154_v31  ;;  %v2232_v31 = vld [vmem:[#allocation13 + $0xfd0] sm:$0xff] }
 0x2ec   :  { %2707 = vmatprep.subr.mxu1 %v2149_v45 }
 0x2ed   :  { %2708 = vmatpush1.msra.mxu1 %v2148_v2  ;;  %v2227_v2 = vld [vmem:[#allocation13 + $0xfa8] sm:$0xff] }
 0x2ee   :  { %2709 = vmatprep.subr.mxu1 %v2143_v3 }
 0x2ef   :  { %2710 = vmatpush1.msra.mxu1 %v2142_v5  ;;  %v2226_v5 = vld [vmem:[#allocation13 + $0xfa0] sm:$0xff] }
 0x2f0   :  { %2711 = vmatprep.subr.mxu1 %v2137_v6 }
 0x2f1   :  { %2712 = vmatpush1.msra.mxu1 %v2136_v7  ;;  %v2010_v7 = vld [vmem:[#allocation13 + $0x8e0] sm:$0xff] }
 0x2f2   :  { %2713 = vmatprep.subr.mxu1 %v2131_v8 }
 0x2f3   :  { %2714 = vmatpush1.msra.mxu1 %v2130_v9  ;;  %v2005_v9 = vld [vmem:[#allocation13 + $0x8b8] sm:$0xff] }
 0x2f4   :  { %2715 = vmatprep.subr.mxu1 %v2125_v10  ;;  %v2221_v10 = vld [vmem:[#allocation13 + $0xf78] sm:$0xff] }
 0x2f5   :  { %2716 = vmatpush1.msra.mxu1 %v2124_v11  ;;  %v2220_v11 = vld [vmem:[#allocation13 + $0xf70] sm:$0xff] }
 0x2f6   :  { %2717 = vmatprep.subr.mxu1 %v2119_v12  ;;  %v1999_v12 = vld [vmem:[#allocation13 + $0x888] sm:$0xff] }
 0x2f7   :  { %2718 = vmatpush1.msra.mxu1 %v2118_v13  ;;  %v2215_v13 = vld [vmem:[#allocation13 + $0xf48] sm:$0xff] }
 0x2f8   :  { %2719 = vmatprep.subr.mxu1 %v2113_v14  ;;  %v1998_v14 = vld [vmem:[#allocation13 + $0x880] sm:$0xff] }
 0x2f9   :  { %2720 = vmatpush1.msra.mxu1 %v2112_v15  ;;  %v2214_v15 = vld [vmem:[#allocation13 + $0xf40] sm:$0xff] }
 0x2fa   :  { %2721 = vmatprep.subr.mxu1 %v2299_v16  ;;  %v1993_v16 = vld [vmem:[#allocation13 + $0x858] sm:$0xff] }
 0x2fb   :  { %2722 = vmatpush2.msra.mxu1 %v2298_v49  ;;  %v2209_v49 = vld [vmem:[#allocation13 + $0xf18] sm:$0xff] }
 0x2fc   :  { %2723 = vmatprep.subr.mxu1 %v2293_v17  ;;  %v1992_v17 = vld [vmem:[#allocation13 + $0x850] sm:$0xff] }
 0x2fd   :  { %2724 = vmatpush2.msra.mxu1 %v2292_v1  ;;  %v2208_v1 = vld [vmem:[#allocation13 + $0xf10] sm:$0xff] }
 0x2fe   :  { %2725 = vmatprep.subr.mxu1 %v2287_v63  ;;  %v1987_v63 = vld [vmem:[#allocation13 + $0x828] sm:$0xff] }
 0x2ff   :  { %2726 = vmatpush2.msra.mxu1 %v2286_v18  ;;  %v2013_v18 = vld [vmem:[#allocation13 + $0x8f8] sm:$0xff] }
 0x300   :  { %2727 = vmatprep.subr.mxu1 %v2281_v4  ;;  %v1986_v4 = vld [vmem:[#allocation13 + $0x820] sm:$0xff] }
 0x301   :  { %2728 = vmatpush2.msra.mxu1 %v2280_v19  ;;  %v2012_v19 = vld [vmem:[#allocation13 + $0x8f0] sm:$0xff] }
 0x302   :  { %2729 = vmatprep.subr.mxu1 %v2275_v21  ;;  %v1981_v21 = vld [vmem:[#allocation13 + $0x7f8] sm:$0xff] }
 0x303   :  { %2730 = vmatpush2.msra.mxu1 %v2274_v22  ;;  %v2007_v22 = vld [vmem:[#allocation13 + $0x8c8] sm:$0xff] }
 0x304   :  { %2731 = vmatprep.subr.mxu1 %v2269_v23  ;;  %v1980_v23 = vld [vmem:[#allocation13 + $0x7f0] sm:$0xff] }
 0x305   :  { %2732 = vmatpush2.msra.mxu1 %v2268_v25  ;;  %v2006_v25 = vld [vmem:[#allocation13 + $0x8c0] sm:$0xff] }
 0x306   :  { %2733 = vmatprep.subr.mxu1 %v2263_v28  ;;  %v2001_v28 = vld [vmem:[#allocation13 + $0x898] sm:$0xff] }
 0x307   :  { %2734 = vmatpush2.msra.mxu1 %v2262_v35  ;;  %v1969_v35 = vld [vmem:[#allocation13 + $0x798] sm:$0xff] }
 0x308   :  { %2735 = vmatprep.subr.mxu1 %v2257_v39  ;;  %v1968_v39 = vld [vmem:[#allocation13 + $0x790] sm:$0xff] }
 0x309   :  { %2736 = vmatpush2.msra.mxu1 %v2256_v42  ;;  %v1963_v42 = vld [vmem:[#allocation13 + $0x768] sm:$0xff] }
 0x30a   :  { %2737 = vmatprep.subr.mxu1 %v2251_v46  ;;  %v1988_v46 = vld [vmem:[#allocation13 + $0x830] sm:$0xff] }
 0x30b   :  { %v1702_v54 = vpop.f32.mrf.mxu1  ;;  %2738 = vmatpush2.msra.mxu1 %v2250_v48  ;;  %v1983_v48 = vld [vmem:[#allocation13 + $0x808] sm:$0xff] }
 0x30c   :  { %v1703_v57 = vadd.f32 %v1702_v54, %v1632_v53  ;;  %2739 = vmatprep.subr.mxu1 %v2245_v52  ;;  %v1982_v52 = vld [vmem:[#allocation13 + $0x800] sm:$0xff]  ;;  %v1977_v53 = vld [vmem:[#allocation13 + $0x7d8] sm:$0xff]  ;;  %v1976_v54 = vld [vmem:[#allocation13 + $0x7d0] sm:$0xff] }
 0x30d   :  { %v1704_v59 = vpop.f32.mrf.mxu1  ;;  %2740 = vmatpush2.msra.mxu1 %v2244_v29  ;;  %v1950_v29 = vld [vmem:[#allocation13 + $0x700] sm:$0xff] }
 0x30e   :  { %v1705_v0 = vadd.f32 %v1704_v59, %v1634_v56  ;;  %2741 = vmatprep.subr.mxu1 %v2239_v55  ;;  %v1718_v45 = vmul.f32 %v4007_v36, %v1703_v57  ;;  %vm1711_vm11 = vcmp.gt.f32.partialorder %v1703_v57, 0.0  ;;  %v1945_v55 = vld [vmem:[#allocation13 + $0x6d8] sm:$0xff]  ;;  %v1971_v56 = vld [vmem:[#allocation13 + $0x7a8] sm:$0xff] }
 0x30f   :  { %2742 = vmatpush2.msra.mxu1 %v2238_v58  ;;  %v1970_v58 = vld [vmem:[#allocation13 + $0x7a0] sm:$0xff]  ;;  %v1939_v59 = vld [vmem:[#allocation13 + $0x6a8] sm:$0xff] }
 0x310   :  { %v1719_v3 = vmul.f32 %v4007_v36, %v1705_v0  ;;  %2743 = vmatprep.subr.mxu1 %v2233_v61  ;;  %vm1712_vm12 = vcmp.gt.f32.partialorder %v1705_v0, 0.0  ;;  %v4040_v8 = vsel %vm1711_vm11, %v1703_v57, %v1718_v45  ;;  %v2004_v36 = vld [vmem:[#allocation13 + $0x8b0] sm:$0xff]  ;;  %v1965_v61 = vld [vmem:[#allocation13 + $0x778] sm:$0xff] }
 0x311   :  { %2744 = vmatpush2.msra.mxu1 %v2232_v31  ;;  %v1944_v57 = vld [vmem:[#allocation13 + $0x6d0] sm:$0xff]  ;;  %v1933_v45 = vld [vmem:[#allocation13 + $0x678] sm:$0xff] }
 0x312   :  { %v4036_v6 = vsel %vm1712_vm12, %v1705_v0, %v1719_v3  ;;  %2745 = vmatprep.subr.mxu1 %v2227_v2  ;;  %v1938_v0 = vld [vmem:[#allocation13 + $0x6a0] sm:$0xff]  ;;  %v1964_v31 = vld [vmem:[#allocation13 + $0x770] sm:$0xff]  ;;  %v1959_v2 = vld [vmem:[#allocation13 + $0x748] sm:$0xff] }
 0x313   :  { %2540 = vmatprep.mubr.f32.mxu0 %v4036_v6  ;;  %2753 = vmatprep.mubr.f32.mxu1 %v4036_v6  ;;  %v1932_v3 = vld [vmem:[#allocation13 + $0x670] sm:$0xff] }
 0x314   :  { %2541 = vmatmul.mubr.f32.vlgmr.msra.gmra.mxu0 %v4040_v8  ;;  %2746 = vmatpush2.msra.mxu1 %v2226_v5  ;;  %v1958_v5 = vld [vmem:[#allocation13 + $0x740] sm:$0xff] }
 0x315   :  { %2619 = vmatpush1.msra.mxu0 %v2010_v7  ;;  %2682 = vmatprep.mubr.f32.mxu0 %v4024_v24  ;;  %v1927_v7 = vld [vmem:[#allocation13 + $0x648] sm:$0xff] }
 0x316   :  { %2620 = vmatprep.subr.mxu0 %v2005_v9  ;;  %2747 = vmatprep.subr.mxu1 %v2221_v10  ;;  %v1953_v9 = vld [vmem:[#allocation13 + $0x718] sm:$0xff]  ;;  %v1926_v10 = vld [vmem:[#allocation13 + $0x640] sm:$0xff] }
 0x317   :  { %2621 = vmatpush1.msra.mxu0 %v2004_v36  ;;  %2748 = vmatpush2.msra.mxu1 %v2220_v11  ;;  %v1952_v36 = vld [vmem:[#allocation13 + $0x710] sm:$0xff]  ;;  %v1921_v11 = vld [vmem:[#allocation13 + $0x618] sm:$0xff] }
 0x318   :  { %2622 = vmatprep.subr.mxu0 %v1999_v12  ;;  %2749 = vmatprep.subr.mxu1 %v2215_v13  ;;  %v1947_v12 = vld [vmem:[#allocation13 + $0x6e8] sm:$0xff]  ;;  %v1920_v13 = vld [vmem:[#allocation13 + $0x610] sm:$0xff] }
 0x319   :  { %2623 = vmatpush1.msra.mxu0 %v1998_v14  ;;  %2750 = vmatpush2.msra.mxu1 %v2214_v15  ;;  %v1946_v14 = vld [vmem:[#allocation13 + $0x6e0] sm:$0xff]  ;;  %v2107_v15 = vld [vmem:[#allocation13 + $0xbe8] sm:$0xff] }
 0x31a   :  { %2624 = vmatprep.subr.mxu0 %v1993_v16  ;;  %2751 = vmatprep.subr.mxu1 %v2209_v49  ;;  %v1941_v16 = vld [vmem:[#allocation13 + $0x6b8] sm:$0xff]  ;;  %v2106_v49 = vld [vmem:[#allocation13 + $0xbe0] sm:$0xff] }
 0x31b   :  { %2625 = vmatpush1.msra.mxu0 %v1992_v17  ;;  %2752 = vmatpush2.msra.mxu1 %v2208_v1  ;;  %v1940_v17 = vld [vmem:[#allocation13 + $0x6b0] sm:$0xff]  ;;  %v2101_v1 = vld [vmem:[#allocation13 + $0xbb8] sm:$0xff] }
 0x31c   :  { %2626 = vmatprep.subr.mxu0 %v1987_v63  ;;  %2754 = vmatmul.mubr.f32.vlgmr.msra.gmra.mxu1 %v4040_v8  ;;  %v1935_v63 = vld [vmem:[#allocation13 + $0x688] sm:$0xff] }
 0x31d   :  { %2831 = vmatprep.subr.mxu1 %v2013_v18  ;;  %2627 = vmatpush1.msra.mxu0 %v1986_v4  ;;  %v2100_v18 = vld [vmem:[#allocation13 + $0xbb0] sm:$0xff]  ;;  %v1934_v4 = vld [vmem:[#allocation13 + $0x680] sm:$0xff] }
 0x31e   :  { %2832 = vmatpush1.msra.mxu1 %v2012_v19  ;;  %2895 = vmatprep.mubr.f32.mxu1 %v4024_v24  ;;  %v1962_v24 = vld [vmem:[#allocation13 + $0x760] sm:$0xff]  ;;  %v2095_v19 = vld [vmem:[#allocation13 + $0xb88] sm:$0xff] }
 0x31f   :  { %2628 = vmatprep.subr.mxu0 %v1981_v21  ;;  %2833 = vmatprep.subr.mxu1 %v2007_v22  ;;  %v1929_v21 = vld [vmem:[#allocation13 + $0x658] sm:$0xff]  ;;  %v2094_v22 = vld [vmem:[#allocation13 + $0xb80] sm:$0xff] }
 0x320   :  { %2629 = vmatpush1.msra.mxu0 %v1980_v23  ;;  %2834 = vmatpush1.msra.mxu1 %v2006_v25  ;;  %v1928_v23 = vld [vmem:[#allocation13 + $0x650] sm:$0xff]  ;;  %v2089_v25 = vld [vmem:[#allocation13 + $0xb58] sm:$0xff] }
 0x321   :  { %2630 = vmatprep.subr.mxu0 %v1975_v27  ;;  %2835 = vmatprep.subr.mxu1 %v2001_v28  ;;  %v1923_v27 = vld [vmem:[#allocation13 + $0x628] sm:$0xff]  ;;  %v2088_v28 = vld [vmem:[#allocation13 + $0xb50] sm:$0xff] }
 0x322   :  { %2631 = vmatpush1.msra.mxu0 %v1974_v33  ;;  %2836 = vmatpush1.msra.mxu1 %v2000_v34  ;;  %v1922_v33 = vld [vmem:[#allocation13 + $0x620] sm:$0xff]  ;;  %v2083_v34 = vld [vmem:[#allocation13 + $0xb28] sm:$0xff] }
 0x323   :  { %2632 = vmatprep.subr.mxu0 %v1969_v35  ;;  %2837 = vmatprep.subr.mxu1 %v1995_v62  ;;  %v2109_v35 = vld [vmem:[#allocation13 + $0xbf8] sm:$0xff]  ;;  %v2082_v62 = vld [vmem:[#allocation13 + $0xb20] sm:$0xff] }
 0x324   :  { %2633 = vmatpush1.msra.mxu0 %v1968_v39  ;;  %2838 = vmatpush1.msra.mxu1 %v1994_v40  ;;  %v2108_v39 = vld [vmem:[#allocation13 + $0xbf0] sm:$0xff]  ;;  %v2077_v40 = vld [vmem:[#allocation13 + $0xaf8] sm:$0xff] }
 0x325   :  { %2634 = vmatprep.subr.mxu0 %v1963_v42  ;;  %2839 = vmatprep.subr.mxu1 %v1989_v44  ;;  %v2103_v42 = vld [vmem:[#allocation13 + $0xbc8] sm:$0xff]  ;;  %v2076_v44 = vld [vmem:[#allocation13 + $0xaf0] sm:$0xff] }
 0x326   :  { %2635 = vmatpush1.msra.mxu0 %v1962_v24  ;;  %2840 = vmatpush1.msra.mxu1 %v1988_v46  ;;  %v2102_v24 = vld [vmem:[#allocation13 + $0xbc0] sm:$0xff]  ;;  %v2071_v46 = vld [vmem:[#allocation13 + $0xac8] sm:$0xff] }
 0x327   :  { %2636 = vmatprep.subr.mxu0 %v1957_v47  ;;  %2841 = vmatprep.subr.mxu1 %v1983_v48  ;;  %v2097_v47 = vld [vmem:[#allocation13 + $0xb98] sm:$0xff]  ;;  %v2070_v48 = vld [vmem:[#allocation13 + $0xac0] sm:$0xff] }
 0x328   :  { %2637 = vmatpush1.msra.mxu0 %v1956_v51  ;;  %2842 = vmatpush1.msra.mxu1 %v1982_v52  ;;  %v2096_v51 = vld [vmem:[#allocation13 + $0xb90] sm:$0xff]  ;;  %v2065_v52 = vld [vmem:[#allocation13 + $0xa98] sm:$0xff] }
 0x329   :  { %2638 = vmatprep.subr.mxu0 %v1951_v37  ;;  %2843 = vmatprep.subr.mxu1 %v1977_v53  ;;  %v2091_v37 = vld [vmem:[#allocation13 + $0xb68] sm:$0xff]  ;;  %v2064_v53 = vld [vmem:[#allocation13 + $0xa90] sm:$0xff] }
 0x32a   :  { %2639 = vmatpush1.msra.mxu0 %v1950_v29  ;;  %2844 = vmatpush1.msra.mxu1 %v1976_v54  ;;  %v2090_v29 = vld [vmem:[#allocation13 + $0xb60] sm:$0xff]  ;;  %v2059_v54 = vld [vmem:[#allocation13 + $0xa68] sm:$0xff] }
 0x32b   :  { %2640 = vmatprep.subr.mxu0 %v1945_v55  ;;  %2845 = vmatprep.subr.mxu1 %v1971_v56  ;;  %v2085_v55 = vld [vmem:[#allocation13 + $0xb38] sm:$0xff]  ;;  %v2058_v56 = vld [vmem:[#allocation13 + $0xa60] sm:$0xff] }
 0x32c   :  { %2641 = vmatpush1.msra.mxu0 %v1944_v57  ;;  %2846 = vmatpush1.msra.mxu1 %v1970_v58  ;;  %v2084_v57 = vld [vmem:[#allocation13 + $0xb30] sm:$0xff]  ;;  %v2053_v58 = vld [vmem:[#allocation13 + $0xa38] sm:$0xff] }
 0x32d   :  { %2642 = vmatprep.subr.mxu0 %v1939_v59  ;;  %2847 = vmatprep.subr.mxu1 %v1965_v61  ;;  %v2079_v59 = vld [vmem:[#allocation13 + $0xb08] sm:$0xff]  ;;  %v2052_v61 = vld [vmem:[#allocation13 + $0xa30] sm:$0xff] }
 0x32e   :  { %2643 = vmatpush1.msra.mxu0 %v1938_v0  ;;  %2848 = vmatpush1.msra.mxu1 %v1964_v31  ;;  %v2078_v0 = vld [vmem:[#allocation13 + $0xb00] sm:$0xff]  ;;  %v2047_v31 = vld [vmem:[#allocation13 + $0xa08] sm:$0xff] }
 0x32f   :  { %2644 = vmatprep.subr.mxu0 %v1933_v45  ;;  %2849 = vmatprep.subr.mxu1 %v1959_v2  ;;  %v2073_v45 = vld [vmem:[#allocation13 + $0xad8] sm:$0xff]  ;;  %v2046_v2 = vld [vmem:[#allocation13 + $0xa00] sm:$0xff] }
 0x330   :  { %2645 = vmatpush1.msra.mxu0 %v1932_v3  ;;  %2850 = vmatpush1.msra.mxu1 %v1958_v5  ;;  %v2072_v3 = vld [vmem:[#allocation13 + $0xad0] sm:$0xff]  ;;  %v2041_v5 = vld [vmem:[#allocation13 + $0x9d8] sm:$0xff] }
 0x331   :  { %2646 = vmatprep.subr.mxu0 %v1927_v7  ;;  %2851 = vmatprep.subr.mxu1 %v1953_v9  ;;  %v2067_v7 = vld [vmem:[#allocation13 + $0xaa8] sm:$0xff]  ;;  %v2040_v9 = vld [vmem:[#allocation13 + $0x9d0] sm:$0xff] }
 0x332   :  { %2647 = vmatpush1.msra.mxu0 %v1926_v10  ;;  %2852 = vmatpush1.msra.mxu1 %v1952_v36  ;;  %v2066_v10 = vld [vmem:[#allocation13 + $0xaa0] sm:$0xff]  ;;  %v2035_v36 = vld [vmem:[#allocation13 + $0x9a8] sm:$0xff] }
 0x333   :  { %2648 = vmatprep.subr.mxu0 %v1921_v11  ;;  %2853 = vmatprep.subr.mxu1 %v1947_v12  ;;  %v2061_v11 = vld [vmem:[#allocation13 + $0xa78] sm:$0xff]  ;;  %v2034_v12 = vld [vmem:[#allocation13 + $0x9a0] sm:$0xff] }
 0x334   :  { %2649 = vmatpush1.msra.mxu0 %v1920_v13  ;;  %2854 = vmatpush1.msra.mxu1 %v1946_v14  ;;  %v2060_v13 = vld [vmem:[#allocation13 + $0xa70] sm:$0xff]  ;;  %v2029_v14 = vld [vmem:[#allocation13 + $0x978] sm:$0xff] }
 0x335   :  { %2650 = vmatprep.subr.mxu0 %v2107_v15  ;;  %2855 = vmatprep.subr.mxu1 %v1941_v16  ;;  %v2055_v15 = vld [vmem:[#allocation13 + $0xa48] sm:$0xff]  ;;  %v2028_v16 = vld [vmem:[#allocation13 + $0x970] sm:$0xff] }
 0x336   :  { %2651 = vmatpush2.msra.mxu0 %v2106_v49  ;;  %2856 = vmatpush1.msra.mxu1 %v1940_v17  ;;  %v2054_v49 = vld [vmem:[#allocation13 + $0xa40] sm:$0xff]  ;;  %v2023_v17 = vld [vmem:[#allocation13 + $0x948] sm:$0xff] }
 0x337   :  { %2652 = vmatprep.subr.mxu0 %v2101_v1  ;;  %2857 = vmatprep.subr.mxu1 %v1935_v63  ;;  %v2049_v1 = vld [vmem:[#allocation13 + $0xa18] sm:$0xff]  ;;  %v2022_v63 = vld [vmem:[#allocation13 + $0x940] sm:$0xff] }
 0x338   :  { %2653 = vmatpush2.msra.mxu0 %v2100_v18  ;;  %2858 = vmatpush1.msra.mxu1 %v1934_v4  ;;  %v2048_v18 = vld [vmem:[#allocation13 + $0xa10] sm:$0xff]  ;;  %v2017_v4 = vld [vmem:[#allocation13 + $0x918] sm:$0xff] }
 0x339   :  { %2654 = vmatprep.subr.mxu0 %v2095_v19  ;;  %2859 = vmatprep.subr.mxu1 %v1929_v21  ;;  %v2043_v19 = vld [vmem:[#allocation13 + $0x9e8] sm:$0xff]  ;;  %v2016_v21 = vld [vmem:[#allocation13 + $0x910] sm:$0xff] }
 0x33a   :  { %2655 = vmatpush2.msra.mxu0 %v2094_v22  ;;  %2860 = vmatpush1.msra.mxu1 %v1928_v23  ;;  %v2042_v22 = vld [vmem:[#allocation13 + $0x9e0] sm:$0xff]  ;;  %v1821_v23 = vld [vmem:[#allocation13 + $0x2f8] sm:$0xff] }
 0x33b   :  { %2656 = vmatprep.subr.mxu0 %v2089_v25  ;;  %2861 = vmatprep.subr.mxu1 %v1923_v27  ;;  %v2037_v25 = vld [vmem:[#allocation13 + $0x9b8] sm:$0xff]  ;;  %v1820_v27 = vld [vmem:[#allocation13 + $0x2f0] sm:$0xff] }
 0x33c   :  { %2657 = vmatpush2.msra.mxu0 %v2088_v28  ;;  %2862 = vmatpush1.msra.mxu1 %v1922_v33  ;;  %v2036_v28 = vld [vmem:[#allocation13 + $0x9b0] sm:$0xff]  ;;  %v1815_v33 = vld [vmem:[#allocation13 + $0x2c8] sm:$0xff] }
 0x33d   :  { %2658 = vmatprep.subr.mxu0 %v2083_v34  ;;  %2863 = vmatprep.subr.mxu1 %v2109_v35  ;;  %v2031_v34 = vld [vmem:[#allocation13 + $0x988] sm:$0xff]  ;;  %v1814_v35 = vld [vmem:[#allocation13 + $0x2c0] sm:$0xff] }
 0x33e   :  { %2659 = vmatpush2.msra.mxu0 %v2082_v62  ;;  %2864 = vmatpush2.msra.mxu1 %v2108_v39  ;;  %v2030_v62 = vld [vmem:[#allocation13 + $0x980] sm:$0xff]  ;;  %v1809_v39 = vld [vmem:[#allocation13 + $0x298] sm:$0xff] }
 0x33f   :  { %2660 = vmatprep.subr.mxu0 %v2077_v40  ;;  %2865 = vmatprep.subr.mxu1 %v2103_v42  ;;  %v2025_v40 = vld [vmem:[#allocation13 + $0x958] sm:$0xff]  ;;  %v1808_v42 = vld [vmem:[#allocation13 + $0x290] sm:$0xff] }
 0x340   :  { %2661 = vmatpush2.msra.mxu0 %v2076_v44  ;;  %2866 = vmatpush2.msra.mxu1 %v2102_v24  ;;  %v2024_v44 = vld [vmem:[#allocation13 + $0x950] sm:$0xff]  ;;  %v1803_v24 = vld [vmem:[#allocation13 + $0x268] sm:$0xff] }
 0x341   :  { %2662 = vmatprep.subr.mxu0 %v2071_v46  ;;  %2867 = vmatprep.subr.mxu1 %v2097_v47  ;;  %v2019_v46 = vld [vmem:[#allocation13 + $0x928] sm:$0xff]  ;;  %v1802_v47 = vld [vmem:[#allocation13 + $0x260] sm:$0xff] }
 0x342   :  { %2663 = vmatpush2.msra.mxu0 %v2070_v48  ;;  %2868 = vmatpush2.msra.mxu1 %v2096_v51  ;;  %v2018_v48 = vld [vmem:[#allocation13 + $0x920] sm:$0xff]  ;;  %v1797_v51 = vld [vmem:[#allocation13 + $0x238] sm:$0xff] }
 0x343   :  { %2664 = vmatprep.subr.mxu0 %v2065_v52  ;;  %2869 = vmatprep.subr.mxu1 %v2091_v37  ;;  %v3023_v52 = vld [vmem:[%s4394_s8 + $0xf8] sm:$0xff] }
 0x344   :  { %2665 = vmatpush2.msra.mxu0 %v2064_v53  ;;  %2870 = vmatpush2.msra.mxu1 %v2090_v29  ;;  %v1791_v37 = vld [vmem:[#allocation13 + $0x208] sm:$0xff]  ;;  %v1790_v29 = vld [vmem:[#allocation13 + $0x200] sm:$0xff] }
 0x345   :  { %2666 = vmatprep.subr.mxu0 %v2059_v54  ;;  %2871 = vmatprep.subr.mxu1 %v2085_v55  ;;  %v3007_v53 = vld [vmem:[%s4394_s8 + $0x78] sm:$0xff]  ;;  %v3022_v54 = vld [vmem:[%s4394_s8 + $0xf0] sm:$0xff] }
 0x346   :  { %2667 = vmatpush2.msra.mxu0 %v2058_v56  ;;  %2872 = vmatpush2.msra.mxu1 %v2084_v57  ;;  %v1785_v55 = vld [vmem:[#allocation13 + $0x1d8] sm:$0xff]  ;;  %v1784_v57 = vld [vmem:[#allocation13 + $0x1d0] sm:$0xff] }
 0x347   :  { %2668 = vmatprep.subr.mxu0 %v2053_v58  ;;  %2873 = vmatprep.subr.mxu1 %v2079_v59  ;;  %v3006_v56 = vld [vmem:[%s4394_s8 + $0x70] sm:$0xff]  ;;  %v3021_v58 = vld [vmem:[%s4394_s8 + $0xe8] sm:$0xff] }
 0x348   :  { %2669 = vmatpush2.msra.mxu0 %v2052_v61  ;;  %2874 = vmatpush2.msra.mxu1 %v2078_v0  ;;  %v3005_v59 = vld [vmem:[%s4394_s8 + $0x68] sm:$0xff]  ;;  %v1778_v61 = vld [vmem:[#allocation13 + $0x1a0] sm:$0xff]  ;;  %v3020_v0 = vld [vmem:[%s4394_s8 + $0xe0] sm:$0xff] }
 0x349   :  { %2670 = vmatprep.subr.mxu0 %v2047_v31  ;;  %2875 = vmatprep.subr.mxu1 %v2073_v45  ;;  %v1773_v31 = vld [vmem:[#allocation13 + $0x178] sm:$0xff]  ;;  %v3004_v45 = vld [vmem:[%s4394_s8 + $0x60] sm:$0xff] }
 0x34a   :  { %2671 = vmatpush2.msra.mxu0 %v2046_v2  ;;  %2876 = vmatpush2.msra.mxu1 %v2072_v3  ;;  %v1772_v2 = vld [vmem:[#allocation13 + $0x170] sm:$0xff]  ;;  %v3019_v3 = vld [vmem:[%s4394_s8 + $0xd8] sm:$0xff] }
 0x34b   :  { %2672 = vmatprep.subr.mxu0 %v2041_v5  ;;  %2877 = vmatprep.subr.mxu1 %v2067_v7  ;;  %v1767_v5 = vld [vmem:[#allocation13 + $0x148] sm:$0xff] }
 0x34c   :  { %2673 = vmatpush2.msra.mxu0 %v2040_v9  ;;  %2878 = vmatpush2.msra.mxu1 %v2066_v10  ;;  %v3003_v7 = vld [vmem:[%s4394_s8 + $0x58] sm:$0xff]  ;;  %v3018_v10 = vld [vmem:[%s4394_s8 + $0xd0] sm:$0xff] }
 0x34d   :  { %2674 = vmatprep.subr.mxu0 %v2035_v36  ;;  %2879 = vmatprep.subr.mxu1 %v2061_v11  ;;  %v1766_v9 = vld [vmem:[#allocation13 + $0x140] sm:$0xff]  ;;  %v1761_v36 = vld [vmem:[#allocation13 + $0x118] sm:$0xff] }
 0x34e   :  { %2675 = vmatpush2.msra.mxu0 %v2034_v12  ;;  %2880 = vmatpush2.msra.mxu1 %v2060_v13  ;;  %v3002_v11 = vld [vmem:[%s4394_s8 + $0x50] sm:$0xff]  ;;  %v1760_v12 = vld [vmem:[#allocation13 + $0x110] sm:$0xff] }
 0x34f   :  { %2676 = vmatprep.subr.mxu0 %v2029_v14  ;;  %2881 = vmatprep.subr.mxu1 %v2055_v15  ;;  %v3017_v13 = vld [vmem:[%s4394_s8 + $0xc8] sm:$0xff]  ;;  %v1755_v14 = vld [vmem:[#allocation13 + $0xe8] sm:$0xff] }
 0x350   :  { %2677 = vmatpush2.msra.mxu0 %v2028_v16  ;;  %2882 = vmatpush2.msra.mxu1 %v2054_v49  ;;  %v3001_v15 = vld [vmem:[%s4394_s8 + $0x48] sm:$0xff]  ;;  %v1754_v16 = vld [vmem:[#allocation13 + $0xe0] sm:$0xff]  ;;  %v3016_v49 = vld [vmem:[%s4394_s8 + $0xc0] sm:$0xff] }
 0x351   :  { %2678 = vmatprep.subr.mxu0 %v2023_v17  ;;  %2883 = vmatprep.subr.mxu1 %v2049_v1  ;;  %v1749_v17 = vld [vmem:[#allocation13 + $0xb8] sm:$0xff]  ;;  %v3000_v1 = vld [vmem:[%s4394_s8 + $0x40] sm:$0xff] }
 0x352   :  { %2679 = vmatpush2.msra.mxu0 %v2022_v63  ;;  %2884 = vmatpush2.msra.mxu1 %v2048_v18  ;;  %v1748_v63 = vld [vmem:[#allocation13 + $0xb0] sm:$0xff]  ;;  %v3015_v18 = vld [vmem:[%s4394_s8 + $0xb8] sm:$0xff] }
 0x353   :  { %2680 = vmatprep.subr.mxu0 %v2017_v4  ;;  %2885 = vmatprep.subr.mxu1 %v2043_v19  ;;  %v1743_v4 = vld [vmem:[#allocation13 + $0x88] sm:$0xff] }
 0x354   :  { %2681 = vmatpush2.msra.mxu0 %v2016_v21  ;;  %2886 = vmatpush2.msra.mxu1 %v2042_v22  ;;  %v2999_v19 = vld [vmem:[%s4394_s8 + $0x38] sm:$0xff]  ;;  %v3014_v22 = vld [vmem:[%s4394_s8 + $0xb0] sm:$0xff] }
 0x355   :  { %2683 = vmatmul.mubr.f32.vlgmr.msra.gmra.mxu0 %v4027_v26  ;;  %2760 = vmatprep.subr.mxu0 %v1821_v23  ;;  %v1742_v21 = vld [vmem:[#allocation13 + $0x80] sm:$0xff]  ;;  %v1737_v23 = vld [vmem:[#allocation13 + $0x58] sm:$0xff] }
 0x356   :  { %2887 = vmatprep.subr.mxu1 %v2037_v25  ;;  %2761 = vmatpush1.msra.mxu0 %v1820_v27  ;;  %v2998_v25 = vld [vmem:[%s4394_s8 + $0x30] sm:$0xff]  ;;  %v1736_v27 = vld [vmem:[#allocation13 + $0x50] sm:$0xff] }
 0x357   :  { %2824 = vmatprep.mubr.f32.mxu0 %v4011_v50  ;;  %2888 = vmatpush2.msra.mxu1 %v2036_v28  ;;  %v1796_v50 = vld [vmem:[#allocation13 + $0x230] sm:$0xff] }
 0x358   :  { %2762 = vmatprep.subr.mxu0 %v1815_v33  ;;  %2889 = vmatprep.subr.mxu1 %v2031_v34  ;;  %v3013_v28 = vld [vmem:[%s4394_s8 + $0xa8] sm:$0xff]  ;;  %v1731_v33 = vld [vmem:[#allocation13 + $0x28] sm:$0xff] }
 0x359   :  { %2763 = vmatpush1.msra.mxu0 %v1814_v35  ;;  %2890 = vmatpush2.msra.mxu1 %v2030_v62  ;;  %v2997_v34 = vld [vmem:[%s4394_s8 + $0x28] sm:$0xff]  ;;  %v1730_v35 = vld [vmem:[#allocation13 + $0x20] sm:$0xff]  ;;  %v3012_v62 = vld [vmem:[%s4394_s8 + $0xa0] sm:$0xff] }
 0x35a   :  { %2764 = vmatprep.subr.mxu0 %v1809_v39  ;;  %2891 = vmatprep.subr.mxu1 %v2025_v40  ;;  %v1917_v39 = vld [vmem:[#allocation13 + $0x5f8] sm:$0xff]  ;;  %v2996_v40 = vld [vmem:[%s4394_s8 + $0x20] sm:$0xff] }
 0x35b   :  { %2765 = vmatpush1.msra.mxu0 %v1808_v42  ;;  %2892 = vmatpush2.msra.mxu1 %v2024_v44  ;;  %v1916_v42 = vld [vmem:[#allocation13 + $0x5f0] sm:$0xff]  ;;  %v3011_v44 = vld [vmem:[%s4394_s8 + $0x98] sm:$0xff] }
 0x35c   :  { %2766 = vmatprep.subr.mxu0 %v1803_v24  ;;  %2893 = vmatprep.subr.mxu1 %v2019_v46  ;;  %v1911_v24 = vld [vmem:[#allocation13 + $0x5c8] sm:$0xff] }
 0x35d   :  { %2767 = vmatpush1.msra.mxu0 %v1802_v47  ;;  %2894 = vmatpush2.msra.mxu1 %v2018_v48  ;;  %v2995_v46 = vld [vmem:[%s4394_s8 + $0x18] sm:$0xff]  ;;  %v3010_v48 = vld [vmem:[%s4394_s8 + $0x90] sm:$0xff] }
 0x35e   :  { %2768 = vmatprep.subr.mxu0 %v1797_v51  ;;  %2896 = vmatmul.mubr.f32.vlgmr.msra.gmra.mxu1 %v4027_v26  ;;  %v1779_v26 = vld [vmem:[#allocation13 + $0x1a8] sm:$0xff]  ;;  %v1910_v47 = vld [vmem:[#allocation13 + $0x5c0] sm:$0xff]  ;;  %v1905_v51 = vld [vmem:[#allocation13 + $0x598] sm:$0xff] }
 0x35f   :  { %2769 = vmatpush1.msra.mxu0 %v1796_v50  ;;  %3443 = vmatprep.subr.mxu1 %v3023_v52  ;;  %v2994_v50 = vld [vmem:[%s4394_s8 + $0x10] sm:$0xff]  ;;  %v1904_v52 = vld [vmem:[#allocation13 + $0x590] sm:$0xff] }
 0x360   :  { %2770 = vmatprep.subr.mxu0 %v1791_v37  ;;  %3444 = vmatpush3.msra.mxu1 %v3007_v53  ;;  %v3009_v37 = vld [vmem:[%s4394_s8 + $0x88] sm:$0xff]  ;;  %v1899_v53 = vld [vmem:[#allocation13 + $0x568] sm:$0xff] }
 0x361   :  { %2771 = vmatpush1.msra.mxu0 %v1790_v29  ;;  %3445 = vmatprep.subr.mxu1 %v3022_v54  ;;  %v2993_v29 = vld [vmem:[%s4394_s8 + $0x8] sm:$0xff]  ;;  %v1898_v54 = vld [vmem:[#allocation13 + $0x560] sm:$0xff] }
 0x362   :  { %2772 = vmatprep.subr.mxu0 %v1785_v55  ;;  %3446 = vmatpush3.msra.mxu1 %v3006_v56  ;;  %v3008_v55 = vld [vmem:[%s4394_s8 + $0x80] sm:$0xff]  ;;  %v1893_v56 = vld [vmem:[#allocation13 + $0x538] sm:$0xff] }
 0x363   :  { %2773 = vmatpush1.msra.mxu0 %v1784_v57  ;;  %3447 = vmatprep.subr.mxu1 %v3021_v58  ;;  %v2992_v57 = vld [vmem:[%s4394_s8] sm:$0xff] }
 0x364   :  { %2774 = vmatprep.subr.mxu0 %v1779_v26  ;;  %3448 = vmatpush3.msra.mxu1 %v3005_v59  ;;  %v1892_v58 = vld [vmem:[#allocation13 + $0x530] sm:$0xff]  ;;  %v1887_v26 = vld [vmem:[#allocation13 + $0x508] sm:$0xff]  ;;  %v1886_v59 = vld [vmem:[#allocation13 + $0x500] sm:$0xff] }
 0x365   :  { %2775 = vmatpush1.msra.mxu0 %v1778_v61  ;;  %3449 = vmatprep.subr.mxu1 %v3020_v0  ;;  %v1881_v61 = vld [vmem:[#allocation13 + $0x4d8] sm:$0xff]  ;;  %v1880_v0 = vld [vmem:[#allocation13 + $0x4d0] sm:$0xff] }
 0x366   :  { %2776 = vmatprep.subr.mxu0 %v1773_v31  ;;  %3450 = vmatpush3.msra.mxu1 %v3004_v45  ;;  %v1875_v31 = vld [vmem:[#allocation13 + $0x4a8] sm:$0xff]  ;;  %v1874_v45 = vld [vmem:[#allocation13 + $0x4a0] sm:$0xff] }
 0x367   :  { %2777 = vmatpush1.msra.mxu0 %v1772_v2  ;;  %3451 = vmatprep.subr.mxu1 %v3019_v3  ;;  %v1869_v2 = vld [vmem:[#allocation13 + $0x478] sm:$0xff]  ;;  %v1868_v3 = vld [vmem:[#allocation13 + $0x470] sm:$0xff] }
 0x368   :  { %2778 = vmatprep.subr.mxu0 %v1767_v5  ;;  %3452 = vmatpush3.msra.mxu1 %v3003_v7  ;;  %v1863_v5 = vld [vmem:[#allocation13 + $0x448] sm:$0xff]  ;;  %v1862_v7 = vld [vmem:[#allocation13 + $0x440] sm:$0xff] }
 0x369   :  { %2779 = vmatpush1.msra.mxu0 %v1766_v9  ;;  %3453 = vmatprep.subr.mxu1 %v3018_v10  ;;  %v1857_v9 = vld [vmem:[#allocation13 + $0x418] sm:$0xff]  ;;  %v1856_v10 = vld [vmem:[#allocation13 + $0x410] sm:$0xff] }
 0x36a   :  { %2780 = vmatprep.subr.mxu0 %v1761_v36  ;;  %3454 = vmatpush3.msra.mxu1 %v3002_v11  ;;  %v1851_v36 = vld [vmem:[#allocation13 + $0x3e8] sm:$0xff]  ;;  %v1850_v11 = vld [vmem:[#allocation13 + $0x3e0] sm:$0xff] }
 0x36b   :  { %2781 = vmatpush1.msra.mxu0 %v1760_v12  ;;  %3455 = vmatprep.subr.mxu1 %v3017_v13  ;;  %v1845_v12 = vld [vmem:[#allocation13 + $0x3b8] sm:$0xff]  ;;  %v1844_v13 = vld [vmem:[#allocation13 + $0x3b0] sm:$0xff] }
 0x36c   :  { %2782 = vmatprep.subr.mxu0 %v1755_v14  ;;  %3456 = vmatpush3.msra.mxu1 %v3001_v15  ;;  %v1839_v14 = vld [vmem:[#allocation13 + $0x388] sm:$0xff]  ;;  %v1838_v15 = vld [vmem:[#allocation13 + $0x380] sm:$0xff] }
 0x36d   :  { %2783 = vmatpush1.msra.mxu0 %v1754_v16  ;;  %3457 = vmatprep.subr.mxu1 %v3016_v49  ;;  %v1833_v16 = vld [vmem:[#allocation13 + $0x358] sm:$0xff]  ;;  %v1832_v49 = vld [vmem:[#allocation13 + $0x350] sm:$0xff] }
 0x36e   :  { %2784 = vmatprep.subr.mxu0 %v1749_v17  ;;  %3458 = vmatpush3.msra.mxu1 %v3000_v1  ;;  %v1827_v17 = vld [vmem:[#allocation13 + $0x328] sm:$0xff]  ;;  %v1826_v1 = vld [vmem:[#allocation13 + $0x320] sm:$0xff] }
 0x36f   :  { %2785 = vmatpush1.msra.mxu0 %v1748_v63  ;;  %3459 = vmatprep.subr.mxu1 %v3015_v18  ;;  %v2205_v63 = vld [vmem:[#allocation13 + $0xef8] sm:$0xff]  ;;  %v2204_v18 = vld [vmem:[#allocation13 + $0xef0] sm:$0xff] }
 0x370   :  { %2786 = vmatprep.subr.mxu0 %v1743_v4  ;;  %3460 = vmatpush3.msra.mxu1 %v2999_v19  ;;  %v2199_v4 = vld [vmem:[#allocation13 + $0xec8] sm:$0xff]  ;;  %v2198_v19 = vld [vmem:[#allocation13 + $0xec0] sm:$0xff] }
 0x371   :  { %2787 = vmatpush1.msra.mxu0 %v1742_v21  ;;  %3461 = vmatprep.subr.mxu1 %v3014_v22  ;;  %v2193_v21 = vld [vmem:[#allocation13 + $0xe98] sm:$0xff]  ;;  %v2192_v22 = vld [vmem:[#allocation13 + $0xe90] sm:$0xff] }
 0x372   :  { %2788 = vmatprep.subr.mxu0 %v1737_v23  ;;  %3462 = vmatpush3.msra.mxu1 %v2998_v25  ;;  %v2187_v23 = vld [vmem:[#allocation13 + $0xe68] sm:$0xff]  ;;  %v2186_v25 = vld [vmem:[#allocation13 + $0xe60] sm:$0xff] }
 0x373   :  { %2789 = vmatpush1.msra.mxu0 %v1736_v27  ;;  %3463 = vmatprep.subr.mxu1 %v3013_v28  ;;  %v2181_v27 = vld [vmem:[#allocation13 + $0xe38] sm:$0xff]  ;;  %v2180_v28 = vld [vmem:[#allocation13 + $0xe30] sm:$0xff] }
 0x374   :  { %2790 = vmatprep.subr.mxu0 %v1731_v33  ;;  %3464 = vmatpush3.msra.mxu1 %v2997_v34  ;;  %v2175_v33 = vld [vmem:[#allocation13 + $0xe08] sm:$0xff]  ;;  %v2169_v34 = vld [vmem:[#allocation13 + $0xdd8] sm:$0xff] }
 0x375   :  { %2791 = vmatpush1.msra.mxu0 %v1730_v35  ;;  %3465 = vmatprep.subr.mxu1 %v3012_v62  ;;  %v2168_v35 = vld [vmem:[#allocation13 + $0xdd0] sm:$0xff]  ;;  %v2162_v62 = vld [vmem:[#allocation13 + $0xda0] sm:$0xff] }
 0x376   :  { %2792 = vmatprep.subr.mxu0 %v1917_v39  ;;  %3466 = vmatpush3.msra.mxu1 %v2996_v40  ;;  %v2157_v39 = vld [vmem:[#allocation13 + $0xd78] sm:$0xff]  ;;  %v2156_v40 = vld [vmem:[#allocation13 + $0xd70] sm:$0xff] }
 0x377   :  { %2793 = vmatpush2.msra.mxu0 %v1916_v42  ;;  %3467 = vmatprep.subr.mxu1 %v3011_v44  ;;  %v2151_v42 = vld [vmem:[#allocation13 + $0xd48] sm:$0xff]  ;;  %v2150_v44 = vld [vmem:[#allocation13 + $0xd40] sm:$0xff] }
 0x378   :  { %2794 = vmatprep.subr.mxu0 %v1911_v24  ;;  %3468 = vmatpush3.msra.mxu1 %v2995_v46  ;;  %v2145_v24 = vld [vmem:[#allocation13 + $0xd18] sm:$0xff]  ;;  %v2144_v46 = vld [vmem:[#allocation13 + $0xd10] sm:$0xff] }
 0x379   :  { %2795 = vmatpush2.msra.mxu0 %v1910_v47  ;;  %3469 = vmatprep.subr.mxu1 %v3010_v48  ;;  %v2139_v47 = vld [vmem:[#allocation13 + $0xce8] sm:$0xff]  ;;  %v2138_v48 = vld [vmem:[#allocation13 + $0xce0] sm:$0xff] }
 0x37a   :  { %2796 = vmatprep.subr.mxu0 %v1905_v51  ;;  %3470 = vmatpush3.msra.mxu1 %v2994_v50  ;;  %v2133_v51 = vld [vmem:[#allocation13 + $0xcb8] sm:$0xff]  ;;  %v2132_v50 = vld [vmem:[#allocation13 + $0xcb0] sm:$0xff] }
 0x37b   :  { %2797 = vmatpush2.msra.mxu0 %v1904_v52  ;;  %3471 = vmatprep.subr.mxu1 %v3009_v37  ;;  %v2127_v52 = vld [vmem:[#allocation13 + $0xc88] sm:$0xff]  ;;  %v2126_v37 = vld [vmem:[#allocation13 + $0xc80] sm:$0xff] }
 0x37c   :  { %2798 = vmatprep.subr.mxu0 %v1899_v53  ;;  %3472 = vmatpush3.msra.mxu1 %v2993_v29  ;;  %v2121_v53 = vld [vmem:[#allocation13 + $0xc58] sm:$0xff]  ;;  %v2120_v29 = vld [vmem:[#allocation13 + $0xc50] sm:$0xff] }
 0x37d   :  { %2799 = vmatpush2.msra.mxu0 %v1898_v54  ;;  %3473 = vmatprep.subr.mxu1 %v3008_v55  ;;  %v2115_v54 = vld [vmem:[#allocation13 + $0xc28] sm:$0xff]  ;;  %v2114_v55 = vld [vmem:[#allocation13 + $0xc20] sm:$0xff] }
 0x37e   :  { %2800 = vmatprep.subr.mxu0 %v1893_v56  ;;  %3474 = vmatpush3.msra.mxu1 %v2992_v57  ;;  %v2301_v56 = vld [vmem:[#allocation13 + $0x11f8] sm:$0xff]  ;;  %v2300_v57 = vld [vmem:[#allocation13 + $0x11f0] sm:$0xff] }
 0x37f   :  { %2801 = vmatpush2.msra.mxu0 %v1892_v58  ;;  %v2295_v58 = vld [vmem:[#allocation13 + $0x11c8] sm:$0xff] }
 0x380   :  { %2802 = vmatprep.subr.mxu0 %v1887_v26  ;;  %v2294_v26 = vld [vmem:[#allocation13 + $0x11c0] sm:$0xff] }
 0x381   :  { %2803 = vmatpush2.msra.mxu0 %v1886_v59  ;;  %v2289_v59 = vld [vmem:[#allocation13 + $0x1198] sm:$0xff] }
 0x382   :  { %2804 = vmatprep.subr.mxu0 %v1881_v61  ;;  %v2288_v61 = vld [vmem:[#allocation13 + $0x1190] sm:$0xff] }
 0x383   :  { %2805 = vmatpush2.msra.mxu0 %v1880_v0  ;;  %v2283_v0 = vld [vmem:[#allocation13 + $0x1168] sm:$0xff] }
 0x384   :  { %2806 = vmatprep.subr.mxu0 %v1875_v31  ;;  %v2282_v31 = vld [vmem:[#allocation13 + $0x1160] sm:$0xff] }
 0x385   :  { %2807 = vmatpush2.msra.mxu0 %v1874_v45  ;;  %v2277_v45 = vld [vmem:[#allocation13 + $0x1138] sm:$0xff] }
 0x386   :  { %2808 = vmatprep.subr.mxu0 %v1869_v2  ;;  %v2276_v2 = vld [vmem:[#allocation13 + $0x1130] sm:$0xff] }
 0x387   :  { %2809 = vmatpush2.msra.mxu0 %v1868_v3  ;;  %v2271_v3 = vld [vmem:[#allocation13 + $0x1108] sm:$0xff] }
 0x388   :  { %2810 = vmatprep.subr.mxu0 %v1863_v5  ;;  %v2270_v5 = vld [vmem:[#allocation13 + $0x1100] sm:$0xff] }
 0x389   :  { %2811 = vmatpush2.msra.mxu0 %v1862_v7  ;;  %v2265_v7 = vld [vmem:[#allocation13 + $0x10d8] sm:$0xff] }
 0x38a   :  { %2812 = vmatprep.subr.mxu0 %v1857_v9  ;;  %v2264_v9 = vld [vmem:[#allocation13 + $0x10d0] sm:$0xff] }
 0x38b   :  { %2813 = vmatpush2.msra.mxu0 %v1856_v10  ;;  %v2259_v10 = vld [vmem:[#allocation13 + $0x10a8] sm:$0xff] }
 0x38c   :  { %2814 = vmatprep.subr.mxu0 %v1851_v36  ;;  %v2258_v36 = vld [vmem:[#allocation13 + $0x10a0] sm:$0xff] }
 0x38d   :  { %2815 = vmatpush2.msra.mxu0 %v1850_v11  ;;  %v2253_v11 = vld [vmem:[#allocation13 + $0x1078] sm:$0xff] }
 0x38e   :  { %2816 = vmatprep.subr.mxu0 %v1845_v12  ;;  %v2252_v12 = vld [vmem:[#allocation13 + $0x1070] sm:$0xff] }
 0x38f   :  { %2817 = vmatpush2.msra.mxu0 %v1844_v13  ;;  %v2247_v13 = vld [vmem:[#allocation13 + $0x1048] sm:$0xff] }
 0x390   :  { %2818 = vmatprep.subr.mxu0 %v1839_v14  ;;  %v2246_v14 = vld [vmem:[#allocation13 + $0x1040] sm:$0xff] }
 0x391   :  { %2819 = vmatpush2.msra.mxu0 %v1838_v15  ;;  %v2241_v15 = vld [vmem:[#allocation13 + $0x1018] sm:$0xff] }
 0x392   :  { %2820 = vmatprep.subr.mxu0 %v1833_v16  ;;  %v2240_v16 = vld [vmem:[#allocation13 + $0x1010] sm:$0xff] }
 0x393   :  { %2821 = vmatpush2.msra.mxu0 %v1832_v49  ;;  %v2235_v49 = vld [vmem:[#allocation13 + $0xfe8] sm:$0xff] }
 0x394   :  { %2822 = vmatprep.subr.mxu0 %v1827_v17  ;;  %v4147_v17 = vld [vmem:[#allocation15] sm:$0x3f] }
 0x395   :  { %2823 = vmatpush2.msra.mxu0 %v1826_v1  ;;  %v2234_v1 = vld [vmem:[#allocation13 + $0xfe0] sm:$0xff] }
 0x396   :  { %2825 = vmatmul.mubr.f32.vlgmr.msra.gmra.mxu0 %v4015_v60  ;;  %2902 = vmatprep.subr.mxu0 %v2205_v63  ;;  %v2174_v60 = vld [vmem:[#allocation13 + $0xe00] sm:$0xff]  ;;  %v2229_v63 = vld [vmem:[#allocation13 + $0xfb8] sm:$0xff] }
 0x397   :  { %2903 = vmatpush1.msra.mxu0 %v2204_v18  ;;  %2966 = vmatprep.mubr.f32.mxu0 %v4036_v6  ;;  %v2163_v6 = vld [vmem:[#allocation13 + $0xda8] sm:$0xff]  ;;  %v2400_v18 = vpop.f32.mrf.mxu0 }
 0x398   :  { %2904 = vmatprep.subr.mxu0 %v2199_v4  ;;  %v2228_v4 = vld [vmem:[#allocation13 + $0xfb0] sm:$0xff] }
 0x399   :  { %2905 = vmatpush1.msra.mxu0 %v2198_v19  ;;  %v2307_v19 = vrot.slane %v4147_v17, %v3930_v30  ;;  %v2210_v30 = vld [vmem:[#allocation13 + $0xf20] sm:$0xff] }
 0x39a   :  { %2906 = vmatprep.subr.mxu0 %v2193_v21  ;;  %v2223_v21 = vld [vmem:[#allocation13 + $0xf88] sm:$0xff] }
 0x39b   :  { %2907 = vmatpush1.msra.mxu0 %v2192_v22  ;;  %v2471_v22 = vpop.f32.mrf.mxu1 }
 0x39c   :  { %2908 = vmatprep.subr.mxu0 %v2187_v23  ;;  %v2222_v23 = vld [vmem:[#allocation13 + $0xf80] sm:$0xff] }
 0x39d   :  { %2909 = vmatpush1.msra.mxu0 %v2186_v25  ;;  %v2311_v25 = vrot.slane %v4147_v17, %v3935_v32 }
 0x39e   :  { %2910 = vmatprep.subr.mxu0 %v2181_v27  ;;  %v2217_v27 = vld [vmem:[#allocation13 + $0xf58] sm:$0xff] }
 0x39f   :  { %2911 = vmatpush1.msra.mxu0 %v2180_v28  ;;  %v2402_v28 = vpop.f32.mrf.mxu0 }
 0x3a0   :  { %2912 = vmatprep.subr.mxu0 %v2175_v33  ;;  %v2216_v33 = vld [vmem:[#allocation13 + $0xf50] sm:$0xff] }
 0x3a1   :  { %2913 = vmatpush1.msra.mxu0 %v2174_v60  ;;  %v2401_v60 = vadd.f32 %v2400_v18, %v2307_v19  ;;  %v3045_v18 = vld [vmem:[%s4394_s8 + $0x1a8] sm:$0xff] }
 0x3a2   :  { %2914 = vmatprep.subr.mxu0 %v2169_v34  ;;  %v2211_v34 = vld [vmem:[#allocation13 + $0xf28] sm:$0xff]  ;;  %v3029_v19 = vld [vmem:[%s4394_s8 + $0x128] sm:$0xff] }
 0x3a3   :  { %2915 = vmatpush1.msra.mxu0 %v2168_v35  ;;  %v2473_v35 = vpop.f32.mrf.mxu1 }
 0x3a4   :  { %2916 = vmatprep.subr.mxu0 %v2163_v6  ;;  %v2403_v6 = vadd.f32 %v2402_v28, %v2311_v25  ;;  %v3028_v25 = vld [vmem:[%s4394_s8 + $0x120] sm:$0xff]  ;;  %v3043_v28 = vld [vmem:[%s4394_s8 + $0x198] sm:$0xff] }
 0x3a5   :  { %2917 = vmatpush1.msra.mxu0 %v2162_v62  ;;  %v2472_v62 = vadd.f32 %v2471_v22, %v2401_v60  ;;  %v3044_v22 = vld [vmem:[%s4394_s8 + $0x1a0] sm:$0xff]  ;;  %v3027_v60 = vld [vmem:[%s4394_s8 + $0x118] sm:$0xff] }
 0x3a6   :  { %2918 = vmatprep.subr.mxu0 %v2157_v39  ;;  %v3055_v39 = vld [vmem:[%s4394_s8 + $0x1f8] sm:$0xff] }
 0x3a7   :  { %2919 = vmatpush1.msra.mxu0 %v2156_v40  ;;  %v3039_v40 = vld [vmem:[%s4394_s8 + $0x178] sm:$0xff] }
 0x3a8   :  { %2920 = vmatprep.subr.mxu0 %v2151_v42  ;;  %v2474_v42 = vadd.f32 %v2473_v35, %v2403_v6  ;;  %v3042_v35 = vld [vmem:[%s4394_s8 + $0x190] sm:$0xff] }
 0x3a9   :  { %2921 = vmatpush1.msra.mxu0 %v2150_v44  ;;  %v3026_v6 = vld [vmem:[%s4394_s8 + $0x110] sm:$0xff] }
 0x3aa   :  { %2922 = vmatprep.subr.mxu0 %v2145_v24  ;;  %v4159_v24 = vstv %s3435_s15 }
 0x3ab   :  { %2923 = vmatpush1.msra.mxu0 %v2144_v46  ;;  %v3054_v46 = vld [vmem:[%s4394_s8 + $0x1f0] sm:$0xff] }
 0x3ac   :  { %2924 = vmatprep.subr.mxu0 %v2139_v47 }
 0x3ad   :  { %2925 = vmatpush1.msra.mxu0 %v2138_v48  ;;  %v3038_v48 = vld [vmem:[%s4394_s8 + $0x170] sm:$0xff] }
 0x3ae   :  { %2926 = vmatprep.subr.mxu0 %v2133_v51 }
 0x3af   :  { %2927 = vmatpush1.msra.mxu0 %v2132_v50  ;;  %v3053_v50 = vld [vmem:[%s4394_s8 + $0x1e8] sm:$0xff] }
 0x3b0   :  { %2928 = vmatprep.subr.mxu0 %v2127_v52 }
 0x3b1   :  { %2929 = vmatpush1.msra.mxu0 %v2126_v37  ;;  %v3037_v37 = vld [vmem:[%s4394_s8 + $0x168] sm:$0xff] }
 0x3b2   :  { %2930 = vmatprep.subr.mxu0 %v2121_v53  ;;  %v3052_v53 = vld [vmem:[%s4394_s8 + $0x1e0] sm:$0xff] }
 0x3b3   :  { %2931 = vmatpush1.msra.mxu0 %v2120_v29  ;;  %v3087_v29 = vld [vmem:[%s4394_s8 + $0x2f8] sm:$0xff] }
 0x3b4   :  { %2932 = vmatprep.subr.mxu0 %v2115_v54  ;;  %v3036_v54 = vld [vmem:[%s4394_s8 + $0x160] sm:$0xff]  ;;  %3513 = vmatprep.subr.mxu1 %v3087_v29 }
 0x3b5   :  { %2933 = vmatpush1.msra.mxu0 %v2114_v55  ;;  %v3060_v29 = vld [vmem:[%s4394_s8 + $0x220] sm:$0xff] }
 0x3b6   :  { %2934 = vmatprep.subr.mxu0 %v2301_v56  ;;  %v3051_v56 = vld [vmem:[%s4394_s8 + $0x1d8] sm:$0xff] }
 0x3b7   :  { %2935 = vmatpush2.msra.mxu0 %v2300_v57  ;;  %v3071_v57 = vld [vmem:[%s4394_s8 + $0x278] sm:$0xff] }
 0x3b8   :  { %2936 = vmatprep.subr.mxu0 %v2295_v58 }
 0x3b9   :  { %2937 = vmatpush2.msra.mxu0 %v2294_v26  ;;  %v3035_v26 = vld [vmem:[%s4394_s8 + $0x158] sm:$0xff] }
 0x3ba   :  { %2938 = vmatprep.subr.mxu0 %v2289_v59  ;;  %v3086_v59 = vld [vmem:[%s4394_s8 + $0x2f0] sm:$0xff] }
 0x3bb   :  { %2939 = vmatpush2.msra.mxu0 %v2288_v61  ;;  %v3050_v61 = vld [vmem:[%s4394_s8 + $0x1d0] sm:$0xff] }
 0x3bc   :  { %2940 = vmatprep.subr.mxu0 %v2283_v0  ;;  %v3070_v0 = vld [vmem:[%s4394_s8 + $0x270] sm:$0xff] }
 0x3bd   :  { %2941 = vmatpush2.msra.mxu0 %v2282_v31  ;;  %v3034_v31 = vld [vmem:[%s4394_s8 + $0x150] sm:$0xff] }
 0x3be   :  { %2942 = vmatprep.subr.mxu0 %v2277_v45  ;;  %v3085_v45 = vld [vmem:[%s4394_s8 + $0x2e8] sm:$0xff] }
 0x3bf   :  { %2943 = vmatpush2.msra.mxu0 %v2276_v2  ;;  %v3049_v2 = vld [vmem:[%s4394_s8 + $0x1c8] sm:$0xff] }
 0x3c0   :  { %2944 = vmatprep.subr.mxu0 %v2271_v3  ;;  %v3069_v3 = vld [vmem:[%s4394_s8 + $0x268] sm:$0xff] }
 0x3c1   :  { %2945 = vmatpush2.msra.mxu0 %v2270_v5  ;;  %v3033_v5 = vld [vmem:[%s4394_s8 + $0x148] sm:$0xff] }
 0x3c2   :  { %2946 = vmatprep.subr.mxu0 %v2265_v7  ;;  %v3084_v7 = vld [vmem:[%s4394_s8 + $0x2e0] sm:$0xff] }
 0x3c3   :  { %2947 = vmatpush2.msra.mxu0 %v2264_v9  ;;  %v3048_v9 = vld [vmem:[%s4394_s8 + $0x1c0] sm:$0xff] }
 0x3c4   :  { %2948 = vmatprep.subr.mxu0 %v2259_v10  ;;  %v3068_v10 = vld [vmem:[%s4394_s8 + $0x260] sm:$0xff] }
 0x3c5   :  { %2949 = vmatpush2.msra.mxu0 %v2258_v36  ;;  %v3032_v36 = vld [vmem:[%s4394_s8 + $0x140] sm:$0xff] }
 0x3c6   :  { %2950 = vmatprep.subr.mxu0 %v2253_v11  ;;  %v3083_v11 = vld [vmem:[%s4394_s8 + $0x2d8] sm:$0xff] }
 0x3c7   :  { %2951 = vmatpush2.msra.mxu0 %v2252_v12  ;;  %v3047_v12 = vld [vmem:[%s4394_s8 + $0x1b8] sm:$0xff] }
 0x3c8   :  { %2952 = vmatprep.subr.mxu0 %v2247_v13  ;;  %v3067_v13 = vld [vmem:[%s4394_s8 + $0x258] sm:$0xff] }
 0x3c9   :  { %2953 = vmatpush2.msra.mxu0 %v2246_v14  ;;  %v3031_v14 = vld [vmem:[%s4394_s8 + $0x138] sm:$0xff] }
 0x3ca   :  { %2954 = vmatprep.subr.mxu0 %v2241_v15  ;;  %v3082_v15 = vld [vmem:[%s4394_s8 + $0x2d0] sm:$0xff] }
 0x3cb   :  { %2955 = vmatpush2.msra.mxu0 %v2240_v16  ;;  %v3046_v16 = vld [vmem:[%s4394_s8 + $0x1b0] sm:$0xff] }
 0x3cc   :  { %2956 = vmatprep.subr.mxu0 %v2235_v49  ;;  %v3066_v49 = vld [vmem:[%s4394_s8 + $0x250] sm:$0xff] }
 0x3cd   :  { %2957 = vmatpush2.msra.mxu0 %v2234_v1  ;;  %v3030_v1 = vld [vmem:[%s4394_s8 + $0x130] sm:$0xff] }
 0x3ce   :  { %2958 = vmatprep.subr.mxu0 %v2229_v63  ;;  %v3081_v63 = vld [vmem:[%s4394_s8 + $0x2c8] sm:$0xff] }
 0x3cf   :  { %2959 = vmatpush2.msra.mxu0 %v2228_v4  ;;  %v3065_v4 = vld [vmem:[%s4394_s8 + $0x248] sm:$0xff] }
 0x3d0   :  { %2960 = vmatprep.subr.mxu0 %v2223_v21  ;;  %v3080_v21 = vld [vmem:[%s4394_s8 + $0x2c0] sm:$0xff] }
 0x3d1   :  { %2961 = vmatpush2.msra.mxu0 %v2222_v23  ;;  %v3064_v23 = vld [vmem:[%s4394_s8 + $0x240] sm:$0xff] }
 0x3d2   :  { %2962 = vmatprep.subr.mxu0 %v2217_v27  ;;  %v3079_v27 = vld [vmem:[%s4394_s8 + $0x2b8] sm:$0xff] }
 0x3d3   :  { %2963 = vmatpush2.msra.mxu0 %v2216_v33  ;;  %v3063_v33 = vld [vmem:[%s4394_s8 + $0x238] sm:$0xff] }
 0x3d4   :  { %2964 = vmatprep.subr.mxu0 %v2211_v34  ;;  %v2542_v32 = vpop.f32.mrf.mxu0  ;;  %v3078_v34 = vld [vmem:[%s4394_s8 + $0x2b0] sm:$0xff] }
 0x3d5   :  { %2965 = vmatpush2.msra.mxu0 %v2210_v30  ;;  %v2543_v44 = vadd.f32 %v2542_v32, %v2472_v62  ;;  %v3062_v30 = vld [vmem:[%s4394_s8 + $0x230] sm:$0xff]  ;;  %v3077_v62 = vld [vmem:[%s4394_s8 + $0x2a8] sm:$0xff] }
 0x3d6   :  { %2967 = vmatmul.mubr.f32.vlgmr.msra.gmra.mxu0 %v4040_v8  ;;  %v2544_v47 = vpop.f32.mrf.mxu0  ;;  %3478 = vmatprep.subr.mxu0 %v3055_v39  ;;  %v3041_v39 = vld [vmem:[%s4394_s8 + $0x188] sm:$0xff] }
 0x3d7   :  { %v2545_v51 = vadd.f32 %v2544_v47, %v2474_v42  ;;  %3479 = vmatpush3.msra.mxu0 %v3039_v40  ;;  %v2980_v52 = vmul.f32 %v4159_v24, %v2543_v44  ;;  %vm2973_vm13 = vcmp.gt.f32.partialorder %v2543_v44, 0.0  ;;  %v3061_v32 = vld [vmem:[%s4394_s8 + $0x228] sm:$0xff]  ;;  %v3076_v42 = vld [vmem:[%s4394_s8 + $0x2a0] sm:$0xff] }
 0x3d8   :  { %3480 = vmatprep.subr.mxu0 %v3054_v46  ;;  %v3025_v40 = vld [vmem:[%s4394_s8 + $0x108] sm:$0xff]  ;;  %v3024_v46 = vld [vmem:[%s4394_s8 + $0x100] sm:$0xff] }
 0x3d9   :  { %v2981_v8 = vmul.f32 %v4159_v24, %v2545_v51  ;;  %vm2974_vm14 = vcmp.gt.f32.partialorder %v2545_v51, 0.0  ;;  %3481 = vmatpush3.msra.mxu0 %v3038_v48  ;;  %v2986_v58 = vsel %vm2973_vm13, %v2543_v44, %v2980_v52  ;;  %v3040_v44 = vld [vmem:[%s4394_s8 + $0x180] sm:$0xff]  ;;  %v2613_v48 = vpop.f32.mrf.mxu1 }
 0x3da   :  { %3482 = vmatprep.subr.mxu0 %v3053_v50  ;;  %v4323_v47 = vld [vmem:[#allocation19] sm:$0xff]  ;;  %v2319_v50 = vrot.slane %v4147_v17, %v3947_v41 }
 0x3db   :  { %v2987_v55 = vsel %vm2974_vm14, %v2545_v51, %v2981_v8  ;;  %3483 = vmatpush3.msra.mxu0 %v3037_v37  ;;  %v2315_v51 = vrot.slane %v4147_v17, %v3944_v38  ;;  %v2615_v52 = vpop.f32.mrf.mxu1  ;;  %v3059_v38 = vld [vmem:[%s4394_s8 + $0x218] sm:$0xff] }
 0x3dc   :  { %3159 = vmatprep.mubr.f32.mxu1 %v2987_v55  ;;  %3484 = vmatprep.subr.mxu0 %v3052_v53 }
 0x3dd   :  { %3160 = vmatmul.mubr.f32.vlgmr.msra.gmra.mxu1 %v2986_v58  ;;  %3485 = vmatpush3.msra.mxu0 %v3036_v54  ;;  %v2614_v37 = vadd.f32 %v2613_v48, %v2315_v51  ;;  %v2755_v8 = vpop.f32.mrf.mxu1  ;;  %v2616_v54 = vadd.f32 %v2615_v52, %v2319_v50 }
 0x3de   :  { %3486 = vmatprep.subr.mxu0 %v3051_v56  ;;  %3514 = vmatpush3.msra.mxu1 %v3071_v57  ;;  %v3075_v56 = vld [vmem:[%s4394_s8 + $0x298] sm:$0xff] }
 0x3df   :  { %3487 = vmatpush3.msra.mxu0 %v3035_v26  ;;  %3515 = vmatprep.subr.mxu1 %v3086_v59  ;;  %v3074_v26 = vld [vmem:[%s4394_s8 + $0x290] sm:$0xff]  ;;  %v2757_v59 = vpop.f32.mrf.mxu1 }
 0x3e0   :  { %3488 = vmatprep.subr.mxu0 %v3050_v61  ;;  %3516 = vmatpush3.msra.mxu1 %v3070_v0  ;;  %v3058_v61 = vld [vmem:[%s4394_s8 + $0x210] sm:$0xff] }
 0x3e1   :  { %3489 = vmatpush3.msra.mxu0 %v3034_v31  ;;  %3517 = vmatprep.subr.mxu1 %v3085_v45  ;;  %v3073_v31 = vld [vmem:[%s4394_s8 + $0x288] sm:$0xff] }
 0x3e2   :  { %3490 = vmatprep.subr.mxu0 %v3049_v2  ;;  %3518 = vmatpush3.msra.mxu1 %v3069_v3  ;;  %v3057_v2 = vld [vmem:[%s4394_s8 + $0x208] sm:$0xff]  ;;  %v3072_v3 = vld [vmem:[%s4394_s8 + $0x280] sm:$0xff] }
 0x3e3   :  { %3491 = vmatpush3.msra.mxu0 %v3033_v5  ;;  %3519 = vmatprep.subr.mxu1 %v3084_v7  ;;  %v3056_v5 = vld [vmem:[%s4394_s8 + $0x200] sm:$0xff] }
 0x3e4   :  { %3492 = vmatprep.subr.mxu0 %v3048_v9  ;;  %3520 = vmatpush3.msra.mxu1 %v3068_v10 }
 0x3e5   :  { %3493 = vmatpush3.msra.mxu0 %v3032_v36  ;;  %3521 = vmatprep.subr.mxu1 %v3083_v11  ;;  %v2323_v11 = vrot.slane %v4147_v17, %v3976_v43 }
 0x3e6   :  { %3494 = vmatprep.subr.mxu0 %v3047_v12  ;;  %3522 = vmatpush3.msra.mxu1 %v3067_v13  ;;  %v2327_v12 = vrot.slane %v4147_v17, %v3971_v20  ;;  %v3312_v17 = vld [vmem:[%s4396_s10 + $0x18] sm:$0xff] }
 0x3e7   :  { %3495 = vmatpush3.msra.mxu0 %v3031_v14  ;;  %3523 = vmatprep.subr.mxu1 %v3082_v15 }
 0x3e8   :  { %3496 = vmatprep.subr.mxu0 %v3046_v16  ;;  %3524 = vmatpush3.msra.mxu1 %v3066_v49 }
 0x3e9   :  { %3497 = vmatpush3.msra.mxu0 %v3030_v1  ;;  %3525 = vmatprep.subr.mxu1 %v3081_v63 }
 0x3ea   :  { %3498 = vmatprep.subr.mxu0 %v3045_v18  ;;  %3526 = vmatpush3.msra.mxu1 %v3065_v4 }
 0x3eb   :  { %3499 = vmatpush3.msra.mxu0 %v3029_v19  ;;  %3527 = vmatprep.subr.mxu1 %v3080_v21 }
 0x3ec   :  { %3500 = vmatprep.subr.mxu0 %v3044_v22  ;;  %3528 = vmatpush3.msra.mxu1 %v3064_v23 }
 0x3ed   :  { %3501 = vmatpush3.msra.mxu0 %v3028_v25  ;;  %3529 = vmatprep.subr.mxu1 %v3079_v27  ;;  %v3311_v25 = vld [vmem:[%s4396_s10 + $0x10] sm:$0xff]  ;;  %v3309_v27 = vld [vmem:[%s4396_s10] sm:$0xff] }
 0x3ee   :  { %3502 = vmatprep.subr.mxu0 %v3043_v28  ;;  %3530 = vmatpush3.msra.mxu1 %v3063_v33 }
 0x3ef   :  { %3503 = vmatpush3.msra.mxu0 %v3027_v60  ;;  %3531 = vmatprep.subr.mxu1 %v3078_v34 }
 0x3f0   :  { %3504 = vmatprep.subr.mxu0 %v3042_v35  ;;  %3532 = vmatpush3.msra.mxu1 %v3062_v30  ;;  %v3440_v30 = vld [vmem:[#allocation16] ss:$0 sm:$0xff] }
 0x3f1   :  { %3505 = vmatpush3.msra.mxu0 %v3026_v6  ;;  %3533 = vmatprep.subr.mxu1 %v3077_v62 }
 0x3f2   :  { %3506 = vmatprep.subr.mxu0 %v3041_v39  ;;  %3534 = vmatpush3.msra.mxu1 %v3061_v32 }
 0x3f3   :  { %3507 = vmatpush3.msra.mxu0 %v3025_v40  ;;  %3535 = vmatprep.subr.mxu1 %v3076_v42 }
 0x3f4   :  { %3508 = vmatprep.subr.mxu0 %v3040_v44  ;;  %3536 = vmatpush3.msra.mxu1 %v3060_v29  ;;  %v3306_v44 = vstv %s3436_s30 }
 0x3f5   :  { %3509 = vmatpush3.msra.mxu0 %v3024_v46  ;;  %3537 = vmatprep.subr.mxu1 %v3075_v56 }
 0x3f6   :  { %3553 = vmatprep.subr.mxu0 %v4323_v47  ;;  %3538 = vmatpush3.msra.mxu1 %v3059_v38 }
 0x3f7   :  { %3539 = vmatprep.subr.mxu1 %v3074_v26 }
 0x3f8   :  { %3540 = vmatpush3.msra.mxu1 %v3058_v61 }
 0x3f9   :  { %3541 = vmatprep.subr.mxu1 %v3073_v31 }
 0x3fa   :  { %3542 = vmatpush3.msra.mxu1 %v3057_v2 }
 0x3fb   :  { %3543 = vmatprep.subr.mxu1 %v3072_v3 }
 0x3fc   :  { %3544 = vmatpush3.msra.mxu1 %v3056_v5 }
 0x415   :  { %v2684_v53 = vpop.f32.mrf.mxu0 }
 0x416   :  { %v2685_v55 = vadd.f32 %v2684_v53, %v2614_v37 }
 0x417   :  { %v2686_v57 = vpop.f32.mrf.mxu0 }
 0x418   :  { %v2756_v41 = vadd.f32 %v2755_v8, %v2685_v55  ;;  %v2687_v58 = vadd.f32 %v2686_v57, %v2616_v54 }
 0x41a   :  { %v2758_v0 = vadd.f32 %v2757_v59, %v2687_v58  ;;  %v2982_v45 = vmul.f32 %v4159_v24, %v2756_v41  ;;  %vm2975_vm1 = vcmp.gt.f32.partialorder %v2756_v41, 0.0 }
 0x41c   :  { %vm2976_vm15 = vcmp.gt.f32.partialorder %v2758_v0, 0.0  ;;  %v2983_v7 = vmul.f32 %v4159_v24, %v2758_v0  ;;  %v2988_v10 = vsel %vm2975_vm1, %v2756_v41, %v2982_v45 }
 0x41e   :  { %v2989_v9 = vsel %vm2976_vm15, %v2758_v0, %v2983_v7  ;;  %v2897_v15 = vpop.f32.mrf.mxu1 }
 0x41f   :  { %3229 = vmatprep.mubr.f32.mxu0 %v2989_v9 }
 0x420   :  { %3230 = vmatmul.mubr.f32.vlgmr.msra.gmra.mxu0 %v2988_v10  ;;  %v2899_v1 = vpop.f32.mrf.mxu1 }
 0x421   :  { %3554 = vmatpush3.msra.mxu0 %v3312_v17  ;;  %3561 = vmatprep.mubr.msk.f32.mxu0 %vm3821_vm4, %v4323_v47 }
 0x422   :  { %3555 = vmatprep.subr.mxu0 %v4323_v47 }
 0x423   :  { %3556 = vmatpush3.msra.mxu0 %v3311_v25 }
 0x424   :  { %3557 = vmatprep.subr.mxu0 %v4323_v47 }
 0x456   :  { %v2826_v36 = vpop.f32.mrf.mxu0 }
 0x457   :  { %v2827_v14 = vadd.f32 %v2826_v36, %v2323_v11 }
 0x458   :  { %v2828_v13 = vpop.f32.mrf.mxu0 }
 0x459   :  { %v2829_v16 = vadd.f32 %v2828_v13, %v2327_v12  ;;  %v2898_v49 = vadd.f32 %v2897_v15, %v2827_v14 }
 0x45b   :  { %v2900_v4 = vadd.f32 %v2899_v1, %v2829_v16 }
 0x496   :  { %v2968_v63 = vpop.f32.mrf.mxu0 }
 0x497   :  { %v2969_v18 = vadd.f32 %v2968_v63, %v2898_v49 }
 0x498   :  { %v2970_v19 = vpop.f32.mrf.mxu0 }
 0x499   :  { %v2971_v21 = vadd.f32 %v2970_v19, %v2900_v4  ;;  %v2984_v22 = vmul.f32 %v4159_v24, %v2969_v18  ;;  %vm2977_vm2 = vcmp.gt.f32.partialorder %v2969_v18, 0.0 }
 0x49b   :  { %v2985_v23 = vmul.f32 %v4159_v24, %v2971_v21  ;;  %vm2978_vm3 = vcmp.gt.f32.partialorder %v2971_v21, 0.0  ;;  %v2990_v20 = vsel %vm2977_vm2, %v2969_v18, %v2984_v22  ;;  %v3310_v24 = vld [vmem:[%s4396_s10 + $0x8] sm:$0xff]  ;;  %s3822_s10 = smov 32  }
 0x49c   :  { %3558 = vmatpush3.msra.mxu0 %v3310_v24 }
 0x49d   :  { %v2991_v43 = vsel %vm2978_vm3, %v2971_v21, %v2985_v23  ;;  %3559 = vmatprep.subr.mxu0 %v4323_v47  ;;  %v3475_v28 = vpop.f32.mrf.mxu1  ;;  %v3441_v47 = vld [vmem:[#allocation18] ss:$0 sm:$0xff] }
 0x49e   :  { %3299 = vmatprep.mubr.f32.mxu1 %v2991_v43  ;;  %3560 = vmatpush3.msra.mxu0 %v3309_v27 }
 0x49f   :  { %3300 = vmatmul.mubr.f32.vlgmr.msra.gmra.mxu1 %v2990_v20  ;;  %v3476_v60 = vpop.f32.mrf.mxu1 }
 0x4a0   :  { %v3477_v35 = vadd.f32 %v3476_v60, %v3475_v28 }
 0x4a2   :  { %v3162_v39 = vadd.f32 %v3477_v35, %v3440_v30 }
 0x4e0   :  { %v3510_v33 = vpop.f32.mrf.mxu0 }
 0x4e2   :  { %v3511_v34 = vpop.f32.mrf.mxu0 }
 0x4e3   :  { %v3512_v6 = vadd.f32 %v3511_v34, %v3510_v33 }
 0x4e5   :  { %v3232_v40 = vadd.f32 %v3512_v6, %v3162_v39 }
 0x55f   :  { %v3545_v62 = vpop.f32.mrf.mxu1 }
 0x561   :  { %v3546_v32 = vpop.f32.mrf.mxu1 }
 0x562   :  { %v3547_v42 = vadd.f32 %v3546_v32, %v3545_v62 }
 0x564   :  { %v3302_v46 = vadd.f32 %v3547_v42, %v3232_v40 }
 0x566   :  { %vm3305_vm5 = vcmp.gt.f32.partialorder %v3302_v46, 0.0  ;;  %v3307_v48 = vmul.f32 %v3306_v44, %v3302_v46 }
 0x568   :  { %v3308_v51 = vsel %vm3305_vm5, %v3302_v46, %v3307_v48 }
 0x569   :  { %3562 = vmatmul.mubr.msk.f32.vlgmr.msra.gmra.mxu0 %vm224_vm0, %v3308_v51  ;;  %3407 = vst.msk [vmem:[#allocation19] sm:$0xff] %vm224_vm0, %v3308_v51  ;;  %vm3412_vm0 = vcmask 326912  }
 0x629   :  { %v3389_v50 = vpop.f32.mrf.mxu0 }
 0x62a   :  { %v3390_v52 = vadd.f32 %v3441_v47, %v3389_v50 }
 0x62b   :  { %v3563_v37 = vpop.f32.mrf.mxu0 }
 0x62c   :  { %v3394_v8 = vsel %vm3393_vm6, %v3390_v52, -inf }
 0x62d   :  { %3395 = vmax.xlane.f32.xlu0 %v3394_v8 }
 0x6b6   :  { %v3396_v53 = vpop.xlane.xlu0 %3395 }
 0x6b7   :  { %v3397_v29 = vsub.f32 %v3390_v52, %v3396_v53 }
 0x6b9   :  { %v3398_v54 = vmul.f32 1.442695, %v3397_v29 }
 0x6bb   :  { %3580 = vpow2.f32 %v3398_v54 }
 0x6c8   :  { %v3581_v55 = vpop.eup %3580 }
 0x6c9   :  { %v3400_v56 = vsel %vm3393_vm6, %v3581_v55, 0.0 }
 0x6ca   :  { %3401 = vadd.xlane.f32.xlu0 %v3400_v56 }
 0x753   :  { %v3402_v57 = vpop.xlane.xlu0 %3401 }
 0x754   :  { %3582 = vlog2.f32 %v3402_v57 }
 0x761   :  { %v3583_v38 = vpop.eup %3582 }
 0x762   :  { %v3404_v41 = vmul.f32 0.6931472, %v3583_v38 }
 0x764   :  { %v3405_v58 = vsub.f32 %v3397_v29, %v3404_v41 }
 0x766   :  { %3409 = vrot.lane.b32.xlu1 %v3405_v58, %s3822_s10 }
 0x7d8   :  { %v3410_v26 = vpop.permute.xlu1 %3409 }
 0x7d9   :  { %3413 = vst.msk [vmem:[#allocation19] sm:$0xff] %vm3412_vm0, %v3410_v26 }
 0x7da   :  { %3785 = shalt.err (!%p3782_p7)
}
 0x7db   :  { %3423 = dma.vmem_to_hbm [thread:$0]  %s3421_s14, 128, %s4398_s12, [#allocation4]  }
 0x7dc   :  { %3806 = dma.done.wait [#allocation4], 128  }
 0x7dd   :  { %3807 = vsyncadd [#allocation4], 4294967168 }
 0x7de   :  { %3427 = vsyncpa [#allocation3], 1 }
 0x7df   :  { %3428 = vsyncpa [#allocation8], 1 }
 0x7e0   :  { %3429 = vsyncpa [#allocation11], 1 }
 0x7e1   :  { %3430 = vsyncpa [#allocation14], 1 }
 0x7e2   :  { %3431 = vsyncpa [#allocation17], 1 }
 0x7e3   :  { %3432 = vsyncpa [#allocation4], 1 }
 0x7e4   :  { %3433 = vsyncpa [#allocation5], 1 }

// kernel: tpu_custom_call.1
= control target key start
LH: loop header
LB: loop body
LE: loop exit
PB: predicated region body
PF: predicated region fallthrough
CT: control target
= control target key end

     0   :  { %17 = vsyncpa [#allocation3], 0  ;;  %s4386_s0 = inlined_call_operand.hbm [shape: f32[8,32], index: 0, kind: input, shape index: {}]   ;;  %s4387_s1 = inlined_call_operand.hbm [shape: f32[4], index: 1, kind: input, shape index: {}]   ;;  %s4388_s2 = inlined_call_operand.hbm [shape: f32[32,768], index: 2, kind: input, shape index: {}]   ;;  %s4389_s3 = inlined_call_operand.hbm [shape: f32[1,768], index: 3, kind: input, shape index: {}]   ;;  %s4390_s4 = inlined_call_operand.hbm [shape: f32[768,768], index: 4, kind: input, shape index: {}]   ;;  %s4391_s5 = inlined_call_operand.hbm [shape: f32[1,768], index: 5, kind: input, shape index: {}]   ;;  %s4392_s6 = inlined_call_operand.hbm [shape: f32[768,768], index: 6, kind: input, shape index: {}]   ;;  %s4393_s7 = inlined_call_operand.hbm [shape: f32[1,768], index: 7, kind: input, shape index: {}]   ;;  %s4394_s8 = inlined_call_operand.vmem [shape: f32[768,32], index: 8, kind: input, shape index: {}]   ;;  %s4395_s9 = inlined_call_operand.hbm [shape: f32[1,32], index: 9, kind: input, shape index: {}]   ;;  %s4396_s10 = inlined_call_operand.vmem [shape: f32[32,8], index: 10, kind: input, shape index: {}]   ;;  %s4397_s11 = inlined_call_operand.hbm [shape: f32[1,8], index: 11, kind: input, shape index: {}]   ;;  %s4398_s12 = inlined_call_operand.hbm [shape: f32[8,128], index: 12, kind: output, shape index: {}]  }
   0x1   :  { %18 = vsyncpa [#allocation5], 0 }
   0x2   :  { %19 = vsyncpa [#allocation8], 0 }
   0x3   :  { %20 = vsyncpa [#allocation11], 0 }
   0x4   :  { %21 = vsyncpa [#allocation14], 0 }
   0x5   :  { %22 = vsyncpa [#allocation17], 0 }
   0x6   :  { %23 = vsyncpa [#allocation4], 0  ;;  %s3808_s21 = smov [#allocation7]  }
   0x7   :  { %s47_s22 = sshll.u32 %s3808_s21, 4  ;;  %s48_s22 = int_to_ptr.vmem [resolvable:$true] %s47_s22 }
   0x8   :  { %s3594_s23 = scalar_lea.vmem %s48_s22, 3072  ;;  %p3599_p1 = scmp.lt.s32.totalorder %s48_s22, %s48_s22 }
   0x9   :  { %p3595_p0 = scmp.ne.s32.totalorder %s48_s22, %s3594_s23  ;;  %p3600_p2 = scmp.lt.s32.totalorder %s3594_s23, %s3594_s23 }
   0xb   :  { %p3601_p3 = por %p3600_p2, %p3599_p1 }
   0xd   :  { %p3602_p4 = pnand %p3601_p3, %p3595_p0 }
   0xf   :  { %3605 = shalt.err (!%p3602_p4)
}
  0x10   :  { %s3809_s24 = smov 768   ;;  %s3810_s25 = smov 48  }
  0x11   :  { %53 = dma.hbm_to_vmem [thread:$0]  %s4388_s2, 3072, %s48_s22, [#allocation8], %s3809_s24, %s3809_s24, %s3810_s25  }
  0x12   :  { %s3811_s28 = smov [#allocation10]   ;;  %s3812_s30 = smov [#allocation13]  }
  0x13   :  { %s69_s29 = sshll.u32 %s3811_s28, 4  ;;  %s91_s13 = sshll.u32 %s3812_s30, 4  ;;  %s70_s29 = int_to_ptr.vmem [resolvable:$true] %s69_s29  ;;  %s92_s13 = int_to_ptr.vmem [resolvable:$true] %s91_s13 }
  0x14   :  { %s3614_s14 = scalar_lea.vmem %s70_s29, 73728  ;;  %p3619_p6 = scmp.lt.s32.totalorder %s70_s29, %s70_s29 }
  0x15   :  { %p3615_p5 = scmp.ne.s32.totalorder %s70_s29, %s3614_s14  ;;  %p3620_p7 = scmp.lt.s32.totalorder %s3614_s14, %s3614_s14 }
  0x17   :  { %p3621_p8 = por %p3620_p7, %p3619_p6 }
  0x19   :  { %p3622_p9 = pnand %p3621_p8, %p3615_p5 }
  0x1b   :  { %3625 = shalt.err (!%p3622_p9)
}
  0x1c   :  { %75 = dma.hbm_to_vmem [thread:$0]  %s4390_s4, 73728, %s70_s29, [#allocation11], %s3809_s24, %s3809_s24, %s3810_s25  }
  0x1d   :  { %s3634_s17 = scalar_lea.vmem %s92_s13, 73728  ;;  %p3639_p11 = scmp.lt.s32.totalorder %s92_s13, %s92_s13 }
  0x1e   :  { %p3635_p10 = scmp.ne.s32.totalorder %s92_s13, %s3634_s17  ;;  %p3640_p12 = scmp.lt.s32.totalorder %s3634_s17, %s3634_s17 }
  0x20   :  { %p3641_p13 = por %p3640_p12, %p3639_p11 }
  0x22   :  { %p3642_p0 = pnand %p3641_p13, %p3635_p10 }
  0x24   :  { %3645 = shalt.err (!%p3642_p0)
}
  0x25   :  { %97 = dma.hbm_to_vmem [thread:$0]  %s4392_s6, 73728, %s92_s13, [#allocation14], %s3809_s24, %s3809_s24, %s3810_s25  }
  0x26   :  { %s3813_s19 = smov [#allocation16]   ;;  %s3814_s21 = smov [#allocation2]  }
  0x27   :  { %s116_s20 = sshll.u32 %s3813_s19, 4  ;;  %s30_s22 = sshll.u32 %s3814_s21, 4  ;;  %s117_s20 = int_to_ptr.vmem [resolvable:$true] %s116_s20  ;;  %s31_s22 = int_to_ptr.vmem [resolvable:$true] %s30_s22 }
  0x28   :  { %s3654_s23 = scalar_lea.vmem %s117_s20, 16  ;;  %s3658_s4 = scalar_lea.vmem %s117_s20, 32 }
  0x29   :  { %p3655_p1 = scmp.ne.s32.totalorder %s117_s20, %s3654_s23  ;;  %p3659_p2 = scmp.lt.s32.totalorder %s117_s20, %s117_s20 }
  0x2a   :  { %p3660_p3 = scmp.lt.s32.totalorder %s3658_s4, %s3654_s23 }
  0x2c   :  { %p3661_p4 = por %p3660_p3, %p3659_p2 }
  0x2e   :  { %p3662_p5 = pnand %p3661_p4, %p3655_p1 }
  0x30   :  { %3665 = shalt.err (!%p3662_p5)
}
  0x31   :  { %119 = dma.hbm_to_vmem [thread:$0]  %s4395_s9, 16, %s117_s20, [#allocation17]  }
  0x32   :  { %s3674_s28 = scalar_lea.vmem %s31_s22, 128  ;;  %p3679_p7 = scmp.lt.s32.totalorder %s31_s22, %s31_s22 }
  0x33   :  { %p3675_p6 = scmp.ne.s32.totalorder %s31_s22, %s3674_s28  ;;  %p3680_p8 = scmp.lt.s32.totalorder %s3674_s28, %s3674_s28 }
  0x35   :  { %p3681_p9 = por %p3680_p8, %p3679_p7 }
  0x37   :  { %p3682_p10 = pnand %p3681_p9, %p3675_p6 }
  0x39   :  { %3685 = shalt.err (!%p3682_p10)
}
  0x3a   :  { %33 = dma.hbm_to_vmem [thread:$0]  %s4386_s0, 128, %s31_s22, [#allocation3]  }
  0x3b   :  { %s3815_s25 = smov [#allocation6]   ;;  %s3816_s13 = smov [#allocation9]  }
  0x3c   :  { %41 = dma.hbm_to_smem %s4387_s1, 16, %s3815_s25, [#allocation5]  }
  0x3d   :  { %s60_s14 = sshll.u32 %s3816_s13, 4  ;;  %s3817_s9 = smov [#allocation12]   ;;  %s61_s14 = int_to_ptr.vmem [resolvable:$true] %s60_s14 }
  0x3e   :  { %s82_s15 = sshll.u32 %s3817_s9, 4  ;;  %s3702_s16 = scalar_lea.vmem %s61_s14, 96  ;;  %s83_s15 = int_to_ptr.vmem [resolvable:$true] %s82_s15 }
  0x3f   :  { %p3703_p11 = scmp.ne.s32.totalorder %s61_s14, %s3702_s16  ;;  %p3707_p12 = scmp.lt.s32.totalorder %s61_s14, %s61_s14 }
  0x40   :  { %p3708_p13 = scmp.lt.s32.totalorder %s3702_s16, %s3702_s16 }
  0x42   :  { %p3709_p0 = por %p3708_p13, %p3707_p12 }
  0x44   :  { %p3710_p1 = pnand %p3709_p0, %p3703_p11 }
  0x46   :  { %3713 = shalt.err (!%p3710_p1)
}
  0x47   :  { %63 = dma.hbm_to_vmem [thread:$0]  %s4389_s3, 96, %s61_s14, [#allocation8]  }
  0x48   :  { %s3722_s2 = scalar_lea.vmem %s83_s15, 96  ;;  %p3727_p3 = scmp.lt.s32.totalorder %s83_s15, %s83_s15 }
  0x49   :  { %p3723_p2 = scmp.ne.s32.totalorder %s83_s15, %s3722_s2  ;;  %p3728_p4 = scmp.lt.s32.totalorder %s3722_s2, %s3722_s2 }
  0x4b   :  { %p3729_p5 = por %p3728_p4, %p3727_p3 }
  0x4d   :  { %p3730_p6 = pnand %p3729_p5, %p3723_p2 }
  0x4f   :  { %3733 = shalt.err (!%p3730_p6)
}
  0x50   :  { %85 = dma.hbm_to_vmem [thread:$0]  %s4391_s5, 96, %s83_s15, [#allocation11]  }
  0x51   :  { %s3818_s19 = smov [#allocation15]   ;;  %s3819_s21 = smov [#allocation18]  }
  0x52   :  { %s104_s20 = sshll.u32 %s3818_s19, 4  ;;  %s128_s22 = sshll.u32 %s3819_s21, 4  ;;  %s105_s20 = int_to_ptr.vmem [resolvable:$true] %s104_s20  ;;  %s129_s22 = int_to_ptr.vmem [resolvable:$true] %s128_s22 }
  0x53   :  { %s3742_s23 = scalar_lea.vmem %s105_s20, 96  ;;  %p3747_p8 = scmp.lt.s32.totalorder %s105_s20, %s105_s20 }
  0x54   :  { %p3743_p7 = scmp.ne.s32.totalorder %s105_s20, %s3742_s23  ;;  %p3748_p9 = scmp.lt.s32.totalorder %s3742_s23, %s3742_s23 }
  0x56   :  { %p3749_p10 = por %p3748_p9, %p3747_p8 }
  0x58   :  { %p3750_p11 = pnand %p3749_p10, %p3743_p7 }
  0x5a   :  { %3753 = shalt.err (!%p3750_p11)
}
  0x5b   :  { %107 = dma.hbm_to_vmem [thread:$0]  %s4393_s7, 96, %s105_s20, [#allocation14]  }
  0x5c   :  { %s3762_s26 = scalar_lea.vmem %s129_s22, 16  ;;  %s3766_s5 = scalar_lea.vmem %s129_s22, 32 }
  0x5d   :  { %p3763_p12 = scmp.ne.s32.totalorder %s129_s22, %s3762_s26  ;;  %p3767_p13 = scmp.lt.s32.totalorder %s129_s22, %s129_s22 }
  0x5e   :  { %p3768_p0 = scmp.lt.s32.totalorder %s3766_s5, %s3762_s26 }
  0x60   :  { %p3769_p1 = por %p3768_p0, %p3767_p13 }
  0x62   :  { %p3770_p2 = pnand %p3769_p1, %p3763_p12 }
  0x64   :  { %3773 = shalt.err (!%p3770_p2)
}
  0x65   :  { %131 = dma.hbm_to_vmem [thread:$0]  %s4397_s11, 16, %s129_s22, [#allocation17]  }
  0x66   :  { %3794 = dma.done.wait [#allocation3], 128  }
  0x67   :  { %3795 = vsyncadd [#allocation3], 4294967168 }
  0x68   :  { %3796 = dma.done.wait [#allocation5], 16  }
  0x69   :  { %3797 = vsyncadd [#allocation5], 4294967280 }
  0x6a   :  { %3798 = dma.done.wait [#allocation8], 3168  }
  0x6b   :  { %3799 = vsyncadd [#allocation8], 4294964128 }
  0x6c   :  { %3800 = dma.done.wait [#allocation11], 73824  }
  0x6d   :  { %3801 = vsyncadd [#allocation11], 4294893472 }
  0x6e   :  { %3802 = dma.done.wait [#allocation14], 73824  }
  0x6f   :  { %3803 = vsyncadd [#allocation14], 4294893472 }
  0x70   :  { %3804 = dma.done.wait [#allocation17], 32  }
  0x71   :  { %3805 = vsyncadd [#allocation17], 4294967264 }
  0x72   :  { %162 = sfence }
  0x73   :  { %v187_v0 = vld [vmem:[#allocation7 + $0x98] sm:$0xff]  ;;  %v186_v1 = vld [vmem:[#allocation7 + $0x90] sm:$0xff]  ;;  %v181_v2 = vld [vmem:[#allocation7 + $0x68] sm:$0xff]  ;;  %v3820_v4 = vmov 0.0   ;;  %vm224_vm0 = vcmask 261120   ;;  %s163_s7 = sld [smem:[#allocation6]] }
  0x74   :  { %252 = vmatprep.subr.mxu0 %v187_v0  ;;  %v180_v3 = vld [vmem:[#allocation7 + $0x60] sm:$0xff]  ;;  %292 = vmatprep.mubr.f32.mxu0 %v3820_v4  ;;  %3406 = vst [vmem:[#allocation19] sm:$0xff] %v3820_v4  ;;  %v175_v5 = vld [vmem:[#allocation7 + $0x38] sm:$0xff]  ;;  %v174_v6 = vld [vmem:[#allocation7 + $0x30] sm:$0xff]  ;;  %s4002_s11 = sld [smem:[#allocation6 + $0x1]]  ;;  %s3823_s13 = smov [#allocation19]  }
  0x75   :  { %253 = vmatpush1.msra.mxu0 %v186_v1  ;;  %v169_v7 = vld [vmem:[#allocation7 + $0x8] sm:$0xff]  ;;  %v168_v8 = vld [vmem:[#allocation7] sm:$0xff]  ;;  %v3919_v9 = vld [vmem:[#allocation2] sm:$0xff]  ;;  %s3435_s15 = sld [smem:[#allocation6 + $0x2]]  ;;  %s3420_s14 = sshll.u32 %s3823_s13, 4  ;;  %s3421_s14 = int_to_ptr.vmem [resolvable:$true] %s3420_s14 }
  0x76   :  { %254 = vmatprep.subr.mxu0 %v181_v2  ;;  %v189_v10 = vld [vmem:[#allocation7 + $0xa8] sm:$0xff]  ;;  %v188_v11 = vld [vmem:[#allocation7 + $0xa0] sm:$0xff]  ;;  %v183_v12 = vld [vmem:[#allocation7 + $0x78] sm:$0xff]  ;;  %s3436_s30 = sld [smem:[#allocation6 + $0x3]]  ;;  %s3774_s9 = scalar_lea.vmem %s3421_s14, 128 }
  0x77   :  { %255 = vmatpush1.msra.mxu0 %v180_v3  ;;  %v551_v13 = vld [vmem:[#allocation10 + $0x2d8] sm:$0xff]  ;;  %v182_v14 = vld [vmem:[#allocation7 + $0x70] sm:$0xff]  ;;  %v177_v16 = vld [vmem:[#allocation7 + $0x48] sm:$0xff]  ;;  %p3775_p3 = scmp.ne.s32.totalorder %s3421_s14, %s3774_s9  ;;  %p3779_p4 = scmp.lt.s32.totalorder %s3421_s14, %s3421_s14 }
  0x78   :  { %256 = vmatprep.subr.mxu0 %v175_v5  ;;  %v550_v15 = vld [vmem:[#allocation10 + $0x2d0] sm:$0xff]  ;;  %v545_v17 = vld [vmem:[#allocation10 + $0x2a8] sm:$0xff]  ;;  %v176_v18 = vld [vmem:[#allocation7 + $0x40] sm:$0xff]  ;;  %1068 = vmatprep.subr.mxu1 %v551_v13  ;;  %p3780_p5 = scmp.lt.s32.totalorder %s3774_s9, %s3774_s9 }
  0x79   :  { %257 = vmatpush1.msra.mxu0 %v174_v6  ;;  %v544_v19 = vld [vmem:[#allocation10 + $0x2a0] sm:$0xff]  ;;  %v171_v20 = vld [vmem:[#allocation7 + $0x18] sm:$0xff]  ;;  %1069 = vmatpush1.msra.mxu1 %v550_v15  ;;  %v170_v22 = vld [vmem:[#allocation7 + $0x10] sm:$0xff] }
  0x7a   :  { %258 = vmatprep.subr.mxu0 %v169_v7  ;;  %v539_v21 = vld [vmem:[#allocation10 + $0x278] sm:$0xff]  ;;  %1070 = vmatprep.subr.mxu1 %v545_v17  ;;  %v538_v23 = vld [vmem:[#allocation10 + $0x270] sm:$0xff]  ;;  %v185_v26 = vld [vmem:[#allocation7 + $0x88] sm:$0xff]  ;;  %p3781_p6 = por %p3780_p5, %p3779_p4 }
  0x7b   :  { %259 = vmatpush1.msra.mxu0 %v168_v8  ;;  %v191_v24 = vld [vmem:[#allocation7 + $0xb8] sm:$0xff]  ;;  %1071 = vmatpush1.msra.mxu1 %v544_v19  ;;  %v190_v25 = vld [vmem:[#allocation7 + $0xb0] sm:$0xff]  ;;  %v184_v28 = vld [vmem:[#allocation7 + $0x80] sm:$0xff] }
  0x7c   :  { %3437 = vmatmul.mubr.msk.f32.vlgmr.msra.gmra.mxu0 %vm224_vm0, %v3919_v9  ;;  %323 = vmatprep.subr.mxu0 %v189_v10  ;;  %v533_v27 = vld [vmem:[#allocation10 + $0x248] sm:$0xff]  ;;  %v532_v29 = vld [vmem:[#allocation10 + $0x240] sm:$0xff]  ;;  %v179_v30 = vld [vmem:[#allocation7 + $0x58] sm:$0xff]  ;;  %p3782_p7 = pnand %p3781_p6, %p3775_p3 }
  0x7d   :  { %324 = vmatpush1.msra.mxu0 %v188_v11  ;;  %363 = vmatprep.mubr.f32.mxu0 %v3820_v4  ;;  %v527_v31 = vld [vmem:[#allocation10 + $0x218] sm:$0xff]  ;;  %v178_v32 = vld [vmem:[#allocation7 + $0x50] sm:$0xff]  ;;  %v173_v34 = vld [vmem:[#allocation7 + $0x28] sm:$0xff] }
  0x7e   :  { %325 = vmatprep.subr.mxu0 %v183_v12  ;;  %1072 = vmatprep.subr.mxu1 %v539_v21  ;;  %v526_v33 = vld [vmem:[#allocation10 + $0x210] sm:$0xff]  ;;  %v521_v35 = vld [vmem:[#allocation10 + $0x1e8] sm:$0xff]  ;;  %v172_v36 = vld [vmem:[#allocation7 + $0x20] sm:$0xff] }
  0x7f   :  { %326 = vmatpush1.msra.mxu0 %v182_v14  ;;  %1073 = vmatpush1.msra.mxu1 %v538_v23  ;;  %v520_v37 = vld [vmem:[#allocation10 + $0x1e0] sm:$0xff]  ;;  %v743_v38 = vld [vmem:[#allocation10 + $0x8d8] sm:$0xff]  ;;  %v742_v39 = vld [vmem:[#allocation10 + $0x8d0] sm:$0xff] }
  0x80   :  { %327 = vmatprep.subr.mxu0 %v177_v16  ;;  %1074 = vmatprep.subr.mxu1 %v533_v27  ;;  %v515_v40 = vld [vmem:[#allocation10 + $0x1b8] sm:$0xff]  ;;  %v737_v41 = vld [vmem:[#allocation10 + $0x8a8] sm:$0xff]  ;;  %v514_v42 = vld [vmem:[#allocation10 + $0x1b0] sm:$0xff] }
  0x81   :  { %328 = vmatpush1.msra.mxu0 %v176_v18  ;;  %1075 = vmatpush1.msra.mxu1 %v532_v29  ;;  %v736_v43 = vld [vmem:[#allocation10 + $0x8a0] sm:$0xff]  ;;  %v509_v44 = vld [vmem:[#allocation10 + $0x188] sm:$0xff]  ;;  %v731_v45 = vld [vmem:[#allocation10 + $0x878] sm:$0xff] }
  0x82   :  { %329 = vmatprep.subr.mxu0 %v171_v20  ;;  %1076 = vmatprep.subr.mxu1 %v527_v31  ;;  %v508_v46 = vld [vmem:[#allocation10 + $0x180] sm:$0xff]  ;;  %v730_v47 = vld [vmem:[#allocation10 + $0x870] sm:$0xff]  ;;  %v503_v48 = vld [vmem:[#allocation10 + $0x158] sm:$0xff] }
  0x83   :  { %330 = vmatpush1.msra.mxu0 %v170_v22  ;;  %1077 = vmatpush1.msra.mxu1 %v526_v33  ;;  %v725_v49 = vld [vmem:[#allocation10 + $0x848] sm:$0xff]  ;;  %v502_v50 = vld [vmem:[#allocation10 + $0x150] sm:$0xff]  ;;  %v724_v51 = vld [vmem:[#allocation10 + $0x840] sm:$0xff] }
  0x84   :  { %3438 = vmatmul.mubr.msk.f32.vlgmr.msra.gmra.mxu0 %vm224_vm0, %v3919_v9  ;;  %394 = vmatprep.subr.mxu0 %v191_v24  ;;  %v497_v52 = vld [vmem:[#allocation10 + $0x128] sm:$0xff]  ;;  %v719_v53 = vld [vmem:[#allocation10 + $0x818] sm:$0xff]  ;;  %v496_v54 = vld [vmem:[#allocation10 + $0x120] sm:$0xff] }
  0x85   :  { %395 = vmatpush1.msra.mxu0 %v190_v25  ;;  %434 = vmatprep.mubr.f32.mxu0 %v3820_v4  ;;  %v718_v55 = vld [vmem:[#allocation10 + $0x810] sm:$0xff]  ;;  %v491_v56 = vld [vmem:[#allocation10 + $0xf8] sm:$0xff]  ;;  %v713_v57 = vld [vmem:[#allocation10 + $0x7e8] sm:$0xff] }
  0x86   :  { %396 = vmatprep.subr.mxu0 %v185_v26  ;;  %1078 = vmatprep.subr.mxu1 %v521_v35  ;;  %v490_v58 = vld [vmem:[#allocation10 + $0xf0] sm:$0xff]  ;;  %v712_v59 = vld [vmem:[#allocation10 + $0x7e0] sm:$0xff]  ;;  %v485_v60 = vld [vmem:[#allocation10 + $0xc8] sm:$0xff] }
  0x87   :  { %397 = vmatpush1.msra.mxu0 %v184_v28  ;;  %1079 = vmatpush1.msra.mxu1 %v520_v37  ;;  %v707_v61 = vld [vmem:[#allocation10 + $0x7b8] sm:$0xff]  ;;  %v484_v62 = vld [vmem:[#allocation10 + $0xc0] sm:$0xff]  ;;  %v706_v63 = vld [vmem:[#allocation10 + $0x7b0] sm:$0xff] }
  0x88   :  { %398 = vmatprep.subr.mxu0 %v179_v30  ;;  %1080 = vmatprep.subr.mxu1 %v515_v40  ;;  %v479_v0 = vld [vmem:[#allocation10 + $0x98] sm:$0xff]  ;;  %v701_v1 = vld [vmem:[#allocation10 + $0x788] sm:$0xff]  ;;  %v478_v2 = vld [vmem:[#allocation10 + $0x90] sm:$0xff] }
  0x89   :  { %399 = vmatpush1.msra.mxu0 %v178_v32  ;;  %1081 = vmatpush1.msra.mxu1 %v514_v42  ;;  %v700_v3 = vld [vmem:[#allocation10 + $0x780] sm:$0xff]  ;;  %v473_v4 = vld [vmem:[#allocation10 + $0x68] sm:$0xff]  ;;  %v695_v5 = vld [vmem:[#allocation10 + $0x758] sm:$0xff] }
  0x8a   :  { %400 = vmatprep.subr.mxu0 %v173_v34  ;;  %1082 = vmatprep.subr.mxu1 %v509_v44  ;;  %v472_v6 = vld [vmem:[#allocation10 + $0x60] sm:$0xff]  ;;  %v694_v7 = vld [vmem:[#allocation10 + $0x750] sm:$0xff]  ;;  %v467_v8 = vld [vmem:[#allocation10 + $0x38] sm:$0xff] }
  0x8b   :  { %401 = vmatpush1.msra.mxu0 %v172_v36  ;;  %1083 = vmatpush1.msra.mxu1 %v508_v46  ;;  %v466_v10 = vld [vmem:[#allocation10 + $0x30] sm:$0xff]  ;;  %v688_v11 = vld [vmem:[#allocation10 + $0x720] sm:$0xff]  ;;  %v461_v12 = vld [vmem:[#allocation10 + $0x8] sm:$0xff] }
  0x8c   :  { %3439 = vmatmul.mubr.msk.f32.vlgmr.msra.gmra.mxu0 %vm224_vm0, %v3919_v9  ;;  %1139 = vmatprep.subr.mxu0 %v743_v38  ;;  %v689_v9 = vld [vmem:[#allocation10 + $0x728] sm:$0xff]  ;;  %v683_v13 = vld [vmem:[#allocation10 + $0x6f8] sm:$0xff]  ;;  %v460_v14 = vld [vmem:[#allocation10] sm:$0xff] }
  0x8d   :  { %1140 = vmatpush1.msra.mxu0 %v742_v39  ;;  %1084 = vmatprep.subr.mxu1 %v503_v48  ;;  %v682_v15 = vld [vmem:[#allocation10 + $0x6f0] sm:$0xff]  ;;  %v647_v16 = vld [vmem:[#allocation10 + $0x5d8] sm:$0xff]  ;;  %v677_v17 = vld [vmem:[#allocation10 + $0x6c8] sm:$0xff] }
  0x8e   :  { %1141 = vmatprep.subr.mxu0 %v737_v41  ;;  %1085 = vmatpush1.msra.mxu1 %v502_v50  ;;  %v646_v18 = vld [vmem:[#allocation10 + $0x5d0] sm:$0xff]  ;;  %v676_v19 = vld [vmem:[#allocation10 + $0x6c0] sm:$0xff]  ;;  %v641_v20 = vld [vmem:[#allocation10 + $0x5a8] sm:$0xff] }
  0x8f   :  { %1142 = vmatpush1.msra.mxu0 %v736_v43  ;;  %1086 = vmatprep.subr.mxu1 %v497_v52  ;;  %v671_v21 = vld [vmem:[#allocation10 + $0x698] sm:$0xff]  ;;  %v640_v22 = vld [vmem:[#allocation10 + $0x5a0] sm:$0xff]  ;;  %v670_v23 = vld [vmem:[#allocation10 + $0x690] sm:$0xff] }
  0x90   :  { %1143 = vmatprep.subr.mxu0 %v731_v45  ;;  %1087 = vmatpush1.msra.mxu1 %v496_v54  ;;  %v635_v24 = vld [vmem:[#allocation10 + $0x578] sm:$0xff]  ;;  %v665_v25 = vld [vmem:[#allocation10 + $0x668] sm:$0xff]  ;;  %v634_v26 = vld [vmem:[#allocation10 + $0x570] sm:$0xff] }
  0x91   :  { %1144 = vmatpush1.msra.mxu0 %v730_v47  ;;  %1088 = vmatprep.subr.mxu1 %v491_v56  ;;  %v664_v27 = vld [vmem:[#allocation10 + $0x660] sm:$0xff]  ;;  %v629_v28 = vld [vmem:[#allocation10 + $0x548] sm:$0xff]  ;;  %v659_v29 = vld [vmem:[#allocation10 + $0x638] sm:$0xff] }
  0x92   :  { %1145 = vmatprep.subr.mxu0 %v725_v49  ;;  %1089 = vmatpush1.msra.mxu1 %v490_v58  ;;  %v628_v30 = vld [vmem:[#allocation10 + $0x540] sm:$0xff]  ;;  %v658_v31 = vld [vmem:[#allocation10 + $0x630] sm:$0xff]  ;;  %v623_v32 = vld [vmem:[#allocation10 + $0x518] sm:$0xff] }
  0x93   :  { %1146 = vmatpush1.msra.mxu0 %v724_v51  ;;  %1090 = vmatprep.subr.mxu1 %v485_v60  ;;  %v653_v33 = vld [vmem:[#allocation10 + $0x608] sm:$0xff]  ;;  %v622_v34 = vld [vmem:[#allocation10 + $0x510] sm:$0xff]  ;;  %v652_v35 = vld [vmem:[#allocation10 + $0x600] sm:$0xff] }
  0x94   :  { %1147 = vmatprep.subr.mxu0 %v719_v53  ;;  %1091 = vmatpush1.msra.mxu1 %v484_v62  ;;  %v617_v36 = vld [vmem:[#allocation10 + $0x4e8] sm:$0xff]  ;;  %v839_v37 = vld [vmem:[#allocation10 + $0xbd8] sm:$0xff]  ;;  %v616_v38 = vld [vmem:[#allocation10 + $0x4e0] sm:$0xff] }
  0x95   :  { %1148 = vmatpush1.msra.mxu0 %v718_v55  ;;  %1092 = vmatprep.subr.mxu1 %v479_v0  ;;  %v838_v39 = vld [vmem:[#allocation10 + $0xbd0] sm:$0xff]  ;;  %v611_v40 = vld [vmem:[#allocation10 + $0x4b8] sm:$0xff]  ;;  %v833_v41 = vld [vmem:[#allocation10 + $0xba8] sm:$0xff] }
  0x96   :  { %1149 = vmatprep.subr.mxu0 %v713_v57  ;;  %1093 = vmatpush1.msra.mxu1 %v478_v2  ;;  %v610_v42 = vld [vmem:[#allocation10 + $0x4b0] sm:$0xff]  ;;  %v832_v43 = vld [vmem:[#allocation10 + $0xba0] sm:$0xff]  ;;  %v605_v44 = vld [vmem:[#allocation10 + $0x488] sm:$0xff] }
  0x97   :  { %1150 = vmatpush1.msra.mxu0 %v712_v59  ;;  %1094 = vmatprep.subr.mxu1 %v473_v4  ;;  %v827_v45 = vld [vmem:[#allocation10 + $0xb78] sm:$0xff]  ;;  %v604_v46 = vld [vmem:[#allocation10 + $0x480] sm:$0xff]  ;;  %v826_v47 = vld [vmem:[#allocation10 + $0xb70] sm:$0xff] }
  0x98   :  { %1151 = vmatprep.subr.mxu0 %v707_v61  ;;  %1095 = vmatpush1.msra.mxu1 %v472_v6  ;;  %v599_v48 = vld [vmem:[#allocation10 + $0x458] sm:$0xff]  ;;  %v821_v49 = vld [vmem:[#allocation10 + $0xb48] sm:$0xff]  ;;  %v598_v50 = vld [vmem:[#allocation10 + $0x450] sm:$0xff] }
  0x99   :  { %1152 = vmatpush1.msra.mxu0 %v706_v63  ;;  %1096 = vmatprep.subr.mxu1 %v467_v8  ;;  %v820_v51 = vld [vmem:[#allocation10 + $0xb40] sm:$0xff]  ;;  %v593_v52 = vld [vmem:[#allocation10 + $0x428] sm:$0xff]  ;;  %v815_v53 = vld [vmem:[#allocation10 + $0xb18] sm:$0xff] }
  0x9a   :  { %1153 = vmatprep.subr.mxu0 %v701_v1  ;;  %1097 = vmatpush1.msra.mxu1 %v466_v10  ;;  %v592_v54 = vld [vmem:[#allocation10 + $0x420] sm:$0xff]  ;;  %v814_v55 = vld [vmem:[#allocation10 + $0xb10] sm:$0xff]  ;;  %v587_v56 = vld [vmem:[#allocation10 + $0x3f8] sm:$0xff] }
  0x9b   :  { %1154 = vmatpush1.msra.mxu0 %v700_v3  ;;  %1098 = vmatprep.subr.mxu1 %v461_v12  ;;  %v809_v57 = vld [vmem:[#allocation10 + $0xae8] sm:$0xff]  ;;  %v586_v58 = vld [vmem:[#allocation10 + $0x3f0] sm:$0xff]  ;;  %v808_v59 = vld [vmem:[#allocation10 + $0xae0] sm:$0xff] }
  0x9c   :  { %1155 = vmatprep.subr.mxu0 %v695_v5  ;;  %1099 = vmatpush1.msra.mxu1 %v460_v14  ;;  %v581_v60 = vld [vmem:[#allocation10 + $0x3c8] sm:$0xff]  ;;  %v803_v61 = vld [vmem:[#allocation10 + $0xab8] sm:$0xff]  ;;  %v580_v62 = vld [vmem:[#allocation10 + $0x3c0] sm:$0xff] }
  0x9d   :  { %1156 = vmatpush1.msra.mxu0 %v694_v7  ;;  %1100 = vmatprep.subr.mxu1 %v647_v16  ;;  %v802_v63 = vld [vmem:[#allocation10 + $0xab0] sm:$0xff]  ;;  %v797_v0 = vld [vmem:[#allocation10 + $0xa88] sm:$0xff]  ;;  %v796_v1 = vld [vmem:[#allocation10 + $0xa80] sm:$0xff] }
  0x9e   :  { %1157 = vmatprep.subr.mxu0 %v689_v9  ;;  %1101 = vmatpush2.msra.mxu1 %v646_v18  ;;  %v575_v2 = vld [vmem:[#allocation10 + $0x398] sm:$0xff]  ;;  %v574_v4 = vld [vmem:[#allocation10 + $0x390] sm:$0xff]  ;;  %v569_v6 = vld [vmem:[#allocation10 + $0x368] sm:$0xff] }
  0x9f   :  { %1158 = vmatpush1.msra.mxu0 %v688_v11  ;;  %1102 = vmatprep.subr.mxu1 %v641_v20  ;;  %v791_v3 = vld [vmem:[#allocation10 + $0xa58] sm:$0xff]  ;;  %v790_v5 = vld [vmem:[#allocation10 + $0xa50] sm:$0xff]  ;;  %v785_v7 = vld [vmem:[#allocation10 + $0xa28] sm:$0xff] }
  0xa0   :  { %1159 = vmatprep.subr.mxu0 %v683_v13  ;;  %1103 = vmatpush2.msra.mxu1 %v640_v22  ;;  %v568_v8 = vld [vmem:[#allocation10 + $0x360] sm:$0xff]  ;;  %v563_v10 = vld [vmem:[#allocation10 + $0x338] sm:$0xff]  ;;  %v562_v12 = vld [vmem:[#allocation10 + $0x330] sm:$0xff] }
  0xa1   :  { %1160 = vmatpush1.msra.mxu0 %v682_v15  ;;  %1104 = vmatprep.subr.mxu1 %v635_v24  ;;  %v784_v9 = vld [vmem:[#allocation10 + $0xa20] sm:$0xff]  ;;  %v779_v11 = vld [vmem:[#allocation10 + $0x9f8] sm:$0xff]  ;;  %v778_v13 = vld [vmem:[#allocation10 + $0x9f0] sm:$0xff] }
  0xa2   :  { %1161 = vmatprep.subr.mxu0 %v677_v17  ;;  %1105 = vmatpush2.msra.mxu1 %v634_v26  ;;  %v557_v14 = vld [vmem:[#allocation10 + $0x308] sm:$0xff]  ;;  %v556_v16 = vld [vmem:[#allocation10 + $0x300] sm:$0xff]  ;;  %v767_v18 = vld [vmem:[#allocation10 + $0x998] sm:$0xff] }
  0xa3   :  { %1162 = vmatpush1.msra.mxu0 %v676_v19  ;;  %1106 = vmatprep.subr.mxu1 %v629_v28  ;;  %v773_v15 = vld [vmem:[#allocation10 + $0x9c8] sm:$0xff]  ;;  %v772_v17 = vld [vmem:[#allocation10 + $0x9c0] sm:$0xff]  ;;  %v935_v19 = vld [vmem:[#allocation10 + $0xed8] sm:$0xff]  ;;  %v194_v28 = vlaneseq }
  0xa4   :  { %1163 = vmatprep.subr.mxu0 %v671_v21  ;;  %1107 = vmatpush2.msra.mxu1 %v628_v30  ;;  %v766_v20 = vld [vmem:[#allocation10 + $0x990] sm:$0xff]  ;;  %v761_v21 = vld [vmem:[#allocation10 + $0x968] sm:$0xff]  ;;  %v760_v22 = vld [vmem:[#allocation10 + $0x960] sm:$0xff] }
  0xa5   :  { %1164 = vmatpush1.msra.mxu0 %v670_v23  ;;  %1108 = vmatprep.subr.mxu1 %v623_v32  ;;  %v755_v23 = vld [vmem:[#allocation10 + $0x938] sm:$0xff]  ;;  %v754_v24 = vld [vmem:[#allocation10 + $0x930] sm:$0xff]  ;;  %v748_v26 = vld [vmem:[#allocation10 + $0x900] sm:$0xff] }
  0xa6   :  { %1165 = vmatprep.subr.mxu0 %v665_v25  ;;  %1109 = vmatpush2.msra.mxu1 %v622_v34  ;;  %v749_v25 = vld [vmem:[#allocation10 + $0x908] sm:$0xff] }
  0xa7   :  { %1166 = vmatpush1.msra.mxu0 %v664_v27  ;;  %1110 = vmatprep.subr.mxu1 %v617_v36  ;;  %v553_v27 = vld [vmem:[#allocation10 + $0x2e8] sm:$0xff] }
  0xa8   :  { %1167 = vmatprep.subr.mxu0 %v659_v29  ;;  %1111 = vmatpush2.msra.mxu1 %v616_v38  ;;  %v3927_v29 = vshrl.u32 %v194_v28, 7  ;;  %v868_v28 = vld [vmem:[#allocation10 + $0xcc0] sm:$0xff] }
  0xa9   :  { %1168 = vmatpush1.msra.mxu0 %v658_v31  ;;  %1112 = vmatprep.subr.mxu1 %v611_v40  ;;  %v3932_v31 = vld [vmem:[#allocation9] sm:$0x3f] }
  0xaa   :  { %1169 = vmatprep.subr.mxu0 %v653_v33  ;;  %1113 = vmatpush2.msra.mxu1 %v610_v42  ;;  %v3930_v30 = vsub.s32 0, %v3927_v29  ;;  %v3935_v32 = vsub.s32 1, %v3927_v29  ;;  %v3944_v38 = vsub.s32 2, %v3927_v29 }
  0xab   :  { %1170 = vmatpush1.msra.mxu0 %v652_v35  ;;  %1114 = vmatprep.subr.mxu1 %v605_v44 }
  0xac   :  { %1171 = vmatprep.subr.mxu0 %v839_v37  ;;  %1115 = vmatpush2.msra.mxu1 %v604_v46  ;;  %v197_v33 = vrot.slane %v3932_v31, %v3930_v30  ;;  %v201_v34 = vrot.slane %v3932_v31, %v3935_v32  ;;  %v3941_v37 = vstv %s163_s7  ;;  %v205_v44 = vrot.slane %v3932_v31, %v3944_v38  ;;  %v934_v46 = vld [vmem:[#allocation10 + $0xed0] sm:$0xff] }
  0xad   :  { %1172 = vmatpush2.msra.mxu0 %v838_v39  ;;  %1116 = vmatprep.subr.mxu1 %v599_v48 }
  0xae   :  { %1173 = vmatprep.subr.mxu0 %v833_v41  ;;  %1117 = vmatpush2.msra.mxu1 %v598_v50  ;;  %v3947_v41 = vsub.s32 3, %v3927_v29  ;;  %v929_v50 = vld [vmem:[#allocation10 + $0xea8] sm:$0xff] }
  0xaf   :  { %1174 = vmatpush2.msra.mxu0 %v832_v43  ;;  %1118 = vmatprep.subr.mxu1 %v593_v52  ;;  %v928_v52 = vld [vmem:[#allocation10 + $0xea0] sm:$0xff] }
  0xb0   :  { %1175 = vmatprep.subr.mxu0 %v827_v45  ;;  %1119 = vmatpush2.msra.mxu1 %v592_v54  ;;  %v923_v54 = vld [vmem:[#allocation10 + $0xe78] sm:$0xff] }
  0xb1   :  { %1176 = vmatpush2.msra.mxu0 %v826_v47  ;;  %1120 = vmatprep.subr.mxu1 %v587_v56  ;;  %v209_v47 = vrot.slane %v3932_v31, %v3947_v41 }
  0xb2   :  { %1177 = vmatprep.subr.mxu0 %v821_v49  ;;  %1121 = vmatpush2.msra.mxu1 %v586_v58  ;;  %v917_v58 = vld [vmem:[#allocation10 + $0xe48] sm:$0xff] }
  0xb3   :  { %1178 = vmatpush2.msra.mxu0 %v820_v51  ;;  %1122 = vmatprep.subr.mxu1 %v581_v60  ;;  %v916_v60 = vld [vmem:[#allocation10 + $0xe40] sm:$0xff] }
  0xb4   :  { %1179 = vmatprep.subr.mxu0 %v815_v53  ;;  %1123 = vmatpush2.msra.mxu1 %v580_v62 }
  0xb5   :  { %1180 = vmatpush2.msra.mxu0 %v814_v55  ;;  %1124 = vmatprep.subr.mxu1 %v575_v2  ;;  %v905_v2 = vld [vmem:[#allocation10 + $0xde8] sm:$0xff] }
  0xb6   :  { %1181 = vmatprep.subr.mxu0 %v809_v57  ;;  %1125 = vmatpush2.msra.mxu1 %v574_v4  ;;  %v922_v57 = vld [vmem:[#allocation10 + $0xe70] sm:$0xff]  ;;  %v904_v4 = vld [vmem:[#allocation10 + $0xde0] sm:$0xff] }
  0xb7   :  { %1182 = vmatpush2.msra.mxu0 %v808_v59  ;;  %1126 = vmatprep.subr.mxu1 %v569_v6  ;;  %v899_v6 = vld [vmem:[#allocation10 + $0xdb8] sm:$0xff] }
  0xb8   :  { %1183 = vmatprep.subr.mxu0 %v803_v61  ;;  %1127 = vmatpush2.msra.mxu1 %v568_v8  ;;  %v911_v61 = vld [vmem:[#allocation10 + $0xe18] sm:$0xff]  ;;  %v898_v8 = vld [vmem:[#allocation10 + $0xdb0] sm:$0xff] }
  0xb9   :  { %1184 = vmatpush2.msra.mxu0 %v802_v63  ;;  %1128 = vmatprep.subr.mxu1 %v563_v10  ;;  %v893_v10 = vld [vmem:[#allocation10 + $0xd88] sm:$0xff] }
  0xba   :  { %1185 = vmatprep.subr.mxu0 %v797_v0  ;;  %1129 = vmatpush2.msra.mxu1 %v562_v12  ;;  %v910_v0 = vld [vmem:[#allocation10 + $0xe10] sm:$0xff]  ;;  %v892_v12 = vld [vmem:[#allocation10 + $0xd80] sm:$0xff] }
  0xbb   :  { %1186 = vmatpush2.msra.mxu0 %v796_v1  ;;  %1130 = vmatprep.subr.mxu1 %v557_v14  ;;  %v552_v1 = vld [vmem:[#allocation10 + $0x2e0] sm:$0xff]  ;;  %v887_v14 = vld [vmem:[#allocation10 + $0xd58] sm:$0xff] }
  0xbc   :  { %1187 = vmatprep.subr.mxu0 %v791_v3  ;;  %1131 = vmatpush2.msra.mxu1 %v556_v16  ;;  %v547_v3 = vld [vmem:[#allocation10 + $0x2b8] sm:$0xff]  ;;  %v886_v16 = vld [vmem:[#allocation10 + $0xd50] sm:$0xff] }
  0xbd   :  { %1188 = vmatpush2.msra.mxu0 %v790_v5  ;;  %1210 = vmatprep.subr.mxu1 %v935_v19  ;;  %v546_v5 = vld [vmem:[#allocation10 + $0x2b0] sm:$0xff]  ;;  %v523_v19 = vld [vmem:[#allocation10 + $0x1f8] sm:$0xff] }
  0xbe   :  { %1189 = vmatprep.subr.mxu0 %v785_v7  ;;  %v541_v7 = vld [vmem:[#allocation10 + $0x288] sm:$0xff] }
  0xbf   :  { %1190 = vmatpush2.msra.mxu0 %v784_v9  ;;  %v540_v9 = vld [vmem:[#allocation10 + $0x280] sm:$0xff] }
  0xc0   :  { %1191 = vmatprep.subr.mxu0 %v779_v11  ;;  %v535_v11 = vld [vmem:[#allocation10 + $0x258] sm:$0xff] }
  0xc1   :  { %1192 = vmatpush2.msra.mxu0 %v778_v13  ;;  %v534_v13 = vld [vmem:[#allocation10 + $0x250] sm:$0xff] }
  0xc2   :  { %1193 = vmatprep.subr.mxu0 %v773_v15  ;;  %v529_v15 = vld [vmem:[#allocation10 + $0x228] sm:$0xff] }
  0xc3   :  { %1194 = vmatpush2.msra.mxu0 %v772_v17  ;;  %v528_v17 = vld [vmem:[#allocation10 + $0x220] sm:$0xff] }
  0xc4   :  { %1195 = vmatprep.subr.mxu0 %v767_v18  ;;  %v881_v18 = vld [vmem:[#allocation10 + $0xd28] sm:$0xff] }
  0xc5   :  { %1196 = vmatpush2.msra.mxu0 %v766_v20  ;;  %v880_v20 = vld [vmem:[#allocation10 + $0xd20] sm:$0xff] }
  0xc6   :  { %1197 = vmatprep.subr.mxu0 %v761_v21  ;;  %v522_v21 = vld [vmem:[#allocation10 + $0x1f0] sm:$0xff] }
  0xc7   :  { %1198 = vmatpush2.msra.mxu0 %v760_v22  ;;  %v875_v22 = vld [vmem:[#allocation10 + $0xcf8] sm:$0xff] }
  0xc8   :  { %1199 = vmatprep.subr.mxu0 %v755_v23  ;;  %v517_v23 = vld [vmem:[#allocation10 + $0x1c8] sm:$0xff] }
  0xc9   :  { %1200 = vmatpush2.msra.mxu0 %v754_v24  ;;  %v874_v24 = vld [vmem:[#allocation10 + $0xcf0] sm:$0xff] }
  0xca   :  { %1201 = vmatprep.subr.mxu0 %v749_v25  ;;  %v516_v25 = vld [vmem:[#allocation10 + $0x1c0] sm:$0xff] }
  0xcb   :  { %1202 = vmatpush2.msra.mxu0 %v748_v26  ;;  %v869_v26 = vld [vmem:[#allocation10 + $0xcc8] sm:$0xff] }
  0xcc   :  { %1281 = vmatprep.subr.mxu0 %v553_v27  ;;  %v511_v27 = vld [vmem:[#allocation10 + $0x198] sm:$0xff] }
 0x13c   :  { %v294_v35 = vpop.f32.mrf.mxu0 }
 0x13d   :  { %v295_v36 = vadd.f32 %v294_v35, %v197_v33  ;;  %v510_v33 = vld [vmem:[#allocation10 + $0x190] sm:$0xff]  ;;  %v505_v35 = vld [vmem:[#allocation10 + $0x168] sm:$0xff] }
 0x13e   :  { %v296_v39 = vpop.f32.mrf.mxu0 }
 0x13f   :  { %v297_v40 = vadd.f32 %v296_v39, %v201_v34  ;;  %v448_v42 = vmul.f32 %v3941_v37, %v295_v36  ;;  %vm441_vm2 = vcmp.gt.f32.partialorder %v295_v36, 0.0  ;;  %v863_v34 = vld [vmem:[#allocation10 + $0xc98] sm:$0xff]  ;;  %v504_v39 = vld [vmem:[#allocation10 + $0x160] sm:$0xff] }
 0x141   :  { %v449_v43 = vmul.f32 %v3941_v37, %v297_v40  ;;  %vm442_vm1 = vcmp.gt.f32.partialorder %v297_v40, 0.0  ;;  %v3958_v49 = vsel %vm441_vm2, %v295_v36, %v448_v42  ;;  %v862_v36 = vld [vmem:[#allocation10 + $0xc90] sm:$0xff]  ;;  %v499_v42 = vld [vmem:[#allocation10 + $0x138] sm:$0xff] }
 0x143   :  { %v3953_v45 = vsel %vm442_vm1, %v297_v40, %v449_v43  ;;  %v857_v40 = vld [vmem:[#allocation10 + $0xc68] sm:$0xff]  ;;  %v856_v43 = vld [vmem:[#allocation10 + $0xc60] sm:$0xff] }
 0x144   :  { %v365_v48 = vpop.f32.mrf.mxu0  ;;  %1132 = vmatprep.mubr.f32.mxu1 %v3953_v45 }
 0x145   :  { %v366_v51 = vadd.f32 %v365_v48, %v205_v44  ;;  %1133 = vmatmul.mubr.f32.vlgmr.msra.gmra.mxu1 %v3958_v49  ;;  %v498_v44 = vld [vmem:[#allocation10 + $0x130] sm:$0xff] }
 0x146   :  { %1211 = vmatpush1.msra.mxu1 %v934_v46  ;;  %v367_v53 = vpop.f32.mrf.mxu0  ;;  %v851_v46 = vld [vmem:[#allocation10 + $0xc38] sm:$0xff]  ;;  %v850_v48 = vld [vmem:[#allocation10 + $0xc30] sm:$0xff] }
 0x147   :  { %vm443_vm3 = vcmp.gt.f32.partialorder %v366_v51, 0.0  ;;  %v450_v55 = vmul.f32 %v3941_v37, %v366_v51  ;;  %v368_v56 = vadd.f32 %v367_v53, %v209_v47  ;;  %1212 = vmatprep.subr.mxu1 %v929_v50  ;;  %v493_v47 = vld [vmem:[#allocation10 + $0x108] sm:$0xff]  ;;  %v492_v50 = vld [vmem:[#allocation10 + $0x100] sm:$0xff] }
 0x148   :  { %1213 = vmatpush1.msra.mxu1 %v928_v52  ;;  %v487_v52 = vld [vmem:[#allocation10 + $0xd8] sm:$0xff]  ;;  %v844_v53 = vld [vmem:[#allocation10 + $0xc00] sm:$0xff] }
 0x149   :  { %v451_v59 = vmul.f32 %v3941_v37, %v368_v56  ;;  %1214 = vmatprep.subr.mxu1 %v923_v54  ;;  %vm444_vm4 = vcmp.gt.f32.partialorder %v368_v56, 0.0  ;;  %v3963_v62 = vsel %vm443_vm3, %v366_v51, %v450_v55  ;;  %v845_v51 = vld [vmem:[#allocation10 + $0xc08] sm:$0xff]  ;;  %v486_v54 = vld [vmem:[#allocation10 + $0xd0] sm:$0xff]  ;;  %v1031_v55 = vld [vmem:[#allocation10 + $0x11d8] sm:$0xff] }
 0x14a   :  { %1215 = vmatpush1.msra.mxu1 %v922_v57  ;;  %v1030_v57 = vld [vmem:[#allocation10 + $0x11d0] sm:$0xff] }
 0x14b   :  { %1216 = vmatprep.subr.mxu1 %v917_v58  ;;  %v3965_v63 = vsel %vm444_vm4, %v368_v56, %v451_v59  ;;  %v481_v56 = vld [vmem:[#allocation10 + $0xa8] sm:$0xff]  ;;  %v480_v58 = vld [vmem:[#allocation10 + $0xa0] sm:$0xff]  ;;  %vm3821_vm4 = vmmov 0  }
 0x14c   :  { %1217 = vmatpush1.msra.mxu1 %v916_v60  ;;  %1203 = vmatprep.mubr.f32.mxu0 %v3965_v63  ;;  %v1025_v59 = vld [vmem:[#allocation10 + $0x11a8] sm:$0xff]  ;;  %v475_v60 = vld [vmem:[#allocation10 + $0x78] sm:$0xff] }
 0x14d   :  { %1218 = vmatprep.subr.mxu1 %v911_v61  ;;  %1204 = vmatmul.mubr.f32.vlgmr.msra.gmra.mxu0 %v3963_v62  ;;  %v1024_v61 = vld [vmem:[#allocation10 + $0x11a0] sm:$0xff] }
 0x14e   :  { %1219 = vmatpush1.msra.mxu1 %v910_v0  ;;  %1282 = vmatpush1.msra.mxu0 %v552_v1  ;;  %v474_v0 = vld [vmem:[#allocation10 + $0x70] sm:$0xff]  ;;  %v1019_v1 = vld [vmem:[#allocation10 + $0x1178] sm:$0xff] }
 0x14f   :  { %1220 = vmatprep.subr.mxu1 %v905_v2  ;;  %1283 = vmatprep.subr.mxu0 %v547_v3  ;;  %v469_v2 = vld [vmem:[#allocation10 + $0x48] sm:$0xff]  ;;  %v1018_v3 = vld [vmem:[#allocation10 + $0x1170] sm:$0xff] }
 0x150   :  { %1345 = vmatprep.mubr.f32.mxu0 %v3953_v45  ;;  %1221 = vmatpush1.msra.mxu1 %v904_v4  ;;  %v468_v4 = vld [vmem:[#allocation10 + $0x40] sm:$0xff] }
 0x151   :  { %1284 = vmatpush1.msra.mxu0 %v546_v5  ;;  %1222 = vmatprep.subr.mxu1 %v899_v6  ;;  %v1013_v5 = vld [vmem:[#allocation10 + $0x1148] sm:$0xff]  ;;  %v463_v6 = vld [vmem:[#allocation10 + $0x18] sm:$0xff] }
 0x152   :  { %1285 = vmatprep.subr.mxu0 %v541_v7  ;;  %1223 = vmatpush1.msra.mxu1 %v898_v8  ;;  %v1012_v7 = vld [vmem:[#allocation10 + $0x1140] sm:$0xff]  ;;  %v462_v8 = vld [vmem:[#allocation10 + $0x10] sm:$0xff] }
 0x153   :  { %1286 = vmatpush1.msra.mxu0 %v540_v9  ;;  %1224 = vmatprep.subr.mxu1 %v893_v10  ;;  %v1007_v9 = vld [vmem:[#allocation10 + $0x1118] sm:$0xff]  ;;  %v649_v10 = vld [vmem:[#allocation10 + $0x5e8] sm:$0xff] }
 0x154   :  { %1287 = vmatprep.subr.mxu0 %v535_v11  ;;  %1225 = vmatpush1.msra.mxu1 %v892_v12  ;;  %v1006_v11 = vld [vmem:[#allocation10 + $0x1110] sm:$0xff]  ;;  %v648_v12 = vld [vmem:[#allocation10 + $0x5e0] sm:$0xff] }
 0x155   :  { %1288 = vmatpush1.msra.mxu0 %v534_v13  ;;  %1226 = vmatprep.subr.mxu1 %v887_v14  ;;  %v1001_v13 = vld [vmem:[#allocation10 + $0x10e8] sm:$0xff]  ;;  %v643_v14 = vld [vmem:[#allocation10 + $0x5b8] sm:$0xff] }
 0x156   :  { %1289 = vmatprep.subr.mxu0 %v529_v15  ;;  %1227 = vmatpush1.msra.mxu1 %v886_v16  ;;  %v1000_v15 = vld [vmem:[#allocation10 + $0x10e0] sm:$0xff]  ;;  %v642_v16 = vld [vmem:[#allocation10 + $0x5b0] sm:$0xff] }
 0x157   :  { %1290 = vmatpush1.msra.mxu0 %v528_v17  ;;  %1228 = vmatprep.subr.mxu1 %v881_v18  ;;  %v995_v17 = vld [vmem:[#allocation10 + $0x10b8] sm:$0xff]  ;;  %v637_v18 = vld [vmem:[#allocation10 + $0x588] sm:$0xff] }
 0x158   :  { %1291 = vmatprep.subr.mxu0 %v523_v19  ;;  %1229 = vmatpush1.msra.mxu1 %v880_v20  ;;  %v994_v19 = vld [vmem:[#allocation10 + $0x10b0] sm:$0xff]  ;;  %v3971_v20 = vsub.s32 5, %v3927_v29 }
 0x159   :  { %1292 = vmatpush1.msra.mxu0 %v522_v21  ;;  %1230 = vmatprep.subr.mxu1 %v875_v22  ;;  %v636_v21 = vld [vmem:[#allocation10 + $0x580] sm:$0xff]  ;;  %v989_v22 = vld [vmem:[#allocation10 + $0x1088] sm:$0xff] }
 0x15a   :  { %1293 = vmatprep.subr.mxu0 %v517_v23  ;;  %1231 = vmatpush1.msra.mxu1 %v874_v24  ;;  %v436_v23 = vpop.f32.mrf.mxu0  ;;  %v631_v24 = vld [vmem:[#allocation10 + $0x558] sm:$0xff] }
 0x15b   :  { %1294 = vmatpush1.msra.mxu0 %v516_v25  ;;  %1232 = vmatprep.subr.mxu1 %v869_v26  ;;  %v988_v25 = vld [vmem:[#allocation10 + $0x1080] sm:$0xff]  ;;  %v630_v26 = vld [vmem:[#allocation10 + $0x550] sm:$0xff] }
 0x15c   :  { %1295 = vmatprep.subr.mxu0 %v511_v27  ;;  %1233 = vmatpush1.msra.mxu1 %v868_v28  ;;  %v983_v27 = vld [vmem:[#allocation10 + $0x1058] sm:$0xff]  ;;  %v625_v28 = vld [vmem:[#allocation10 + $0x528] sm:$0xff] }
 0x15d   :  { %1296 = vmatpush1.msra.mxu0 %v510_v33  ;;  %1234 = vmatprep.subr.mxu1 %v863_v34  ;;  %v982_v33 = vld [vmem:[#allocation10 + $0x1050] sm:$0xff]  ;;  %v217_v34 = vrot.slane %v3932_v31, %v3971_v20 }
 0x15e   :  { %1297 = vmatprep.subr.mxu0 %v505_v35  ;;  %1235 = vmatpush1.msra.mxu1 %v862_v36  ;;  %v624_v35 = vld [vmem:[#allocation10 + $0x520] sm:$0xff]  ;;  %v977_v36 = vld [vmem:[#allocation10 + $0x1028] sm:$0xff] }
 0x15f   :  { %1298 = vmatpush1.msra.mxu0 %v504_v39  ;;  %1236 = vmatprep.subr.mxu1 %v857_v40  ;;  %v438_v39 = vpop.f32.mrf.mxu0  ;;  %v619_v40 = vld [vmem:[#allocation10 + $0x4f8] sm:$0xff] }
 0x160   :  { %1299 = vmatprep.subr.mxu0 %v499_v42  ;;  %1237 = vmatpush1.msra.mxu1 %v856_v43  ;;  %v976_v42 = vld [vmem:[#allocation10 + $0x1020] sm:$0xff]  ;;  %v3976_v43 = vsub.s32 4, %v3927_v29  ;;  %v607_v29 = vld [vmem:[#allocation10 + $0x498] sm:$0xff] }
 0x161   :  { %1300 = vmatpush1.msra.mxu0 %v498_v44  ;;  %1238 = vmatprep.subr.mxu1 %v851_v46  ;;  %v618_v44 = vld [vmem:[#allocation10 + $0x4f0] sm:$0xff]  ;;  %v971_v46 = vld [vmem:[#allocation10 + $0xff8] sm:$0xff] }
 0x162   :  { %1301 = vmatprep.subr.mxu0 %v493_v47  ;;  %1239 = vmatpush1.msra.mxu1 %v850_v48  ;;  %v613_v47 = vld [vmem:[#allocation10 + $0x4c8] sm:$0xff]  ;;  %v970_v48 = vld [vmem:[#allocation10 + $0xff0] sm:$0xff] }
 0x163   :  { %1302 = vmatpush1.msra.mxu0 %v492_v50  ;;  %1240 = vmatprep.subr.mxu1 %v845_v51  ;;  %v439_v50 = vadd.f32 %v438_v39, %v217_v34  ;;  %v612_v51 = vld [vmem:[#allocation10 + $0x4c0] sm:$0xff]  ;;  %v721_v34 = vld [vmem:[#allocation10 + $0x828] sm:$0xff] }
 0x164   :  { %1303 = vmatprep.subr.mxu0 %v487_v52  ;;  %1241 = vmatpush1.msra.mxu1 %v844_v53  ;;  %v965_v52 = vld [vmem:[#allocation10 + $0xfc8] sm:$0xff]  ;;  %v213_v53 = vrot.slane %v3932_v31, %v3976_v43  ;;  %v595_v31 = vld [vmem:[#allocation10 + $0x438] sm:$0xff]  ;;  %v936_v39 = vld [vmem:[#allocation10 + $0xee0] sm:$0xff] }
 0x165   :  { %1304 = vmatpush1.msra.mxu0 %v486_v54  ;;  %1242 = vmatprep.subr.mxu1 %v1031_v55  ;;  %v964_v54 = vld [vmem:[#allocation10 + $0xfc0] sm:$0xff]  ;;  %v606_v55 = vld [vmem:[#allocation10 + $0x490] sm:$0xff]  ;;  %vm446_vm5 = vcmp.gt.f32.partialorder %v439_v50, 0.0 }
 0x166   :  { %1305 = vmatprep.subr.mxu0 %v481_v56  ;;  %1243 = vmatpush2.msra.mxu1 %v1030_v57  ;;  %v959_v56 = vld [vmem:[#allocation10 + $0xf98] sm:$0xff]  ;;  %v453_v57 = vmul.f32 %v3941_v37, %v439_v50 }
 0x167   :  { %1306 = vmatpush1.msra.mxu0 %v480_v58  ;;  %1244 = vmatprep.subr.mxu1 %v1025_v59  ;;  %v601_v58 = vld [vmem:[#allocation10 + $0x468] sm:$0xff]  ;;  %v958_v59 = vld [vmem:[#allocation10 + $0xf90] sm:$0xff] }
 0x168   :  { %1307 = vmatprep.subr.mxu0 %v475_v60  ;;  %1245 = vmatpush2.msra.mxu1 %v1024_v61  ;;  %v600_v60 = vld [vmem:[#allocation10 + $0x460] sm:$0xff]  ;;  %v953_v61 = vld [vmem:[#allocation10 + $0xf68] sm:$0xff] }
 0x169   :  { %1308 = vmatpush1.msra.mxu0 %v474_v0  ;;  %1246 = vmatprep.subr.mxu1 %v1019_v1  ;;  %v437_v0 = vadd.f32 %v436_v23, %v213_v53  ;;  %v952_v1 = vld [vmem:[#allocation10 + $0xf60] sm:$0xff]  ;;  %v733_v23 = vld [vmem:[#allocation10 + $0x888] sm:$0xff]  ;;  %v919_v53 = vld [vmem:[#allocation10 + $0xe58] sm:$0xff] }
 0x16a   :  { %1309 = vmatprep.subr.mxu0 %v469_v2  ;;  %1247 = vmatpush2.msra.mxu1 %v1018_v3  ;;  %v594_v2 = vld [vmem:[#allocation10 + $0x430] sm:$0xff]  ;;  %v947_v3 = vld [vmem:[#allocation10 + $0xf38] sm:$0xff] }
 0x16b   :  { %1310 = vmatpush1.msra.mxu0 %v468_v4  ;;  %1248 = vmatprep.subr.mxu1 %v1013_v5  ;;  %v3981_v4 = vsel %vm446_vm5, %v439_v50, %v453_v57  ;;  %v589_v5 = vld [vmem:[#allocation10 + $0x408] sm:$0xff]  ;;  %vm445_vm6 = vcmp.gt.f32.partialorder %v437_v0, 0.0  ;;  %v708_v50 = vld [vmem:[#allocation10 + $0x7c0] sm:$0xff] }
 0x16c   :  { %1311 = vmatprep.subr.mxu0 %v463_v6  ;;  %1249 = vmatpush2.msra.mxu1 %v1012_v7  ;;  %v946_v6 = vld [vmem:[#allocation10 + $0xf30] sm:$0xff]  ;;  %v588_v7 = vld [vmem:[#allocation10 + $0x400] sm:$0xff] }
 0x16d   :  { %1312 = vmatpush1.msra.mxu0 %v462_v8  ;;  %1250 = vmatprep.subr.mxu1 %v1007_v9  ;;  %v452_v8 = vmul.f32 %v3941_v37, %v437_v0  ;;  %v941_v9 = vld [vmem:[#allocation10 + $0xf08] sm:$0xff]  ;;  %v696_v57 = vld [vmem:[#allocation10 + $0x760] sm:$0xff] }
 0x16e   :  { %1313 = vmatprep.subr.mxu0 %v649_v10  ;;  %1251 = vmatpush2.msra.mxu1 %v1006_v11  ;;  %v583_v10 = vld [vmem:[#allocation10 + $0x3d8] sm:$0xff]  ;;  %v940_v11 = vld [vmem:[#allocation10 + $0xf00] sm:$0xff] }
 0x16f   :  { %1314 = vmatpush2.msra.mxu0 %v648_v12  ;;  %1252 = vmatprep.subr.mxu1 %v1001_v13  ;;  %v582_v12 = vld [vmem:[#allocation10 + $0x3d0] sm:$0xff]  ;;  %v577_v13 = vld [vmem:[#allocation10 + $0x3a8] sm:$0xff]  ;;  %v3985_v37 = vsel %vm445_vm6, %v437_v0, %v452_v8  ;;  %vm3393_vm6 = vcmask 64512  }
 0x170   :  { %1315 = vmatprep.subr.mxu0 %v643_v14  ;;  %1253 = vmatpush2.msra.mxu1 %v1000_v15  ;;  %v745_v14 = vld [vmem:[#allocation10 + $0x8e8] sm:$0xff]  ;;  %v576_v15 = vld [vmem:[#allocation10 + $0x3a0] sm:$0xff]  ;;  %v906_v0 = vld [vmem:[#allocation10 + $0xdf0] sm:$0xff] }
 0x171   :  { %1316 = vmatpush2.msra.mxu0 %v642_v16  ;;  %1254 = vmatprep.subr.mxu1 %v995_v17  ;;  %v744_v16 = vld [vmem:[#allocation10 + $0x8e0] sm:$0xff]  ;;  %v571_v17 = vld [vmem:[#allocation10 + $0x378] sm:$0xff]  ;;  %v894_v8 = vld [vmem:[#allocation10 + $0xd90] sm:$0xff] }
 0x172   :  { %1317 = vmatprep.subr.mxu0 %v637_v18  ;;  %1255 = vmatpush2.msra.mxu1 %v994_v19  ;;  %v739_v18 = vld [vmem:[#allocation10 + $0x8b8] sm:$0xff]  ;;  %v570_v19 = vld [vmem:[#allocation10 + $0x370] sm:$0xff] }
 0x173   :  { %1318 = vmatpush2.msra.mxu0 %v636_v21  ;;  %1256 = vmatprep.subr.mxu1 %v989_v22  ;;  %v738_v21 = vld [vmem:[#allocation10 + $0x8b0] sm:$0xff]  ;;  %v565_v22 = vld [vmem:[#allocation10 + $0x348] sm:$0xff] }
 0x174   :  { %1319 = vmatprep.subr.mxu0 %v631_v24  ;;  %1257 = vmatpush2.msra.mxu1 %v988_v25  ;;  %v564_v24 = vld [vmem:[#allocation10 + $0x340] sm:$0xff] }
 0x175   :  { %1320 = vmatpush2.msra.mxu0 %v630_v26  ;;  %1258 = vmatprep.subr.mxu1 %v983_v27  ;;  %v732_v25 = vld [vmem:[#allocation10 + $0x880] sm:$0xff]  ;;  %v559_v26 = vld [vmem:[#allocation10 + $0x318] sm:$0xff] }
 0x176   :  { %1321 = vmatprep.subr.mxu0 %v625_v28  ;;  %1259 = vmatpush2.msra.mxu1 %v982_v33  ;;  %v727_v27 = vld [vmem:[#allocation10 + $0x858] sm:$0xff]  ;;  %v558_v28 = vld [vmem:[#allocation10 + $0x310] sm:$0xff] }
 0x177   :  { %1322 = vmatpush2.msra.mxu0 %v624_v35  ;;  %1260 = vmatprep.subr.mxu1 %v977_v36  ;;  %v726_v33 = vld [vmem:[#allocation10 + $0x850] sm:$0xff]  ;;  %v937_v35 = vld [vmem:[#allocation10 + $0xee8] sm:$0xff]  ;;  %v720_v36 = vld [vmem:[#allocation10 + $0x820] sm:$0xff] }
 0x178   :  { %1323 = vmatprep.subr.mxu0 %v619_v40  ;;  %1261 = vmatpush2.msra.mxu1 %v976_v42  ;;  %v715_v40 = vld [vmem:[#allocation10 + $0x7f8] sm:$0xff] }
 0x179   :  { %1324 = vmatpush2.msra.mxu0 %v618_v44  ;;  %1262 = vmatprep.subr.mxu1 %v971_v46  ;;  %v931_v42 = vld [vmem:[#allocation10 + $0xeb8] sm:$0xff]  ;;  %v714_v44 = vld [vmem:[#allocation10 + $0x7f0] sm:$0xff] }
 0x17a   :  { %1325 = vmatprep.subr.mxu0 %v613_v47  ;;  %1263 = vmatpush2.msra.mxu1 %v970_v48  ;;  %v930_v46 = vld [vmem:[#allocation10 + $0xeb0] sm:$0xff]  ;;  %v709_v47 = vld [vmem:[#allocation10 + $0x7c8] sm:$0xff] }
 0x17b   :  { %1326 = vmatpush2.msra.mxu0 %v612_v51  ;;  %1264 = vmatprep.subr.mxu1 %v965_v52  ;;  %v925_v48 = vld [vmem:[#allocation10 + $0xe88] sm:$0xff]  ;;  %v924_v51 = vld [vmem:[#allocation10 + $0xe80] sm:$0xff]  ;;  %v703_v52 = vld [vmem:[#allocation10 + $0x798] sm:$0xff] }
 0x17c   :  { %1327 = vmatprep.subr.mxu0 %v607_v29  ;;  %1265 = vmatpush2.msra.mxu1 %v964_v54  ;;  %v702_v29 = vld [vmem:[#allocation10 + $0x790] sm:$0xff] }
 0x17d   :  { %1328 = vmatpush2.msra.mxu0 %v606_v55  ;;  %1266 = vmatprep.subr.mxu1 %v959_v56  ;;  %v918_v54 = vld [vmem:[#allocation10 + $0xe50] sm:$0xff]  ;;  %v697_v55 = vld [vmem:[#allocation10 + $0x768] sm:$0xff] }
 0x17e   :  { %1329 = vmatprep.subr.mxu0 %v601_v58  ;;  %1267 = vmatpush2.msra.mxu1 %v958_v59  ;;  %v913_v56 = vld [vmem:[#allocation10 + $0xe28] sm:$0xff]  ;;  %v912_v58 = vld [vmem:[#allocation10 + $0xe20] sm:$0xff]  ;;  %v691_v59 = vld [vmem:[#allocation10 + $0x738] sm:$0xff] }
 0x17f   :  { %1330 = vmatpush2.msra.mxu0 %v600_v60  ;;  %1268 = vmatprep.subr.mxu1 %v953_v61  ;;  %v907_v60 = vld [vmem:[#allocation10 + $0xdf8] sm:$0xff]  ;;  %v690_v61 = vld [vmem:[#allocation10 + $0x730] sm:$0xff] }
 0x180   :  { %1331 = vmatprep.subr.mxu0 %v595_v31  ;;  %1269 = vmatpush2.msra.mxu1 %v952_v1  ;;  %v685_v31 = vld [vmem:[#allocation10 + $0x708] sm:$0xff] }
 0x181   :  { %1332 = vmatpush2.msra.mxu0 %v594_v2  ;;  %1270 = vmatprep.subr.mxu1 %v947_v3  ;;  %v901_v1 = vld [vmem:[#allocation10 + $0xdc8] sm:$0xff]  ;;  %v684_v2 = vld [vmem:[#allocation10 + $0x700] sm:$0xff] }
 0x182   :  { %1274 = vmatprep.mubr.f32.mxu1 %v3981_v4  ;;  %1333 = vmatprep.subr.mxu0 %v589_v5  ;;  %v900_v3 = vld [vmem:[#allocation10 + $0xdc0] sm:$0xff]  ;;  %v679_v5 = vld [vmem:[#allocation10 + $0x6d8] sm:$0xff] }
 0x183   :  { %1271 = vmatpush2.msra.mxu1 %v946_v6  ;;  %1334 = vmatpush2.msra.mxu0 %v588_v7  ;;  %v895_v6 = vld [vmem:[#allocation10 + $0xd98] sm:$0xff]  ;;  %v678_v7 = vld [vmem:[#allocation10 + $0x6d0] sm:$0xff] }
 0x184   :  { %1272 = vmatprep.subr.mxu1 %v941_v9  ;;  %1335 = vmatprep.subr.mxu0 %v583_v10  ;;  %v673_v9 = vld [vmem:[#allocation10 + $0x6a8] sm:$0xff] }
 0x185   :  { %1273 = vmatpush2.msra.mxu1 %v940_v11  ;;  %1336 = vmatpush2.msra.mxu0 %v582_v12  ;;  %v889_v10 = vld [vmem:[#allocation10 + $0xd68] sm:$0xff]  ;;  %v672_v11 = vld [vmem:[#allocation10 + $0x6a0] sm:$0xff] }
 0x186   :  { %1275 = vmatmul.mubr.f32.vlgmr.msra.gmra.mxu1 %v3985_v37  ;;  %1337 = vmatprep.subr.mxu0 %v577_v13  ;;  %v888_v12 = vld [vmem:[#allocation10 + $0xd60] sm:$0xff]  ;;  %v667_v13 = vld [vmem:[#allocation10 + $0x678] sm:$0xff] }
 0x187   :  { %1352 = vmatprep.subr.mxu1 %v745_v14  ;;  %1338 = vmatpush2.msra.mxu0 %v576_v15  ;;  %v883_v14 = vld [vmem:[#allocation10 + $0xd38] sm:$0xff]  ;;  %v666_v15 = vld [vmem:[#allocation10 + $0x670] sm:$0xff] }
 0x188   :  { %1353 = vmatpush1.msra.mxu1 %v744_v16  ;;  %1416 = vmatprep.mubr.f32.mxu1 %v3965_v63  ;;  %v882_v16 = vld [vmem:[#allocation10 + $0xd30] sm:$0xff] }
 0x189   :  { %1339 = vmatprep.subr.mxu0 %v571_v17  ;;  %1354 = vmatprep.subr.mxu1 %v739_v18  ;;  %v661_v17 = vld [vmem:[#allocation10 + $0x648] sm:$0xff] }
 0x18a   :  { %1340 = vmatpush2.msra.mxu0 %v570_v19  ;;  %1355 = vmatpush1.msra.mxu1 %v738_v21  ;;  %v877_v18 = vld [vmem:[#allocation10 + $0xd08] sm:$0xff]  ;;  %v660_v19 = vld [vmem:[#allocation10 + $0x640] sm:$0xff] }
 0x18b   :  { %1341 = vmatprep.subr.mxu0 %v565_v22  ;;  %1356 = vmatprep.subr.mxu1 %v733_v23  ;;  %v876_v21 = vld [vmem:[#allocation10 + $0xd00] sm:$0xff]  ;;  %v655_v22 = vld [vmem:[#allocation10 + $0x618] sm:$0xff] }
 0x18c   :  { %1342 = vmatpush2.msra.mxu0 %v564_v24  ;;  %1357 = vmatpush1.msra.mxu1 %v732_v25  ;;  %v871_v23 = vld [vmem:[#allocation10 + $0xcd8] sm:$0xff]  ;;  %v654_v24 = vld [vmem:[#allocation10 + $0x610] sm:$0xff] }
 0x18d   :  { %1343 = vmatprep.subr.mxu0 %v559_v26  ;;  %1358 = vmatprep.subr.mxu1 %v727_v27  ;;  %v870_v25 = vld [vmem:[#allocation10 + $0xcd0] sm:$0xff]  ;;  %v841_v26 = vld [vmem:[#allocation10 + $0xbe8] sm:$0xff] }
 0x18e   :  { %1344 = vmatpush2.msra.mxu0 %v558_v28  ;;  %1359 = vmatpush1.msra.mxu1 %v726_v33  ;;  %v865_v27 = vld [vmem:[#allocation10 + $0xca8] sm:$0xff]  ;;  %v840_v28 = vld [vmem:[#allocation10 + $0xbe0] sm:$0xff] }
 0x18f   :  { %1346 = vmatmul.mubr.f32.vlgmr.msra.gmra.mxu0 %v3958_v49  ;;  %1360 = vmatprep.subr.mxu1 %v721_v34  ;;  %v864_v33 = vld [vmem:[#allocation10 + $0xca0] sm:$0xff]  ;;  %v835_v34 = vld [vmem:[#allocation10 + $0xbb8] sm:$0xff] }
 0x190   :  { %1423 = vmatprep.subr.mxu0 %v937_v35  ;;  %1361 = vmatpush1.msra.mxu1 %v720_v36  ;;  %v859_v35 = vld [vmem:[#allocation10 + $0xc78] sm:$0xff]  ;;  %v834_v36 = vld [vmem:[#allocation10 + $0xbb0] sm:$0xff] }
 0x191   :  { %1424 = vmatpush1.msra.mxu0 %v936_v39  ;;  %1487 = vmatprep.mubr.f32.mxu0 %v3981_v4  ;;  %v858_v39 = vld [vmem:[#allocation10 + $0xc70] sm:$0xff] }
 0x192   :  { %1362 = vmatprep.subr.mxu1 %v715_v40  ;;  %1425 = vmatprep.subr.mxu0 %v931_v42  ;;  %v829_v40 = vld [vmem:[#allocation10 + $0xb88] sm:$0xff] }
 0x193   :  { %1363 = vmatpush1.msra.mxu1 %v714_v44  ;;  %1426 = vmatpush1.msra.mxu0 %v930_v46  ;;  %v853_v42 = vld [vmem:[#allocation10 + $0xc48] sm:$0xff]  ;;  %v828_v44 = vld [vmem:[#allocation10 + $0xb80] sm:$0xff] }
 0x194   :  { %1364 = vmatprep.subr.mxu1 %v709_v47  ;;  %1427 = vmatprep.subr.mxu0 %v925_v48  ;;  %v852_v46 = vld [vmem:[#allocation10 + $0xc40] sm:$0xff]  ;;  %v823_v47 = vld [vmem:[#allocation10 + $0xb58] sm:$0xff] }
 0x195   :  { %1365 = vmatpush1.msra.mxu1 %v708_v50  ;;  %1428 = vmatpush1.msra.mxu0 %v924_v51  ;;  %v847_v48 = vld [vmem:[#allocation10 + $0xc18] sm:$0xff]  ;;  %v822_v50 = vld [vmem:[#allocation10 + $0xb50] sm:$0xff] }
 0x196   :  { %1366 = vmatprep.subr.mxu1 %v703_v52  ;;  %1429 = vmatprep.subr.mxu0 %v919_v53  ;;  %v846_v51 = vld [vmem:[#allocation10 + $0xc10] sm:$0xff]  ;;  %v817_v52 = vld [vmem:[#allocation10 + $0xb28] sm:$0xff] }
 0x197   :  { %1367 = vmatpush1.msra.mxu1 %v702_v29  ;;  %1430 = vmatpush1.msra.mxu0 %v918_v54  ;;  %v1033_v53 = vld [vmem:[#allocation10 + $0x11e8] sm:$0xff]  ;;  %v816_v29 = vld [vmem:[#allocation10 + $0xb20] sm:$0xff] }
 0x198   :  { %1368 = vmatprep.subr.mxu1 %v697_v55  ;;  %1431 = vmatprep.subr.mxu0 %v913_v56  ;;  %v1032_v54 = vld [vmem:[#allocation10 + $0x11e0] sm:$0xff]  ;;  %v811_v55 = vld [vmem:[#allocation10 + $0xaf8] sm:$0xff] }
 0x199   :  { %1369 = vmatpush1.msra.mxu1 %v696_v57  ;;  %1432 = vmatpush1.msra.mxu0 %v912_v58  ;;  %v1027_v56 = vld [vmem:[#allocation10 + $0x11b8] sm:$0xff]  ;;  %v810_v57 = vld [vmem:[#allocation10 + $0xaf0] sm:$0xff] }
 0x19a   :  { %1370 = vmatprep.subr.mxu1 %v691_v59  ;;  %1433 = vmatprep.subr.mxu0 %v907_v60  ;;  %v1026_v58 = vld [vmem:[#allocation10 + $0x11b0] sm:$0xff]  ;;  %v805_v59 = vld [vmem:[#allocation10 + $0xac8] sm:$0xff] }
 0x19b   :  { %1371 = vmatpush1.msra.mxu1 %v690_v61  ;;  %1434 = vmatpush1.msra.mxu0 %v906_v0  ;;  %v1021_v60 = vld [vmem:[#allocation10 + $0x1188] sm:$0xff]  ;;  %v804_v61 = vld [vmem:[#allocation10 + $0xac0] sm:$0xff] }
 0x19c   :  { %1372 = vmatprep.subr.mxu1 %v685_v31  ;;  %1435 = vmatprep.subr.mxu0 %v901_v1  ;;  %v1020_v0 = vld [vmem:[#allocation10 + $0x1180] sm:$0xff]  ;;  %v799_v31 = vld [vmem:[#allocation10 + $0xa98] sm:$0xff] }
 0x19d   :  { %1373 = vmatpush1.msra.mxu1 %v684_v2  ;;  %1436 = vmatpush1.msra.mxu0 %v900_v3  ;;  %v1015_v1 = vld [vmem:[#allocation10 + $0x1158] sm:$0xff]  ;;  %v798_v2 = vld [vmem:[#allocation10 + $0xa90] sm:$0xff] }
 0x19e   :  { %1374 = vmatprep.subr.mxu1 %v679_v5  ;;  %1437 = vmatprep.subr.mxu0 %v895_v6  ;;  %v1014_v3 = vld [vmem:[#allocation10 + $0x1150] sm:$0xff]  ;;  %v793_v5 = vld [vmem:[#allocation10 + $0xa68] sm:$0xff] }
 0x19f   :  { %1375 = vmatpush1.msra.mxu1 %v678_v7  ;;  %1438 = vmatpush1.msra.mxu0 %v894_v8  ;;  %v1009_v6 = vld [vmem:[#allocation10 + $0x1128] sm:$0xff]  ;;  %v792_v7 = vld [vmem:[#allocation10 + $0xa60] sm:$0xff] }
 0x1a0   :  { %1376 = vmatprep.subr.mxu1 %v673_v9  ;;  %1439 = vmatprep.subr.mxu0 %v889_v10  ;;  %v1008_v8 = vld [vmem:[#allocation10 + $0x1120] sm:$0xff]  ;;  %v787_v9 = vld [vmem:[#allocation10 + $0xa38] sm:$0xff] }
 0x1a1   :  { %1377 = vmatpush1.msra.mxu1 %v672_v11  ;;  %1440 = vmatpush1.msra.mxu0 %v888_v12  ;;  %v1003_v10 = vld [vmem:[#allocation10 + $0x10f8] sm:$0xff]  ;;  %v786_v11 = vld [vmem:[#allocation10 + $0xa30] sm:$0xff] }
 0x1a2   :  { %1378 = vmatprep.subr.mxu1 %v667_v13  ;;  %1441 = vmatprep.subr.mxu0 %v883_v14  ;;  %v1002_v12 = vld [vmem:[#allocation10 + $0x10f0] sm:$0xff]  ;;  %v781_v13 = vld [vmem:[#allocation10 + $0xa08] sm:$0xff] }
 0x1a3   :  { %1379 = vmatpush1.msra.mxu1 %v666_v15  ;;  %1442 = vmatpush1.msra.mxu0 %v882_v16  ;;  %v997_v14 = vld [vmem:[#allocation10 + $0x10c8] sm:$0xff]  ;;  %v780_v15 = vld [vmem:[#allocation10 + $0xa00] sm:$0xff] }
 0x1a4   :  { %1380 = vmatprep.subr.mxu1 %v661_v17  ;;  %1443 = vmatprep.subr.mxu0 %v877_v18  ;;  %v996_v16 = vld [vmem:[#allocation10 + $0x10c0] sm:$0xff]  ;;  %v775_v17 = vld [vmem:[#allocation10 + $0x9d8] sm:$0xff] }
 0x1a5   :  { %1381 = vmatpush1.msra.mxu1 %v660_v19  ;;  %1444 = vmatpush1.msra.mxu0 %v876_v21  ;;  %v991_v18 = vld [vmem:[#allocation10 + $0x1098] sm:$0xff]  ;;  %v774_v19 = vld [vmem:[#allocation10 + $0x9d0] sm:$0xff] }
 0x1a6   :  { %1382 = vmatprep.subr.mxu1 %v655_v22  ;;  %1445 = vmatprep.subr.mxu0 %v871_v23  ;;  %v990_v21 = vld [vmem:[#allocation10 + $0x1090] sm:$0xff]  ;;  %v769_v22 = vld [vmem:[#allocation10 + $0x9a8] sm:$0xff] }
 0x1a7   :  { %1383 = vmatpush1.msra.mxu1 %v654_v24  ;;  %1446 = vmatpush1.msra.mxu0 %v870_v25  ;;  %v985_v23 = vld [vmem:[#allocation10 + $0x1068] sm:$0xff]  ;;  %v768_v24 = vld [vmem:[#allocation10 + $0x9a0] sm:$0xff] }
 0x1a8   :  { %1384 = vmatprep.subr.mxu1 %v841_v26  ;;  %1447 = vmatprep.subr.mxu0 %v865_v27  ;;  %v984_v25 = vld [vmem:[#allocation10 + $0x1060] sm:$0xff]  ;;  %v763_v26 = vld [vmem:[#allocation10 + $0x978] sm:$0xff] }
 0x1a9   :  { %1385 = vmatpush2.msra.mxu1 %v840_v28  ;;  %1448 = vmatpush1.msra.mxu0 %v864_v33  ;;  %v979_v27 = vld [vmem:[#allocation10 + $0x1038] sm:$0xff]  ;;  %v762_v28 = vld [vmem:[#allocation10 + $0x970] sm:$0xff] }
 0x1aa   :  { %1386 = vmatprep.subr.mxu1 %v835_v34  ;;  %1449 = vmatprep.subr.mxu0 %v859_v35  ;;  %v978_v33 = vld [vmem:[#allocation10 + $0x1030] sm:$0xff]  ;;  %v757_v34 = vld [vmem:[#allocation10 + $0x948] sm:$0xff] }
 0x1ab   :  { %1387 = vmatpush2.msra.mxu1 %v834_v36  ;;  %1450 = vmatpush1.msra.mxu0 %v858_v39  ;;  %v973_v35 = vld [vmem:[#allocation10 + $0x1008] sm:$0xff]  ;;  %v756_v36 = vld [vmem:[#allocation10 + $0x940] sm:$0xff] }
 0x1ac   :  { %1388 = vmatprep.subr.mxu1 %v829_v40  ;;  %1451 = vmatprep.subr.mxu0 %v853_v42  ;;  %v972_v39 = vld [vmem:[#allocation10 + $0x1000] sm:$0xff]  ;;  %v751_v40 = vld [vmem:[#allocation10 + $0x918] sm:$0xff] }
 0x1ad   :  { %1389 = vmatpush2.msra.mxu1 %v828_v44  ;;  %1452 = vmatpush1.msra.mxu0 %v852_v46  ;;  %v967_v42 = vld [vmem:[#allocation10 + $0xfd8] sm:$0xff]  ;;  %v750_v44 = vld [vmem:[#allocation10 + $0x910] sm:$0xff] }
 0x1ae   :  { %1390 = vmatprep.subr.mxu1 %v823_v47  ;;  %1453 = vmatprep.subr.mxu0 %v847_v48  ;;  %v966_v46 = vld [vmem:[#allocation10 + $0xfd0] sm:$0xff]  ;;  %v961_v47 = vld [vmem:[#allocation10 + $0xfa8] sm:$0xff]  ;;  %v555_v48 = vld [vmem:[#allocation10 + $0x2f8] sm:$0xff] }
 0x1af   :  { %1391 = vmatpush2.msra.mxu1 %v822_v50  ;;  %1454 = vmatpush1.msra.mxu0 %v846_v51  ;;  %v960_v50 = vld [vmem:[#allocation10 + $0xfa0] sm:$0xff]  ;;  %v554_v51 = vld [vmem:[#allocation10 + $0x2f0] sm:$0xff] }
 0x1b0   :  { %1392 = vmatprep.subr.mxu1 %v817_v52  ;;  %1455 = vmatprep.subr.mxu0 %v1033_v53  ;;  %v955_v52 = vld [vmem:[#allocation10 + $0xf78] sm:$0xff]  ;;  %v549_v53 = vld [vmem:[#allocation10 + $0x2c8] sm:$0xff] }
 0x1b1   :  { %1393 = vmatpush2.msra.mxu1 %v816_v29  ;;  %1456 = vmatpush2.msra.mxu0 %v1032_v54  ;;  %v954_v29 = vld [vmem:[#allocation10 + $0xf70] sm:$0xff]  ;;  %v548_v54 = vld [vmem:[#allocation10 + $0x2c0] sm:$0xff] }
 0x1b2   :  { %1394 = vmatprep.subr.mxu1 %v811_v55  ;;  %1457 = vmatprep.subr.mxu0 %v1027_v56  ;;  %v949_v55 = vld [vmem:[#allocation10 + $0xf48] sm:$0xff]  ;;  %v543_v56 = vld [vmem:[#allocation10 + $0x298] sm:$0xff] }
 0x1b3   :  { %1395 = vmatpush2.msra.mxu1 %v810_v57  ;;  %1458 = vmatpush2.msra.mxu0 %v1026_v58  ;;  %v948_v57 = vld [vmem:[#allocation10 + $0xf40] sm:$0xff]  ;;  %v542_v58 = vld [vmem:[#allocation10 + $0x290] sm:$0xff] }
 0x1b4   :  { %1396 = vmatprep.subr.mxu1 %v805_v59  ;;  %1459 = vmatprep.subr.mxu0 %v1021_v60  ;;  %v943_v59 = vld [vmem:[#allocation10 + $0xf18] sm:$0xff]  ;;  %v537_v60 = vld [vmem:[#allocation10 + $0x268] sm:$0xff] }
 0x1b5   :  { %1397 = vmatpush2.msra.mxu1 %v804_v61  ;;  %1460 = vmatpush2.msra.mxu0 %v1020_v0  ;;  %v942_v61 = vld [vmem:[#allocation10 + $0xf10] sm:$0xff]  ;;  %v536_v0 = vld [vmem:[#allocation10 + $0x260] sm:$0xff] }
 0x1b6   :  { %1398 = vmatprep.subr.mxu1 %v799_v31  ;;  %1461 = vmatprep.subr.mxu0 %v1015_v1  ;;  %v531_v31 = vld [vmem:[#allocation10 + $0x238] sm:$0xff]  ;;  %v530_v1 = vld [vmem:[#allocation10 + $0x230] sm:$0xff] }
 0x1b7   :  { %1399 = vmatpush2.msra.mxu1 %v798_v2  ;;  %1462 = vmatpush2.msra.mxu0 %v1014_v3  ;;  %v746_v2 = vld [vmem:[#allocation10 + $0x8f0] sm:$0xff]  ;;  %v525_v3 = vld [vmem:[#allocation10 + $0x208] sm:$0xff] }
 0x1b8   :  { %1400 = vmatprep.subr.mxu1 %v793_v5  ;;  %1463 = vmatprep.subr.mxu0 %v1009_v6  ;;  %v741_v5 = vld [vmem:[#allocation10 + $0x8c8] sm:$0xff]  ;;  %v524_v6 = vld [vmem:[#allocation10 + $0x200] sm:$0xff] }
 0x1b9   :  { %1401 = vmatpush2.msra.mxu1 %v792_v7  ;;  %1464 = vmatpush2.msra.mxu0 %v1008_v8  ;;  %v740_v7 = vld [vmem:[#allocation10 + $0x8c0] sm:$0xff]  ;;  %v519_v8 = vld [vmem:[#allocation10 + $0x1d8] sm:$0xff] }
 0x1ba   :  { %1402 = vmatprep.subr.mxu1 %v787_v9  ;;  %1465 = vmatprep.subr.mxu0 %v1003_v10  ;;  %v735_v9 = vld [vmem:[#allocation10 + $0x898] sm:$0xff]  ;;  %v518_v10 = vld [vmem:[#allocation10 + $0x1d0] sm:$0xff] }
 0x1bb   :  { %1403 = vmatpush2.msra.mxu1 %v786_v11  ;;  %1466 = vmatpush2.msra.mxu0 %v1002_v12  ;;  %v734_v11 = vld [vmem:[#allocation10 + $0x890] sm:$0xff]  ;;  %v513_v12 = vld [vmem:[#allocation10 + $0x1a8] sm:$0xff] }
 0x1bc   :  { %1404 = vmatprep.subr.mxu1 %v781_v13  ;;  %1467 = vmatprep.subr.mxu0 %v997_v14  ;;  %v729_v13 = vld [vmem:[#allocation10 + $0x868] sm:$0xff]  ;;  %v512_v14 = vld [vmem:[#allocation10 + $0x1a0] sm:$0xff] }
 0x1bd   :  { %1405 = vmatpush2.msra.mxu1 %v780_v15  ;;  %1468 = vmatpush2.msra.mxu0 %v996_v16  ;;  %v728_v15 = vld [vmem:[#allocation10 + $0x860] sm:$0xff]  ;;  %v507_v16 = vld [vmem:[#allocation10 + $0x178] sm:$0xff] }
 0x1be   :  { %1406 = vmatprep.subr.mxu1 %v775_v17  ;;  %1469 = vmatprep.subr.mxu0 %v991_v18  ;;  %v723_v17 = vld [vmem:[#allocation10 + $0x838] sm:$0xff]  ;;  %v722_v18 = vld [vmem:[#allocation10 + $0x830] sm:$0xff] }
 0x1bf   :  { %1407 = vmatpush2.msra.mxu1 %v774_v19  ;;  %1470 = vmatpush2.msra.mxu0 %v990_v21  ;;  %v501_v19 = vld [vmem:[#allocation10 + $0x148] sm:$0xff] }
 0x1c0   :  { %1408 = vmatprep.subr.mxu1 %v769_v22  ;;  %1471 = vmatprep.subr.mxu0 %v985_v23  ;;  %v717_v21 = vld [vmem:[#allocation10 + $0x808] sm:$0xff]  ;;  %v500_v22 = vld [vmem:[#allocation10 + $0x140] sm:$0xff] }
 0x1c1   :  { %1409 = vmatpush2.msra.mxu1 %v768_v24  ;;  %1472 = vmatpush2.msra.mxu0 %v984_v25  ;;  %v716_v23 = vld [vmem:[#allocation10 + $0x800] sm:$0xff]  ;;  %v495_v24 = vld [vmem:[#allocation10 + $0x118] sm:$0xff] }
 0x1c2   :  { %1410 = vmatprep.subr.mxu1 %v763_v26  ;;  %1473 = vmatprep.subr.mxu0 %v979_v27  ;;  %v711_v25 = vld [vmem:[#allocation10 + $0x7d8] sm:$0xff]  ;;  %v494_v26 = vld [vmem:[#allocation10 + $0x110] sm:$0xff] }
 0x1c3   :  { %1411 = vmatpush2.msra.mxu1 %v762_v28  ;;  %1474 = vmatpush2.msra.mxu0 %v978_v33  ;;  %v710_v27 = vld [vmem:[#allocation10 + $0x7d0] sm:$0xff]  ;;  %v489_v28 = vld [vmem:[#allocation10 + $0xe8] sm:$0xff] }
 0x1c4   :  { %1412 = vmatprep.subr.mxu1 %v757_v34  ;;  %1475 = vmatprep.subr.mxu0 %v973_v35  ;;  %v705_v33 = vld [vmem:[#allocation10 + $0x7a8] sm:$0xff]  ;;  %v488_v34 = vld [vmem:[#allocation10 + $0xe0] sm:$0xff] }
 0x1c5   :  { %1413 = vmatpush2.msra.mxu1 %v756_v36  ;;  %1476 = vmatpush2.msra.mxu0 %v972_v39  ;;  %v704_v35 = vld [vmem:[#allocation10 + $0x7a0] sm:$0xff]  ;;  %v483_v36 = vld [vmem:[#allocation10 + $0xb8] sm:$0xff] }
 0x1c6   :  { %1414 = vmatprep.subr.mxu1 %v751_v40  ;;  %1477 = vmatprep.subr.mxu0 %v967_v42  ;;  %v699_v39 = vld [vmem:[#allocation10 + $0x778] sm:$0xff]  ;;  %v482_v40 = vld [vmem:[#allocation10 + $0xb0] sm:$0xff] }
 0x1c7   :  { %1415 = vmatpush2.msra.mxu1 %v750_v44  ;;  %1478 = vmatpush2.msra.mxu0 %v966_v46  ;;  %v698_v42 = vld [vmem:[#allocation10 + $0x770] sm:$0xff]  ;;  %v477_v44 = vld [vmem:[#allocation10 + $0x88] sm:$0xff] }
 0x1c8   :  { %1417 = vmatmul.mubr.f32.vlgmr.msra.gmra.mxu1 %v3963_v62  ;;  %1479 = vmatprep.subr.mxu0 %v961_v47  ;;  %v693_v46 = vld [vmem:[#allocation10 + $0x748] sm:$0xff]  ;;  %v476_v47 = vld [vmem:[#allocation10 + $0x80] sm:$0xff] }
 0x1c9   :  { %1494 = vmatprep.subr.mxu1 %v555_v48  ;;  %1480 = vmatpush2.msra.mxu0 %v960_v50  ;;  %v692_v48 = vld [vmem:[#allocation10 + $0x740] sm:$0xff]  ;;  %v471_v50 = vld [vmem:[#allocation10 + $0x58] sm:$0xff] }
 0x1ca   :  { %1495 = vmatpush1.msra.mxu1 %v554_v51  ;;  %1558 = vmatprep.mubr.f32.mxu1 %v3953_v45  ;;  %v747_v45 = vld [vmem:[#allocation10 + $0x8f8] sm:$0xff] }
 0x1cb   :  { %1481 = vmatprep.subr.mxu0 %v955_v52  ;;  %1496 = vmatprep.subr.mxu1 %v549_v53  ;;  %v687_v51 = vld [vmem:[#allocation10 + $0x718] sm:$0xff]  ;;  %v470_v52 = vld [vmem:[#allocation10 + $0x50] sm:$0xff] }
 0x1cc   :  { %1482 = vmatpush2.msra.mxu0 %v954_v29  ;;  %1497 = vmatpush1.msra.mxu1 %v548_v54  ;;  %v686_v53 = vld [vmem:[#allocation10 + $0x710] sm:$0xff]  ;;  %v465_v29 = vld [vmem:[#allocation10 + $0x28] sm:$0xff] }
 0x1cd   :  { %1483 = vmatprep.subr.mxu0 %v949_v55  ;;  %1498 = vmatprep.subr.mxu1 %v543_v56  ;;  %v681_v54 = vld [vmem:[#allocation10 + $0x6e8] sm:$0xff]  ;;  %v464_v55 = vld [vmem:[#allocation10 + $0x20] sm:$0xff] }
 0x1ce   :  { %1484 = vmatpush2.msra.mxu0 %v948_v57  ;;  %1499 = vmatpush1.msra.mxu1 %v542_v58  ;;  %v680_v56 = vld [vmem:[#allocation10 + $0x6e0] sm:$0xff]  ;;  %v651_v57 = vld [vmem:[#allocation10 + $0x5f8] sm:$0xff] }
 0x1cf   :  { %1485 = vmatprep.subr.mxu0 %v943_v59  ;;  %1500 = vmatprep.subr.mxu1 %v537_v60  ;;  %v675_v58 = vld [vmem:[#allocation10 + $0x6b8] sm:$0xff]  ;;  %v650_v59 = vld [vmem:[#allocation10 + $0x5f0] sm:$0xff] }
 0x1d0   :  { %1486 = vmatpush2.msra.mxu0 %v942_v61  ;;  %1501 = vmatpush1.msra.mxu1 %v536_v0  ;;  %v674_v60 = vld [vmem:[#allocation10 + $0x6b0] sm:$0xff]  ;;  %v645_v61 = vld [vmem:[#allocation10 + $0x5c8] sm:$0xff] }
 0x1d1   :  { %1488 = vmatmul.mubr.f32.vlgmr.msra.gmra.mxu0 %v3985_v37  ;;  %1502 = vmatprep.subr.mxu1 %v531_v31  ;;  %v669_v0 = vld [vmem:[#allocation10 + $0x688] sm:$0xff]  ;;  %v644_v31 = vld [vmem:[#allocation10 + $0x5c0] sm:$0xff] }
 0x1d2   :  { %1565 = vmatprep.subr.mxu0 %v747_v45  ;;  %1503 = vmatpush1.msra.mxu1 %v530_v1  ;;  %v668_v45 = vld [vmem:[#allocation10 + $0x680] sm:$0xff]  ;;  %v639_v1 = vld [vmem:[#allocation10 + $0x598] sm:$0xff] }
 0x1d3   :  { %1566 = vmatpush1.msra.mxu0 %v746_v2  ;;  %1629 = vmatprep.mubr.f32.mxu0 %v3965_v63  ;;  %v506_v63 = vld [vmem:[#allocation10 + $0x170] sm:$0xff]  ;;  %v663_v2 = vld [vmem:[#allocation10 + $0x658] sm:$0xff] }
 0x1d4   :  { %1504 = vmatprep.subr.mxu1 %v525_v3  ;;  %1567 = vmatprep.subr.mxu0 %v741_v5  ;;  %v638_v3 = vld [vmem:[#allocation10 + $0x590] sm:$0xff] }
 0x1d5   :  { %1505 = vmatpush1.msra.mxu1 %v524_v6  ;;  %1568 = vmatpush1.msra.mxu0 %v740_v7  ;;  %v662_v5 = vld [vmem:[#allocation10 + $0x650] sm:$0xff]  ;;  %v633_v6 = vld [vmem:[#allocation10 + $0x568] sm:$0xff] }
 0x1d6   :  { %1506 = vmatprep.subr.mxu1 %v519_v8  ;;  %1569 = vmatprep.subr.mxu0 %v735_v9  ;;  %v657_v7 = vld [vmem:[#allocation10 + $0x628] sm:$0xff]  ;;  %v632_v8 = vld [vmem:[#allocation10 + $0x560] sm:$0xff] }
 0x1d7   :  { %1507 = vmatpush1.msra.mxu1 %v518_v10  ;;  %1570 = vmatpush1.msra.mxu0 %v734_v11  ;;  %v656_v9 = vld [vmem:[#allocation10 + $0x620] sm:$0xff]  ;;  %v627_v10 = vld [vmem:[#allocation10 + $0x538] sm:$0xff] }
 0x1d8   :  { %1508 = vmatprep.subr.mxu1 %v513_v12  ;;  %1571 = vmatprep.subr.mxu0 %v729_v13  ;;  %v843_v11 = vld [vmem:[#allocation10 + $0xbf8] sm:$0xff]  ;;  %v626_v12 = vld [vmem:[#allocation10 + $0x530] sm:$0xff] }
 0x1d9   :  { %1509 = vmatpush1.msra.mxu1 %v512_v14  ;;  %1572 = vmatpush1.msra.mxu0 %v728_v15  ;;  %v842_v13 = vld [vmem:[#allocation10 + $0xbf0] sm:$0xff]  ;;  %v621_v14 = vld [vmem:[#allocation10 + $0x508] sm:$0xff] }
 0x1da   :  { %1510 = vmatprep.subr.mxu1 %v507_v16  ;;  %1573 = vmatprep.subr.mxu0 %v723_v17  ;;  %v837_v15 = vld [vmem:[#allocation10 + $0xbc8] sm:$0xff]  ;;  %v620_v16 = vld [vmem:[#allocation10 + $0x500] sm:$0xff] }
 0x1db   :  { %1511 = vmatpush1.msra.mxu1 %v506_v63  ;;  %1574 = vmatpush1.msra.mxu0 %v722_v18  ;;  %v836_v17 = vld [vmem:[#allocation10 + $0xbc0] sm:$0xff]  ;;  %v615_v63 = vld [vmem:[#allocation10 + $0x4d8] sm:$0xff] }
 0x1dc   :  { %1512 = vmatprep.subr.mxu1 %v501_v19  ;;  %1575 = vmatprep.subr.mxu0 %v717_v21  ;;  %v831_v18 = vld [vmem:[#allocation10 + $0xb98] sm:$0xff]  ;;  %v614_v19 = vld [vmem:[#allocation10 + $0x4d0] sm:$0xff] }
 0x1dd   :  { %1513 = vmatpush1.msra.mxu1 %v500_v22  ;;  %1576 = vmatpush1.msra.mxu0 %v716_v23  ;;  %v830_v21 = vld [vmem:[#allocation10 + $0xb90] sm:$0xff]  ;;  %v609_v22 = vld [vmem:[#allocation10 + $0x4a8] sm:$0xff] }
 0x1de   :  { %1514 = vmatprep.subr.mxu1 %v495_v24  ;;  %1577 = vmatprep.subr.mxu0 %v711_v25  ;;  %v825_v23 = vld [vmem:[#allocation10 + $0xb68] sm:$0xff]  ;;  %v608_v24 = vld [vmem:[#allocation10 + $0x4a0] sm:$0xff] }
 0x1df   :  { %1515 = vmatpush1.msra.mxu1 %v494_v26  ;;  %1578 = vmatpush1.msra.mxu0 %v710_v27  ;;  %v824_v25 = vld [vmem:[#allocation10 + $0xb60] sm:$0xff]  ;;  %v603_v26 = vld [vmem:[#allocation10 + $0x478] sm:$0xff] }
 0x1e0   :  { %1516 = vmatprep.subr.mxu1 %v489_v28  ;;  %1579 = vmatprep.subr.mxu0 %v705_v33  ;;  %v819_v27 = vld [vmem:[#allocation10 + $0xb38] sm:$0xff]  ;;  %v602_v28 = vld [vmem:[#allocation10 + $0x470] sm:$0xff] }
 0x1e1   :  { %1517 = vmatpush1.msra.mxu1 %v488_v34  ;;  %1580 = vmatpush1.msra.mxu0 %v704_v35  ;;  %v818_v33 = vld [vmem:[#allocation10 + $0xb30] sm:$0xff]  ;;  %v597_v34 = vld [vmem:[#allocation10 + $0x448] sm:$0xff] }
 0x1e2   :  { %1518 = vmatprep.subr.mxu1 %v483_v36  ;;  %1581 = vmatprep.subr.mxu0 %v699_v39  ;;  %v813_v35 = vld [vmem:[#allocation10 + $0xb08] sm:$0xff]  ;;  %v596_v36 = vld [vmem:[#allocation10 + $0x440] sm:$0xff] }
 0x1e3   :  { %1519 = vmatpush1.msra.mxu1 %v482_v40  ;;  %1582 = vmatpush1.msra.mxu0 %v698_v42  ;;  %v812_v39 = vld [vmem:[#allocation10 + $0xb00] sm:$0xff]  ;;  %v591_v40 = vld [vmem:[#allocation10 + $0x418] sm:$0xff] }
 0x1e4   :  { %1520 = vmatprep.subr.mxu1 %v477_v44  ;;  %1583 = vmatprep.subr.mxu0 %v693_v46  ;;  %v807_v42 = vld [vmem:[#allocation10 + $0xad8] sm:$0xff]  ;;  %v590_v44 = vld [vmem:[#allocation10 + $0x410] sm:$0xff] }
 0x1e5   :  { %1521 = vmatpush1.msra.mxu1 %v476_v47  ;;  %1584 = vmatpush1.msra.mxu0 %v692_v48  ;;  %v806_v46 = vld [vmem:[#allocation10 + $0xad0] sm:$0xff]  ;;  %v585_v47 = vld [vmem:[#allocation10 + $0x3e8] sm:$0xff] }
 0x1e6   :  { %1522 = vmatprep.subr.mxu1 %v471_v50  ;;  %1585 = vmatprep.subr.mxu0 %v687_v51  ;;  %v801_v48 = vld [vmem:[#allocation10 + $0xaa8] sm:$0xff]  ;;  %v584_v50 = vld [vmem:[#allocation10 + $0x3e0] sm:$0xff] }
 0x1e7   :  { %1523 = vmatpush1.msra.mxu1 %v470_v52  ;;  %1586 = vmatpush1.msra.mxu0 %v686_v53  ;;  %v800_v51 = vld [vmem:[#allocation10 + $0xaa0] sm:$0xff]  ;;  %v579_v52 = vld [vmem:[#allocation10 + $0x3b8] sm:$0xff] }
 0x1e8   :  { %1524 = vmatprep.subr.mxu1 %v465_v29  ;;  %1587 = vmatprep.subr.mxu0 %v681_v54  ;;  %v795_v53 = vld [vmem:[#allocation10 + $0xa78] sm:$0xff]  ;;  %v578_v29 = vld [vmem:[#allocation10 + $0x3b0] sm:$0xff] }
 0x1e9   :  { %1525 = vmatpush1.msra.mxu1 %v464_v55  ;;  %1588 = vmatpush1.msra.mxu0 %v680_v56  ;;  %v794_v54 = vld [vmem:[#allocation10 + $0xa70] sm:$0xff]  ;;  %v573_v55 = vld [vmem:[#allocation10 + $0x388] sm:$0xff] }
 0x1ea   :  { %1526 = vmatprep.subr.mxu1 %v651_v57  ;;  %1589 = vmatprep.subr.mxu0 %v675_v58  ;;  %v789_v56 = vld [vmem:[#allocation10 + $0xa48] sm:$0xff]  ;;  %v572_v57 = vld [vmem:[#allocation10 + $0x380] sm:$0xff] }
 0x1eb   :  { %1527 = vmatpush2.msra.mxu1 %v650_v59  ;;  %1590 = vmatpush1.msra.mxu0 %v674_v60  ;;  %v788_v58 = vld [vmem:[#allocation10 + $0xa40] sm:$0xff]  ;;  %v567_v59 = vld [vmem:[#allocation10 + $0x358] sm:$0xff] }
 0x1ec   :  { %1528 = vmatprep.subr.mxu1 %v645_v61  ;;  %1591 = vmatprep.subr.mxu0 %v669_v0  ;;  %v783_v60 = vld [vmem:[#allocation10 + $0xa18] sm:$0xff]  ;;  %v566_v61 = vld [vmem:[#allocation10 + $0x350] sm:$0xff] }
 0x1ed   :  { %1529 = vmatpush2.msra.mxu1 %v644_v31  ;;  %1592 = vmatpush1.msra.mxu0 %v668_v45  ;;  %v782_v0 = vld [vmem:[#allocation10 + $0xa10] sm:$0xff]  ;;  %v561_v31 = vld [vmem:[#allocation10 + $0x328] sm:$0xff] }
 0x1ee   :  { %1530 = vmatprep.subr.mxu1 %v639_v1  ;;  %1593 = vmatprep.subr.mxu0 %v663_v2  ;;  %v777_v45 = vld [vmem:[#allocation10 + $0x9e8] sm:$0xff]  ;;  %v560_v1 = vld [vmem:[#allocation10 + $0x320] sm:$0xff] }
 0x1ef   :  { %1531 = vmatpush2.msra.mxu1 %v638_v3  ;;  %1594 = vmatpush1.msra.mxu0 %v662_v5  ;;  %v776_v2 = vld [vmem:[#allocation10 + $0x9e0] sm:$0xff]  ;;  %v771_v3 = vld [vmem:[#allocation10 + $0x9b8] sm:$0xff] }
 0x1f0   :  { %1532 = vmatprep.subr.mxu1 %v633_v6  ;;  %1595 = vmatprep.subr.mxu0 %v657_v7  ;;  %v939_v5 = vld [vmem:[#allocation10 + $0xef8] sm:$0xff]  ;;  %v770_v6 = vld [vmem:[#allocation10 + $0x9b0] sm:$0xff] }
 0x1f1   :  { %1533 = vmatpush2.msra.mxu1 %v632_v8  ;;  %1596 = vmatpush1.msra.mxu0 %v656_v9  ;;  %v938_v7 = vld [vmem:[#allocation10 + $0xef0] sm:$0xff]  ;;  %v765_v8 = vld [vmem:[#allocation10 + $0x988] sm:$0xff] }
 0x1f2   :  { %1534 = vmatprep.subr.mxu1 %v627_v10  ;;  %1597 = vmatprep.subr.mxu0 %v843_v11  ;;  %v933_v9 = vld [vmem:[#allocation10 + $0xec8] sm:$0xff]  ;;  %v764_v10 = vld [vmem:[#allocation10 + $0x980] sm:$0xff] }
 0x1f3   :  { %1535 = vmatpush2.msra.mxu1 %v626_v12  ;;  %1598 = vmatpush2.msra.mxu0 %v842_v13  ;;  %v932_v11 = vld [vmem:[#allocation10 + $0xec0] sm:$0xff]  ;;  %v759_v12 = vld [vmem:[#allocation10 + $0x958] sm:$0xff] }
 0x1f4   :  { %1536 = vmatprep.subr.mxu1 %v621_v14  ;;  %1599 = vmatprep.subr.mxu0 %v837_v15  ;;  %v927_v13 = vld [vmem:[#allocation10 + $0xe98] sm:$0xff]  ;;  %v758_v14 = vld [vmem:[#allocation10 + $0x950] sm:$0xff] }
 0x1f5   :  { %1537 = vmatpush2.msra.mxu1 %v620_v16  ;;  %1600 = vmatpush2.msra.mxu0 %v836_v17  ;;  %v926_v15 = vld [vmem:[#allocation10 + $0xe90] sm:$0xff]  ;;  %v753_v16 = vld [vmem:[#allocation10 + $0x928] sm:$0xff]  ;;  %v752_v17 = vld [vmem:[#allocation10 + $0x920] sm:$0xff] }
 0x1f6   :  { %1538 = vmatprep.subr.mxu1 %v615_v63  ;;  %1601 = vmatprep.subr.mxu0 %v831_v18  ;;  %v920_v63 = vld [vmem:[#allocation10 + $0xe60] sm:$0xff]  ;;  %v915_v18 = vld [vmem:[#allocation10 + $0xe38] sm:$0xff] }
 0x1f7   :  { %1539 = vmatpush2.msra.mxu1 %v614_v19  ;;  %1602 = vmatpush2.msra.mxu0 %v830_v21  ;;  %v1817_v19 = vld [vmem:[#allocation13 + $0x2d8] sm:$0xff]  ;;  %v909_v21 = vld [vmem:[#allocation10 + $0xe08] sm:$0xff] }
 0x1f8   :  { %1540 = vmatprep.subr.mxu1 %v609_v22  ;;  %1603 = vmatprep.subr.mxu0 %v825_v23  ;;  %v1816_v22 = vld [vmem:[#allocation13 + $0x2d0] sm:$0xff]  ;;  %v908_v23 = vld [vmem:[#allocation10 + $0xe00] sm:$0xff] }
 0x1f9   :  { %1541 = vmatpush2.msra.mxu1 %v608_v24  ;;  %1604 = vmatpush2.msra.mxu0 %v824_v25  ;;  %v1811_v24 = vld [vmem:[#allocation13 + $0x2a8] sm:$0xff]  ;;  %v903_v25 = vld [vmem:[#allocation10 + $0xdd8] sm:$0xff] }
 0x1fa   :  { %1542 = vmatprep.subr.mxu1 %v603_v26  ;;  %1605 = vmatprep.subr.mxu0 %v819_v27  ;;  %v1810_v26 = vld [vmem:[#allocation13 + $0x2a0] sm:$0xff]  ;;  %v902_v27 = vld [vmem:[#allocation10 + $0xdd0] sm:$0xff] }
 0x1fb   :  { %1543 = vmatpush2.msra.mxu1 %v602_v28  ;;  %1606 = vmatpush2.msra.mxu0 %v818_v33  ;;  %v1805_v28 = vld [vmem:[#allocation13 + $0x278] sm:$0xff]  ;;  %v897_v33 = vld [vmem:[#allocation10 + $0xda8] sm:$0xff] }
 0x1fc   :  { %1544 = vmatprep.subr.mxu1 %v597_v34  ;;  %1607 = vmatprep.subr.mxu0 %v813_v35  ;;  %v1804_v34 = vld [vmem:[#allocation13 + $0x270] sm:$0xff]  ;;  %v896_v35 = vld [vmem:[#allocation10 + $0xda0] sm:$0xff] }
 0x1fd   :  { %1545 = vmatpush2.msra.mxu1 %v596_v36  ;;  %1608 = vmatpush2.msra.mxu0 %v812_v39  ;;  %v1799_v36 = vld [vmem:[#allocation13 + $0x248] sm:$0xff]  ;;  %v1798_v39 = vld [vmem:[#allocation13 + $0x240] sm:$0xff] }
 0x1fe   :  { %1546 = vmatprep.subr.mxu1 %v591_v40  ;;  %1609 = vmatprep.subr.mxu0 %v807_v42  ;;  %v890_v40 = vld [vmem:[#allocation10 + $0xd70] sm:$0xff]  ;;  %v1793_v42 = vld [vmem:[#allocation13 + $0x218] sm:$0xff] }
 0x1ff   :  { %1547 = vmatpush2.msra.mxu1 %v590_v44  ;;  %1610 = vmatpush2.msra.mxu0 %v806_v46  ;;  %v885_v44 = vld [vmem:[#allocation10 + $0xd48] sm:$0xff]  ;;  %v1792_v46 = vld [vmem:[#allocation13 + $0x210] sm:$0xff] }
 0x200   :  { %1548 = vmatprep.subr.mxu1 %v585_v47  ;;  %1611 = vmatprep.subr.mxu0 %v801_v48  ;;  %v884_v47 = vld [vmem:[#allocation10 + $0xd40] sm:$0xff]  ;;  %v1787_v48 = vld [vmem:[#allocation13 + $0x1e8] sm:$0xff] }
 0x201   :  { %1549 = vmatpush2.msra.mxu1 %v584_v50  ;;  %1612 = vmatpush2.msra.mxu0 %v800_v51  ;;  %v879_v50 = vld [vmem:[#allocation10 + $0xd18] sm:$0xff]  ;;  %v1786_v51 = vld [vmem:[#allocation13 + $0x1e0] sm:$0xff] }
 0x202   :  { %1550 = vmatprep.subr.mxu1 %v579_v52  ;;  %1613 = vmatprep.subr.mxu0 %v795_v53  ;;  %v878_v52 = vld [vmem:[#allocation10 + $0xd10] sm:$0xff]  ;;  %v1781_v53 = vld [vmem:[#allocation13 + $0x1b8] sm:$0xff] }
 0x203   :  { %1551 = vmatpush2.msra.mxu1 %v578_v29  ;;  %1614 = vmatpush2.msra.mxu0 %v794_v54  ;;  %v873_v29 = vld [vmem:[#allocation10 + $0xce8] sm:$0xff]  ;;  %v1780_v54 = vld [vmem:[#allocation13 + $0x1b0] sm:$0xff] }
 0x204   :  { %1552 = vmatprep.subr.mxu1 %v573_v55  ;;  %1615 = vmatprep.subr.mxu0 %v789_v56  ;;  %v872_v55 = vld [vmem:[#allocation10 + $0xce0] sm:$0xff]  ;;  %v1775_v56 = vld [vmem:[#allocation13 + $0x188] sm:$0xff] }
 0x205   :  { %1553 = vmatpush2.msra.mxu1 %v572_v57  ;;  %1616 = vmatpush2.msra.mxu0 %v788_v58  ;;  %v867_v57 = vld [vmem:[#allocation10 + $0xcb8] sm:$0xff]  ;;  %v1774_v58 = vld [vmem:[#allocation13 + $0x180] sm:$0xff] }
 0x206   :  { %1554 = vmatprep.subr.mxu1 %v567_v59  ;;  %1617 = vmatprep.subr.mxu0 %v783_v60  ;;  %v866_v59 = vld [vmem:[#allocation10 + $0xcb0] sm:$0xff]  ;;  %v1769_v60 = vld [vmem:[#allocation13 + $0x158] sm:$0xff] }
 0x207   :  { %1555 = vmatpush2.msra.mxu1 %v566_v61  ;;  %1618 = vmatpush2.msra.mxu0 %v782_v0  ;;  %v861_v61 = vld [vmem:[#allocation10 + $0xc88] sm:$0xff]  ;;  %v1768_v0 = vld [vmem:[#allocation13 + $0x150] sm:$0xff] }
 0x208   :  { %1556 = vmatprep.subr.mxu1 %v561_v31  ;;  %1619 = vmatprep.subr.mxu0 %v777_v45  ;;  %v860_v31 = vld [vmem:[#allocation10 + $0xc80] sm:$0xff]  ;;  %v1763_v45 = vld [vmem:[#allocation13 + $0x128] sm:$0xff] }
 0x209   :  { %1557 = vmatpush2.msra.mxu1 %v560_v1  ;;  %1620 = vmatpush2.msra.mxu0 %v776_v2  ;;  %v855_v1 = vld [vmem:[#allocation10 + $0xc58] sm:$0xff]  ;;  %v1762_v2 = vld [vmem:[#allocation13 + $0x120] sm:$0xff] }
 0x20a   :  { %1559 = vmatmul.mubr.f32.vlgmr.msra.gmra.mxu1 %v3958_v49  ;;  %1621 = vmatprep.subr.mxu0 %v771_v3  ;;  %v921_v49 = vld [vmem:[#allocation10 + $0xe68] sm:$0xff]  ;;  %v854_v3 = vld [vmem:[#allocation10 + $0xc50] sm:$0xff] }
 0x20b   :  { %1636 = vmatprep.subr.mxu1 %v939_v5  ;;  %1622 = vmatpush2.msra.mxu0 %v770_v6  ;;  %v1757_v5 = vld [vmem:[#allocation13 + $0xf8] sm:$0xff]  ;;  %v849_v6 = vld [vmem:[#allocation10 + $0xc28] sm:$0xff] }
 0x20c   :  { %1637 = vmatpush1.msra.mxu1 %v938_v7  ;;  %1700 = vmatprep.mubr.f32.mxu1 %v3981_v4  ;;  %v914_v4 = vld [vmem:[#allocation10 + $0xe30] sm:$0xff] }
 0x20d   :  { %1623 = vmatprep.subr.mxu0 %v765_v8  ;;  %1638 = vmatprep.subr.mxu1 %v933_v9  ;;  %v1756_v7 = vld [vmem:[#allocation13 + $0xf0] sm:$0xff]  ;;  %v848_v8 = vld [vmem:[#allocation10 + $0xc20] sm:$0xff]  ;;  %v1751_v9 = vld [vmem:[#allocation13 + $0xc8] sm:$0xff] }
 0x20e   :  { %1624 = vmatpush2.msra.mxu0 %v764_v10  ;;  %1639 = vmatpush1.msra.mxu1 %v932_v11  ;;  %v1035_v10 = vld [vmem:[#allocation10 + $0x11f8] sm:$0xff]  ;;  %v1750_v11 = vld [vmem:[#allocation13 + $0xc0] sm:$0xff] }
 0x20f   :  { %1625 = vmatprep.subr.mxu0 %v759_v12  ;;  %1640 = vmatprep.subr.mxu1 %v927_v13  ;;  %v1034_v12 = vld [vmem:[#allocation10 + $0x11f0] sm:$0xff]  ;;  %v1745_v13 = vld [vmem:[#allocation13 + $0x98] sm:$0xff] }
 0x210   :  { %1626 = vmatpush2.msra.mxu0 %v758_v14  ;;  %1641 = vmatpush1.msra.mxu1 %v926_v15  ;;  %v1029_v14 = vld [vmem:[#allocation10 + $0x11c8] sm:$0xff]  ;;  %v1744_v15 = vld [vmem:[#allocation13 + $0x90] sm:$0xff] }
 0x211   :  { %1627 = vmatprep.subr.mxu0 %v753_v16  ;;  %1642 = vmatprep.subr.mxu1 %v921_v49  ;;  %v1028_v16 = vld [vmem:[#allocation10 + $0x11c0] sm:$0xff]  ;;  %v1739_v49 = vld [vmem:[#allocation13 + $0x68] sm:$0xff] }
 0x212   :  { %1628 = vmatpush2.msra.mxu0 %v752_v17  ;;  %1643 = vmatpush1.msra.mxu1 %v920_v63  ;;  %v1023_v17 = vld [vmem:[#allocation10 + $0x1198] sm:$0xff]  ;;  %v1738_v63 = vld [vmem:[#allocation13 + $0x60] sm:$0xff] }
 0x213   :  { %1630 = vmatmul.mubr.f32.vlgmr.msra.gmra.mxu0 %v3963_v62  ;;  %1644 = vmatprep.subr.mxu1 %v915_v18  ;;  %v891_v62 = vld [vmem:[#allocation10 + $0xd78] sm:$0xff]  ;;  %v1022_v18 = vld [vmem:[#allocation10 + $0x1190] sm:$0xff] }
 0x214   :  { %1645 = vmatpush1.msra.mxu1 %v914_v4  ;;  %2334 = vmatprep.subr.mxu0 %v1817_v19  ;;  %v1733_v4 = vld [vmem:[#allocation13 + $0x38] sm:$0xff]  ;;  %v1017_v19 = vld [vmem:[#allocation10 + $0x1168] sm:$0xff] }
 0x215   :  { %1646 = vmatprep.subr.mxu1 %v909_v21  ;;  %2335 = vmatpush1.msra.mxu0 %v1816_v22  ;;  %v1732_v21 = vld [vmem:[#allocation13 + $0x30] sm:$0xff]  ;;  %v1016_v22 = vld [vmem:[#allocation10 + $0x1160] sm:$0xff] }
 0x216   :  { %1647 = vmatpush1.msra.mxu1 %v908_v23  ;;  %2336 = vmatprep.subr.mxu0 %v1811_v24  ;;  %v1727_v23 = vld [vmem:[#allocation13 + $0x8] sm:$0xff]  ;;  %v1011_v24 = vld [vmem:[#allocation10 + $0x1138] sm:$0xff] }
 0x217   :  { %1648 = vmatprep.subr.mxu1 %v903_v25  ;;  %2337 = vmatpush1.msra.mxu0 %v1810_v26  ;;  %v1726_v25 = vld [vmem:[#allocation13] sm:$0xff]  ;;  %v1010_v26 = vld [vmem:[#allocation10 + $0x1130] sm:$0xff] }
 0x218   :  { %1649 = vmatpush1.msra.mxu1 %v902_v27  ;;  %2338 = vmatprep.subr.mxu0 %v1805_v28  ;;  %v1913_v27 = vld [vmem:[#allocation13 + $0x5d8] sm:$0xff]  ;;  %v1005_v28 = vld [vmem:[#allocation10 + $0x1108] sm:$0xff] }
 0x219   :  { %1650 = vmatprep.subr.mxu1 %v897_v33  ;;  %2339 = vmatpush1.msra.mxu0 %v1804_v34  ;;  %v1912_v33 = vld [vmem:[#allocation13 + $0x5d0] sm:$0xff]  ;;  %v1004_v34 = vld [vmem:[#allocation10 + $0x1100] sm:$0xff] }
 0x21a   :  { %1651 = vmatpush1.msra.mxu1 %v896_v35  ;;  %2340 = vmatprep.subr.mxu0 %v1799_v36  ;;  %v1907_v35 = vld [vmem:[#allocation13 + $0x5a8] sm:$0xff]  ;;  %v999_v36 = vld [vmem:[#allocation10 + $0x10d8] sm:$0xff] }
 0x21b   :  { %1652 = vmatprep.subr.mxu1 %v891_v62  ;;  %2341 = vmatpush1.msra.mxu0 %v1798_v39  ;;  %v1906_v62 = vld [vmem:[#allocation13 + $0x5a0] sm:$0xff]  ;;  %v998_v39 = vld [vmem:[#allocation10 + $0x10d0] sm:$0xff] }
 0x21c   :  { %1653 = vmatpush1.msra.mxu1 %v890_v40  ;;  %2342 = vmatprep.subr.mxu0 %v1793_v42  ;;  %v1901_v40 = vld [vmem:[#allocation13 + $0x578] sm:$0xff]  ;;  %v993_v42 = vld [vmem:[#allocation10 + $0x10a8] sm:$0xff] }
 0x21d   :  { %1654 = vmatprep.subr.mxu1 %v885_v44  ;;  %2343 = vmatpush1.msra.mxu0 %v1792_v46  ;;  %v1900_v44 = vld [vmem:[#allocation13 + $0x570] sm:$0xff]  ;;  %v992_v46 = vld [vmem:[#allocation10 + $0x10a0] sm:$0xff] }
 0x21e   :  { %1655 = vmatpush1.msra.mxu1 %v884_v47  ;;  %2344 = vmatprep.subr.mxu0 %v1787_v48  ;;  %v1895_v47 = vld [vmem:[#allocation13 + $0x548] sm:$0xff]  ;;  %v987_v48 = vld [vmem:[#allocation10 + $0x1078] sm:$0xff] }
 0x21f   :  { %1656 = vmatprep.subr.mxu1 %v879_v50  ;;  %2345 = vmatpush1.msra.mxu0 %v1786_v51  ;;  %v1894_v50 = vld [vmem:[#allocation13 + $0x540] sm:$0xff]  ;;  %v986_v51 = vld [vmem:[#allocation10 + $0x1070] sm:$0xff] }
 0x220   :  { %1657 = vmatpush1.msra.mxu1 %v878_v52  ;;  %2346 = vmatprep.subr.mxu0 %v1781_v53  ;;  %v1889_v52 = vld [vmem:[#allocation13 + $0x518] sm:$0xff]  ;;  %v981_v53 = vld [vmem:[#allocation10 + $0x1048] sm:$0xff] }
 0x221   :  { %1658 = vmatprep.subr.mxu1 %v873_v29  ;;  %2347 = vmatpush1.msra.mxu0 %v1780_v54  ;;  %v1888_v29 = vld [vmem:[#allocation13 + $0x510] sm:$0xff]  ;;  %v980_v54 = vld [vmem:[#allocation10 + $0x1040] sm:$0xff] }
 0x222   :  { %1659 = vmatpush1.msra.mxu1 %v872_v55  ;;  %2348 = vmatprep.subr.mxu0 %v1775_v56  ;;  %v1883_v55 = vld [vmem:[#allocation13 + $0x4e8] sm:$0xff]  ;;  %v975_v56 = vld [vmem:[#allocation10 + $0x1018] sm:$0xff] }
 0x223   :  { %1660 = vmatprep.subr.mxu1 %v867_v57  ;;  %2349 = vmatpush1.msra.mxu0 %v1774_v58  ;;  %v1882_v57 = vld [vmem:[#allocation13 + $0x4e0] sm:$0xff]  ;;  %v974_v58 = vld [vmem:[#allocation10 + $0x1010] sm:$0xff] }
 0x224   :  { %1661 = vmatpush1.msra.mxu1 %v866_v59  ;;  %2350 = vmatprep.subr.mxu0 %v1769_v60  ;;  %v1877_v59 = vld [vmem:[#allocation13 + $0x4b8] sm:$0xff]  ;;  %v1134_v60 = vpop.f32.mrf.mxu1 }
 0x225   :  { %1662 = vmatprep.subr.mxu1 %v861_v61  ;;  %2351 = vmatpush1.msra.mxu0 %v1768_v0  ;;  %v969_v61 = vld [vmem:[#allocation10 + $0xfe8] sm:$0xff]  ;;  %v1876_v0 = vld [vmem:[#allocation13 + $0x4b0] sm:$0xff] }
 0x226   :  { %1663 = vmatpush1.msra.mxu1 %v860_v31  ;;  %2352 = vmatprep.subr.mxu0 %v1763_v45  ;;  %v968_v31 = vld [vmem:[#allocation10 + $0xfe0] sm:$0xff]  ;;  %v1871_v45 = vld [vmem:[#allocation13 + $0x488] sm:$0xff] }
 0x227   :  { %1664 = vmatprep.subr.mxu1 %v855_v1  ;;  %2353 = vmatpush1.msra.mxu0 %v1762_v2  ;;  %v3998_v1 = vld [vmem:[#allocation12] sm:$0x3f]  ;;  %v1205_v2 = vpop.f32.mrf.mxu0 }
 0x228   :  { %1665 = vmatpush1.msra.mxu1 %v854_v3  ;;  %2354 = vmatprep.subr.mxu0 %v1757_v5  ;;  %v963_v3 = vld [vmem:[#allocation10 + $0xfb8] sm:$0xff]  ;;  %v1870_v5 = vld [vmem:[#allocation13 + $0x480] sm:$0xff] }
 0x229   :  { %1666 = vmatprep.subr.mxu1 %v849_v6  ;;  %2355 = vmatpush1.msra.mxu0 %v1756_v7  ;;  %v1045_v6 = vrot.slane %v3998_v1, %v3935_v32  ;;  %v962_v7 = vld [vmem:[#allocation10 + $0xfb0] sm:$0xff] }
 0x22a   :  { %1667 = vmatpush1.msra.mxu1 %v848_v8  ;;  %2356 = vmatprep.subr.mxu0 %v1751_v9  ;;  %v1865_v8 = vld [vmem:[#allocation13 + $0x458] sm:$0xff]  ;;  %v1136_v9 = vpop.f32.mrf.mxu1 }
 0x22b   :  { %1668 = vmatprep.subr.mxu1 %v1035_v10  ;;  %2357 = vmatpush1.msra.mxu0 %v1750_v11  ;;  %v957_v10 = vld [vmem:[#allocation10 + $0xf88] sm:$0xff]  ;;  %v1864_v11 = vld [vmem:[#allocation13 + $0x450] sm:$0xff] }
 0x22c   :  { %1669 = vmatpush2.msra.mxu1 %v1034_v12  ;;  %2358 = vmatprep.subr.mxu0 %v1745_v13  ;;  %v1041_v12 = vrot.slane %v3998_v1, %v3930_v30  ;;  %v956_v13 = vld [vmem:[#allocation10 + $0xf80] sm:$0xff] }
 0x22d   :  { %1670 = vmatprep.subr.mxu1 %v1029_v14  ;;  %2359 = vmatpush1.msra.mxu0 %v1744_v15  ;;  %v1859_v14 = vld [vmem:[#allocation13 + $0x428] sm:$0xff]  ;;  %v1207_v15 = vpop.f32.mrf.mxu0 }
 0x22e   :  { %1671 = vmatpush2.msra.mxu1 %v1028_v16  ;;  %2360 = vmatprep.subr.mxu0 %v1739_v49  ;;  %v951_v16 = vld [vmem:[#allocation10 + $0xf58] sm:$0xff]  ;;  %v1858_v49 = vld [vmem:[#allocation13 + $0x420] sm:$0xff] }
 0x22f   :  { %1672 = vmatprep.subr.mxu1 %v1023_v17  ;;  %2361 = vmatpush1.msra.mxu0 %v1738_v63  ;;  %v1137_v17 = vadd.f32 %v1136_v9, %v1045_v6  ;;  %v950_v63 = vld [vmem:[#allocation10 + $0xf50] sm:$0xff]  ;;  %v2189_v6 = vld [vmem:[#allocation13 + $0xe78] sm:$0xff] }
 0x230   :  { %1673 = vmatpush2.msra.mxu1 %v1022_v18  ;;  %2362 = vmatprep.subr.mxu0 %v1733_v4  ;;  %v1853_v18 = vld [vmem:[#allocation13 + $0x3f8] sm:$0xff]  ;;  %v945_v4 = vld [vmem:[#allocation10 + $0xf28] sm:$0xff] }
 0x231   :  { %1674 = vmatprep.subr.mxu1 %v1017_v19  ;;  %2363 = vmatpush1.msra.mxu0 %v1732_v21  ;;  %v1852_v19 = vld [vmem:[#allocation13 + $0x3f0] sm:$0xff]  ;;  %v1967_v9 = vld [vmem:[#allocation13 + $0x788] sm:$0xff] }
 0x232   :  { %1675 = vmatpush2.msra.mxu1 %v1016_v22  ;;  %2364 = vmatprep.subr.mxu0 %v1727_v23  ;;  %v1135_v22 = vadd.f32 %v1134_v60, %v1041_v12  ;;  %v1208_v23 = vadd.f32 %v1207_v15, %v1137_v17  ;;  %v2182_v12 = vld [vmem:[#allocation13 + $0xe40] sm:$0xff]  ;;  %v1960_v15 = vld [vmem:[#allocation13 + $0x750] sm:$0xff]  ;;  %v2171_v17 = vld [vmem:[#allocation13 + $0xde8] sm:$0xff] }
 0x233   :  { %1676 = vmatprep.subr.mxu1 %v1011_v24  ;;  %2365 = vmatpush1.msra.mxu0 %v1726_v25  ;;  %v944_v24 = vld [vmem:[#allocation10 + $0xf20] sm:$0xff]  ;;  %v1847_v25 = vld [vmem:[#allocation13 + $0x3c8] sm:$0xff] }
 0x234   :  { %1677 = vmatpush2.msra.mxu1 %v1010_v26  ;;  %2366 = vmatprep.subr.mxu0 %v1913_v27  ;;  %v1846_v26 = vld [vmem:[#allocation13 + $0x3c0] sm:$0xff] }
 0x235   :  { %1678 = vmatprep.subr.mxu1 %v1005_v28  ;;  %2367 = vmatpush2.msra.mxu0 %v1912_v33  ;;  %v1206_v28 = vadd.f32 %v1205_v2, %v1135_v22  ;;  %v1841_v33 = vld [vmem:[#allocation13 + $0x398] sm:$0xff]  ;;  %v1978_v2 = vld [vmem:[#allocation13 + $0x7e0] sm:$0xff]  ;;  %v2164_v22 = vld [vmem:[#allocation13 + $0xdb0] sm:$0xff] }
 0x236   :  { %1679 = vmatpush2.msra.mxu1 %v1004_v34  ;;  %2368 = vmatprep.subr.mxu0 %v1907_v35  ;;  %v2009_v35 = vld [vmem:[#allocation13 + $0x8d8] sm:$0xff] }
 0x237   :  { %1680 = vmatprep.subr.mxu1 %v999_v36  ;;  %2369 = vmatpush2.msra.mxu0 %v1906_v62  ;;  %v4007_v36 = vstv %s4002_s11  ;;  %v1840_v62 = vld [vmem:[#allocation13 + $0x390] sm:$0xff] }
 0x238   :  { %1681 = vmatpush2.msra.mxu1 %v998_v39  ;;  %2370 = vmatprep.subr.mxu0 %v1901_v40  ;;  %v2008_v39 = vld [vmem:[#allocation13 + $0x8d0] sm:$0xff] }
 0x239   :  { %1682 = vmatprep.subr.mxu1 %v993_v42  ;;  %2371 = vmatpush2.msra.mxu0 %v1900_v44  ;;  %v1835_v44 = vld [vmem:[#allocation13 + $0x368] sm:$0xff] }
 0x23a   :  { %1683 = vmatpush2.msra.mxu1 %v992_v46  ;;  %2372 = vmatprep.subr.mxu0 %v1895_v47  ;;  %v1834_v46 = vld [vmem:[#allocation13 + $0x360] sm:$0xff]  ;;  %v2003_v47 = vld [vmem:[#allocation13 + $0x8a8] sm:$0xff] }
 0x23b   :  { %1684 = vmatprep.subr.mxu1 %v987_v48  ;;  %2373 = vmatpush2.msra.mxu0 %v1894_v50  ;;  %v1829_v48 = vld [vmem:[#allocation13 + $0x338] sm:$0xff] }
 0x23c   :  { %1685 = vmatpush2.msra.mxu1 %v986_v51  ;;  %2374 = vmatprep.subr.mxu0 %v1889_v52  ;;  %v2002_v51 = vld [vmem:[#allocation13 + $0x8a0] sm:$0xff]  ;;  %v1828_v52 = vld [vmem:[#allocation13 + $0x330] sm:$0xff] }
 0x23d   :  { %1686 = vmatprep.subr.mxu1 %v981_v53  ;;  %2375 = vmatpush2.msra.mxu0 %v1888_v29  ;;  %v1823_v29 = vld [vmem:[#allocation13 + $0x308] sm:$0xff] }
 0x23e   :  { %1687 = vmatpush2.msra.mxu1 %v980_v54  ;;  %2376 = vmatprep.subr.mxu0 %v1883_v55  ;;  %v1996_v54 = vld [vmem:[#allocation13 + $0x870] sm:$0xff]  ;;  %v1822_v55 = vld [vmem:[#allocation13 + $0x300] sm:$0xff] }
 0x23f   :  { %1688 = vmatprep.subr.mxu1 %v975_v56  ;;  %2377 = vmatpush2.msra.mxu0 %v1882_v57  ;;  %v1991_v56 = vld [vmem:[#allocation13 + $0x848] sm:$0xff]  ;;  %v1990_v57 = vld [vmem:[#allocation13 + $0x840] sm:$0xff] }
 0x240   :  { %1689 = vmatpush2.msra.mxu1 %v974_v58  ;;  %2378 = vmatprep.subr.mxu0 %v1877_v59  ;;  %v1985_v58 = vld [vmem:[#allocation13 + $0x818] sm:$0xff] }
 0x241   :  { %1690 = vmatprep.subr.mxu1 %v969_v61  ;;  %2379 = vmatpush2.msra.mxu0 %v1876_v0  ;;  %v2201_v59 = vld [vmem:[#allocation13 + $0xed8] sm:$0xff]  ;;  %v1984_v61 = vld [vmem:[#allocation13 + $0x810] sm:$0xff] }
 0x242   :  { %1691 = vmatpush2.msra.mxu1 %v968_v31  ;;  %2380 = vmatprep.subr.mxu0 %v1871_v45  ;;  %v2200_v0 = vld [vmem:[#allocation13 + $0xed0] sm:$0xff]  ;;  %v1979_v31 = vld [vmem:[#allocation13 + $0x7e8] sm:$0xff] }
 0x243   :  { %1692 = vmatprep.subr.mxu1 %v963_v3  ;;  %2381 = vmatpush2.msra.mxu0 %v1870_v5  ;;  %v2195_v45 = vld [vmem:[#allocation13 + $0xea8] sm:$0xff]  ;;  %v2194_v3 = vld [vmem:[#allocation13 + $0xea0] sm:$0xff]  ;;  %v1973_v5 = vld [vmem:[#allocation13 + $0x7b8] sm:$0xff] }
 0x244   :  { %1693 = vmatpush2.msra.mxu1 %v962_v7  ;;  %2382 = vmatprep.subr.mxu0 %v1865_v8  ;;  %v1972_v7 = vld [vmem:[#allocation13 + $0x7b0] sm:$0xff] }
 0x245   :  { %1694 = vmatprep.subr.mxu1 %v957_v10  ;;  %2383 = vmatpush2.msra.mxu0 %v1864_v11  ;;  %v2188_v8 = vld [vmem:[#allocation13 + $0xe70] sm:$0xff]  ;;  %v2183_v10 = vld [vmem:[#allocation13 + $0xe48] sm:$0xff]  ;;  %v1966_v11 = vld [vmem:[#allocation13 + $0x780] sm:$0xff] }
 0x246   :  { %1695 = vmatpush2.msra.mxu1 %v956_v13  ;;  %2384 = vmatprep.subr.mxu0 %v1859_v14  ;;  %v1276_v21 = vpop.f32.mrf.mxu1  ;;  %v1961_v13 = vld [vmem:[#allocation13 + $0x758] sm:$0xff] }
 0x247   :  { %1696 = vmatprep.subr.mxu1 %v951_v16  ;;  %2385 = vmatpush2.msra.mxu0 %v1858_v49  ;;  %v1277_v40 = vadd.f32 %v1276_v21, %v1206_v28  ;;  %v2177_v14 = vld [vmem:[#allocation13 + $0xe18] sm:$0xff]  ;;  %v2176_v16 = vld [vmem:[#allocation13 + $0xe10] sm:$0xff]  ;;  %v1955_v49 = vld [vmem:[#allocation13 + $0x728] sm:$0xff] }
 0x248   :  { %1697 = vmatpush2.msra.mxu1 %v950_v63  ;;  %2386 = vmatprep.subr.mxu0 %v1853_v18  ;;  %v1278_v27 = vpop.f32.mrf.mxu1  ;;  %v1954_v63 = vld [vmem:[#allocation13 + $0x720] sm:$0xff]  ;;  %v1948_v21 = vld [vmem:[#allocation13 + $0x6f0] sm:$0xff]  ;;  %v2153_v28 = vld [vmem:[#allocation13 + $0xd58] sm:$0xff] }
 0x249   :  { %1698 = vmatprep.subr.mxu1 %v945_v4  ;;  %2387 = vmatpush2.msra.mxu0 %v1852_v19  ;;  %v1279_v34 = vadd.f32 %v1278_v27, %v1208_v23  ;;  %v1714_v53 = vmul.f32 %v4007_v36, %v1277_v40  ;;  %vm1707_vm8 = vcmp.gt.f32.partialorder %v1277_v40, 0.0  ;;  %v2170_v18 = vld [vmem:[#allocation13 + $0xde0] sm:$0xff]  ;;  %v1949_v4 = vld [vmem:[#allocation13 + $0x6f8] sm:$0xff]  ;;  %v1943_v23 = vld [vmem:[#allocation13 + $0x6c8] sm:$0xff] }
 0x24a   :  { %1699 = vmatpush2.msra.mxu1 %v944_v24  ;;  %2388 = vmatprep.subr.mxu0 %v1847_v25  ;;  %v2165_v19 = vld [vmem:[#allocation13 + $0xdb8] sm:$0xff]  ;;  %v2159_v24 = vld [vmem:[#allocation13 + $0xd88] sm:$0xff]  ;;  %v1942_v25 = vld [vmem:[#allocation13 + $0x6c0] sm:$0xff] }
 0x24b   :  { %1701 = vmatmul.mubr.f32.vlgmr.msra.gmra.mxu1 %v3985_v37  ;;  %2389 = vmatpush2.msra.mxu0 %v1846_v26  ;;  %v1715_v42 = vmul.f32 %v4007_v36, %v1279_v34  ;;  %vm1708_vm7 = vcmp.gt.f32.partialorder %v1279_v34, 0.0  ;;  %v1997_v37 = vld [vmem:[#allocation13 + $0x878] sm:$0xff]  ;;  %v4015_v60 = vsel %vm1707_vm8, %v1277_v40, %v1714_v53  ;;  %v2158_v26 = vld [vmem:[#allocation13 + $0xd80] sm:$0xff] }
 0x24c   :  { %2390 = vmatprep.subr.mxu0 %v1841_v33  ;;  %2405 = vmatprep.subr.mxu1 %v2009_v35  ;;  %v1937_v27 = vld [vmem:[#allocation13 + $0x698] sm:$0xff]  ;;  %v1936_v33 = vld [vmem:[#allocation13 + $0x690] sm:$0xff]  ;;  %v1931_v35 = vld [vmem:[#allocation13 + $0x668] sm:$0xff] }
 0x24d   :  { %2391 = vmatpush2.msra.mxu0 %v1840_v62  ;;  %v4011_v50 = vsel %vm1708_vm7, %v1279_v34, %v1715_v42  ;;  %2406 = vmatpush1.msra.mxu1 %v2008_v39  ;;  %v2152_v34 = vld [vmem:[#allocation13 + $0xd50] sm:$0xff]  ;;  %v2147_v62 = vld [vmem:[#allocation13 + $0xd28] sm:$0xff]  ;;  %v1930_v39 = vld [vmem:[#allocation13 + $0x660] sm:$0xff] }
 0x24e   :  { %2392 = vmatprep.subr.mxu0 %v1835_v44  ;;  %2398 = vmatprep.mubr.f32.mxu0 %v4011_v50  ;;  %v2146_v40 = vld [vmem:[#allocation13 + $0xd20] sm:$0xff]  ;;  %v1925_v42 = vld [vmem:[#allocation13 + $0x638] sm:$0xff] }
 0x24f   :  { %2393 = vmatpush2.msra.mxu0 %v1834_v46  ;;  %2407 = vmatprep.subr.mxu1 %v2003_v47  ;;  %v2141_v44 = vld [vmem:[#allocation13 + $0xcf8] sm:$0xff]  ;;  %v1924_v46 = vld [vmem:[#allocation13 + $0x630] sm:$0xff] }
 0x250   :  { %2394 = vmatprep.subr.mxu0 %v1829_v48  ;;  %2408 = vmatpush1.msra.mxu1 %v2002_v51  ;;  %v2140_v47 = vld [vmem:[#allocation13 + $0xcf0] sm:$0xff]  ;;  %v1919_v48 = vld [vmem:[#allocation13 + $0x608] sm:$0xff]  ;;  %v2105_v53 = vld [vmem:[#allocation13 + $0xbd8] sm:$0xff] }
 0x251   :  { %2395 = vmatpush2.msra.mxu0 %v1828_v52  ;;  %2409 = vmatprep.subr.mxu1 %v1997_v37  ;;  %v2135_v51 = vld [vmem:[#allocation13 + $0xcc8] sm:$0xff]  ;;  %v1918_v52 = vld [vmem:[#allocation13 + $0x600] sm:$0xff] }
 0x252   :  { %2396 = vmatprep.subr.mxu0 %v1823_v29  ;;  %2410 = vmatpush1.msra.mxu1 %v1996_v54  ;;  %v2134_v37 = vld [vmem:[#allocation13 + $0xcc0] sm:$0xff]  ;;  %v2129_v29 = vld [vmem:[#allocation13 + $0xc98] sm:$0xff]  ;;  %v2104_v54 = vld [vmem:[#allocation13 + $0xbd0] sm:$0xff] }
 0x253   :  { %2397 = vmatpush2.msra.mxu0 %v1822_v55  ;;  %2411 = vmatprep.subr.mxu1 %v1991_v56  ;;  %v2128_v55 = vld [vmem:[#allocation13 + $0xc90] sm:$0xff]  ;;  %v2099_v56 = vld [vmem:[#allocation13 + $0xba8] sm:$0xff] }
 0x254   :  { %2399 = vmatmul.mubr.f32.vlgmr.msra.gmra.mxu0 %v4015_v60  ;;  %2412 = vmatpush1.msra.mxu1 %v1990_v57  ;;  %v2123_v57 = vld [vmem:[#allocation13 + $0xc68] sm:$0xff] }
 0x255   :  { %2413 = vmatprep.subr.mxu1 %v1985_v58  ;;  %2476 = vmatprep.subr.mxu0 %v2201_v59  ;;  %v2098_v58 = vld [vmem:[#allocation13 + $0xba0] sm:$0xff] }
 0x256   :  { %2414 = vmatpush1.msra.mxu1 %v1984_v61  ;;  %2477 = vmatpush1.msra.mxu0 %v2200_v0  ;;  %v2122_v59 = vld [vmem:[#allocation13 + $0xc60] sm:$0xff]  ;;  %v2093_v61 = vld [vmem:[#allocation13 + $0xb78] sm:$0xff] }
 0x257   :  { %2415 = vmatprep.subr.mxu1 %v1979_v31  ;;  %2478 = vmatprep.subr.mxu0 %v2195_v45  ;;  %v2117_v0 = vld [vmem:[#allocation13 + $0xc38] sm:$0xff]  ;;  %v2092_v31 = vld [vmem:[#allocation13 + $0xb70] sm:$0xff] }
 0x258   :  { %2416 = vmatpush1.msra.mxu1 %v1978_v2  ;;  %2479 = vmatpush1.msra.mxu0 %v2194_v3  ;;  %v2116_v45 = vld [vmem:[#allocation13 + $0xc30] sm:$0xff]  ;;  %v2087_v2 = vld [vmem:[#allocation13 + $0xb48] sm:$0xff] }
 0x259   :  { %2417 = vmatprep.subr.mxu1 %v1973_v5  ;;  %2480 = vmatprep.subr.mxu0 %v2189_v6  ;;  %v2111_v3 = vld [vmem:[#allocation13 + $0xc08] sm:$0xff]  ;;  %v2086_v5 = vld [vmem:[#allocation13 + $0xb40] sm:$0xff] }
 0x25a   :  { %2418 = vmatpush1.msra.mxu1 %v1972_v7  ;;  %2481 = vmatpush1.msra.mxu0 %v2188_v8  ;;  %v2110_v6 = vld [vmem:[#allocation13 + $0xc00] sm:$0xff]  ;;  %v2081_v7 = vld [vmem:[#allocation13 + $0xb18] sm:$0xff] }
 0x25b   :  { %2419 = vmatprep.subr.mxu1 %v1967_v9  ;;  %2482 = vmatprep.subr.mxu0 %v2183_v10  ;;  %v2297_v8 = vld [vmem:[#allocation13 + $0x11d8] sm:$0xff]  ;;  %v2080_v9 = vld [vmem:[#allocation13 + $0xb10] sm:$0xff] }
 0x25c   :  { %2420 = vmatpush1.msra.mxu1 %v1966_v11  ;;  %2483 = vmatpush1.msra.mxu0 %v2182_v12  ;;  %v2296_v10 = vld [vmem:[#allocation13 + $0x11d0] sm:$0xff]  ;;  %v2075_v11 = vld [vmem:[#allocation13 + $0xae8] sm:$0xff] }
 0x25d   :  { %2421 = vmatprep.subr.mxu1 %v1961_v13  ;;  %2484 = vmatprep.subr.mxu0 %v2177_v14  ;;  %v2291_v12 = vld [vmem:[#allocation13 + $0x11a8] sm:$0xff]  ;;  %v2074_v13 = vld [vmem:[#allocation13 + $0xae0] sm:$0xff] }
 0x25e   :  { %2422 = vmatpush1.msra.mxu1 %v1960_v15  ;;  %2485 = vmatpush1.msra.mxu0 %v2176_v16  ;;  %v2290_v14 = vld [vmem:[#allocation13 + $0x11a0] sm:$0xff]  ;;  %v2069_v15 = vld [vmem:[#allocation13 + $0xab8] sm:$0xff] }
 0x25f   :  { %2423 = vmatprep.subr.mxu1 %v1955_v49  ;;  %2486 = vmatprep.subr.mxu0 %v2171_v17  ;;  %v2285_v16 = vld [vmem:[#allocation13 + $0x1178] sm:$0xff]  ;;  %v2068_v49 = vld [vmem:[#allocation13 + $0xab0] sm:$0xff] }
 0x260   :  { %2424 = vmatpush1.msra.mxu1 %v1954_v63  ;;  %2487 = vmatpush1.msra.mxu0 %v2170_v18  ;;  %v2284_v17 = vld [vmem:[#allocation13 + $0x1170] sm:$0xff]  ;;  %v2063_v63 = vld [vmem:[#allocation13 + $0xa88] sm:$0xff] }
 0x261   :  { %2425 = vmatprep.subr.mxu1 %v1949_v4  ;;  %2488 = vmatprep.subr.mxu0 %v2165_v19  ;;  %v2279_v18 = vld [vmem:[#allocation13 + $0x1148] sm:$0xff]  ;;  %v2062_v4 = vld [vmem:[#allocation13 + $0xa80] sm:$0xff] }
 0x262   :  { %2426 = vmatpush1.msra.mxu1 %v1948_v21  ;;  %2489 = vmatpush1.msra.mxu0 %v2164_v22  ;;  %v2278_v19 = vld [vmem:[#allocation13 + $0x1140] sm:$0xff]  ;;  %v2057_v21 = vld [vmem:[#allocation13 + $0xa58] sm:$0xff] }
 0x263   :  { %2427 = vmatprep.subr.mxu1 %v1943_v23  ;;  %2490 = vmatprep.subr.mxu0 %v2159_v24  ;;  %v2273_v22 = vld [vmem:[#allocation13 + $0x1118] sm:$0xff]  ;;  %v2056_v23 = vld [vmem:[#allocation13 + $0xa50] sm:$0xff] }
 0x264   :  { %2428 = vmatpush1.msra.mxu1 %v1942_v25  ;;  %2491 = vmatpush1.msra.mxu0 %v2158_v26  ;;  %v2272_v24 = vld [vmem:[#allocation13 + $0x1110] sm:$0xff]  ;;  %v2051_v25 = vld [vmem:[#allocation13 + $0xa28] sm:$0xff] }
 0x265   :  { %2429 = vmatprep.subr.mxu1 %v1937_v27  ;;  %2492 = vmatprep.subr.mxu0 %v2153_v28  ;;  %v2267_v26 = vld [vmem:[#allocation13 + $0x10e8] sm:$0xff]  ;;  %v2050_v27 = vld [vmem:[#allocation13 + $0xa20] sm:$0xff] }
 0x266   :  { %2430 = vmatpush1.msra.mxu1 %v1936_v33  ;;  %2493 = vmatpush1.msra.mxu0 %v2152_v34  ;;  %v2266_v28 = vld [vmem:[#allocation13 + $0x10e0] sm:$0xff]  ;;  %v2045_v33 = vld [vmem:[#allocation13 + $0x9f8] sm:$0xff] }
 0x267   :  { %2431 = vmatprep.subr.mxu1 %v1931_v35  ;;  %2494 = vmatprep.subr.mxu0 %v2147_v62  ;;  %v2261_v34 = vld [vmem:[#allocation13 + $0x10b8] sm:$0xff]  ;;  %v2044_v35 = vld [vmem:[#allocation13 + $0x9f0] sm:$0xff] }
 0x268   :  { %2432 = vmatpush1.msra.mxu1 %v1930_v39  ;;  %2495 = vmatpush1.msra.mxu0 %v2146_v40  ;;  %v2260_v62 = vld [vmem:[#allocation13 + $0x10b0] sm:$0xff]  ;;  %v2039_v39 = vld [vmem:[#allocation13 + $0x9c8] sm:$0xff] }
 0x269   :  { %2433 = vmatprep.subr.mxu1 %v1925_v42  ;;  %2496 = vmatprep.subr.mxu0 %v2141_v44  ;;  %v2255_v40 = vld [vmem:[#allocation13 + $0x1088] sm:$0xff]  ;;  %v2038_v42 = vld [vmem:[#allocation13 + $0x9c0] sm:$0xff] }
 0x26a   :  { %2434 = vmatpush1.msra.mxu1 %v1924_v46  ;;  %2497 = vmatpush1.msra.mxu0 %v2140_v47  ;;  %v2254_v44 = vld [vmem:[#allocation13 + $0x1080] sm:$0xff]  ;;  %v2033_v46 = vld [vmem:[#allocation13 + $0x998] sm:$0xff] }
 0x26b   :  { %2435 = vmatprep.subr.mxu1 %v1919_v48  ;;  %2498 = vmatprep.subr.mxu0 %v2135_v51  ;;  %v2249_v47 = vld [vmem:[#allocation13 + $0x1058] sm:$0xff]  ;;  %v2032_v48 = vld [vmem:[#allocation13 + $0x990] sm:$0xff] }
 0x26c   :  { %2436 = vmatpush1.msra.mxu1 %v1918_v52  ;;  %2499 = vmatpush1.msra.mxu0 %v2134_v37  ;;  %v2248_v51 = vld [vmem:[#allocation13 + $0x1050] sm:$0xff]  ;;  %v2027_v52 = vld [vmem:[#allocation13 + $0x968] sm:$0xff] }
 0x26d   :  { %2437 = vmatprep.subr.mxu1 %v2105_v53  ;;  %2500 = vmatprep.subr.mxu0 %v2129_v29  ;;  %v2243_v37 = vld [vmem:[#allocation13 + $0x1028] sm:$0xff]  ;;  %v2026_v53 = vld [vmem:[#allocation13 + $0x960] sm:$0xff] }
 0x26e   :  { %2438 = vmatpush2.msra.mxu1 %v2104_v54  ;;  %2501 = vmatpush1.msra.mxu0 %v2128_v55  ;;  %v2242_v29 = vld [vmem:[#allocation13 + $0x1020] sm:$0xff]  ;;  %v2021_v54 = vld [vmem:[#allocation13 + $0x938] sm:$0xff] }
 0x26f   :  { %2439 = vmatprep.subr.mxu1 %v2099_v56  ;;  %2502 = vmatprep.subr.mxu0 %v2123_v57  ;;  %v2237_v55 = vld [vmem:[#allocation13 + $0xff8] sm:$0xff]  ;;  %v2020_v56 = vld [vmem:[#allocation13 + $0x930] sm:$0xff] }
 0x270   :  { %2440 = vmatpush2.msra.mxu1 %v2098_v58  ;;  %2503 = vmatpush1.msra.mxu0 %v2122_v59  ;;  %v2236_v57 = vld [vmem:[#allocation13 + $0xff0] sm:$0xff]  ;;  %v2015_v58 = vld [vmem:[#allocation13 + $0x908] sm:$0xff] }
 0x271   :  { %2441 = vmatprep.subr.mxu1 %v2093_v61  ;;  %2504 = vmatprep.subr.mxu0 %v2117_v0  ;;  %v2231_v59 = vld [vmem:[#allocation13 + $0xfc8] sm:$0xff]  ;;  %v1347_v61 = vpop.f32.mrf.mxu0  ;;  %v2014_v0 = vld [vmem:[#allocation13 + $0x900] sm:$0xff] }
 0x272   :  { %2442 = vmatpush2.msra.mxu1 %v2092_v31  ;;  %2505 = vmatpush1.msra.mxu0 %v2116_v45  ;;  %v2230_v31 = vld [vmem:[#allocation13 + $0xfc0] sm:$0xff]  ;;  %v1049_v45 = vrot.slane %v3998_v1, %v3944_v38 }
 0x273   :  { %2443 = vmatprep.subr.mxu1 %v2087_v2  ;;  %2506 = vmatprep.subr.mxu0 %v2111_v3  ;;  %v1819_v2 = vld [vmem:[#allocation13 + $0x2e8] sm:$0xff]  ;;  %v2225_v3 = vld [vmem:[#allocation13 + $0xf98] sm:$0xff] }
 0x274   :  { %2444 = vmatpush2.msra.mxu1 %v2086_v5  ;;  %2507 = vmatpush1.msra.mxu0 %v2110_v6  ;;  %v2224_v6 = vld [vmem:[#allocation13 + $0xf90] sm:$0xff] }
 0x275   :  { %2445 = vmatprep.subr.mxu1 %v2081_v7  ;;  %2508 = vmatprep.subr.mxu0 %v2297_v8  ;;  %v1053_v7 = vrot.slane %v3998_v1, %v3947_v41  ;;  %v2219_v8 = vld [vmem:[#allocation13 + $0xf68] sm:$0xff]  ;;  %v2206_v1 = vld [vmem:[#allocation13 + $0xf00] sm:$0xff] }
 0x276   :  { %2446 = vmatpush2.msra.mxu1 %v2080_v9  ;;  %2509 = vmatpush2.msra.mxu0 %v2296_v10  ;;  %v1349_v9 = vpop.f32.mrf.mxu0  ;;  %v2218_v10 = vld [vmem:[#allocation13 + $0xf60] sm:$0xff] }
 0x277   :  { %2447 = vmatprep.subr.mxu1 %v2075_v11  ;;  %2510 = vmatprep.subr.mxu0 %v2291_v12  ;;  %v1348_v11 = vadd.f32 %v1347_v61, %v1049_v45  ;;  %v2213_v12 = vld [vmem:[#allocation13 + $0xf38] sm:$0xff]  ;;  %v1734_v45 = vld [vmem:[#allocation13 + $0x40] sm:$0xff] }
 0x278   :  { %2448 = vmatpush2.msra.mxu1 %v2074_v13  ;;  %2511 = vmatpush2.msra.mxu0 %v2290_v14  ;;  %v2212_v14 = vld [vmem:[#allocation13 + $0xf30] sm:$0xff]  ;;  %v1741_v61 = vld [vmem:[#allocation13 + $0x78] sm:$0xff] }
 0x279   :  { %2449 = vmatprep.subr.mxu1 %v2069_v15  ;;  %2512 = vmatprep.subr.mxu0 %v2285_v16  ;;  %v1350_v15 = vadd.f32 %v1349_v9, %v1053_v7  ;;  %v1909_v7 = vld [vmem:[#allocation13 + $0x5b8] sm:$0xff]  ;;  %v1903_v9 = vld [vmem:[#allocation13 + $0x588] sm:$0xff] }
 0x27a   :  { %2450 = vmatpush2.msra.mxu1 %v2068_v49  ;;  %2513 = vmatpush2.msra.mxu0 %v2284_v17  ;;  %v2207_v49 = vld [vmem:[#allocation13 + $0xf08] sm:$0xff] }
 0x27b   :  { %2451 = vmatprep.subr.mxu1 %v2063_v63  ;;  %2514 = vmatprep.subr.mxu0 %v2279_v18 }
 0x27c   :  { %2452 = vmatpush2.msra.mxu1 %v2062_v4  ;;  %2515 = vmatpush2.msra.mxu0 %v2278_v19  ;;  %v2011_v4 = vld [vmem:[#allocation13 + $0x8e8] sm:$0xff] }
 0x27d   :  { %2453 = vmatprep.subr.mxu1 %v2057_v21  ;;  %2516 = vmatprep.subr.mxu0 %v2273_v22 }
 0x27e   :  { %2454 = vmatpush2.msra.mxu1 %v2056_v23  ;;  %2517 = vmatpush2.msra.mxu0 %v2272_v24 }
 0x27f   :  { %2455 = vmatprep.subr.mxu1 %v2051_v25  ;;  %2518 = vmatprep.subr.mxu0 %v2267_v26  ;;  %v1818_v25 = vld [vmem:[#allocation13 + $0x2e0] sm:$0xff] }
 0x280   :  { %2456 = vmatpush2.msra.mxu1 %v2050_v27  ;;  %2519 = vmatpush2.msra.mxu0 %v2266_v28  ;;  %v1813_v27 = vld [vmem:[#allocation13 + $0x2b8] sm:$0xff]  ;;  %v1812_v28 = vld [vmem:[#allocation13 + $0x2b0] sm:$0xff] }
 0x281   :  { %2457 = vmatprep.subr.mxu1 %v2045_v33  ;;  %2520 = vmatprep.subr.mxu0 %v2261_v34  ;;  %v1807_v33 = vld [vmem:[#allocation13 + $0x288] sm:$0xff]  ;;  %v1806_v34 = vld [vmem:[#allocation13 + $0x280] sm:$0xff] }
 0x282   :  { %2458 = vmatpush2.msra.mxu1 %v2044_v35  ;;  %2521 = vmatpush2.msra.mxu0 %v2260_v62  ;;  %v1801_v35 = vld [vmem:[#allocation13 + $0x258] sm:$0xff]  ;;  %v1800_v62 = vld [vmem:[#allocation13 + $0x250] sm:$0xff] }
 0x283   :  { %2459 = vmatprep.subr.mxu1 %v2039_v39  ;;  %2522 = vmatprep.subr.mxu0 %v2255_v40  ;;  %v1795_v39 = vld [vmem:[#allocation13 + $0x228] sm:$0xff]  ;;  %v1794_v40 = vld [vmem:[#allocation13 + $0x220] sm:$0xff] }
 0x284   :  { %2460 = vmatpush2.msra.mxu1 %v2038_v42  ;;  %2523 = vmatpush2.msra.mxu0 %v2254_v44  ;;  %v1789_v42 = vld [vmem:[#allocation13 + $0x1f8] sm:$0xff]  ;;  %v1788_v44 = vld [vmem:[#allocation13 + $0x1f0] sm:$0xff] }
 0x285   :  { %2461 = vmatprep.subr.mxu1 %v2033_v46  ;;  %2524 = vmatprep.subr.mxu0 %v2249_v47  ;;  %v1783_v46 = vld [vmem:[#allocation13 + $0x1c8] sm:$0xff]  ;;  %v1782_v47 = vld [vmem:[#allocation13 + $0x1c0] sm:$0xff] }
 0x286   :  { %2462 = vmatpush2.msra.mxu1 %v2032_v48  ;;  %2525 = vmatpush2.msra.mxu0 %v2248_v51  ;;  %v1777_v48 = vld [vmem:[#allocation13 + $0x198] sm:$0xff]  ;;  %v1776_v51 = vld [vmem:[#allocation13 + $0x190] sm:$0xff] }
 0x287   :  { %2463 = vmatprep.subr.mxu1 %v2027_v52  ;;  %2526 = vmatprep.subr.mxu0 %v2243_v37  ;;  %v1771_v52 = vld [vmem:[#allocation13 + $0x168] sm:$0xff]  ;;  %v1770_v37 = vld [vmem:[#allocation13 + $0x160] sm:$0xff] }
 0x288   :  { %2464 = vmatpush2.msra.mxu1 %v2026_v53  ;;  %2527 = vmatpush2.msra.mxu0 %v2242_v29  ;;  %v1418_v5 = vpop.f32.mrf.mxu1  ;;  %v1765_v53 = vld [vmem:[#allocation13 + $0x138] sm:$0xff]  ;;  %v1764_v29 = vld [vmem:[#allocation13 + $0x130] sm:$0xff] }
 0x289   :  { %2465 = vmatprep.subr.mxu1 %v2021_v54  ;;  %2528 = vmatprep.subr.mxu0 %v2237_v55  ;;  %v1419_v16 = vadd.f32 %v1418_v5, %v1348_v11  ;;  %v1759_v54 = vld [vmem:[#allocation13 + $0x108] sm:$0xff]  ;;  %v1758_v55 = vld [vmem:[#allocation13 + $0x100] sm:$0xff]  ;;  %v1897_v11 = vld [vmem:[#allocation13 + $0x558] sm:$0xff] }
 0x28a   :  { %2466 = vmatpush2.msra.mxu1 %v2020_v56  ;;  %2529 = vmatpush2.msra.mxu0 %v2236_v57  ;;  %v1420_v13 = vpop.f32.mrf.mxu1  ;;  %v1753_v56 = vld [vmem:[#allocation13 + $0xd8] sm:$0xff]  ;;  %v1752_v57 = vld [vmem:[#allocation13 + $0xd0] sm:$0xff]  ;;  %v1915_v5 = vld [vmem:[#allocation13 + $0x5e8] sm:$0xff] }
 0x28b   :  { %2467 = vmatprep.subr.mxu1 %v2015_v58  ;;  %2530 = vmatprep.subr.mxu0 %v2231_v59  ;;  %v1421_v63 = vadd.f32 %v1420_v13, %v1350_v15  ;;  %v1747_v58 = vld [vmem:[#allocation13 + $0xa8] sm:$0xff]  ;;  %v1746_v59 = vld [vmem:[#allocation13 + $0xa0] sm:$0xff]  ;;  %v1885_v15 = vld [vmem:[#allocation13 + $0x4f8] sm:$0xff] }
 0x28c   :  { %2468 = vmatpush2.msra.mxu1 %v2014_v0  ;;  %2531 = vmatpush2.msra.mxu0 %v2230_v31  ;;  %v1740_v0 = vld [vmem:[#allocation13 + $0x70] sm:$0xff]  ;;  %v1735_v31 = vld [vmem:[#allocation13 + $0x48] sm:$0xff] }
 0x28d   :  { %2547 = vmatprep.subr.mxu1 %v1819_v2  ;;  %2532 = vmatprep.subr.mxu0 %v2225_v3  ;;  %v1729_v2 = vld [vmem:[#allocation13 + $0x18] sm:$0xff]  ;;  %v1728_v3 = vld [vmem:[#allocation13 + $0x10] sm:$0xff]  ;;  %v1891_v13 = vld [vmem:[#allocation13 + $0x528] sm:$0xff] }
 0x28e   :  { %2533 = vmatpush2.msra.mxu0 %v2224_v6  ;;  %v1914_v6 = vld [vmem:[#allocation13 + $0x5e0] sm:$0xff] }
 0x28f   :  { %2534 = vmatprep.subr.mxu0 %v2219_v8  ;;  %v1908_v8 = vld [vmem:[#allocation13 + $0x5b0] sm:$0xff] }
 0x290   :  { %2535 = vmatpush2.msra.mxu0 %v2218_v10  ;;  %v1902_v10 = vld [vmem:[#allocation13 + $0x580] sm:$0xff] }
 0x291   :  { %v1489_v17 = vpop.f32.mrf.mxu0  ;;  %2536 = vmatprep.subr.mxu0 %v2213_v12  ;;  %v1896_v12 = vld [vmem:[#allocation13 + $0x550] sm:$0xff] }
 0x292   :  { %v1490_v18 = vadd.f32 %v1489_v17, %v1419_v16  ;;  %2537 = vmatpush2.msra.mxu0 %v2212_v14  ;;  %v1890_v14 = vld [vmem:[#allocation13 + $0x520] sm:$0xff]  ;;  %v1884_v16 = vld [vmem:[#allocation13 + $0x4f0] sm:$0xff] }
 0x293   :  { %v1491_v19 = vpop.f32.mrf.mxu0  ;;  %2538 = vmatprep.subr.mxu0 %v2207_v49  ;;  %v1879_v49 = vld [vmem:[#allocation13 + $0x4c8] sm:$0xff]  ;;  %v1878_v17 = vld [vmem:[#allocation13 + $0x4c0] sm:$0xff] }
 0x294   :  { %v1492_v21 = vadd.f32 %v1491_v19, %v1421_v63  ;;  %2539 = vmatpush2.msra.mxu0 %v2206_v1  ;;  %v1716_v22 = vmul.f32 %v4007_v36, %v1490_v18  ;;  %vm1709_vm9 = vcmp.gt.f32.partialorder %v1490_v18, 0.0  ;;  %v1873_v1 = vld [vmem:[#allocation13 + $0x498] sm:$0xff]  ;;  %v1872_v63 = vld [vmem:[#allocation13 + $0x490] sm:$0xff] }
 0x295   :  { %2618 = vmatprep.subr.mxu0 %v2011_v4  ;;  %v1866_v4 = vld [vmem:[#allocation13 + $0x460] sm:$0xff]  ;;  %v1861_v19 = vld [vmem:[#allocation13 + $0x438] sm:$0xff] }
 0x296   :  { %v1717_v23 = vmul.f32 %v4007_v36, %v1492_v21  ;;  %vm1710_vm10 = vcmp.gt.f32.partialorder %v1492_v21, 0.0  ;;  %v4027_v26 = vsel %vm1709_vm9, %v1490_v18, %v1716_v22  ;;  %v1867_v18 = vld [vmem:[#allocation13 + $0x468] sm:$0xff] }
 0x297   :  { %v1855_v22 = vld [vmem:[#allocation13 + $0x408] sm:$0xff] }
 0x298   :  { %v4024_v24 = vsel %vm1710_vm10, %v1492_v21, %v1717_v23  ;;  %v1860_v21 = vld [vmem:[#allocation13 + $0x430] sm:$0xff]  ;;  %v1854_v23 = vld [vmem:[#allocation13 + $0x400] sm:$0xff] }
 0x299   :  { %2469 = vmatprep.mubr.f32.mxu1 %v4024_v24 }
 0x29a   :  { %2470 = vmatmul.mubr.f32.vlgmr.msra.gmra.mxu1 %v4027_v26 }
 0x29b   :  { %2548 = vmatpush1.msra.mxu1 %v1818_v25  ;;  %2611 = vmatprep.mubr.f32.mxu1 %v4011_v50  ;;  %v1849_v25 = vld [vmem:[#allocation13 + $0x3d8] sm:$0xff] }
 0x29c   :  { %2549 = vmatprep.subr.mxu1 %v1813_v27  ;;  %v1848_v27 = vld [vmem:[#allocation13 + $0x3d0] sm:$0xff] }
 0x29d   :  { %2550 = vmatpush1.msra.mxu1 %v1812_v28  ;;  %v1843_v28 = vld [vmem:[#allocation13 + $0x3a8] sm:$0xff] }
 0x29e   :  { %2551 = vmatprep.subr.mxu1 %v1807_v33  ;;  %v1842_v33 = vld [vmem:[#allocation13 + $0x3a0] sm:$0xff] }
 0x29f   :  { %2552 = vmatpush1.msra.mxu1 %v1806_v34  ;;  %v1837_v34 = vld [vmem:[#allocation13 + $0x378] sm:$0xff] }
 0x2a0   :  { %2553 = vmatprep.subr.mxu1 %v1801_v35  ;;  %v1836_v35 = vld [vmem:[#allocation13 + $0x370] sm:$0xff] }
 0x2a1   :  { %2554 = vmatpush1.msra.mxu1 %v1800_v62  ;;  %v1831_v62 = vld [vmem:[#allocation13 + $0x348] sm:$0xff] }
 0x2a2   :  { %2555 = vmatprep.subr.mxu1 %v1795_v39  ;;  %v1830_v39 = vld [vmem:[#allocation13 + $0x340] sm:$0xff] }
 0x2a3   :  { %2556 = vmatpush1.msra.mxu1 %v1794_v40  ;;  %v1825_v40 = vld [vmem:[#allocation13 + $0x318] sm:$0xff] }
 0x2a4   :  { %2557 = vmatprep.subr.mxu1 %v1789_v42  ;;  %v1824_v42 = vld [vmem:[#allocation13 + $0x310] sm:$0xff] }
 0x2a5   :  { %2558 = vmatpush1.msra.mxu1 %v1788_v44  ;;  %v2203_v44 = vld [vmem:[#allocation13 + $0xee8] sm:$0xff] }
 0x2a6   :  { %2559 = vmatprep.subr.mxu1 %v1783_v46  ;;  %v2202_v46 = vld [vmem:[#allocation13 + $0xee0] sm:$0xff] }
 0x2a7   :  { %2560 = vmatpush1.msra.mxu1 %v1782_v47  ;;  %v2197_v47 = vld [vmem:[#allocation13 + $0xeb8] sm:$0xff] }
 0x2a8   :  { %2561 = vmatprep.subr.mxu1 %v1777_v48  ;;  %v2196_v48 = vld [vmem:[#allocation13 + $0xeb0] sm:$0xff] }
 0x2a9   :  { %2562 = vmatpush1.msra.mxu1 %v1776_v51  ;;  %v2191_v51 = vld [vmem:[#allocation13 + $0xe88] sm:$0xff] }
 0x2aa   :  { %2563 = vmatprep.subr.mxu1 %v1771_v52  ;;  %v2190_v52 = vld [vmem:[#allocation13 + $0xe80] sm:$0xff] }
 0x2ab   :  { %2564 = vmatpush1.msra.mxu1 %v1770_v37  ;;  %v2185_v37 = vld [vmem:[#allocation13 + $0xe58] sm:$0xff] }
 0x2ac   :  { %2565 = vmatprep.subr.mxu1 %v1765_v53  ;;  %v2184_v53 = vld [vmem:[#allocation13 + $0xe50] sm:$0xff] }
 0x2ad   :  { %2566 = vmatpush1.msra.mxu1 %v1764_v29  ;;  %v2179_v29 = vld [vmem:[#allocation13 + $0xe28] sm:$0xff] }
 0x2ae   :  { %2567 = vmatprep.subr.mxu1 %v1759_v54  ;;  %v2178_v54 = vld [vmem:[#allocation13 + $0xe20] sm:$0xff] }
 0x2af   :  { %2568 = vmatpush1.msra.mxu1 %v1758_v55  ;;  %v2173_v55 = vld [vmem:[#allocation13 + $0xdf8] sm:$0xff] }
 0x2b0   :  { %2569 = vmatprep.subr.mxu1 %v1753_v56  ;;  %v2172_v56 = vld [vmem:[#allocation13 + $0xdf0] sm:$0xff] }
 0x2b1   :  { %2570 = vmatpush1.msra.mxu1 %v1752_v57  ;;  %v2167_v57 = vld [vmem:[#allocation13 + $0xdc8] sm:$0xff] }
 0x2b2   :  { %2571 = vmatprep.subr.mxu1 %v1747_v58  ;;  %v2166_v58 = vld [vmem:[#allocation13 + $0xdc0] sm:$0xff] }
 0x2b3   :  { %2572 = vmatpush1.msra.mxu1 %v1746_v59  ;;  %v2161_v59 = vld [vmem:[#allocation13 + $0xd98] sm:$0xff] }
 0x2b4   :  { %2573 = vmatprep.subr.mxu1 %v1741_v61  ;;  %v2160_v61 = vld [vmem:[#allocation13 + $0xd90] sm:$0xff] }
 0x2b5   :  { %2574 = vmatpush1.msra.mxu1 %v1740_v0  ;;  %v2155_v0 = vld [vmem:[#allocation13 + $0xd68] sm:$0xff] }
 0x2b6   :  { %2575 = vmatprep.subr.mxu1 %v1735_v31  ;;  %v2154_v31 = vld [vmem:[#allocation13 + $0xd60] sm:$0xff] }
 0x2b7   :  { %2576 = vmatpush1.msra.mxu1 %v1734_v45  ;;  %v2149_v45 = vld [vmem:[#allocation13 + $0xd38] sm:$0xff] }
 0x2b8   :  { %2577 = vmatprep.subr.mxu1 %v1729_v2  ;;  %v2148_v2 = vld [vmem:[#allocation13 + $0xd30] sm:$0xff] }
 0x2b9   :  { %2578 = vmatpush1.msra.mxu1 %v1728_v3  ;;  %v2143_v3 = vld [vmem:[#allocation13 + $0xd08] sm:$0xff] }
 0x2ba   :  { %2579 = vmatprep.subr.mxu1 %v1915_v5  ;;  %v2142_v5 = vld [vmem:[#allocation13 + $0xd00] sm:$0xff] }
 0x2bb   :  { %2580 = vmatpush2.msra.mxu1 %v1914_v6  ;;  %v2137_v6 = vld [vmem:[#allocation13 + $0xcd8] sm:$0xff] }
 0x2bc   :  { %2581 = vmatprep.subr.mxu1 %v1909_v7  ;;  %v2136_v7 = vld [vmem:[#allocation13 + $0xcd0] sm:$0xff] }
 0x2bd   :  { %2582 = vmatpush2.msra.mxu1 %v1908_v8  ;;  %v2131_v8 = vld [vmem:[#allocation13 + $0xca8] sm:$0xff] }
 0x2be   :  { %2583 = vmatprep.subr.mxu1 %v1903_v9  ;;  %v2130_v9 = vld [vmem:[#allocation13 + $0xca0] sm:$0xff] }
 0x2bf   :  { %2584 = vmatpush2.msra.mxu1 %v1902_v10  ;;  %v2125_v10 = vld [vmem:[#allocation13 + $0xc78] sm:$0xff] }
 0x2c0   :  { %2585 = vmatprep.subr.mxu1 %v1897_v11  ;;  %v2124_v11 = vld [vmem:[#allocation13 + $0xc70] sm:$0xff] }
 0x2c1   :  { %2586 = vmatpush2.msra.mxu1 %v1896_v12  ;;  %v2119_v12 = vld [vmem:[#allocation13 + $0xc48] sm:$0xff] }
 0x2c2   :  { %2587 = vmatprep.subr.mxu1 %v1891_v13  ;;  %v2118_v13 = vld [vmem:[#allocation13 + $0xc40] sm:$0xff] }
 0x2c3   :  { %2588 = vmatpush2.msra.mxu1 %v1890_v14  ;;  %v2113_v14 = vld [vmem:[#allocation13 + $0xc18] sm:$0xff] }
 0x2c4   :  { %2589 = vmatprep.subr.mxu1 %v1885_v15  ;;  %v2112_v15 = vld [vmem:[#allocation13 + $0xc10] sm:$0xff] }
 0x2c5   :  { %2590 = vmatpush2.msra.mxu1 %v1884_v16  ;;  %v2299_v16 = vld [vmem:[#allocation13 + $0x11e8] sm:$0xff] }
 0x2c6   :  { %2591 = vmatprep.subr.mxu1 %v1879_v49  ;;  %v2298_v49 = vld [vmem:[#allocation13 + $0x11e0] sm:$0xff] }
 0x2c7   :  { %2592 = vmatpush2.msra.mxu1 %v1878_v17  ;;  %v2293_v17 = vld [vmem:[#allocation13 + $0x11b8] sm:$0xff] }
 0x2c8   :  { %2593 = vmatprep.subr.mxu1 %v1873_v1  ;;  %v2292_v1 = vld [vmem:[#allocation13 + $0x11b0] sm:$0xff] }
 0x2c9   :  { %2594 = vmatpush2.msra.mxu1 %v1872_v63  ;;  %v2287_v63 = vld [vmem:[#allocation13 + $0x1188] sm:$0xff] }
 0x2ca   :  { %2595 = vmatprep.subr.mxu1 %v1867_v18  ;;  %v2286_v18 = vld [vmem:[#allocation13 + $0x1180] sm:$0xff] }
 0x2cb   :  { %2596 = vmatpush2.msra.mxu1 %v1866_v4  ;;  %v2281_v4 = vld [vmem:[#allocation13 + $0x1158] sm:$0xff] }
 0x2cc   :  { %2597 = vmatprep.subr.mxu1 %v1861_v19  ;;  %v2280_v19 = vld [vmem:[#allocation13 + $0x1150] sm:$0xff] }
 0x2cd   :  { %2598 = vmatpush2.msra.mxu1 %v1860_v21  ;;  %v2275_v21 = vld [vmem:[#allocation13 + $0x1128] sm:$0xff] }
 0x2ce   :  { %2599 = vmatprep.subr.mxu1 %v1855_v22  ;;  %v2274_v22 = vld [vmem:[#allocation13 + $0x1120] sm:$0xff] }
 0x2cf   :  { %2600 = vmatpush2.msra.mxu1 %v1854_v23  ;;  %v2269_v23 = vld [vmem:[#allocation13 + $0x10f8] sm:$0xff] }
 0x2d0   :  { %2601 = vmatprep.subr.mxu1 %v1849_v25  ;;  %v2268_v25 = vld [vmem:[#allocation13 + $0x10f0] sm:$0xff] }
 0x2d1   :  { %2602 = vmatpush2.msra.mxu1 %v1848_v27  ;;  %v1560_v27 = vpop.f32.mrf.mxu1 }
 0x2d2   :  { %2603 = vmatprep.subr.mxu1 %v1843_v28  ;;  %v2263_v28 = vld [vmem:[#allocation13 + $0x10c8] sm:$0xff] }
 0x2d3   :  { %2604 = vmatpush2.msra.mxu1 %v1842_v33  ;;  %v3584_v33 = vld [vmem:[#allocation12] sm:$0x3f] }
 0x2d4   :  { %2605 = vmatprep.subr.mxu1 %v1837_v34  ;;  %v1057_v34 = vrot.slane %v3584_v33, %v3976_v43 }
 0x2d5   :  { %2606 = vmatpush2.msra.mxu1 %v1836_v35  ;;  %v2262_v35 = vld [vmem:[#allocation13 + $0x10c0] sm:$0xff] }
 0x2d6   :  { %2607 = vmatprep.subr.mxu1 %v1831_v62  ;;  %v1631_v62 = vpop.f32.mrf.mxu0 }
 0x2d7   :  { %2608 = vmatpush2.msra.mxu1 %v1830_v39  ;;  %v2257_v39 = vld [vmem:[#allocation13 + $0x1098] sm:$0xff] }
 0x2d8   :  { %2609 = vmatprep.subr.mxu1 %v1825_v40  ;;  %v1061_v40 = vrot.slane %v3584_v33, %v3971_v20  ;;  %v1974_v33 = vld [vmem:[#allocation13 + $0x7c0] sm:$0xff] }
 0x2d9   :  { %2610 = vmatpush2.msra.mxu1 %v1824_v42  ;;  %v2256_v42 = vld [vmem:[#allocation13 + $0x1090] sm:$0xff] }
 0x2da   :  { %2612 = vmatmul.mubr.f32.vlgmr.msra.gmra.mxu1 %v4015_v60  ;;  %2689 = vmatprep.subr.mxu1 %v2203_v44  ;;  %v1562_v44 = vpop.f32.mrf.mxu1 }
 0x2db   :  { %2690 = vmatpush1.msra.mxu1 %v2202_v46  ;;  %v2251_v46 = vld [vmem:[#allocation13 + $0x1068] sm:$0xff] }
 0x2dc   :  { %2691 = vmatprep.subr.mxu1 %v2197_v47  ;;  %v1561_v47 = vadd.f32 %v1560_v27, %v1057_v34  ;;  %v1975_v27 = vld [vmem:[#allocation13 + $0x7c8] sm:$0xff]  ;;  %v2000_v34 = vld [vmem:[#allocation13 + $0x890] sm:$0xff] }
 0x2dd   :  { %2692 = vmatpush1.msra.mxu1 %v2196_v48  ;;  %v2250_v48 = vld [vmem:[#allocation13 + $0x1060] sm:$0xff] }
 0x2de   :  { %2693 = vmatprep.subr.mxu1 %v2191_v51  ;;  %v1633_v51 = vpop.f32.mrf.mxu0 }
 0x2df   :  { %2694 = vmatpush1.msra.mxu1 %v2190_v52  ;;  %v2245_v52 = vld [vmem:[#allocation13 + $0x1038] sm:$0xff] }
 0x2e0   :  { %2695 = vmatprep.subr.mxu1 %v2185_v37  ;;  %v1563_v37 = vadd.f32 %v1562_v44, %v1061_v40  ;;  %v1994_v40 = vld [vmem:[#allocation13 + $0x860] sm:$0xff]  ;;  %v1989_v44 = vld [vmem:[#allocation13 + $0x838] sm:$0xff] }
 0x2e1   :  { %2696 = vmatpush1.msra.mxu1 %v2184_v53  ;;  %v1632_v53 = vadd.f32 %v1631_v62, %v1561_v47  ;;  %v1995_v62 = vld [vmem:[#allocation13 + $0x868] sm:$0xff]  ;;  %v1957_v47 = vld [vmem:[#allocation13 + $0x738] sm:$0xff] }
 0x2e2   :  { %2697 = vmatprep.subr.mxu1 %v2179_v29  ;;  %v2244_v29 = vld [vmem:[#allocation13 + $0x1030] sm:$0xff] }
 0x2e3   :  { %2698 = vmatpush1.msra.mxu1 %v2178_v54 }
 0x2e4   :  { %2699 = vmatprep.subr.mxu1 %v2173_v55  ;;  %v2239_v55 = vld [vmem:[#allocation13 + $0x1008] sm:$0xff] }
 0x2e5   :  { %2700 = vmatpush1.msra.mxu1 %v2172_v56  ;;  %v1634_v56 = vadd.f32 %v1633_v51, %v1563_v37  ;;  %v1956_v51 = vld [vmem:[#allocation13 + $0x730] sm:$0xff]  ;;  %v1951_v37 = vld [vmem:[#allocation13 + $0x708] sm:$0xff] }
 0x2e6   :  { %2701 = vmatprep.subr.mxu1 %v2167_v57 }
 0x2e7   :  { %2702 = vmatpush1.msra.mxu1 %v2166_v58  ;;  %v2238_v58 = vld [vmem:[#allocation13 + $0x1000] sm:$0xff] }
 0x2e8   :  { %2703 = vmatprep.subr.mxu1 %v2161_v59 }
 0x2e9   :  { %2704 = vmatpush1.msra.mxu1 %v2160_v61  ;;  %v2233_v61 = vld [vmem:[#allocation13 + $0xfd8] sm:$0xff] }
 0x2ea   :  { %2705 = vmatprep.subr.mxu1 %v2155_v0 }
 0x2eb   :  { %2706 = vmatpush1.msra.mxu1 %v2154_v31  ;;  %v2232_v31 = vld [vmem:[#allocation13 + $0xfd0] sm:$0xff] }
 0x2ec   :  { %2707 = vmatprep.subr.mxu1 %v2149_v45 }
 0x2ed   :  { %2708 = vmatpush1.msra.mxu1 %v2148_v2  ;;  %v2227_v2 = vld [vmem:[#allocation13 + $0xfa8] sm:$0xff] }
 0x2ee   :  { %2709 = vmatprep.subr.mxu1 %v2143_v3 }
 0x2ef   :  { %2710 = vmatpush1.msra.mxu1 %v2142_v5  ;;  %v2226_v5 = vld [vmem:[#allocation13 + $0xfa0] sm:$0xff] }
 0x2f0   :  { %2711 = vmatprep.subr.mxu1 %v2137_v6 }
 0x2f1   :  { %2712 = vmatpush1.msra.mxu1 %v2136_v7  ;;  %v2010_v7 = vld [vmem:[#allocation13 + $0x8e0] sm:$0xff] }
 0x2f2   :  { %2713 = vmatprep.subr.mxu1 %v2131_v8 }
 0x2f3   :  { %2714 = vmatpush1.msra.mxu1 %v2130_v9  ;;  %v2005_v9 = vld [vmem:[#allocation13 + $0x8b8] sm:$0xff] }
 0x2f4   :  { %2715 = vmatprep.subr.mxu1 %v2125_v10  ;;  %v2221_v10 = vld [vmem:[#allocation13 + $0xf78] sm:$0xff] }
 0x2f5   :  { %2716 = vmatpush1.msra.mxu1 %v2124_v11  ;;  %v2220_v11 = vld [vmem:[#allocation13 + $0xf70] sm:$0xff] }
 0x2f6   :  { %2717 = vmatprep.subr.mxu1 %v2119_v12  ;;  %v1999_v12 = vld [vmem:[#allocation13 + $0x888] sm:$0xff] }
 0x2f7   :  { %2718 = vmatpush1.msra.mxu1 %v2118_v13  ;;  %v2215_v13 = vld [vmem:[#allocation13 + $0xf48] sm:$0xff] }
 0x2f8   :  { %2719 = vmatprep.subr.mxu1 %v2113_v14  ;;  %v1998_v14 = vld [vmem:[#allocation13 + $0x880] sm:$0xff] }
 0x2f9   :  { %2720 = vmatpush1.msra.mxu1 %v2112_v15  ;;  %v2214_v15 = vld [vmem:[#allocation13 + $0xf40] sm:$0xff] }
 0x2fa   :  { %2721 = vmatprep.subr.mxu1 %v2299_v16  ;;  %v1993_v16 = vld [vmem:[#allocation13 + $0x858] sm:$0xff] }
 0x2fb   :  { %2722 = vmatpush2.msra.mxu1 %v2298_v49  ;;  %v2209_v49 = vld [vmem:[#allocation13 + $0xf18] sm:$0xff] }
 0x2fc   :  { %2723 = vmatprep.subr.mxu1 %v2293_v17  ;;  %v1992_v17 = vld [vmem:[#allocation13 + $0x850] sm:$0xff] }
 0x2fd   :  { %2724 = vmatpush2.msra.mxu1 %v2292_v1  ;;  %v2208_v1 = vld [vmem:[#allocation13 + $0xf10] sm:$0xff] }
 0x2fe   :  { %2725 = vmatprep.subr.mxu1 %v2287_v63  ;;  %v1987_v63 = vld [vmem:[#allocation13 + $0x828] sm:$0xff] }
 0x2ff   :  { %2726 = vmatpush2.msra.mxu1 %v2286_v18  ;;  %v2013_v18 = vld [vmem:[#allocation13 + $0x8f8] sm:$0xff] }
 0x300   :  { %2727 = vmatprep.subr.mxu1 %v2281_v4  ;;  %v1986_v4 = vld [vmem:[#allocation13 + $0x820] sm:$0xff] }
 0x301   :  { %2728 = vmatpush2.msra.mxu1 %v2280_v19  ;;  %v2012_v19 = vld [vmem:[#allocation13 + $0x8f0] sm:$0xff] }
 0x302   :  { %2729 = vmatprep.subr.mxu1 %v2275_v21  ;;  %v1981_v21 = vld [vmem:[#allocation13 + $0x7f8] sm:$0xff] }
 0x303   :  { %2730 = vmatpush2.msra.mxu1 %v2274_v22  ;;  %v2007_v22 = vld [vmem:[#allocation13 + $0x8c8] sm:$0xff] }
 0x304   :  { %2731 = vmatprep.subr.mxu1 %v2269_v23  ;;  %v1980_v23 = vld [vmem:[#allocation13 + $0x7f0] sm:$0xff] }
 0x305   :  { %2732 = vmatpush2.msra.mxu1 %v2268_v25  ;;  %v2006_v25 = vld [vmem:[#allocation13 + $0x8c0] sm:$0xff] }
 0x306   :  { %2733 = vmatprep.subr.mxu1 %v2263_v28  ;;  %v2001_v28 = vld [vmem:[#allocation13 + $0x898] sm:$0xff] }
 0x307   :  { %2734 = vmatpush2.msra.mxu1 %v2262_v35  ;;  %v1969_v35 = vld [vmem:[#allocation13 + $0x798] sm:$0xff] }
 0x308   :  { %2735 = vmatprep.subr.mxu1 %v2257_v39  ;;  %v1968_v39 = vld [vmem:[#allocation13 + $0x790] sm:$0xff] }
 0x309   :  { %2736 = vmatpush2.msra.mxu1 %v2256_v42  ;;  %v1963_v42 = vld [vmem:[#allocation13 + $0x768] sm:$0xff] }
 0x30a   :  { %2737 = vmatprep.subr.mxu1 %v2251_v46  ;;  %v1988_v46 = vld [vmem:[#allocation13 + $0x830] sm:$0xff] }
 0x30b   :  { %v1702_v54 = vpop.f32.mrf.mxu1  ;;  %2738 = vmatpush2.msra.mxu1 %v2250_v48  ;;  %v1983_v48 = vld [vmem:[#allocation13 + $0x808] sm:$0xff] }
 0x30c   :  { %v1703_v57 = vadd.f32 %v1702_v54, %v1632_v53  ;;  %2739 = vmatprep.subr.mxu1 %v2245_v52  ;;  %v1982_v52 = vld [vmem:[#allocation13 + $0x800] sm:$0xff]  ;;  %v1977_v53 = vld [vmem:[#allocation13 + $0x7d8] sm:$0xff]  ;;  %v1976_v54 = vld [vmem:[#allocation13 + $0x7d0] sm:$0xff] }
 0x30d   :  { %v1704_v59 = vpop.f32.mrf.mxu1  ;;  %2740 = vmatpush2.msra.mxu1 %v2244_v29  ;;  %v1950_v29 = vld [vmem:[#allocation13 + $0x700] sm:$0xff] }
 0x30e   :  { %v1705_v0 = vadd.f32 %v1704_v59, %v1634_v56  ;;  %2741 = vmatprep.subr.mxu1 %v2239_v55  ;;  %v1718_v45 = vmul.f32 %v4007_v36, %v1703_v57  ;;  %vm1711_vm11 = vcmp.gt.f32.partialorder %v1703_v57, 0.0  ;;  %v1945_v55 = vld [vmem:[#allocation13 + $0x6d8] sm:$0xff]  ;;  %v1971_v56 = vld [vmem:[#allocation13 + $0x7a8] sm:$0xff] }
 0x30f   :  { %2742 = vmatpush2.msra.mxu1 %v2238_v58  ;;  %v1970_v58 = vld [vmem:[#allocation13 + $0x7a0] sm:$0xff]  ;;  %v1939_v59 = vld [vmem:[#allocation13 + $0x6a8] sm:$0xff] }
 0x310   :  { %v1719_v3 = vmul.f32 %v4007_v36, %v1705_v0  ;;  %2743 = vmatprep.subr.mxu1 %v2233_v61  ;;  %vm1712_vm12 = vcmp.gt.f32.partialorder %v1705_v0, 0.0  ;;  %v4040_v8 = vsel %vm1711_vm11, %v1703_v57, %v1718_v45  ;;  %v2004_v36 = vld [vmem:[#allocation13 + $0x8b0] sm:$0xff]  ;;  %v1965_v61 = vld [vmem:[#allocation13 + $0x778] sm:$0xff] }
 0x311   :  { %2744 = vmatpush2.msra.mxu1 %v2232_v31  ;;  %v1944_v57 = vld [vmem:[#allocation13 + $0x6d0] sm:$0xff]  ;;  %v1933_v45 = vld [vmem:[#allocation13 + $0x678] sm:$0xff] }
 0x312   :  { %v4036_v6 = vsel %vm1712_vm12, %v1705_v0, %v1719_v3  ;;  %2745 = vmatprep.subr.mxu1 %v2227_v2  ;;  %v1938_v0 = vld [vmem:[#allocation13 + $0x6a0] sm:$0xff]  ;;  %v1964_v31 = vld [vmem:[#allocation13 + $0x770] sm:$0xff]  ;;  %v1959_v2 = vld [vmem:[#allocation13 + $0x748] sm:$0xff] }
 0x313   :  { %2540 = vmatprep.mubr.f32.mxu0 %v4036_v6  ;;  %2753 = vmatprep.mubr.f32.mxu1 %v4036_v6  ;;  %v1932_v3 = vld [vmem:[#allocation13 + $0x670] sm:$0xff] }
 0x314   :  { %2541 = vmatmul.mubr.f32.vlgmr.msra.gmra.mxu0 %v4040_v8  ;;  %2746 = vmatpush2.msra.mxu1 %v2226_v5  ;;  %v1958_v5 = vld [vmem:[#allocation13 + $0x740] sm:$0xff] }
 0x315   :  { %2619 = vmatpush1.msra.mxu0 %v2010_v7  ;;  %2682 = vmatprep.mubr.f32.mxu0 %v4024_v24  ;;  %v1927_v7 = vld [vmem:[#allocation13 + $0x648] sm:$0xff] }
 0x316   :  { %2620 = vmatprep.subr.mxu0 %v2005_v9  ;;  %2747 = vmatprep.subr.mxu1 %v2221_v10  ;;  %v1953_v9 = vld [vmem:[#allocation13 + $0x718] sm:$0xff]  ;;  %v1926_v10 = vld [vmem:[#allocation13 + $0x640] sm:$0xff] }
 0x317   :  { %2621 = vmatpush1.msra.mxu0 %v2004_v36  ;;  %2748 = vmatpush2.msra.mxu1 %v2220_v11  ;;  %v1952_v36 = vld [vmem:[#allocation13 + $0x710] sm:$0xff]  ;;  %v1921_v11 = vld [vmem:[#allocation13 + $0x618] sm:$0xff] }
 0x318   :  { %2622 = vmatprep.subr.mxu0 %v1999_v12  ;;  %2749 = vmatprep.subr.mxu1 %v2215_v13  ;;  %v1947_v12 = vld [vmem:[#allocation13 + $0x6e8] sm:$0xff]  ;;  %v1920_v13 = vld [vmem:[#allocation13 + $0x610] sm:$0xff] }
 0x319   :  { %2623 = vmatpush1.msra.mxu0 %v1998_v14  ;;  %2750 = vmatpush2.msra.mxu1 %v2214_v15  ;;  %v1946_v14 = vld [vmem:[#allocation13 + $0x6e0] sm:$0xff]  ;;  %v2107_v15 = vld [vmem:[#allocation13 + $0xbe8] sm:$0xff] }
 0x31a   :  { %2624 = vmatprep.subr.mxu0 %v1993_v16  ;;  %2751 = vmatprep.subr.mxu1 %v2209_v49  ;;  %v1941_v16 = vld [vmem:[#allocation13 + $0x6b8] sm:$0xff]  ;;  %v2106_v49 = vld [vmem:[#allocation13 + $0xbe0] sm:$0xff] }
 0x31b   :  { %2625 = vmatpush1.msra.mxu0 %v1992_v17  ;;  %2752 = vmatpush2.msra.mxu1 %v2208_v1  ;;  %v1940_v17 = vld [vmem:[#allocation13 + $0x6b0] sm:$0xff]  ;;  %v2101_v1 = vld [vmem:[#allocation13 + $0xbb8] sm:$0xff] }
 0x31c   :  { %2626 = vmatprep.subr.mxu0 %v1987_v63  ;;  %2754 = vmatmul.mubr.f32.vlgmr.msra.gmra.mxu1 %v4040_v8  ;;  %v1935_v63 = vld [vmem:[#allocation13 + $0x688] sm:$0xff] }
 0x31d   :  { %2831 = vmatprep.subr.mxu1 %v2013_v18  ;;  %2627 = vmatpush1.msra.mxu0 %v1986_v4  ;;  %v2100_v18 = vld [vmem:[#allocation13 + $0xbb0] sm:$0xff]  ;;  %v1934_v4 = vld [vmem:[#allocation13 + $0x680] sm:$0xff] }
 0x31e   :  { %2832 = vmatpush1.msra.mxu1 %v2012_v19  ;;  %2895 = vmatprep.mubr.f32.mxu1 %v4024_v24  ;;  %v1962_v24 = vld [vmem:[#allocation13 + $0x760] sm:$0xff]  ;;  %v2095_v19 = vld [vmem:[#allocation13 + $0xb88] sm:$0xff] }
 0x31f   :  { %2628 = vmatprep.subr.mxu0 %v1981_v21  ;;  %2833 = vmatprep.subr.mxu1 %v2007_v22  ;;  %v1929_v21 = vld [vmem:[#allocation13 + $0x658] sm:$0xff]  ;;  %v2094_v22 = vld [vmem:[#allocation13 + $0xb80] sm:$0xff] }
 0x320   :  { %2629 = vmatpush1.msra.mxu0 %v1980_v23  ;;  %2834 = vmatpush1.msra.mxu1 %v2006_v25  ;;  %v1928_v23 = vld [vmem:[#allocation13 + $0x650] sm:$0xff]  ;;  %v2089_v25 = vld [vmem:[#allocation13 + $0xb58] sm:$0xff] }
 0x321   :  { %2630 = vmatprep.subr.mxu0 %v1975_v27  ;;  %2835 = vmatprep.subr.mxu1 %v2001_v28  ;;  %v1923_v27 = vld [vmem:[#allocation13 + $0x628] sm:$0xff]  ;;  %v2088_v28 = vld [vmem:[#allocation13 + $0xb50] sm:$0xff] }
 0x322   :  { %2631 = vmatpush1.msra.mxu0 %v1974_v33  ;;  %2836 = vmatpush1.msra.mxu1 %v2000_v34  ;;  %v1922_v33 = vld [vmem:[#allocation13 + $0x620] sm:$0xff]  ;;  %v2083_v34 = vld [vmem:[#allocation13 + $0xb28] sm:$0xff] }
 0x323   :  { %2632 = vmatprep.subr.mxu0 %v1969_v35  ;;  %2837 = vmatprep.subr.mxu1 %v1995_v62  ;;  %v2109_v35 = vld [vmem:[#allocation13 + $0xbf8] sm:$0xff]  ;;  %v2082_v62 = vld [vmem:[#allocation13 + $0xb20] sm:$0xff] }
 0x324   :  { %2633 = vmatpush1.msra.mxu0 %v1968_v39  ;;  %2838 = vmatpush1.msra.mxu1 %v1994_v40  ;;  %v2108_v39 = vld [vmem:[#allocation13 + $0xbf0] sm:$0xff]  ;;  %v2077_v40 = vld [vmem:[#allocation13 + $0xaf8] sm:$0xff] }
 0x325   :  { %2634 = vmatprep.subr.mxu0 %v1963_v42  ;;  %2839 = vmatprep.subr.mxu1 %v1989_v44  ;;  %v2103_v42 = vld [vmem:[#allocation13 + $0xbc8] sm:$0xff]  ;;  %v2076_v44 = vld [vmem:[#allocation13 + $0xaf0] sm:$0xff] }
 0x326   :  { %2635 = vmatpush1.msra.mxu0 %v1962_v24  ;;  %2840 = vmatpush1.msra.mxu1 %v1988_v46  ;;  %v2102_v24 = vld [vmem:[#allocation13 + $0xbc0] sm:$0xff]  ;;  %v2071_v46 = vld [vmem:[#allocation13 + $0xac8] sm:$0xff] }
 0x327   :  { %2636 = vmatprep.subr.mxu0 %v1957_v47  ;;  %2841 = vmatprep.subr.mxu1 %v1983_v48  ;;  %v2097_v47 = vld [vmem:[#allocation13 + $0xb98] sm:$0xff]  ;;  %v2070_v48 = vld [vmem:[#allocation13 + $0xac0] sm:$0xff] }
 0x328   :  { %2637 = vmatpush1.msra.mxu0 %v1956_v51  ;;  %2842 = vmatpush1.msra.mxu1 %v1982_v52  ;;  %v2096_v51 = vld [vmem:[#allocation13 + $0xb90] sm:$0xff]  ;;  %v2065_v52 = vld [vmem:[#allocation13 + $0xa98] sm:$0xff] }
 0x329   :  { %2638 = vmatprep.subr.mxu0 %v1951_v37  ;;  %2843 = vmatprep.subr.mxu1 %v1977_v53  ;;  %v2091_v37 = vld [vmem:[#allocation13 + $0xb68] sm:$0xff]  ;;  %v2064_v53 = vld [vmem:[#allocation13 + $0xa90] sm:$0xff] }
 0x32a   :  { %2639 = vmatpush1.msra.mxu0 %v1950_v29  ;;  %2844 = vmatpush1.msra.mxu1 %v1976_v54  ;;  %v2090_v29 = vld [vmem:[#allocation13 + $0xb60] sm:$0xff]  ;;  %v2059_v54 = vld [vmem:[#allocation13 + $0xa68] sm:$0xff] }
 0x32b   :  { %2640 = vmatprep.subr.mxu0 %v1945_v55  ;;  %2845 = vmatprep.subr.mxu1 %v1971_v56  ;;  %v2085_v55 = vld [vmem:[#allocation13 + $0xb38] sm:$0xff]  ;;  %v2058_v56 = vld [vmem:[#allocation13 + $0xa60] sm:$0xff] }
 0x32c   :  { %2641 = vmatpush1.msra.mxu0 %v1944_v57  ;;  %2846 = vmatpush1.msra.mxu1 %v1970_v58  ;;  %v2084_v57 = vld [vmem:[#allocation13 + $0xb30] sm:$0xff]  ;;  %v2053_v58 = vld [vmem:[#allocation13 + $0xa38] sm:$0xff] }
 0x32d   :  { %2642 = vmatprep.subr.mxu0 %v1939_v59  ;;  %2847 = vmatprep.subr.mxu1 %v1965_v61  ;;  %v2079_v59 = vld [vmem:[#allocation13 + $0xb08] sm:$0xff]  ;;  %v2052_v61 = vld [vmem:[#allocation13 + $0xa30] sm:$0xff] }
 0x32e   :  { %2643 = vmatpush1.msra.mxu0 %v1938_v0  ;;  %2848 = vmatpush1.msra.mxu1 %v1964_v31  ;;  %v2078_v0 = vld [vmem:[#allocation13 + $0xb00] sm:$0xff]  ;;  %v2047_v31 = vld [vmem:[#allocation13 + $0xa08] sm:$0xff] }
 0x32f   :  { %2644 = vmatprep.subr.mxu0 %v1933_v45  ;;  %2849 = vmatprep.subr.mxu1 %v1959_v2  ;;  %v2073_v45 = vld [vmem:[#allocation13 + $0xad8] sm:$0xff]  ;;  %v2046_v2 = vld [vmem:[#allocation13 + $0xa00] sm:$0xff] }
 0x330   :  { %2645 = vmatpush1.msra.mxu0 %v1932_v3  ;;  %2850 = vmatpush1.msra.mxu1 %v1958_v5  ;;  %v2072_v3 = vld [vmem:[#allocation13 + $0xad0] sm:$0xff]  ;;  %v2041_v5 = vld [vmem:[#allocation13 + $0x9d8] sm:$0xff] }
 0x331   :  { %2646 = vmatprep.subr.mxu0 %v1927_v7  ;;  %2851 = vmatprep.subr.mxu1 %v1953_v9  ;;  %v2067_v7 = vld [vmem:[#allocation13 + $0xaa8] sm:$0xff]  ;;  %v2040_v9 = vld [vmem:[#allocation13 + $0x9d0] sm:$0xff] }
 0x332   :  { %2647 = vmatpush1.msra.mxu0 %v1926_v10  ;;  %2852 = vmatpush1.msra.mxu1 %v1952_v36  ;;  %v2066_v10 = vld [vmem:[#allocation13 + $0xaa0] sm:$0xff]  ;;  %v2035_v36 = vld [vmem:[#allocation13 + $0x9a8] sm:$0xff] }
 0x333   :  { %2648 = vmatprep.subr.mxu0 %v1921_v11  ;;  %2853 = vmatprep.subr.mxu1 %v1947_v12  ;;  %v2061_v11 = vld [vmem:[#allocation13 + $0xa78] sm:$0xff]  ;;  %v2034_v12 = vld [vmem:[#allocation13 + $0x9a0] sm:$0xff] }
 0x334   :  { %2649 = vmatpush1.msra.mxu0 %v1920_v13  ;;  %2854 = vmatpush1.msra.mxu1 %v1946_v14  ;;  %v2060_v13 = vld [vmem:[#allocation13 + $0xa70] sm:$0xff]  ;;  %v2029_v14 = vld [vmem:[#allocation13 + $0x978] sm:$0xff] }
 0x335   :  { %2650 = vmatprep.subr.mxu0 %v2107_v15  ;;  %2855 = vmatprep.subr.mxu1 %v1941_v16  ;;  %v2055_v15 = vld [vmem:[#allocation13 + $0xa48] sm:$0xff]  ;;  %v2028_v16 = vld [vmem:[#allocation13 + $0x970] sm:$0xff] }
 0x336   :  { %2651 = vmatpush2.msra.mxu0 %v2106_v49  ;;  %2856 = vmatpush1.msra.mxu1 %v1940_v17  ;;  %v2054_v49 = vld [vmem:[#allocation13 + $0xa40] sm:$0xff]  ;;  %v2023_v17 = vld [vmem:[#allocation13 + $0x948] sm:$0xff] }
 0x337   :  { %2652 = vmatprep.subr.mxu0 %v2101_v1  ;;  %2857 = vmatprep.subr.mxu1 %v1935_v63  ;;  %v2049_v1 = vld [vmem:[#allocation13 + $0xa18] sm:$0xff]  ;;  %v2022_v63 = vld [vmem:[#allocation13 + $0x940] sm:$0xff] }
 0x338   :  { %2653 = vmatpush2.msra.mxu0 %v2100_v18  ;;  %2858 = vmatpush1.msra.mxu1 %v1934_v4  ;;  %v2048_v18 = vld [vmem:[#allocation13 + $0xa10] sm:$0xff]  ;;  %v2017_v4 = vld [vmem:[#allocation13 + $0x918] sm:$0xff] }
 0x339   :  { %2654 = vmatprep.subr.mxu0 %v2095_v19  ;;  %2859 = vmatprep.subr.mxu1 %v1929_v21  ;;  %v2043_v19 = vld [vmem:[#allocation13 + $0x9e8] sm:$0xff]  ;;  %v2016_v21 = vld [vmem:[#allocation13 + $0x910] sm:$0xff] }
 0x33a   :  { %2655 = vmatpush2.msra.mxu0 %v2094_v22  ;;  %2860 = vmatpush1.msra.mxu1 %v1928_v23  ;;  %v2042_v22 = vld [vmem:[#allocation13 + $0x9e0] sm:$0xff]  ;;  %v1821_v23 = vld [vmem:[#allocation13 + $0x2f8] sm:$0xff] }
 0x33b   :  { %2656 = vmatprep.subr.mxu0 %v2089_v25  ;;  %2861 = vmatprep.subr.mxu1 %v1923_v27  ;;  %v2037_v25 = vld [vmem:[#allocation13 + $0x9b8] sm:$0xff]  ;;  %v1820_v27 = vld [vmem:[#allocation13 + $0x2f0] sm:$0xff] }
 0x33c   :  { %2657 = vmatpush2.msra.mxu0 %v2088_v28  ;;  %2862 = vmatpush1.msra.mxu1 %v1922_v33  ;;  %v2036_v28 = vld [vmem:[#allocation13 + $0x9b0] sm:$0xff]  ;;  %v1815_v33 = vld [vmem:[#allocation13 + $0x2c8] sm:$0xff] }
 0x33d   :  { %2658 = vmatprep.subr.mxu0 %v2083_v34  ;;  %2863 = vmatprep.subr.mxu1 %v2109_v35  ;;  %v2031_v34 = vld [vmem:[#allocation13 + $0x988] sm:$0xff]  ;;  %v1814_v35 = vld [vmem:[#allocation13 + $0x2c0] sm:$0xff] }
 0x33e   :  { %2659 = vmatpush2.msra.mxu0 %v2082_v62  ;;  %2864 = vmatpush2.msra.mxu1 %v2108_v39  ;;  %v2030_v62 = vld [vmem:[#allocation13 + $0x980] sm:$0xff]  ;;  %v1809_v39 = vld [vmem:[#allocation13 + $0x298] sm:$0xff] }
 0x33f   :  { %2660 = vmatprep.subr.mxu0 %v2077_v40  ;;  %2865 = vmatprep.subr.mxu1 %v2103_v42  ;;  %v2025_v40 = vld [vmem:[#allocation13 + $0x958] sm:$0xff]  ;;  %v1808_v42 = vld [vmem:[#allocation13 + $0x290] sm:$0xff] }
 0x340   :  { %2661 = vmatpush2.msra.mxu0 %v2076_v44  ;;  %2866 = vmatpush2.msra.mxu1 %v2102_v24  ;;  %v2024_v44 = vld [vmem:[#allocation13 + $0x950] sm:$0xff]  ;;  %v1803_v24 = vld [vmem:[#allocation13 + $0x268] sm:$0xff] }
 0x341   :  { %2662 = vmatprep.subr.mxu0 %v2071_v46  ;;  %2867 = vmatprep.subr.mxu1 %v2097_v47  ;;  %v2019_v46 = vld [vmem:[#allocation13 + $0x928] sm:$0xff]  ;;  %v1802_v47 = vld [vmem:[#allocation13 + $0x260] sm:$0xff] }
 0x342   :  { %2663 = vmatpush2.msra.mxu0 %v2070_v48  ;;  %2868 = vmatpush2.msra.mxu1 %v2096_v51  ;;  %v2018_v48 = vld [vmem:[#allocation13 + $0x920] sm:$0xff]  ;;  %v1797_v51 = vld [vmem:[#allocation13 + $0x238] sm:$0xff] }
 0x343   :  { %2664 = vmatprep.subr.mxu0 %v2065_v52  ;;  %2869 = vmatprep.subr.mxu1 %v2091_v37  ;;  %v3023_v52 = vld [vmem:[%s4394_s8 + $0xf8] sm:$0xff] }
 0x344   :  { %2665 = vmatpush2.msra.mxu0 %v2064_v53  ;;  %2870 = vmatpush2.msra.mxu1 %v2090_v29  ;;  %v1791_v37 = vld [vmem:[#allocation13 + $0x208] sm:$0xff]  ;;  %v1790_v29 = vld [vmem:[#allocation13 + $0x200] sm:$0xff] }
 0x345   :  { %2666 = vmatprep.subr.mxu0 %v2059_v54  ;;  %2871 = vmatprep.subr.mxu1 %v2085_v55  ;;  %v3007_v53 = vld [vmem:[%s4394_s8 + $0x78] sm:$0xff]  ;;  %v3022_v54 = vld [vmem:[%s4394_s8 + $0xf0] sm:$0xff] }
 0x346   :  { %2667 = vmatpush2.msra.mxu0 %v2058_v56  ;;  %2872 = vmatpush2.msra.mxu1 %v2084_v57  ;;  %v1785_v55 = vld [vmem:[#allocation13 + $0x1d8] sm:$0xff]  ;;  %v1784_v57 = vld [vmem:[#allocation13 + $0x1d0] sm:$0xff] }
 0x347   :  { %2668 = vmatprep.subr.mxu0 %v2053_v58  ;;  %2873 = vmatprep.subr.mxu1 %v2079_v59  ;;  %v3006_v56 = vld [vmem:[%s4394_s8 + $0x70] sm:$0xff]  ;;  %v3021_v58 = vld [vmem:[%s4394_s8 + $0xe8] sm:$0xff] }
 0x348   :  { %2669 = vmatpush2.msra.mxu0 %v2052_v61  ;;  %2874 = vmatpush2.msra.mxu1 %v2078_v0  ;;  %v3005_v59 = vld [vmem:[%s4394_s8 + $0x68] sm:$0xff]  ;;  %v1778_v61 = vld [vmem:[#allocation13 + $0x1a0] sm:$0xff]  ;;  %v3020_v0 = vld [vmem:[%s4394_s8 + $0xe0] sm:$0xff] }
 0x349   :  { %2670 = vmatprep.subr.mxu0 %v2047_v31  ;;  %2875 = vmatprep.subr.mxu1 %v2073_v45  ;;  %v1773_v31 = vld [vmem:[#allocation13 + $0x178] sm:$0xff]  ;;  %v3004_v45 = vld [vmem:[%s4394_s8 + $0x60] sm:$0xff] }
 0x34a   :  { %2671 = vmatpush2.msra.mxu0 %v2046_v2  ;;  %2876 = vmatpush2.msra.mxu1 %v2072_v3  ;;  %v1772_v2 = vld [vmem:[#allocation13 + $0x170] sm:$0xff]  ;;  %v3019_v3 = vld [vmem:[%s4394_s8 + $0xd8] sm:$0xff] }
 0x34b   :  { %2672 = vmatprep.subr.mxu0 %v2041_v5  ;;  %2877 = vmatprep.subr.mxu1 %v2067_v7  ;;  %v1767_v5 = vld [vmem:[#allocation13 + $0x148] sm:$0xff] }
 0x34c   :  { %2673 = vmatpush2.msra.mxu0 %v2040_v9  ;;  %2878 = vmatpush2.msra.mxu1 %v2066_v10  ;;  %v3003_v7 = vld [vmem:[%s4394_s8 + $0x58] sm:$0xff]  ;;  %v3018_v10 = vld [vmem:[%s4394_s8 + $0xd0] sm:$0xff] }
 0x34d   :  { %2674 = vmatprep.subr.mxu0 %v2035_v36  ;;  %2879 = vmatprep.subr.mxu1 %v2061_v11  ;;  %v1766_v9 = vld [vmem:[#allocation13 + $0x140] sm:$0xff]  ;;  %v1761_v36 = vld [vmem:[#allocation13 + $0x118] sm:$0xff] }
 0x34e   :  { %2675 = vmatpush2.msra.mxu0 %v2034_v12  ;;  %2880 = vmatpush2.msra.mxu1 %v2060_v13  ;;  %v3002_v11 = vld [vmem:[%s4394_s8 + $0x50] sm:$0xff]  ;;  %v1760_v12 = vld [vmem:[#allocation13 + $0x110] sm:$0xff] }
 0x34f   :  { %2676 = vmatprep.subr.mxu0 %v2029_v14  ;;  %2881 = vmatprep.subr.mxu1 %v2055_v15  ;;  %v3017_v13 = vld [vmem:[%s4394_s8 + $0xc8] sm:$0xff]  ;;  %v1755_v14 = vld [vmem:[#allocation13 + $0xe8] sm:$0xff] }
 0x350   :  { %2677 = vmatpush2.msra.mxu0 %v2028_v16  ;;  %2882 = vmatpush2.msra.mxu1 %v2054_v49  ;;  %v3001_v15 = vld [vmem:[%s4394_s8 + $0x48] sm:$0xff]  ;;  %v1754_v16 = vld [vmem:[#allocation13 + $0xe0] sm:$0xff]  ;;  %v3016_v49 = vld [vmem:[%s4394_s8 + $0xc0] sm:$0xff] }
 0x351   :  { %2678 = vmatprep.subr.mxu0 %v2023_v17  ;;  %2883 = vmatprep.subr.mxu1 %v2049_v1  ;;  %v1749_v17 = vld [vmem:[#allocation13 + $0xb8] sm:$0xff]  ;;  %v3000_v1 = vld [vmem:[%s4394_s8 + $0x40] sm:$0xff] }
 0x352   :  { %2679 = vmatpush2.msra.mxu0 %v2022_v63  ;;  %2884 = vmatpush2.msra.mxu1 %v2048_v18  ;;  %v1748_v63 = vld [vmem:[#allocation13 + $0xb0] sm:$0xff]  ;;  %v3015_v18 = vld [vmem:[%s4394_s8 + $0xb8] sm:$0xff] }
 0x353   :  { %2680 = vmatprep.subr.mxu0 %v2017_v4  ;;  %2885 = vmatprep.subr.mxu1 %v2043_v19  ;;  %v1743_v4 = vld [vmem:[#allocation13 + $0x88] sm:$0xff] }
 0x354   :  { %2681 = vmatpush2.msra.mxu0 %v2016_v21  ;;  %2886 = vmatpush2.msra.mxu1 %v2042_v22  ;;  %v2999_v19 = vld [vmem:[%s4394_s8 + $0x38] sm:$0xff]  ;;  %v3014_v22 = vld [vmem:[%s4394_s8 + $0xb0] sm:$0xff] }
 0x355   :  { %2683 = vmatmul.mubr.f32.vlgmr.msra.gmra.mxu0 %v4027_v26  ;;  %2760 = vmatprep.subr.mxu0 %v1821_v23  ;;  %v1742_v21 = vld [vmem:[#allocation13 + $0x80] sm:$0xff]  ;;  %v1737_v23 = vld [vmem:[#allocation13 + $0x58] sm:$0xff] }
 0x356   :  { %2887 = vmatprep.subr.mxu1 %v2037_v25  ;;  %2761 = vmatpush1.msra.mxu0 %v1820_v27  ;;  %v2998_v25 = vld [vmem:[%s4394_s8 + $0x30] sm:$0xff]  ;;  %v1736_v27 = vld [vmem:[#allocation13 + $0x50] sm:$0xff] }
 0x357   :  { %2824 = vmatprep.mubr.f32.mxu0 %v4011_v50  ;;  %2888 = vmatpush2.msra.mxu1 %v2036_v28  ;;  %v1796_v50 = vld [vmem:[#allocation13 + $0x230] sm:$0xff] }
 0x358   :  { %2762 = vmatprep.subr.mxu0 %v1815_v33  ;;  %2889 = vmatprep.subr.mxu1 %v2031_v34  ;;  %v3013_v28 = vld [vmem:[%s4394_s8 + $0xa8] sm:$0xff]  ;;  %v1731_v33 = vld [vmem:[#allocation13 + $0x28] sm:$0xff] }
 0x359   :  { %2763 = vmatpush1.msra.mxu0 %v1814_v35  ;;  %2890 = vmatpush2.msra.mxu1 %v2030_v62  ;;  %v2997_v34 = vld [vmem:[%s4394_s8 + $0x28] sm:$0xff]  ;;  %v1730_v35 = vld [vmem:[#allocation13 + $0x20] sm:$0xff]  ;;  %v3012_v62 = vld [vmem:[%s4394_s8 + $0xa0] sm:$0xff] }
 0x35a   :  { %2764 = vmatprep.subr.mxu0 %v1809_v39  ;;  %2891 = vmatprep.subr.mxu1 %v2025_v40  ;;  %v1917_v39 = vld [vmem:[#allocation13 + $0x5f8] sm:$0xff]  ;;  %v2996_v40 = vld [vmem:[%s4394_s8 + $0x20] sm:$0xff] }
 0x35b   :  { %2765 = vmatpush1.msra.mxu0 %v1808_v42  ;;  %2892 = vmatpush2.msra.mxu1 %v2024_v44  ;;  %v1916_v42 = vld [vmem:[#allocation13 + $0x5f0] sm:$0xff]  ;;  %v3011_v44 = vld [vmem:[%s4394_s8 + $0x98] sm:$0xff] }
 0x35c   :  { %2766 = vmatprep.subr.mxu0 %v1803_v24  ;;  %2893 = vmatprep.subr.mxu1 %v2019_v46  ;;  %v1911_v24 = vld [vmem:[#allocation13 + $0x5c8] sm:$0xff] }
 0x35d   :  { %2767 = vmatpush1.msra.mxu0 %v1802_v47  ;;  %2894 = vmatpush2.msra.mxu1 %v2018_v48  ;;  %v2995_v46 = vld [vmem:[%s4394_s8 + $0x18] sm:$0xff]  ;;  %v3010_v48 = vld [vmem:[%s4394_s8 + $0x90] sm:$0xff] }
 0x35e   :  { %2768 = vmatprep.subr.mxu0 %v1797_v51  ;;  %2896 = vmatmul.mubr.f32.vlgmr.msra.gmra.mxu1 %v4027_v26  ;;  %v1779_v26 = vld [vmem:[#allocation13 + $0x1a8] sm:$0xff]  ;;  %v1910_v47 = vld [vmem:[#allocation13 + $0x5c0] sm:$0xff]  ;;  %v1905_v51 = vld [vmem:[#allocation13 + $0x598] sm:$0xff] }
 0x35f   :  { %2769 = vmatpush1.msra.mxu0 %v1796_v50  ;;  %3443 = vmatprep.subr.mxu1 %v3023_v52  ;;  %v2994_v50 = vld [vmem:[%s4394_s8 + $0x10] sm:$0xff]  ;;  %v1904_v52 = vld [vmem:[#allocation13 + $0x590] sm:$0xff] }
 0x360   :  { %2770 = vmatprep.subr.mxu0 %v1791_v37  ;;  %3444 = vmatpush3.msra.mxu1 %v3007_v53  ;;  %v3009_v37 = vld [vmem:[%s4394_s8 + $0x88] sm:$0xff]  ;;  %v1899_v53 = vld [vmem:[#allocation13 + $0x568] sm:$0xff] }
 0x361   :  { %2771 = vmatpush1.msra.mxu0 %v1790_v29  ;;  %3445 = vmatprep.subr.mxu1 %v3022_v54  ;;  %v2993_v29 = vld [vmem:[%s4394_s8 + $0x8] sm:$0xff]  ;;  %v1898_v54 = vld [vmem:[#allocation13 + $0x560] sm:$0xff] }
 0x362   :  { %2772 = vmatprep.subr.mxu0 %v1785_v55  ;;  %3446 = vmatpush3.msra.mxu1 %v3006_v56  ;;  %v3008_v55 = vld [vmem:[%s4394_s8 + $0x80] sm:$0xff]  ;;  %v1893_v56 = vld [vmem:[#allocation13 + $0x538] sm:$0xff] }
 0x363   :  { %2773 = vmatpush1.msra.mxu0 %v1784_v57  ;;  %3447 = vmatprep.subr.mxu1 %v3021_v58  ;;  %v2992_v57 = vld [vmem:[%s4394_s8] sm:$0xff] }
 0x364   :  { %2774 = vmatprep.subr.mxu0 %v1779_v26  ;;  %3448 = vmatpush3.msra.mxu1 %v3005_v59  ;;  %v1892_v58 = vld [vmem:[#allocation13 + $0x530] sm:$0xff]  ;;  %v1887_v26 = vld [vmem:[#allocation13 + $0x508] sm:$0xff]  ;;  %v1886_v59 = vld [vmem:[#allocation13 + $0x500] sm:$0xff] }
 0x365   :  { %2775 = vmatpush1.msra.mxu0 %v1778_v61  ;;  %3449 = vmatprep.subr.mxu1 %v3020_v0  ;;  %v1881_v61 = vld [vmem:[#allocation13 + $0x4d8] sm:$0xff]  ;;  %v1880_v0 = vld [vmem:[#allocation13 + $0x4d0] sm:$0xff] }
 0x366   :  { %2776 = vmatprep.subr.mxu0 %v1773_v31  ;;  %3450 = vmatpush3.msra.mxu1 %v3004_v45  ;;  %v1875_v31 = vld [vmem:[#allocation13 + $0x4a8] sm:$0xff]  ;;  %v1874_v45 = vld [vmem:[#allocation13 + $0x4a0] sm:$0xff] }
 0x367   :  { %2777 = vmatpush1.msra.mxu0 %v1772_v2  ;;  %3451 = vmatprep.subr.mxu1 %v3019_v3  ;;  %v1869_v2 = vld [vmem:[#allocation13 + $0x478] sm:$0xff]  ;;  %v1868_v3 = vld [vmem:[#allocation13 + $0x470] sm:$0xff] }
 0x368   :  { %2778 = vmatprep.subr.mxu0 %v1767_v5  ;;  %3452 = vmatpush3.msra.mxu1 %v3003_v7  ;;  %v1863_v5 = vld [vmem:[#allocation13 + $0x448] sm:$0xff]  ;;  %v1862_v7 = vld [vmem:[#allocation13 + $0x440] sm:$0xff] }
 0x369   :  { %2779 = vmatpush1.msra.mxu0 %v1766_v9  ;;  %3453 = vmatprep.subr.mxu1 %v3018_v10  ;;  %v1857_v9 = vld [vmem:[#allocation13 + $0x418] sm:$0xff]  ;;  %v1856_v10 = vld [vmem:[#allocation13 + $0x410] sm:$0xff] }
 0x36a   :  { %2780 = vmatprep.subr.mxu0 %v1761_v36  ;;  %3454 = vmatpush3.msra.mxu1 %v3002_v11  ;;  %v1851_v36 = vld [vmem:[#allocation13 + $0x3e8] sm:$0xff]  ;;  %v1850_v11 = vld [vmem:[#allocation13 + $0x3e0] sm:$0xff] }
 0x36b   :  { %2781 = vmatpush1.msra.mxu0 %v1760_v12  ;;  %3455 = vmatprep.subr.mxu1 %v3017_v13  ;;  %v1845_v12 = vld [vmem:[#allocation13 + $0x3b8] sm:$0xff]  ;;  %v1844_v13 = vld [vmem:[#allocation13 + $0x3b0] sm:$0xff] }
 0x36c   :  { %2782 = vmatprep.subr.mxu0 %v1755_v14  ;;  %3456 = vmatpush3.msra.mxu1 %v3001_v15  ;;  %v1839_v14 = vld [vmem:[#allocation13 + $0x388] sm:$0xff]  ;;  %v1838_v15 = vld [vmem:[#allocation13 + $0x380] sm:$0xff] }
 0x36d   :  { %2783 = vmatpush1.msra.mxu0 %v1754_v16  ;;  %3457 = vmatprep.subr.mxu1 %v3016_v49  ;;  %v1833_v16 = vld [vmem:[#allocation13 + $0x358] sm:$0xff]  ;;  %v1832_v49 = vld [vmem:[#allocation13 + $0x350] sm:$0xff] }
 0x36e   :  { %2784 = vmatprep.subr.mxu0 %v1749_v17  ;;  %3458 = vmatpush3.msra.mxu1 %v3000_v1  ;;  %v1827_v17 = vld [vmem:[#allocation13 + $0x328] sm:$0xff]  ;;  %v1826_v1 = vld [vmem:[#allocation13 + $0x320] sm:$0xff] }
 0x36f   :  { %2785 = vmatpush1.msra.mxu0 %v1748_v63  ;;  %3459 = vmatprep.subr.mxu1 %v3015_v18  ;;  %v2205_v63 = vld [vmem:[#allocation13 + $0xef8] sm:$0xff]  ;;  %v2204_v18 = vld [vmem:[#allocation13 + $0xef0] sm:$0xff] }
 0x370   :  { %2786 = vmatprep.subr.mxu0 %v1743_v4  ;;  %3460 = vmatpush3.msra.mxu1 %v2999_v19  ;;  %v2199_v4 = vld [vmem:[#allocation13 + $0xec8] sm:$0xff]  ;;  %v2198_v19 = vld [vmem:[#allocation13 + $0xec0] sm:$0xff] }
 0x371   :  { %2787 = vmatpush1.msra.mxu0 %v1742_v21  ;;  %3461 = vmatprep.subr.mxu1 %v3014_v22  ;;  %v2193_v21 = vld [vmem:[#allocation13 + $0xe98] sm:$0xff]  ;;  %v2192_v22 = vld [vmem:[#allocation13 + $0xe90] sm:$0xff] }
 0x372   :  { %2788 = vmatprep.subr.mxu0 %v1737_v23  ;;  %3462 = vmatpush3.msra.mxu1 %v2998_v25  ;;  %v2187_v23 = vld [vmem:[#allocation13 + $0xe68] sm:$0xff]  ;;  %v2186_v25 = vld [vmem:[#allocation13 + $0xe60] sm:$0xff] }
 0x373   :  { %2789 = vmatpush1.msra.mxu0 %v1736_v27  ;;  %3463 = vmatprep.subr.mxu1 %v3013_v28  ;;  %v2181_v27 = vld [vmem:[#allocation13 + $0xe38] sm:$0xff]  ;;  %v2180_v28 = vld [vmem:[#allocation13 + $0xe30] sm:$0xff] }
 0x374   :  { %2790 = vmatprep.subr.mxu0 %v1731_v33  ;;  %3464 = vmatpush3.msra.mxu1 %v2997_v34  ;;  %v2175_v33 = vld [vmem:[#allocation13 + $0xe08] sm:$0xff]  ;;  %v2169_v34 = vld [vmem:[#allocation13 + $0xdd8] sm:$0xff] }
 0x375   :  { %2791 = vmatpush1.msra.mxu0 %v1730_v35  ;;  %3465 = vmatprep.subr.mxu1 %v3012_v62  ;;  %v2168_v35 = vld [vmem:[#allocation13 + $0xdd0] sm:$0xff]  ;;  %v2162_v62 = vld [vmem:[#allocation13 + $0xda0] sm:$0xff] }
 0x376   :  { %2792 = vmatprep.subr.mxu0 %v1917_v39  ;;  %3466 = vmatpush3.msra.mxu1 %v2996_v40  ;;  %v2157_v39 = vld [vmem:[#allocation13 + $0xd78] sm:$0xff]  ;;  %v2156_v40 = vld [vmem:[#allocation13 + $0xd70] sm:$0xff] }
 0x377   :  { %2793 = vmatpush2.msra.mxu0 %v1916_v42  ;;  %3467 = vmatprep.subr.mxu1 %v3011_v44  ;;  %v2151_v42 = vld [vmem:[#allocation13 + $0xd48] sm:$0xff]  ;;  %v2150_v44 = vld [vmem:[#allocation13 + $0xd40] sm:$0xff] }
 0x378   :  { %2794 = vmatprep.subr.mxu0 %v1911_v24  ;;  %3468 = vmatpush3.msra.mxu1 %v2995_v46  ;;  %v2145_v24 = vld [vmem:[#allocation13 + $0xd18] sm:$0xff]  ;;  %v2144_v46 = vld [vmem:[#allocation13 + $0xd10] sm:$0xff] }
 0x379   :  { %2795 = vmatpush2.msra.mxu0 %v1910_v47  ;;  %3469 = vmatprep.subr.mxu1 %v3010_v48  ;;  %v2139_v47 = vld [vmem:[#allocation13 + $0xce8] sm:$0xff]  ;;  %v2138_v48 = vld [vmem:[#allocation13 + $0xce0] sm:$0xff] }
 0x37a   :  { %2796 = vmatprep.subr.mxu0 %v1905_v51  ;;  %3470 = vmatpush3.msra.mxu1 %v2994_v50  ;;  %v2133_v51 = vld [vmem:[#allocation13 + $0xcb8] sm:$0xff]  ;;  %v2132_v50 = vld [vmem:[#allocation13 + $0xcb0] sm:$0xff] }
 0x37b   :  { %2797 = vmatpush2.msra.mxu0 %v1904_v52  ;;  %3471 = vmatprep.subr.mxu1 %v3009_v37  ;;  %v2127_v52 = vld [vmem:[#allocation13 + $0xc88] sm:$0xff]  ;;  %v2126_v37 = vld [vmem:[#allocation13 + $0xc80] sm:$0xff] }
 0x37c   :  { %2798 = vmatprep.subr.mxu0 %v1899_v53  ;;  %3472 = vmatpush3.msra.mxu1 %v2993_v29  ;;  %v2121_v53 = vld [vmem:[#allocation13 + $0xc58] sm:$0xff]  ;;  %v2120_v29 = vld [vmem:[#allocation13 + $0xc50] sm:$0xff] }
 0x37d   :  { %2799 = vmatpush2.msra.mxu0 %v1898_v54  ;;  %3473 = vmatprep.subr.mxu1 %v3008_v55  ;;  %v2115_v54 = vld [vmem:[#allocation13 + $0xc28] sm:$0xff]  ;;  %v2114_v55 = vld [vmem:[#allocation13 + $0xc20] sm:$0xff] }
 0x37e   :  { %2800 = vmatprep.subr.mxu0 %v1893_v56  ;;  %3474 = vmatpush3.msra.mxu1 %v2992_v57  ;;  %v2301_v56 = vld [vmem:[#allocation13 + $0x11f8] sm:$0xff]  ;;  %v2300_v57 = vld [vmem:[#allocation13 + $0x11f0] sm:$0xff] }
 0x37f   :  { %2801 = vmatpush2.msra.mxu0 %v1892_v58  ;;  %v2295_v58 = vld [vmem:[#allocation13 + $0x11c8] sm:$0xff] }
 0x380   :  { %2802 = vmatprep.subr.mxu0 %v1887_v26  ;;  %v2294_v26 = vld [vmem:[#allocation13 + $0x11c0] sm:$0xff] }
 0x381   :  { %2803 = vmatpush2.msra.mxu0 %v1886_v59  ;;  %v2289_v59 = vld [vmem:[#allocation13 + $0x1198] sm:$0xff] }
 0x382   :  { %2804 = vmatprep.subr.mxu0 %v1881_v61  ;;  %v2288_v61 = vld [vmem:[#allocation13 + $0x1190] sm:$0xff] }
 0x383   :  { %2805 = vmatpush2.msra.mxu0 %v1880_v0  ;;  %v2283_v0 = vld [vmem:[#allocation13 + $0x1168] sm:$0xff] }
 0x384   :  { %2806 = vmatprep.subr.mxu0 %v1875_v31  ;;  %v2282_v31 = vld [vmem:[#allocation13 + $0x1160] sm:$0xff] }
 0x385   :  { %2807 = vmatpush2.msra.mxu0 %v1874_v45  ;;  %v2277_v45 = vld [vmem:[#allocation13 + $0x1138] sm:$0xff] }
 0x386   :  { %2808 = vmatprep.subr.mxu0 %v1869_v2  ;;  %v2276_v2 = vld [vmem:[#allocation13 + $0x1130] sm:$0xff] }
 0x387   :  { %2809 = vmatpush2.msra.mxu0 %v1868_v3  ;;  %v2271_v3 = vld [vmem:[#allocation13 + $0x1108] sm:$0xff] }
 0x388   :  { %2810 = vmatprep.subr.mxu0 %v1863_v5  ;;  %v2270_v5 = vld [vmem:[#allocation13 + $0x1100] sm:$0xff] }
 0x389   :  { %2811 = vmatpush2.msra.mxu0 %v1862_v7  ;;  %v2265_v7 = vld [vmem:[#allocation13 + $0x10d8] sm:$0xff] }
 0x38a   :  { %2812 = vmatprep.subr.mxu0 %v1857_v9  ;;  %v2264_v9 = vld [vmem:[#allocation13 + $0x10d0] sm:$0xff] }
 0x38b   :  { %2813 = vmatpush2.msra.mxu0 %v1856_v10  ;;  %v2259_v10 = vld [vmem:[#allocation13 + $0x10a8] sm:$0xff] }
 0x38c   :  { %2814 = vmatprep.subr.mxu0 %v1851_v36  ;;  %v2258_v36 = vld [vmem:[#allocation13 + $0x10a0] sm:$0xff] }
 0x38d   :  { %2815 = vmatpush2.msra.mxu0 %v1850_v11  ;;  %v2253_v11 = vld [vmem:[#allocation13 + $0x1078] sm:$0xff] }
 0x38e   :  { %2816 = vmatprep.subr.mxu0 %v1845_v12  ;;  %v2252_v12 = vld [vmem:[#allocation13 + $0x1070] sm:$0xff] }
 0x38f   :  { %2817 = vmatpush2.msra.mxu0 %v1844_v13  ;;  %v2247_v13 = vld [vmem:[#allocation13 + $0x1048] sm:$0xff] }
 0x390   :  { %2818 = vmatprep.subr.mxu0 %v1839_v14  ;;  %v2246_v14 = vld [vmem:[#allocation13 + $0x1040] sm:$0xff] }
 0x391   :  { %2819 = vmatpush2.msra.mxu0 %v1838_v15  ;;  %v2241_v15 = vld [vmem:[#allocation13 + $0x1018] sm:$0xff] }
 0x392   :  { %2820 = vmatprep.subr.mxu0 %v1833_v16  ;;  %v2240_v16 = vld [vmem:[#allocation13 + $0x1010] sm:$0xff] }
 0x393   :  { %2821 = vmatpush2.msra.mxu0 %v1832_v49  ;;  %v2235_v49 = vld [vmem:[#allocation13 + $0xfe8] sm:$0xff] }
 0x394   :  { %2822 = vmatprep.subr.mxu0 %v1827_v17  ;;  %v4147_v17 = vld [vmem:[#allocation15] sm:$0x3f] }
 0x395   :  { %2823 = vmatpush2.msra.mxu0 %v1826_v1  ;;  %v2234_v1 = vld [vmem:[#allocation13 + $0xfe0] sm:$0xff] }
 0x396   :  { %2825 = vmatmul.mubr.f32.vlgmr.msra.gmra.mxu0 %v4015_v60  ;;  %2902 = vmatprep.subr.mxu0 %v2205_v63  ;;  %v2174_v60 = vld [vmem:[#allocation13 + $0xe00] sm:$0xff]  ;;  %v2229_v63 = vld [vmem:[#allocation13 + $0xfb8] sm:$0xff] }
 0x397   :  { %2903 = vmatpush1.msra.mxu0 %v2204_v18  ;;  %2966 = vmatprep.mubr.f32.mxu0 %v4036_v6  ;;  %v2163_v6 = vld [vmem:[#allocation13 + $0xda8] sm:$0xff]  ;;  %v2400_v18 = vpop.f32.mrf.mxu0 }
 0x398   :  { %2904 = vmatprep.subr.mxu0 %v2199_v4  ;;  %v2228_v4 = vld [vmem:[#allocation13 + $0xfb0] sm:$0xff] }
 0x399   :  { %2905 = vmatpush1.msra.mxu0 %v2198_v19  ;;  %v2307_v19 = vrot.slane %v4147_v17, %v3930_v30  ;;  %v2210_v30 = vld [vmem:[#allocation13 + $0xf20] sm:$0xff] }
 0x39a   :  { %2906 = vmatprep.subr.mxu0 %v2193_v21  ;;  %v2223_v21 = vld [vmem:[#allocation13 + $0xf88] sm:$0xff] }
 0x39b   :  { %2907 = vmatpush1.msra.mxu0 %v2192_v22  ;;  %v2471_v22 = vpop.f32.mrf.mxu1 }
 0x39c   :  { %2908 = vmatprep.subr.mxu0 %v2187_v23  ;;  %v2222_v23 = vld [vmem:[#allocation13 + $0xf80] sm:$0xff] }
 0x39d   :  { %2909 = vmatpush1.msra.mxu0 %v2186_v25  ;;  %v2311_v25 = vrot.slane %v4147_v17, %v3935_v32 }
 0x39e   :  { %2910 = vmatprep.subr.mxu0 %v2181_v27  ;;  %v2217_v27 = vld [vmem:[#allocation13 + $0xf58] sm:$0xff] }
 0x39f   :  { %2911 = vmatpush1.msra.mxu0 %v2180_v28  ;;  %v2402_v28 = vpop.f32.mrf.mxu0 }
 0x3a0   :  { %2912 = vmatprep.subr.mxu0 %v2175_v33  ;;  %v2216_v33 = vld [vmem:[#allocation13 + $0xf50] sm:$0xff] }
 0x3a1   :  { %2913 = vmatpush1.msra.mxu0 %v2174_v60  ;;  %v2401_v60 = vadd.f32 %v2400_v18, %v2307_v19  ;;  %v3045_v18 = vld [vmem:[%s4394_s8 + $0x1a8] sm:$0xff] }
 0x3a2   :  { %2914 = vmatprep.subr.mxu0 %v2169_v34  ;;  %v2211_v34 = vld [vmem:[#allocation13 + $0xf28] sm:$0xff]  ;;  %v3029_v19 = vld [vmem:[%s4394_s8 + $0x128] sm:$0xff] }
 0x3a3   :  { %2915 = vmatpush1.msra.mxu0 %v2168_v35  ;;  %v2473_v35 = vpop.f32.mrf.mxu1 }
 0x3a4   :  { %2916 = vmatprep.subr.mxu0 %v2163_v6  ;;  %v2403_v6 = vadd.f32 %v2402_v28, %v2311_v25  ;;  %v3028_v25 = vld [vmem:[%s4394_s8 + $0x120] sm:$0xff]  ;;  %v3043_v28 = vld [vmem:[%s4394_s8 + $0x198] sm:$0xff] }
 0x3a5   :  { %2917 = vmatpush1.msra.mxu0 %v2162_v62  ;;  %v2472_v62 = vadd.f32 %v2471_v22, %v2401_v60  ;;  %v3044_v22 = vld [vmem:[%s4394_s8 + $0x1a0] sm:$0xff]  ;;  %v3027_v60 = vld [vmem:[%s4394_s8 + $0x118] sm:$0xff] }
 0x3a6   :  { %2918 = vmatprep.subr.mxu0 %v2157_v39  ;;  %v3055_v39 = vld [vmem:[%s4394_s8 + $0x1f8] sm:$0xff] }
 0x3a7   :  { %2919 = vmatpush1.msra.mxu0 %v2156_v40  ;;  %v3039_v40 = vld [vmem:[%s4394_s8 + $0x178] sm:$0xff] }
 0x3a8   :  { %2920 = vmatprep.subr.mxu0 %v2151_v42  ;;  %v2474_v42 = vadd.f32 %v2473_v35, %v2403_v6  ;;  %v3042_v35 = vld [vmem:[%s4394_s8 + $0x190] sm:$0xff] }
 0x3a9   :  { %2921 = vmatpush1.msra.mxu0 %v2150_v44  ;;  %v3026_v6 = vld [vmem:[%s4394_s8 + $0x110] sm:$0xff] }
 0x3aa   :  { %2922 = vmatprep.subr.mxu0 %v2145_v24  ;;  %v4159_v24 = vstv %s3435_s15 }
 0x3ab   :  { %2923 = vmatpush1.msra.mxu0 %v2144_v46  ;;  %v3054_v46 = vld [vmem:[%s4394_s8 + $0x1f0] sm:$0xff] }
 0x3ac   :  { %2924 = vmatprep.subr.mxu0 %v2139_v47 }
 0x3ad   :  { %2925 = vmatpush1.msra.mxu0 %v2138_v48  ;;  %v3038_v48 = vld [vmem:[%s4394_s8 + $0x170] sm:$0xff] }
 0x3ae   :  { %2926 = vmatprep.subr.mxu0 %v2133_v51 }
 0x3af   :  { %2927 = vmatpush1.msra.mxu0 %v2132_v50  ;;  %v3053_v50 = vld [vmem:[%s4394_s8 + $0x1e8] sm:$0xff] }
 0x3b0   :  { %2928 = vmatprep.subr.mxu0 %v2127_v52 }
 0x3b1   :  { %2929 = vmatpush1.msra.mxu0 %v2126_v37  ;;  %v3037_v37 = vld [vmem:[%s4394_s8 + $0x168] sm:$0xff] }
 0x3b2   :  { %2930 = vmatprep.subr.mxu0 %v2121_v53  ;;  %v3052_v53 = vld [vmem:[%s4394_s8 + $0x1e0] sm:$0xff] }
 0x3b3   :  { %2931 = vmatpush1.msra.mxu0 %v2120_v29  ;;  %v3087_v29 = vld [vmem:[%s4394_s8 + $0x2f8] sm:$0xff] }
 0x3b4   :  { %2932 = vmatprep.subr.mxu0 %v2115_v54  ;;  %v3036_v54 = vld [vmem:[%s4394_s8 + $0x160] sm:$0xff]  ;;  %3513 = vmatprep.subr.mxu1 %v3087_v29 }
 0x3b5   :  { %2933 = vmatpush1.msra.mxu0 %v2114_v55  ;;  %v3060_v29 = vld [vmem:[%s4394_s8 + $0x220] sm:$0xff] }
 0x3b6   :  { %2934 = vmatprep.subr.mxu0 %v2301_v56  ;;  %v3051_v56 = vld [vmem:[%s4394_s8 + $0x1d8] sm:$0xff] }
 0x3b7   :  { %2935 = vmatpush2.msra.mxu0 %v2300_v57  ;;  %v3071_v57 = vld [vmem:[%s4394_s8 + $0x278] sm:$0xff] }
 0x3b8   :  { %2936 = vmatprep.subr.mxu0 %v2295_v58 }
 0x3b9   :  { %2937 = vmatpush2.msra.mxu0 %v2294_v26  ;;  %v3035_v26 = vld [vmem:[%s4394_s8 + $0x158] sm:$0xff] }
 0x3ba   :  { %2938 = vmatprep.subr.mxu0 %v2289_v59  ;;  %v3086_v59 = vld [vmem:[%s4394_s8 + $0x2f0] sm:$0xff] }
 0x3bb   :  { %2939 = vmatpush2.msra.mxu0 %v2288_v61  ;;  %v3050_v61 = vld [vmem:[%s4394_s8 + $0x1d0] sm:$0xff] }
 0x3bc   :  { %2940 = vmatprep.subr.mxu0 %v2283_v0  ;;  %v3070_v0 = vld [vmem:[%s4394_s8 + $0x270] sm:$0xff] }
 0x3bd   :  { %2941 = vmatpush2.msra.mxu0 %v2282_v31  ;;  %v3034_v31 = vld [vmem:[%s4394_s8 + $0x150] sm:$0xff] }
 0x3be   :  { %2942 = vmatprep.subr.mxu0 %v2277_v45  ;;  %v3085_v45 = vld [vmem:[%s4394_s8 + $0x2e8] sm:$0xff] }
 0x3bf   :  { %2943 = vmatpush2.msra.mxu0 %v2276_v2  ;;  %v3049_v2 = vld [vmem:[%s4394_s8 + $0x1c8] sm:$0xff] }
 0x3c0   :  { %2944 = vmatprep.subr.mxu0 %v2271_v3  ;;  %v3069_v3 = vld [vmem:[%s4394_s8 + $0x268] sm:$0xff] }
 0x3c1   :  { %2945 = vmatpush2.msra.mxu0 %v2270_v5  ;;  %v3033_v5 = vld [vmem:[%s4394_s8 + $0x148] sm:$0xff] }
 0x3c2   :  { %2946 = vmatprep.subr.mxu0 %v2265_v7  ;;  %v3084_v7 = vld [vmem:[%s4394_s8 + $0x2e0] sm:$0xff] }
 0x3c3   :  { %2947 = vmatpush2.msra.mxu0 %v2264_v9  ;;  %v3048_v9 = vld [vmem:[%s4394_s8 + $0x1c0] sm:$0xff] }
 0x3c4   :  { %2948 = vmatprep.subr.mxu0 %v2259_v10  ;;  %v3068_v10 = vld [vmem:[%s4394_s8 + $0x260] sm:$0xff] }
 0x3c5   :  { %2949 = vmatpush2.msra.mxu0 %v2258_v36  ;;  %v3032_v36 = vld [vmem:[%s4394_s8 + $0x140] sm:$0xff] }
 0x3c6   :  { %2950 = vmatprep.subr.mxu0 %v2253_v11  ;;  %v3083_v11 = vld [vmem:[%s4394_s8 + $0x2d8] sm:$0xff] }
 0x3c7   :  { %2951 = vmatpush2.msra.mxu0 %v2252_v12  ;;  %v3047_v12 = vld [vmem:[%s4394_s8 + $0x1b8] sm:$0xff] }
 0x3c8   :  { %2952 = vmatprep.subr.mxu0 %v2247_v13  ;;  %v3067_v13 = vld [vmem:[%s4394_s8 + $0x258] sm:$0xff] }
 0x3c9   :  { %2953 = vmatpush2.msra.mxu0 %v2246_v14  ;;  %v3031_v14 = vld [vmem:[%s4394_s8 + $0x138] sm:$0xff] }
 0x3ca   :  { %2954 = vmatprep.subr.mxu0 %v2241_v15  ;;  %v3082_v15 = vld [vmem:[%s4394_s8 + $0x2d0] sm:$0xff] }
 0x3cb   :  { %2955 = vmatpush2.msra.mxu0 %v2240_v16  ;;  %v3046_v16 = vld [vmem:[%s4394_s8 + $0x1b0] sm:$0xff] }
 0x3cc   :  { %2956 = vmatprep.subr.mxu0 %v2235_v49  ;;  %v3066_v49 = vld [vmem:[%s4394_s8 + $0x250] sm:$0xff] }
 0x3cd   :  { %2957 = vmatpush2.msra.mxu0 %v2234_v1  ;;  %v3030_v1 = vld [vmem:[%s4394_s8 + $0x130] sm:$0xff] }
 0x3ce   :  { %2958 = vmatprep.subr.mxu0 %v2229_v63  ;;  %v3081_v63 = vld [vmem:[%s4394_s8 + $0x2c8] sm:$0xff] }
 0x3cf   :  { %2959 = vmatpush2.msra.mxu0 %v2228_v4  ;;  %v3065_v4 = vld [vmem:[%s4394_s8 + $0x248] sm:$0xff] }
 0x3d0   :  { %2960 = vmatprep.subr.mxu0 %v2223_v21  ;;  %v3080_v21 = vld [vmem:[%s4394_s8 + $0x2c0] sm:$0xff] }
 0x3d1   :  { %2961 = vmatpush2.msra.mxu0 %v2222_v23  ;;  %v3064_v23 = vld [vmem:[%s4394_s8 + $0x240] sm:$0xff] }
 0x3d2   :  { %2962 = vmatprep.subr.mxu0 %v2217_v27  ;;  %v3079_v27 = vld [vmem:[%s4394_s8 + $0x2b8] sm:$0xff] }
 0x3d3   :  { %2963 = vmatpush2.msra.mxu0 %v2216_v33  ;;  %v3063_v33 = vld [vmem:[%s4394_s8 + $0x238] sm:$0xff] }
 0x3d4   :  { %2964 = vmatprep.subr.mxu0 %v2211_v34  ;;  %v2542_v32 = vpop.f32.mrf.mxu0  ;;  %v3078_v34 = vld [vmem:[%s4394_s8 + $0x2b0] sm:$0xff] }
 0x3d5   :  { %2965 = vmatpush2.msra.mxu0 %v2210_v30  ;;  %v2543_v44 = vadd.f32 %v2542_v32, %v2472_v62  ;;  %v3062_v30 = vld [vmem:[%s4394_s8 + $0x230] sm:$0xff]  ;;  %v3077_v62 = vld [vmem:[%s4394_s8 + $0x2a8] sm:$0xff] }
 0x3d6   :  { %2967 = vmatmul.mubr.f32.vlgmr.msra.gmra.mxu0 %v4040_v8  ;;  %v2544_v47 = vpop.f32.mrf.mxu0  ;;  %3478 = vmatprep.subr.mxu0 %v3055_v39  ;;  %v3041_v39 = vld [vmem:[%s4394_s8 + $0x188] sm:$0xff] }
 0x3d7   :  { %v2545_v51 = vadd.f32 %v2544_v47, %v2474_v42  ;;  %3479 = vmatpush3.msra.mxu0 %v3039_v40  ;;  %v2980_v52 = vmul.f32 %v4159_v24, %v2543_v44  ;;  %vm2973_vm13 = vcmp.gt.f32.partialorder %v2543_v44, 0.0  ;;  %v3061_v32 = vld [vmem:[%s4394_s8 + $0x228] sm:$0xff]  ;;  %v3076_v42 = vld [vmem:[%s4394_s8 + $0x2a0] sm:$0xff] }
 0x3d8   :  { %3480 = vmatprep.subr.mxu0 %v3054_v46  ;;  %v3025_v40 = vld [vmem:[%s4394_s8 + $0x108] sm:$0xff]  ;;  %v3024_v46 = vld [vmem:[%s4394_s8 + $0x100] sm:$0xff] }
 0x3d9   :  { %v2981_v8 = vmul.f32 %v4159_v24, %v2545_v51  ;;  %vm2974_vm14 = vcmp.gt.f32.partialorder %v2545_v51, 0.0  ;;  %3481 = vmatpush3.msra.mxu0 %v3038_v48  ;;  %v2986_v58 = vsel %vm2973_vm13, %v2543_v44, %v2980_v52  ;;  %v3040_v44 = vld [vmem:[%s4394_s8 + $0x180] sm:$0xff]  ;;  %v2613_v48 = vpop.f32.mrf.mxu1 }
 0x3da   :  { %3482 = vmatprep.subr.mxu0 %v3053_v50  ;;  %v4323_v47 = vld [vmem:[#allocation19] sm:$0xff]  ;;  %v2319_v50 = vrot.slane %v4147_v17, %v3947_v41 }
 0x3db   :  { %v2987_v55 = vsel %vm2974_vm14, %v2545_v51, %v2981_v8  ;;  %3483 = vmatpush3.msra.mxu0 %v3037_v37  ;;  %v2315_v51 = vrot.slane %v4147_v17, %v3944_v38  ;;  %v2615_v52 = vpop.f32.mrf.mxu1  ;;  %v3059_v38 = vld [vmem:[%s4394_s8 + $0x218] sm:$0xff] }
 0x3dc   :  { %3159 = vmatprep.mubr.f32.mxu1 %v2987_v55  ;;  %3484 = vmatprep.subr.mxu0 %v3052_v53 }
 0x3dd   :  { %3160 = vmatmul.mubr.f32.vlgmr.msra.gmra.mxu1 %v2986_v58  ;;  %3485 = vmatpush3.msra.mxu0 %v3036_v54  ;;  %v2614_v37 = vadd.f32 %v2613_v48, %v2315_v51  ;;  %v2755_v8 = vpop.f32.mrf.mxu1  ;;  %v2616_v54 = vadd.f32 %v2615_v52, %v2319_v50 }
 0x3de   :  { %3486 = vmatprep.subr.mxu0 %v3051_v56  ;;  %3514 = vmatpush3.msra.mxu1 %v3071_v57  ;;  %v3075_v56 = vld [vmem:[%s4394_s8 + $0x298] sm:$0xff] }
 0x3df   :  { %3487 = vmatpush3.msra.mxu0 %v3035_v26  ;;  %3515 = vmatprep.subr.mxu1 %v3086_v59  ;;  %v3074_v26 = vld [vmem:[%s4394_s8 + $0x290] sm:$0xff]  ;;  %v2757_v59 = vpop.f32.mrf.mxu1 }
 0x3e0   :  { %3488 = vmatprep.subr.mxu0 %v3050_v61  ;;  %3516 = vmatpush3.msra.mxu1 %v3070_v0  ;;  %v3058_v61 = vld [vmem:[%s4394_s8 + $0x210] sm:$0xff] }
 0x3e1   :  { %3489 = vmatpush3.msra.mxu0 %v3034_v31  ;;  %3517 = vmatprep.subr.mxu1 %v3085_v45  ;;  %v3073_v31 = vld [vmem:[%s4394_s8 + $0x288] sm:$0xff] }
 0x3e2   :  { %3490 = vmatprep.subr.mxu0 %v3049_v2  ;;  %3518 = vmatpush3.msra.mxu1 %v3069_v3  ;;  %v3057_v2 = vld [vmem:[%s4394_s8 + $0x208] sm:$0xff]  ;;  %v3072_v3 = vld [vmem:[%s4394_s8 + $0x280] sm:$0xff] }
 0x3e3   :  { %3491 = vmatpush3.msra.mxu0 %v3033_v5  ;;  %3519 = vmatprep.subr.mxu1 %v3084_v7  ;;  %v3056_v5 = vld [vmem:[%s4394_s8 + $0x200] sm:$0xff] }
 0x3e4   :  { %3492 = vmatprep.subr.mxu0 %v3048_v9  ;;  %3520 = vmatpush3.msra.mxu1 %v3068_v10 }
 0x3e5   :  { %3493 = vmatpush3.msra.mxu0 %v3032_v36  ;;  %3521 = vmatprep.subr.mxu1 %v3083_v11  ;;  %v2323_v11 = vrot.slane %v4147_v17, %v3976_v43 }
 0x3e6   :  { %3494 = vmatprep.subr.mxu0 %v3047_v12  ;;  %3522 = vmatpush3.msra.mxu1 %v3067_v13  ;;  %v2327_v12 = vrot.slane %v4147_v17, %v3971_v20  ;;  %v3312_v17 = vld [vmem:[%s4396_s10 + $0x18] sm:$0xff] }
 0x3e7   :  { %3495 = vmatpush3.msra.mxu0 %v3031_v14  ;;  %3523 = vmatprep.subr.mxu1 %v3082_v15 }
 0x3e8   :  { %3496 = vmatprep.subr.mxu0 %v3046_v16  ;;  %3524 = vmatpush3.msra.mxu1 %v3066_v49 }
 0x3e9   :  { %3497 = vmatpush3.msra.mxu0 %v3030_v1  ;;  %3525 = vmatprep.subr.mxu1 %v3081_v63 }
 0x3ea   :  { %3498 = vmatprep.subr.mxu0 %v3045_v18  ;;  %3526 = vmatpush3.msra.mxu1 %v3065_v4 }
 0x3eb   :  { %3499 = vmatpush3.msra.mxu0 %v3029_v19  ;;  %3527 = vmatprep.subr.mxu1 %v3080_v21 }
 0x3ec   :  { %3500 = vmatprep.subr.mxu0 %v3044_v22  ;;  %3528 = vmatpush3.msra.mxu1 %v3064_v23 }
 0x3ed   :  { %3501 = vmatpush3.msra.mxu0 %v3028_v25  ;;  %3529 = vmatprep.subr.mxu1 %v3079_v27  ;;  %v3311_v25 = vld [vmem:[%s4396_s10 + $0x10] sm:$0xff]  ;;  %v3309_v27 = vld [vmem:[%s4396_s10] sm:$0xff] }
 0x3ee   :  { %3502 = vmatprep.subr.mxu0 %v3043_v28  ;;  %3530 = vmatpush3.msra.mxu1 %v3063_v33 }
 0x3ef   :  { %3503 = vmatpush3.msra.mxu0 %v3027_v60  ;;  %3531 = vmatprep.subr.mxu1 %v3078_v34 }
 0x3f0   :  { %3504 = vmatprep.subr.mxu0 %v3042_v35  ;;  %3532 = vmatpush3.msra.mxu1 %v3062_v30  ;;  %v3440_v30 = vld [vmem:[#allocation16] ss:$0 sm:$0xff] }
 0x3f1   :  { %3505 = vmatpush3.msra.mxu0 %v3026_v6  ;;  %3533 = vmatprep.subr.mxu1 %v3077_v62 }
 0x3f2   :  { %3506 = vmatprep.subr.mxu0 %v3041_v39  ;;  %3534 = vmatpush3.msra.mxu1 %v3061_v32 }
 0x3f3   :  { %3507 = vmatpush3.msra.mxu0 %v3025_v40  ;;  %3535 = vmatprep.subr.mxu1 %v3076_v42 }
 0x3f4   :  { %3508 = vmatprep.subr.mxu0 %v3040_v44  ;;  %3536 = vmatpush3.msra.mxu1 %v3060_v29  ;;  %v3306_v44 = vstv %s3436_s30 }
 0x3f5   :  { %3509 = vmatpush3.msra.mxu0 %v3024_v46  ;;  %3537 = vmatprep.subr.mxu1 %v3075_v56 }
 0x3f6   :  { %3553 = vmatprep.subr.mxu0 %v4323_v47  ;;  %3538 = vmatpush3.msra.mxu1 %v3059_v38 }
 0x3f7   :  { %3539 = vmatprep.subr.mxu1 %v3074_v26 }
 0x3f8   :  { %3540 = vmatpush3.msra.mxu1 %v3058_v61 }
 0x3f9   :  { %3541 = vmatprep.subr.mxu1 %v3073_v31 }
 0x3fa   :  { %3542 = vmatpush3.msra.mxu1 %v3057_v2 }
 0x3fb   :  { %3543 = vmatprep.subr.mxu1 %v3072_v3 }
 0x3fc   :  { %3544 = vmatpush3.msra.mxu1 %v3056_v5 }
 0x415   :  { %v2684_v53 = vpop.f32.mrf.mxu0 }
 0x416   :  { %v2685_v55 = vadd.f32 %v2684_v53, %v2614_v37 }
 0x417   :  { %v2686_v57 = vpop.f32.mrf.mxu0 }
 0x418   :  { %v2756_v41 = vadd.f32 %v2755_v8, %v2685_v55  ;;  %v2687_v58 = vadd.f32 %v2686_v57, %v2616_v54 }
 0x41a   :  { %v2758_v0 = vadd.f32 %v2757_v59, %v2687_v58  ;;  %v2982_v45 = vmul.f32 %v4159_v24, %v2756_v41  ;;  %vm2975_vm1 = vcmp.gt.f32.partialorder %v2756_v41, 0.0 }
 0x41c   :  { %vm2976_vm15 = vcmp.gt.f32.partialorder %v2758_v0, 0.0  ;;  %v2983_v7 = vmul.f32 %v4159_v24, %v2758_v0  ;;  %v2988_v10 = vsel %vm2975_vm1, %v2756_v41, %v2982_v45 }
 0x41e   :  { %v2989_v9 = vsel %vm2976_vm15, %v2758_v0, %v2983_v7  ;;  %v2897_v15 = vpop.f32.mrf.mxu1 }
 0x41f   :  { %3229 = vmatprep.mubr.f32.mxu0 %v2989_v9 }
 0x420   :  { %3230 = vmatmul.mubr.f32.vlgmr.msra.gmra.mxu0 %v2988_v10  ;;  %v2899_v1 = vpop.f32.mrf.mxu1 }
 0x421   :  { %3554 = vmatpush3.msra.mxu0 %v3312_v17  ;;  %3561 = vmatprep.mubr.msk.f32.mxu0 %vm3821_vm4, %v4323_v47 }
 0x422   :  { %3555 = vmatprep.subr.mxu0 %v4323_v47 }
 0x423   :  { %3556 = vmatpush3.msra.mxu0 %v3311_v25 }
 0x424   :  { %3557 = vmatprep.subr.mxu0 %v4323_v47 }
 0x456   :  { %v2826_v36 = vpop.f32.mrf.mxu0 }
 0x457   :  { %v2827_v14 = vadd.f32 %v2826_v36, %v2323_v11 }
 0x458   :  { %v2828_v13 = vpop.f32.mrf.mxu0 }
 0x459   :  { %v2829_v16 = vadd.f32 %v2828_v13, %v2327_v12  ;;  %v2898_v49 = vadd.f32 %v2897_v15, %v2827_v14 }
 0x45b   :  { %v2900_v4 = vadd.f32 %v2899_v1, %v2829_v16 }
 0x496   :  { %v2968_v63 = vpop.f32.mrf.mxu0 }
 0x497   :  { %v2969_v18 = vadd.f32 %v2968_v63, %v2898_v49 }
 0x498   :  { %v2970_v19 = vpop.f32.mrf.mxu0 }
 0x499   :  { %v2971_v21 = vadd.f32 %v2970_v19, %v2900_v4  ;;  %v2984_v22 = vmul.f32 %v4159_v24, %v2969_v18  ;;  %vm2977_vm2 = vcmp.gt.f32.partialorder %v2969_v18, 0.0 }
 0x49b   :  { %v2985_v23 = vmul.f32 %v4159_v24, %v2971_v21  ;;  %vm2978_vm3 = vcmp.gt.f32.partialorder %v2971_v21, 0.0  ;;  %v2990_v20 = vsel %vm2977_vm2, %v2969_v18, %v2984_v22  ;;  %v3310_v24 = vld [vmem:[%s4396_s10 + $0x8] sm:$0xff]  ;;  %s3822_s10 = smov 32  }
 0x49c   :  { %3558 = vmatpush3.msra.mxu0 %v3310_v24 }
 0x49d   :  { %v2991_v43 = vsel %vm2978_vm3, %v2971_v21, %v2985_v23  ;;  %3559 = vmatprep.subr.mxu0 %v4323_v47  ;;  %v3475_v28 = vpop.f32.mrf.mxu1  ;;  %v3441_v47 = vld [vmem:[#allocation18] ss:$0 sm:$0xff] }
 0x49e   :  { %3299 = vmatprep.mubr.f32.mxu1 %v2991_v43  ;;  %3560 = vmatpush3.msra.mxu0 %v3309_v27 }
 0x49f   :  { %3300 = vmatmul.mubr.f32.vlgmr.msra.gmra.mxu1 %v2990_v20  ;;  %v3476_v60 = vpop.f32.mrf.mxu1 }
 0x4a0   :  { %v3477_v35 = vadd.f32 %v3476_v60, %v3475_v28 }
 0x4a2   :  { %v3162_v39 = vadd.f32 %v3477_v35, %v3440_v30 }
 0x4e0   :  { %v3510_v33 = vpop.f32.mrf.mxu0 }
 0x4e2   :  { %v3511_v34 = vpop.f32.mrf.mxu0 }
 0x4e3   :  { %v3512_v6 = vadd.f32 %v3511_v34, %v3510_v33 }
 0x4e5   :  { %v3232_v40 = vadd.f32 %v3512_v6, %v3162_v39 }
 0x55f   :  { %v3545_v62 = vpop.f32.mrf.mxu1 }
 0x561   :  { %v3546_v32 = vpop.f32.mrf.mxu1 }
 0x562   :  { %v3547_v42 = vadd.f32 %v3546_v32, %v3545_v62 }
 0x564   :  { %v3302_v46 = vadd.f32 %v3547_v42, %v3232_v40 }
 0x566   :  { %vm3305_vm5 = vcmp.gt.f32.partialorder %v3302_v46, 0.0  ;;  %v3307_v48 = vmul.f32 %v3306_v44, %v3302_v46 }
 0x568   :  { %v3308_v51 = vsel %vm3305_vm5, %v3302_v46, %v3307_v48 }
 0x569   :  { %3562 = vmatmul.mubr.msk.f32.vlgmr.msra.gmra.mxu0 %vm224_vm0, %v3308_v51  ;;  %3407 = vst.msk [vmem:[#allocation19] sm:$0xff] %vm224_vm0, %v3308_v51  ;;  %vm3412_vm0 = vcmask 326912  }
 0x629   :  { %v3389_v50 = vpop.f32.mrf.mxu0 }
 0x62a   :  { %v3390_v52 = vadd.f32 %v3441_v47, %v3389_v50 }
 0x62b   :  { %v3563_v37 = vpop.f32.mrf.mxu0 }
 0x62c   :  { %v3394_v8 = vsel %vm3393_vm6, %v3390_v52, -inf }
 0x62d   :  { %3395 = vmax.xlane.f32.xlu0 %v3394_v8 }
 0x6b6   :  { %v3396_v53 = vpop.xlane.xlu0 %3395 }
 0x6b7   :  { %v3397_v29 = vsub.f32 %v3390_v52, %v3396_v53 }
 0x6b9   :  { %v3398_v54 = vmul.f32 1.442695, %v3397_v29 }
 0x6bb   :  { %3580 = vpow2.f32 %v3398_v54 }
 0x6c8   :  { %v3581_v55 = vpop.eup %3580 }
 0x6c9   :  { %v3400_v56 = vsel %vm3393_vm6, %v3581_v55, 0.0 }
 0x6ca   :  { %3401 = vadd.xlane.f32.xlu0 %v3400_v56 }
 0x753   :  { %v3402_v57 = vpop.xlane.xlu0 %3401 }
 0x754   :  { %3582 = vlog2.f32 %v3402_v57 }
 0x761   :  { %v3583_v38 = vpop.eup %3582 }
 0x762   :  { %v3404_v41 = vmul.f32 0.6931472, %v3583_v38 }
 0x764   :  { %v3405_v58 = vsub.f32 %v3397_v29, %v3404_v41 }
 0x766   :  { %3409 = vrot.lane.b32.xlu1 %v3405_v58, %s3822_s10 }
 0x7d8   :  { %v3410_v26 = vpop.permute.xlu1 %3409 }
 0x7d9   :  { %3413 = vst.msk [vmem:[#allocation19] sm:$0xff] %vm3412_vm0, %v3410_v26 }
 0x7da   :  { %3785 = shalt.err (!%p3782_p7)
}
 0x7db   :  { %3423 = dma.vmem_to_hbm [thread:$0]  %s3421_s14, 128, %s4398_s12, [#allocation4]  }
 0x7dc   :  { %3806 = dma.done.wait [#allocation4], 128  }
 0x7dd   :  { %3807 = vsyncadd [#allocation4], 4294967168 }
 0x7de   :  { %3427 = vsyncpa [#allocation3], 1 }
 0x7df   :  { %3428 = vsyncpa [#allocation8], 1 }
 0x7e0   :  { %3429 = vsyncpa [#allocation11], 1 }
 0x7e1   :  { %3430 = vsyncpa [#allocation14], 1 }
 0x7e2   :  { %3431 = vsyncpa [#allocation17], 1 }
 0x7e3   :  { %3432 = vsyncpa [#allocation4], 1 }
 0x7e4   :  { %3433 = vsyncpa [#allocation5], 1 }

</bundles_post_ra>
